<compile_context>
chip_gen: v7x
topology: tpu7x:2x2x1
jax: 0.10.0
libtpu: 0.0.40
codegen_flags: <defaults>
</compile_context>

<pallas_src>
import jax
import jax.numpy as jnp
from jax import lax
from jax.experimental import pallas as pl
from jax.experimental.pallas import tpu as pltpu

LRELU_SLOPE = 0.1
SPP_KERNELS = (5, 9, 13)
SPP_PAD = max(SPP_KERNELS) // 2          # 6 (-inf halo needed for the cascade)
VMEM_LIMIT = 48 * 1024 * 1024            # <= v7x's 64 MiB physical VMEM


# ----------------------------------------------------------------------------
# Tile-size helpers (sized so double-buffered blocks stay well under the scoped
# VMEM limit on v5e/v6e/v7x; for the tiny test shapes a single block is used).
# ----------------------------------------------------------------------------
def _pick_hw_tile(hw, cap=1024):
    """Largest HW tile (multiple of 8, dividing hw) up to cap, else full."""
    if hw <= cap:
        return hw
    for t in range(cap - cap % 8, 7, -8):
        if hw % t == 0:
            return t
    return hw


def _pick_row_tile(h, cap=32):
    """Row tile for 3x3 conv (divides H)."""
    if h <= cap:
        return h
    for t in range(cap, 0, -1):
        if h % t == 0:
            return t
    return h


# ----------------------------------------------------------------------------
# Pallas kernels
# ----------------------------------------------------------------------------
def _conv1x1_kernel(x_ref, w_ref, b_ref, o_ref):
    """Fused (folded-BN) 1x1 conv + bias + LeakyReLU(0.1).

    x_ref: (T, Cin) bf16   w_ref: (Cin, Cout) bf16   b_ref: (1, Cout) f32
    o_ref: (T, Cout) bf16
    """
    y = jnp.dot(x_ref[...], w_ref[...], preferred_element_type=jnp.float32)
    y = y + b_ref[...]
    o_ref[...] = jnp.where(y >= 0.0, y, LRELU_SLOPE * y).astype(o_ref.dtype)


def _conv3x3_kernel(x_ref, w_ref, b_ref, o_ref, pad_ref):
    """3x3 / pad=1 conv + bias + LeakyReLU as 9 accumulated shifted matmuls.

    x_ref:   (H, W, Cin) bf16  (full image, VMEM-resident across row tiles)
    w_ref:   (9, Cin, Cout) bf16   b_ref: (1, Cout) f32
    o_ref:   (TH, W, Cout) bf16    (row tile of the output)
    pad_ref: (TH+2, W+2, Cin) f32  zero-padded halo'd tile (built in VMEM).
    """
    H, W, cin = x_ref.shape
    TH, _, cout = o_ref.shape
    t = pl.program_id(1)
    nt = pl.num_programs(1)
    row0 = t * TH

    # Build the zero-padded (TH+2, W+2) tile in VMEM (no HBM pad traffic).
    pad_ref[...] = jnp.zeros(pad_ref.shape, pad_ref.dtype)
    pad_ref[pl.ds(1, TH), pl.ds(1, W), :] = (
        x_ref[pl.ds(row0, TH), :, :].astype(jnp.float32))

    @pl.when(t > 0)
    def _():
        top = jnp.maximum(row0 - 1, 0)
        pad_ref[pl.ds(0, 1), pl.ds(1, W), :] = (
            x_ref[pl.ds(top, 1), :, :].astype(jnp.float32))

    @pl.when(t < nt - 1)
    def _():
        bot = jnp.minimum(row0 + TH, H - 1)
        pad_ref[pl.ds(TH + 1, 1), pl.ds(1, W), :] = (
            x_ref[pl.ds(bot, 1), :, :].astype(jnp.float32))

    acc = jnp.zeros((TH * W, cout), jnp.float32)
    for k in range(9):
        dy, dx = divmod(k, 3)
        patch = pad_ref[dy:dy + TH, dx:dx + W, :].astype(jnp.bfloat16)
        acc = acc + jnp.dot(patch.reshape(TH * W, cin), w_ref[k],
                            preferred_element_type=jnp.float32)
    y = acc + b_ref[...]
    y = jnp.where(y >= 0.0, y, LRELU_SLOPE * y)
    o_ref[...] = y.reshape(TH, W, cout).astype(o_ref.dtype)


def _spp_fused_kernel(x_ref, w1_ref, b1_ref, w2_ref, b2_ref, o_ref, tpad_ref):
    """Fused SPP: cv1 1x1 -> SPPF cascade maxpool(5/9/13) -> cv2 1x1.

    x_ref:    (H, W, c1) bf16
    w1_ref:   (c1, c_) bf16        b1_ref: (1, c_) f32
    w2_ref:   (4, c_, cout) bf16   b2_ref: (1, cout) f32
    o_ref:    (H, W, cout) bf16
    tpad_ref: (H+12, W+12, c_) f32 scratch, -inf padded (PyTorch maxpool pad).
    """
    H, W, c1 = x_ref.shape
    c_ = w1_ref.shape[1]
    cout = o_ref.shape[2]
    P = SPP_PAD

    # cv1: 1x1 conv + folded BN + LeakyReLU; rounded to bf16 (layer boundary).
    t = jnp.dot(x_ref[...].reshape(H * W, c1), w1_ref[...],
                preferred_element_type=jnp.float32)
    t = t + b1_ref[...]
    t = jnp.where(t >= 0.0, t, LRELU_SLOPE * t)
    t16 = t.astype(jnp.bfloat16)                      # identity branch (HW, c_)

    # -inf padding done in VMEM (channels-last: C on lanes, W on sublanes).
    tpad_ref[...] = jnp.full(tpad_ref.shape, -jnp.inf, tpad_ref.dtype)
    tpad_ref[P:P + H, P:P + W, :] = t16.astype(jnp.float32).reshape(H, W, c_)

    def _mp5(a):  # separable 5x5 stride-1 max, 'valid' on the padded domain
        hh, ww = a.shape[0], a.shape[1]
        wmax = a[:, 0:ww - 4, :]
        for dx in range(1, 5):
            wmax = jnp.maximum(wmax, a[:, dx:dx + ww - 4, :])
        out = wmax[0:hh - 4]
        for dy in range(1, 5):
            out = jnp.maximum(out, wmax[dy:dy + hh - 4])
        return out

    # SPPF cascade: mp9 = mp5(mp5), mp13 = mp5(mp5(mp5)) (identical results).
    p5 = _mp5(tpad_ref[...])      # (H+8,  W+8,  c_)
    p9 = _mp5(p5)                 # (H+4,  W+4,  c_)
    p13 = _mp5(p9)                # (H,    W,    c_)
    b5 = p5[4:4 + H, 4:4 + W, :].reshape(H * W, c_).astype(jnp.bfloat16)
    b9 = p9[2:2 + H, 2:2 + W, :].reshape(H * W, c_).astype(jnp.bfloat16)
    b13 = p13.reshape(H * W, c_).astype(jnp.bfloat16)

    # cv2: 1x1 conv over the (virtual) concat, as 4 accumulated K-block GEMMs.
    acc = jnp.dot(t16, w2_ref[0], preferred_element_type=jnp.float32)
    acc = acc + jnp.dot(b5, w2_ref[1], preferred_element_type=jnp.float32)
    acc = acc + jnp.dot(b9, w2_ref[2], preferred_element_type=jnp.float32)
    acc = acc + jnp.dot(b13, w2_ref[3], preferred_element_type=jnp.float32)
    y = acc + b2_ref[...]
    y = jnp.where(y >= 0.0, y, LRELU_SLOPE * y)
    o_ref[...] = y.reshape(H, W, cout).astype(o_ref.dtype)


# ----------------------------------------------------------------------------
# Wrappers around pallas_call (activations are NHWC bf16 between layers)
# ----------------------------------------------------------------------------
def conv1x1(x, w, b):
    """x: (N, H, W, Cin) bf16, w: (Cin, Cout) bf16, b: (Cout,) f32."""
    N, H, W, Cin = x.shape
    Cout = w.shape[1]
    HW = H * W
    T = _pick_hw_tile(HW)
    xf = x.reshape(N, HW, Cin)                       # free reshape (NHWC slab)
    out = pl.pallas_call(
        _conv1x1_kernel,
        out_shape=jax.ShapeDtypeStruct((N, HW, Cout), jnp.bfloat16),
        grid=(N, HW // T),
        in_specs=[
            pl.BlockSpec((None, T, Cin), lambda n, t: (n, t, 0)),
            pl.BlockSpec((Cin, Cout), lambda n, t: (0, 0)),
            pl.BlockSpec((1, Cout), lambda n, t: (0, 0)),
        ],
        out_specs=pl.BlockSpec((None, T, Cout), lambda n, t: (n, t, 0)),
        compiler_params=pltpu.CompilerParams(
            dimension_semantics=("parallel", "parallel"),
            vmem_limit_bytes=VMEM_LIMIT),
    )(xf, w, b.reshape(1, Cout))
    return out.reshape(N, H, W, Cout)


def conv3x3(x, w9, b):
    """x: (N, H, W, Cin) bf16, w9: (9, Cin, Cout) bf16, b: (Cout,) f32."""
    N, H, W, Cin = x.shape
    Cout = w9.shape[2]
    TH = _pick_row_tile(H)
    return pl.pallas_call(
        _conv3x3_kernel,
        out_shape=jax.ShapeDtypeStruct((N, H, W, Cout), jnp.bfloat16),
        grid=(N, H // TH),
        in_specs=[
            pl.BlockSpec((None, H, W, Cin), lambda n, t: (n, 0, 0, 0)),
            pl.BlockSpec((9, Cin, Cout), lambda n, t: (0, 0, 0)),
            pl.BlockSpec((1, Cout), lambda n, t: (0, 0)),
        ],
        out_specs=pl.BlockSpec((None, TH, W, Cout), lambda n, t: (n, t, 0, 0)),
        scratch_shapes=[pltpu.VMEM((TH + 2, W + 2, Cin), jnp.float32)],
        compiler_params=pltpu.CompilerParams(
            dimension_semantics=("parallel", "parallel"),
            vmem_limit_bytes=VMEM_LIMIT),
    )(x, w9, b.reshape(1, Cout))


def spp_fused(x, w1, b1, w2, b2):
    """Fused SPP (cv1 + pooling cascade + cv2). x: (N, H, W, c1) bf16."""
    N, H, W, C1 = x.shape
    Cmid = w1.shape[1]
    Cout = w2.shape[2]
    Hp, Wp = H + 2 * SPP_PAD, W + 2 * SPP_PAD
    return pl.pallas_call(
        _spp_fused_kernel,
        out_shape=jax.ShapeDtypeStruct((N, H, W, Cout), jnp.bfloat16),
        grid=(N,),
        in_specs=[
            pl.BlockSpec((None, H, W, C1), lambda n: (n, 0, 0, 0)),
            pl.BlockSpec((C1, Cmid), lambda n: (0, 0)),
            pl.BlockSpec((1, Cmid), lambda n: (0, 0)),
            pl.BlockSpec((4, Cmid, Cout), lambda n: (0, 0, 0)),
            pl.BlockSpec((1, Cout), lambda n: (0, 0)),
        ],
        out_specs=pl.BlockSpec((None, H, W, Cout), lambda n: (n, 0, 0, 0)),
        scratch_shapes=[pltpu.VMEM((Hp, Wp, Cmid), jnp.float32)],
        compiler_params=pltpu.CompilerParams(
            dimension_semantics=("parallel",),
            vmem_limit_bytes=VMEM_LIMIT),
    )(x, w1, b1.reshape(1, Cmid), w2, b2.reshape(1, Cout))


# ----------------------------------------------------------------------------
# Parameters (deterministic init, BatchNorm folded into conv scale/bias)
# ----------------------------------------------------------------------------
def make_conv_params(key, cin, cout, k):
    kw, kg, kb, km, kv = jax.random.split(key, 5)
    w = jax.random.normal(kw, (cout, cin, k, k), jnp.float32) * (2.0 / (cin * k * k)) ** 0.5
    gamma = 1.0 + 0.1 * jax.random.normal(kg, (cout,), jnp.float32)
    beta = 0.1 * jax.random.normal(kb, (cout,), jnp.float32)
    mean = 0.1 * jax.random.normal(km, (cout,), jnp.float32)
    var = 1.0 + jnp.abs(jax.random.normal(kv, (cout,), jnp.float32))
    scale = gamma / jnp.sqrt(var + 1e-5)
    return w * scale[:, None, None, None], beta - mean * scale


def make_sppblock_params(key, c1, c2, e=0.5):
    c_half = c1 // 2
    c_ = int(c1 * e)
    ks = jax.random.split(key, 6)
    return {
        "m0": make_conv_params(ks[0], c1, c_half, 1),
        "m1": make_conv_params(ks[1], c_half, c1, 3),
        "spp_cv1": make_conv_params(ks[2], c1, c_, 1),
        "spp_cv2": make_conv_params(ks[3], c_ * 4, c_half, 1),
        "m3": make_conv_params(ks[4], c_half, c1, 3),
        "m4": make_conv_params(ks[5], c1, c2, 1),
    }


def _prep_1x1(w, b):
    cout, cin = w.shape[0], w.shape[1]
    return w.reshape(cout, cin).T.astype(jnp.bfloat16), b


def _prep_3x3(w, b):
    cout, cin = w.shape[0], w.shape[1]
    w9 = jnp.transpose(w, (2, 3, 1, 0)).reshape(9, cin, cout).astype(jnp.bfloat16)
    return w9, b


def _prep_spp_cv2(w, b, cmid):
    cout = w.shape[0]
    w4 = jnp.transpose(w.reshape(cout, 4, cmid), (1, 2, 0)).astype(jnp.bfloat16)
    return w4, b


def prep_kernel_params(raw):
    cmid = raw["spp_cv1"][0].shape[0]
    return {
        "m0": _prep_1x1(*raw["m0"]),
        "m1": _prep_3x3(*raw["m1"]),
        "spp_cv1": _prep_1x1(*raw["spp_cv1"]),
        "spp_cv2": _prep_spp_cv2(*raw["spp_cv2"], cmid),
        "m3": _prep_3x3(*raw["m3"]),
        "m4": _prep_1x1(*raw["m4"]),
    }


def spp_block_forward(x_nchw, kp):
    # TODO(synk): the NCHW<->NHWC boundary transposes are plain-JAX layout glue
    # (a real pipeline would already carry NHWC activations end to end).
    x = jnp.transpose(x_nchw, (0, 2, 3, 1)).astype(jnp.bfloat16)
    x = conv1x1(x, *kp["m0"])
    x = conv3x3(x, *kp["m1"])
    x = spp_fused(x, *kp["spp_cv1"], *kp["spp_cv2"])
    x = conv3x3(x, *kp["m3"])
    x = conv1x1(x, *kp["m4"])
    return jnp.transpose(x, (0, 3, 1, 2)).astype(jnp.float32)


# ----------------------------------------------------------------------------
# Pure-JAX reference (verification only; emulates the bf16 rounding points of
# the kernel path: bf16 weights and bf16 inter-layer activations, f32 compute)
# ----------------------------------------------------------------------------
def _bf16r(x):
    return x.astype(jnp.bfloat16).astype(jnp.float32)


def _ref_conv(x, w, b, pad):
    y = lax.conv_general_dilated(
        _bf16r(x), _bf16r(w), (1, 1), ((pad, pad), (pad, pad)),
        dimension_numbers=("NCHW", "OIHW", "NCHW"),
        precision=lax.Precision.HIGHEST)
    y = y + b[None, :, None, None]
    y = jnp.where(y >= 0.0, y, LRELU_SLOPE * y)
    return _bf16r(y)


def _ref_pool(x, k):
    p = k // 2
    return lax.reduce_window(x, -jnp.inf, lax.max, (1, 1, k, k), (1, 1, 1, 1),
                             [(0, 0), (0, 0), (p, p), (p, p)])


def ref_forward(x, raw):
    x = _ref_conv(x, *raw["m0"], 0)
    x = _ref_conv(x, *raw["m1"], 1)
    x = _ref_conv(x, *raw["spp_cv1"], 0)
    x = jnp.concatenate([x] + [_ref_pool(x, k) for k in SPP_KERNELS], axis=1)
    x = _ref_conv(x, *raw["spp_cv2"], 0)
    x = _ref_conv(x, *raw["m3"], 1)
    x = _ref_conv(x, *raw["m4"], 0)
    return x


if __name__ == "__main__":
    key = jax.random.PRNGKey(0)
    kx, kparam = jax.random.split(key)

    N, C1, C2, H, W = 2, 8, 8, 16, 16
    x = jax.random.normal(kx, (N, C1, H, W), jnp.float32)   # NCHW, like PyTorch
    raw = make_sppblock_params(kparam, C1, C2)
    kparams = prep_kernel_params(raw)

    fwd = jax.jit(spp_block_forward)
    out = jax.block_until_ready(fwd(x, kparams))
    assert out.shape == (N, C2, H, W), out.shape
    assert out.dtype == jnp.float32
    assert bool(jnp.all(jnp.isfinite(out)))

    ref = jax.block_until_ready(ref_forward(x, raw))
    err = float(jnp.max(jnp.abs(out - ref)))
    scale = float(jnp.max(jnp.abs(ref)))
    # Tolerance sized for the bf16-MXU path: accumulation-order differences can
    # flip an occasional bf16 ULP at layer boundaries (~0.4% relative).  The
    # all-f32 variant of this check passes at ~1e-5.
    assert err <= 1e-2 * scale + 1e-3, f"max abs err {err} (ref scale {scale})"

    print("KERNEL_OK")
</pallas_src>

<mosaic_0001>
module attributes {stable_mosaic.version = 11 : i64} {
  func.func @_conv1x1_kernel(%arg0: i32, %arg1: i32, %arg2: memref<1x256x8xbf16, #tpu.memory_space<vmem>>, %arg3: memref<8x4xbf16, #tpu.memory_space<vmem>>, %arg4: memref<1x4xf32, #tpu.memory_space<vmem>>, %arg5: memref<1x256x4xbf16, #tpu.memory_space<vmem>>) attributes {dimension_semantics = [#tpu.dimension_semantics<parallel>, #tpu.dimension_semantics<parallel>], iteration_bounds = array<i64: 2, 1>, scalar_prefetch = 0 : i64, scratch_operands = 0 : i64, tpu.core_type = #tpu.core_type<tc>, window_params = [{transform_indices = @transform_0, window_bounds = array<i64: 1, 256, 8>}, {pipeline_mode = #tpu.pipeline_mode<synchronous>, transform_indices = @transform_1, window_bounds = array<i64: 8, 4>}, {pipeline_mode = #tpu.pipeline_mode<synchronous>, transform_indices = @transform_2, window_bounds = array<i64: 1, 4>}, {transform_indices = @transform_3, window_bounds = array<i64: 1, 256, 4>}]} {
    %c0 = arith.constant 0 : index
    %c0_0 = arith.constant 0 : index
    %c0_1 = arith.constant 0 : index
    %0 = vector.load %arg2[%c0, %c0_0, %c0_1] : memref<1x256x8xbf16, #tpu.memory_space<vmem>>, vector<1x256x8xbf16>
    %1 = vector.shape_cast %0 : vector<1x256x8xbf16> to vector<256x8xbf16>
    %c0_2 = arith.constant 0 : index
    %c0_3 = arith.constant 0 : index
    %2 = vector.load %arg3[%c0_2, %c0_3] : memref<8x4xbf16, #tpu.memory_space<vmem>>, vector<8x4xbf16>
    %cst = arith.constant dense<0.000000e+00> : vector<256x4xf32>
    %3 = tpu.matmul %1, %2, %cst {dimension_numbers = #tpu.dot_dimension_numbers<[1], [0], [0], [1], [0, 0, 1, 1], [], []>} : vector<256x8xbf16>, vector<8x4xbf16>, vector<256x4xf32> -> vector<256x4xf32>
    %c0_4 = arith.constant 0 : index
    %c0_5 = arith.constant 0 : index
    %4 = vector.load %arg4[%c0_4, %c0_5] : memref<1x4xf32, #tpu.memory_space<vmem>>, vector<1x4xf32>
    %5 = vector.broadcast %4 : vector<1x4xf32> to vector<256x4xf32>
    %6 = arith.addf %3, %5 : vector<256x4xf32>
    %cst_6 = arith.constant 0.000000e+00 : f32
    %7 = vector.broadcast %cst_6 : f32 to vector<256x4xf32>
    %8 = arith.cmpf oge, %6, %7 : vector<256x4xf32>
    %cst_7 = arith.constant 1.000000e-01 : f32
    %9 = vector.broadcast %cst_7 : f32 to vector<256x4xf32>
    %10 = arith.mulf %9, %6 : vector<256x4xf32>
    %11 = arith.select %8, %6, %10 : vector<256x4xi1>, vector<256x4xf32>
    %12 = arith.truncf %11 : vector<256x4xf32> to vector<256x4xbf16>
    %c0_8 = arith.constant 0 : index
    %c0_9 = arith.constant 0 : index
    %c0_10 = arith.constant 0 : index
    %13 = vector.load %arg5[%c0_8, %c0_9, %c0_10] : memref<1x256x4xbf16, #tpu.memory_space<vmem>>, vector<1x256x4xbf16>
    %14 = vector.shape_cast %13 : vector<1x256x4xbf16> to vector<256x4xbf16>
    %15 = vector.shape_cast %12 : vector<256x4xbf16> to vector<1x256x4xbf16>
    tpu.vector_store %arg5[%c0_8, %c0_9, %c0_10], %15 {strides = array<i32>} : memref<1x256x4xbf16, #tpu.memory_space<vmem>>, vector<1x256x4xbf16>,
    return
  }
  func.func @transform_0(%arg0: i32, %arg1: i32) -> (i32, i32, i32) {
    %c0_i32 = arith.constant 0 : i32
    %c0_i32_0 = arith.constant 0 : i32
    return %arg0, %arg1, %c0_i32 : i32, i32, i32
  }
  func.func @transform_1(%arg0: i32, %arg1: i32) -> (i32, i32) {
    %c0_i32 = arith.constant 0 : i32
    %c0_i32_0 = arith.constant 0 : i32
    %c0_i32_1 = arith.constant 0 : i32
    return %c0_i32, %c0_i32_0 : i32, i32
  }
  func.func @transform_2(%arg0: i32, %arg1: i32) -> (i32, i32) {
    %c0_i32 = arith.constant 0 : i32
    %c0_i32_0 = arith.constant 0 : i32
    %c0_i32_1 = arith.constant 0 : i32
    return %c0_i32, %c0_i32_0 : i32, i32
  }
  func.func @transform_3(%arg0: i32, %arg1: i32) -> (i32, i32, i32) {
    %c0_i32 = arith.constant 0 : i32
    %c0_i32_0 = arith.constant 0 : i32
    return %arg0, %arg1, %c0_i32 : i32, i32, i32
  }
}

module attributes {stable_mosaic.version = 11 : i64} {
  func.func @_spp_fused_kernel(%arg0: i32, %arg1: memref<1x16x16x8xbf16, #tpu.memory_space<vmem>>, %arg2: memref<8x4xbf16, #tpu.memory_space<vmem>>, %arg3: memref<1x4xf32, #tpu.memory_space<vmem>>, %arg4: memref<4x4x4xbf16, #tpu.memory_space<vmem>>, %arg5: memref<1x4xf32, #tpu.memory_space<vmem>>, %arg6: memref<1x16x16x4xbf16, #tpu.memory_space<vmem>>, %arg7: memref<28x28x4xf32, #tpu.memory_space<vmem>>) attributes {dimension_semantics = [#tpu.dimension_semantics<parallel>], iteration_bounds = array<i64: 2>, scalar_prefetch = 0 : i64, scratch_operands = 1 : i64, tpu.core_type = #tpu.core_type<tc>, window_params = [{transform_indices = @transform_0, window_bounds = array<i64: 1, 16, 16, 8>}, {pipeline_mode = #tpu.pipeline_mode<synchronous>, transform_indices = @transform_1, window_bounds = array<i64: 8, 4>}, {pipeline_mode = #tpu.pipeline_mode<synchronous>, transform_indices = @transform_2, window_bounds = array<i64: 1, 4>}, {pipeline_mode = #tpu.pipeline_mode<synchronous>, transform_indices = @transform_3, window_bounds = array<i64: 4, 4, 4>}, {pipeline_mode = #tpu.pipeline_mode<synchronous>, transform_indices = @transform_4, window_bounds = array<i64: 1, 4>}, {transform_indices = @transform_5, window_bounds = array<i64: 1, 16, 16, 4>}]} {
    %c0 = arith.constant 0 : index
    %c0_0 = arith.constant 0 : index
    %c0_1 = arith.constant 0 : index
    %c0_2 = arith.constant 0 : index
    %0 = vector.load %arg1[%c0, %c0_0, %c0_1, %c0_2] : memref<1x16x16x8xbf16, #tpu.memory_space<vmem>>, vector<1x16x16x8xbf16>
    %1 = vector.shape_cast %0 : vector<1x16x16x8xbf16> to vector<16x16x8xbf16>
    %2 = vector.shape_cast %1 : vector<16x16x8xbf16> to vector<256x8xbf16>
    %c0_3 = arith.constant 0 : index
    %c0_4 = arith.constant 0 : index
    %3 = vector.load %arg2[%c0_3, %c0_4] : memref<8x4xbf16, #tpu.memory_space<vmem>>, vector<8x4xbf16>
    %cst = arith.constant dense<0.000000e+00> : vector<256x4xf32>
    %4 = tpu.matmul %2, %3, %cst {dimension_numbers = #tpu.dot_dimension_numbers<[1], [0], [0], [1], [0, 0, 1, 1], [], []>} : vector<256x8xbf16>, vector<8x4xbf16>, vector<256x4xf32> -> vector<256x4xf32>
    %c0_5 = arith.constant 0 : index
    %c0_6 = arith.constant 0 : index
    %5 = vector.load %arg3[%c0_5, %c0_6] : memref<1x4xf32, #tpu.memory_space<vmem>>, vector<1x4xf32>
    %6 = vector.broadcast %5 : vector<1x4xf32> to vector<256x4xf32>
    %7 = arith.addf %4, %6 : vector<256x4xf32>
    %cst_7 = arith.constant 0.000000e+00 : f32
    %8 = vector.broadcast %cst_7 : f32 to vector<256x4xf32>
    %9 = arith.cmpf oge, %7, %8 : vector<256x4xf32>
    %cst_8 = arith.constant 1.000000e-01 : f32
    %10 = vector.broadcast %cst_8 : f32 to vector<256x4xf32>
    %11 = arith.mulf %10, %7 : vector<256x4xf32>
    %12 = arith.select %9, %7, %11 : vector<256x4xi1>, vector<256x4xf32>
    %13 = arith.truncf %12 : vector<256x4xf32> to vector<256x4xbf16>
    %cst_9 = arith.constant 0xFF800000 : f32
    %14 = vector.broadcast %cst_9 : f32 to vector<28x28x4xf32>
    %c0_10 = arith.constant 0 : index
    %c0_11 = arith.constant 0 : index
    %c0_12 = arith.constant 0 : index
    %15 = vector.load %arg7[%c0_10, %c0_11, %c0_12] : memref<28x28x4xf32, #tpu.memory_space<vmem>>, vector<28x28x4xf32>
    tpu.vector_store %arg7[%c0_10, %c0_11, %c0_12], %14 {strides = array<i32>} : memref<28x28x4xf32, #tpu.memory_space<vmem>>, vector<28x28x4xf32>,
    %16 = arith.extf %13 : vector<256x4xbf16> to vector<256x4xf32>
    %17 = vector.shape_cast %16 : vector<256x4xf32> to vector<16x16x4xf32>
    %c6 = arith.constant 6 : index
    %c6_13 = arith.constant 6 : index
    %c0_14 = arith.constant 0 : index
    %18 = vector.load %arg7[%c6, %c6_13, %c0_14] : memref<28x28x4xf32, #tpu.memory_space<vmem>>, vector<16x16x4xf32>
    tpu.vector_store %arg7[%c6, %c6_13, %c0_14], %17 {strides = array<i32>} : memref<28x28x4xf32, #tpu.memory_space<vmem>>, vector<16x16x4xf32>,
    %c0_15 = arith.constant 0 : index
    %c0_16 = arith.constant 0 : index
    %c0_17 = arith.constant 0 : index
    %19 = vector.load %arg7[%c0_15, %c0_16, %c0_17] : memref<28x28x4xf32, #tpu.memory_space<vmem>>, vector<28x28x4xf32>
    %20 = vector.extract_strided_slice %19 {offsets = [0, 0, 0], sizes = [28, 24, 4], strides = [1, 1, 1]} : vector<28x28x4xf32> to vector<28x24x4xf32>
    %21 = vector.extract_strided_slice %19 {offsets = [0, 1, 0], sizes = [28, 24, 4], strides = [1, 1, 1]} : vector<28x28x4xf32> to vector<28x24x4xf32>
    %22 = arith.maximumf %20, %21 : vector<28x24x4xf32>
    %23 = vector.extract_strided_slice %19 {offsets = [0, 2, 0], sizes = [28, 24, 4], strides = [1, 1, 1]} : vector<28x28x4xf32> to vector<28x24x4xf32>
    %24 = arith.maximumf %22, %23 : vector<28x24x4xf32>
    %25 = vector.extract_strided_slice %19 {offsets = [0, 3, 0], sizes = [28, 24, 4], strides = [1, 1, 1]} : vector<28x28x4xf32> to vector<28x24x4xf32>
    %26 = arith.maximumf %24, %25 : vector<28x24x4xf32>
    %27 = vector.extract_strided_slice %19 {offsets = [0, 4, 0], sizes = [28, 24, 4], strides = [1, 1, 1]} : vector<28x28x4xf32> to vector<28x24x4xf32>
    %28 = arith.maximumf %26, %27 : vector<28x24x4xf32>
    %29 = vector.extract_strided_slice %28 {offsets = [0, 0, 0], sizes = [24, 24, 4], strides = [1, 1, 1]} : vector<28x24x4xf32> to vector<24x24x4xf32>
    %30 = vector.extract_strided_slice %28 {offsets = [1, 0, 0], sizes = [24, 24, 4], strides = [1, 1, 1]} : vector<28x24x4xf32> to vector<24x24x4xf32>
    %31 = arith.maximumf %29, %30 : vector<24x24x4xf32>
    %32 = vector.extract_strided_slice %28 {offsets = [2, 0, 0], sizes = [24, 24, 4], strides = [1, 1, 1]} : vector<28x24x4xf32> to vector<24x24x4xf32>
    %33 = arith.maximumf %31, %32 : vector<24x24x4xf32>
    %34 = vector.extract_strided_slice %28 {offsets = [3, 0, 0], sizes = [24, 24, 4], strides = [1, 1, 1]} : vector<28x24x4xf32> to vector<24x24x4xf32>
    %35 = arith.maximumf %33, %34 : vector<24x24x4xf32>
    %36 = vector.extract_strided_slice %28 {offsets = [4, 0, 0], sizes = [24, 24, 4], strides = [1, 1, 1]} : vector<28x24x4xf32> to vector<24x24x4xf32>
    %37 = arith.maximumf %35, %36 : vector<24x24x4xf32>
    %38 = vector.extract_strided_slice %37 {offsets = [0, 0, 0], sizes = [24, 20, 4], strides = [1, 1, 1]} : vector<24x24x4xf32> to vector<24x20x4xf32>
    %39 = vector.extract_strided_slice %37 {offsets = [0, 1, 0], sizes = [24, 20, 4], strides = [1, 1, 1]} : vector<24x24x4xf32> to vector<24x20x4xf32>
    %40 = arith.maximumf %38, %39 : vector<24x20x4xf32>
    %41 = vector.extract_strided_slice %37 {offsets = [0, 2, 0], sizes = [24, 20, 4], strides = [1, 1, 1]} : vector<24x24x4xf32> to vector<24x20x4xf32>
    %42 = arith.maximumf %40, %41 : vector<24x20x4xf32>
    %43 = vector.extract_strided_slice %37 {offsets = [0, 3, 0], sizes = [24, 20, 4], strides = [1, 1, 1]} : vector<24x24x4xf32> to vector<24x20x4xf32>
    %44 = arith.maximumf %42, %43 : vector<24x20x4xf32>
    %45 = vector.extract_strided_slice %37 {offsets = [0, 4, 0], sizes = [24, 20, 4], strides = [1, 1, 1]} : vector<24x24x4xf32> to vector<24x20x4xf32>
    %46 = arith.maximumf %44, %45 : vector<24x20x4xf32>
    %47 = vector.extract_strided_slice %46 {offsets = [0, 0, 0], sizes = [20, 20, 4], strides = [1, 1, 1]} : vector<24x20x4xf32> to vector<20x20x4xf32>
    %48 = vector.extract_strided_slice %46 {offsets = [1, 0, 0], sizes = [20, 20, 4], strides = [1, 1, 1]} : vector<24x20x4xf32> to vector<20x20x4xf32>
    %49 = arith.maximumf %47, %48 : vector<20x20x4xf32>
    %50 = vector.extract_strided_slice %46 {offsets = [2, 0, 0], sizes = [20, 20, 4], strides = [1, 1, 1]} : vector<24x20x4xf32> to vector<20x20x4xf32>
    %51 = arith.maximumf %49, %50 : vector<20x20x4xf32>
    %52 = vector.extract_strided_slice %46 {offsets = [3, 0, 0], sizes = [20, 20, 4], strides = [1, 1, 1]} : vector<24x20x4xf32> to vector<20x20x4xf32>
    %53 = arith.maximumf %51, %52 : vector<20x20x4xf32>
    %54 = vector.extract_strided_slice %46 {offsets = [4, 0, 0], sizes = [20, 20, 4], strides = [1, 1, 1]} : vector<24x20x4xf32> to vector<20x20x4xf32>
    %55 = arith.maximumf %53, %54 : vector<20x20x4xf32>
    %56 = vector.extract_strided_slice %55 {offsets = [0, 0, 0], sizes = [20, 16, 4], strides = [1, 1, 1]} : vector<20x20x4xf32> to vector<20x16x4xf32>
    %57 = vector.extract_strided_slice %55 {offsets = [0, 1, 0], sizes = [20, 16, 4], strides = [1, 1, 1]} : vector<20x20x4xf32> to vector<20x16x4xf32>
    %58 = arith.maximumf %56, %57 : vector<20x16x4xf32>
    %59 = vector.extract_strided_slice %55 {offsets = [0, 2, 0], sizes = [20, 16, 4], strides = [1, 1, 1]} : vector<20x20x4xf32> to vector<20x16x4xf32>
    %60 = arith.maximumf %58, %59 : vector<20x16x4xf32>
    %61 = vector.extract_strided_slice %55 {offsets = [0, 3, 0], sizes = [20, 16, 4], strides = [1, 1, 1]} : vector<20x20x4xf32> to vector<20x16x4xf32>
    %62 = arith.maximumf %60, %61 : vector<20x16x4xf32>
    %63 = vector.extract_strided_slice %55 {offsets = [0, 4, 0], sizes = [20, 16, 4], strides = [1, 1, 1]} : vector<20x20x4xf32> to vector<20x16x4xf32>
    %64 = arith.maximumf %62, %63 : vector<20x16x4xf32>
    %65 = vector.extract_strided_slice %64 {offsets = [0, 0, 0], sizes = [16, 16, 4], strides = [1, 1, 1]} : vector<20x16x4xf32> to vector<16x16x4xf32>
    %66 = vector.extract_strided_slice %64 {offsets = [1, 0, 0], sizes = [16, 16, 4], strides = [1, 1, 1]} : vector<20x16x4xf32> to vector<16x16x4xf32>
    %67 = arith.maximumf %65, %66 : vector<16x16x4xf32>
    %68 = vector.extract_strided_slice %64 {offsets = [2, 0, 0], sizes = [16, 16, 4], strides = [1, 1, 1]} : vector<20x16x4xf32> to vector<16x16x4xf32>
    %69 = arith.maximumf %67, %68 : vector<16x16x4xf32>
    %70 = vector.extract_strided_slice %64 {offsets = [3, 0, 0], sizes = [16, 16, 4], strides = [1, 1, 1]} : vector<20x16x4xf32> to vector<16x16x4xf32>
    %71 = arith.maximumf %69, %70 : vector<16x16x4xf32>
    %72 = vector.extract_strided_slice %64 {offsets = [4, 0, 0], sizes = [16, 16, 4], strides = [1, 1, 1]} : vector<20x16x4xf32> to vector<16x16x4xf32>
    %73 = arith.maximumf %71, %72 : vector<16x16x4xf32>
    %74 = vector.extract_strided_slice %37 {offsets = [4, 4, 0], sizes = [16, 16, 4], strides = [1, 1, 1]} : vector<24x24x4xf32> to vector<16x16x4xf32>
    %75 = vector.shape_cast %74 : vector<16x16x4xf32> to vector<256x4xf32>
    %76 = arith.truncf %75 : vector<256x4xf32> to vector<256x4xbf16>
    %77 = vector.extract_strided_slice %55 {offsets = [2, 2, 0], sizes = [16, 16, 4], strides = [1, 1, 1]} : vector<20x20x4xf32> to vector<16x16x4xf32>
    %78 = vector.shape_cast %77 : vector<16x16x4xf32> to vector<256x4xf32>
    %79 = arith.truncf %78 : vector<256x4xf32> to vector<256x4xbf16>
    %80 = vector.shape_cast %73 : vector<16x16x4xf32> to vector<256x4xf32>
    %81 = arith.truncf %80 : vector<256x4xf32> to vector<256x4xbf16>
    %c0_18 = arith.constant 0 : index
    %c0_19 = arith.constant 0 : index
    %c0_20 = arith.constant 0 : index
    %82 = vector.load %arg4[%c0_18, %c0_19, %c0_20] : memref<4x4x4xbf16, #tpu.memory_space<vmem>>, vector<1x4x4xbf16>
    %83 = vector.shape_cast %82 : vector<1x4x4xbf16> to vector<4x4xbf16>
    %cst_21 = arith.constant dense<0.000000e+00> : vector<256x4xf32>
    %84 = tpu.matmul %13, %83, %cst_21 {dimension_numbers = #tpu.dot_dimension_numbers<[1], [0], [0], [1], [0, 0, 1, 1], [], []>} : vector<256x4xbf16>, vector<4x4xbf16>, vector<256x4xf32> -> vector<256x4xf32>
    %c1 = arith.constant 1 : index
    %c0_22 = arith.constant 0 : index
    %c0_23 = arith.constant 0 : index
    %85 = vector.load %arg4[%c1, %c0_22, %c0_23] : memref<4x4x4xbf16, #tpu.memory_space<vmem>>, vector<1x4x4xbf16>
    %86 = vector.shape_cast %85 : vector<1x4x4xbf16> to vector<4x4xbf16>
    %cst_24 = arith.constant dense<0.000000e+00> : vector<256x4xf32>
    %87 = tpu.matmul %76, %86, %cst_24 {dimension_numbers = #tpu.dot_dimension_numbers<[1], [0], [0], [1], [0, 0, 1, 1], [], []>} : vector<256x4xbf16>, vector<4x4xbf16>, vector<256x4xf32> -> vector<256x4xf32>
    %88 = arith.addf %84, %87 : vector<256x4xf32>
    %c2 = arith.constant 2 : index
    %c0_25 = arith.constant 0 : index
    %c0_26 = arith.constant 0 : index
    %89 = vector.load %arg4[%c2, %c0_25, %c0_26] : memref<4x4x4xbf16, #tpu.memory_space<vmem>>, vector<1x4x4xbf16>
    %90 = vector.shape_cast %89 : vector<1x4x4xbf16> to vector<4x4xbf16>
    %cst_27 = arith.constant dense<0.000000e+00> : vector<256x4xf32>
    %91 = tpu.matmul %79, %90, %cst_27 {dimension_numbers = #tpu.dot_dimension_numbers<[1], [0], [0], [1], [0, 0, 1, 1], [], []>} : vector<256x4xbf16>, vector<4x4xbf16>, vector<256x4xf32> -> vector<256x4xf32>
    %92 = arith.addf %88, %91 : vector<256x4xf32>
    %c3 = arith.constant 3 : index
    %c0_28 = arith.constant 0 : index
    %c0_29 = arith.constant 0 : index
    %93 = vector.load %arg4[%c3, %c0_28, %c0_29] : memref<4x4x4xbf16, #tpu.memory_space<vmem>>, vector<1x4x4xbf16>
    %94 = vector.shape_cast %93 : vector<1x4x4xbf16> to vector<4x4xbf16>
    %cst_30 = arith.constant dense<0.000000e+00> : vector<256x4xf32>
    %95 = tpu.matmul %81, %94, %cst_30 {dimension_numbers = #tpu.dot_dimension_numbers<[1], [0], [0], [1], [0, 0, 1, 1], [], []>} : vector<256x4xbf16>, vector<4x4xbf16>, vector<256x4xf32> -> vector<256x4xf32>
    %96 = arith.addf %92, %95 : vector<256x4xf32>
    %c0_31 = arith.constant 0 : index
    %c0_32 = arith.constant 0 : index
    %97 = vector.load %arg5[%c0_31, %c0_32] : memref<1x4xf32, #tpu.memory_space<vmem>>, vector<1x4xf32>
    %98 = vector.broadcast %97 : vector<1x4xf32> to vector<256x4xf32>
    %99 = arith.addf %96, %98 : vector<256x4xf32>
    %cst_33 = arith.constant 0.000000e+00 : f32
    %100 = vector.broadcast %cst_33 : f32 to vector<256x4xf32>
    %101 = arith.cmpf oge, %99, %100 : vector<256x4xf32>
    %cst_34 = arith.constant 1.000000e-01 : f32
    %102 = vector.broadcast %cst_34 : f32 to vector<256x4xf32>
    %103 = arith.mulf %102, %99 : vector<256x4xf32>
    %104 = arith.select %101, %99, %103 : vector<256x4xi1>, vector<256x4xf32>
    %105 = vector.shape_cast %104 : vector<256x4xf32> to vector<16x16x4xf32>
    %106 = arith.truncf %105 : vector<16x16x4xf32> to vector<16x16x4xbf16>
    %c0_35 = arith.constant 0 : index
    %c0_36 = arith.constant 0 : index
    %c0_37 = arith.constant 0 : index
    %c0_38 = arith.constant 0 : index
    %107 = vector.load %arg6[%c0_35, %c0_36, %c0_37, %c0_38] : memref<1x16x16x4xbf16, #tpu.memory_space<vmem>>, vector<1x16x16x4xbf16>
    %108 = vector.shape_cast %107 : vector<1x16x16x4xbf16> to vector<16x16x4xbf16>
    %109 = vector.shape_cast %106 : vector<16x16x4xbf16> to vector<1x16x16x4xbf16>
    tpu.vector_store %arg6[%c0_35, %c0_36, %c0_37, %c0_38], %109 {strides = array<i32>} : memref<1x16x16x4xbf16, #tpu.memory_space<vmem>>, vector<1x16x16x4xbf16>,
    return
  }
  func.func @transform_0(%arg0: i32) -> (i32, i32, i32, i32) {
    %c0_i32 = arith.constant 0 : i32
    %c0_i32_0 = arith.constant 0 : i32
    %c0_i32_1 = arith.constant 0 : i32
    %c0_i32_2 = arith.constant 0 : i32
    return %arg0, %c0_i32, %c0_i32_0, %c0_i32_1 : i32, i32, i32, i32
  }
  func.func @transform_1(%arg0: i32) -> (i32, i32) {
    %c0_i32 = arith.constant 0 : i32
    %c0_i32_0 = arith.constant 0 : i32
    %c0_i32_1 = arith.constant 0 : i32
    return %c0_i32, %c0_i32_0 : i32, i32
  }
  func.func @transform_2(%arg0: i32) -> (i32, i32) {
    %c0_i32 = arith.constant 0 : i32
    %c0_i32_0 = arith.constant 0 : i32
    %c0_i32_1 = arith.constant 0 : i32
    return %c0_i32, %c0_i32_0 : i32, i32
  }
  func.func @transform_3(%arg0: i32) -> (i32, i32, i32) {
    %c0_i32 = arith.constant 0 : i32
    %c0_i32_0 = arith.constant 0 : i32
    %c0_i32_1 = arith.constant 0 : i32
    %c0_i32_2 = arith.constant 0 : i32
    return %c0_i32, %c0_i32_0, %c0_i32_1 : i32, i32, i32
  }
  func.func @transform_4(%arg0: i32) -> (i32, i32) {
    %c0_i32 = arith.constant 0 : i32
    %c0_i32_0 = arith.constant 0 : i32
    %c0_i32_1 = arith.constant 0 : i32
    return %c0_i32, %c0_i32_0 : i32, i32
  }
  func.func @transform_5(%arg0: i32) -> (i32, i32, i32, i32) {
    %c0_i32 = arith.constant 0 : i32
    %c0_i32_0 = arith.constant 0 : i32
    %c0_i32_1 = arith.constant 0 : i32
    %c0_i32_2 = arith.constant 0 : i32
    return %arg0, %c0_i32, %c0_i32_0, %c0_i32_1 : i32, i32, i32, i32
  }
}

module attributes {stable_mosaic.version = 11 : i64} {
  func.func @_conv3x3_kernel(%arg0: i32, %arg1: i32, %arg2: memref<1x16x16x4xbf16, #tpu.memory_space<vmem>>, %arg3: memref<9x4x8xbf16, #tpu.memory_space<vmem>>, %arg4: memref<1x8xf32, #tpu.memory_space<vmem>>, %arg5: memref<1x16x16x8xbf16, #tpu.memory_space<vmem>>, %arg6: memref<18x18x4xf32, #tpu.memory_space<vmem>>) attributes {dimension_semantics = [#tpu.dimension_semantics<parallel>, #tpu.dimension_semantics<parallel>], iteration_bounds = array<i64: 2, 1>, scalar_prefetch = 0 : i64, scratch_operands = 1 : i64, tpu.core_type = #tpu.core_type<tc>, window_params = [{transform_indices = @transform_0, window_bounds = array<i64: 1, 16, 16, 4>}, {pipeline_mode = #tpu.pipeline_mode<synchronous>, transform_indices = @transform_1, window_bounds = array<i64: 9, 4, 8>}, {pipeline_mode = #tpu.pipeline_mode<synchronous>, transform_indices = @transform_2, window_bounds = array<i64: 1, 8>}, {transform_indices = @transform_3, window_bounds = array<i64: 1, 16, 16, 8>}]} {
    %c16_i32 = arith.constant 16 : i32
    %0 = arith.muli %arg1, %c16_i32 : i32
    %cst = arith.constant 0.000000e+00 : f32
    %1 = vector.broadcast %cst : f32 to vector<18x18x4xf32>
    %c0 = arith.constant 0 : index
    %c0_0 = arith.constant 0 : index
    %c0_1 = arith.constant 0 : index
    %2 = vector.load %arg6[%c0, %c0_0, %c0_1] : memref<18x18x4xf32, #tpu.memory_space<vmem>>, vector<18x18x4xf32>
    tpu.vector_store %arg6[%c0, %c0_0, %c0_1], %1 {strides = array<i32>} : memref<18x18x4xf32, #tpu.memory_space<vmem>>, vector<18x18x4xf32>,
    %c0_2 = arith.constant 0 : index
    %3 = arith.index_cast %0 : i32 to index
    %c0_3 = arith.constant 0 : index
    %c0_4 = arith.constant 0 : index
    %4 = vector.load %arg2[%c0_2, %3, %c0_3, %c0_4] : memref<1x16x16x4xbf16, #tpu.memory_space<vmem>>, vector<1x16x16x4xbf16>
    %5 = vector.shape_cast %4 : vector<1x16x16x4xbf16> to vector<16x16x4xbf16>
    %6 = arith.extf %5 : vector<16x16x4xbf16> to vector<16x16x4xf32>
    %c1 = arith.constant 1 : index
    %c1_5 = arith.constant 1 : index
    %c0_6 = arith.constant 0 : index
    %7 = vector.load %arg6[%c1, %c1_5, %c0_6] : memref<18x18x4xf32, #tpu.memory_space<vmem>>, vector<16x16x4xf32>
    tpu.vector_store %arg6[%c1, %c1_5, %c0_6], %6 {strides = array<i32>} : memref<18x18x4xf32, #tpu.memory_space<vmem>>, vector<16x16x4xf32>,
    %c0_i32 = arith.constant 0 : i32
    %8 = arith.cmpi sgt, %arg1, %c0_i32 : i32
    %9 = arith.extui %8 : i1 to i32
    %c0_i32_7 = arith.constant 0 : i32
    %10 = arith.cmpi ne, %9, %c0_i32_7 : i32
    scf.if %10 {
      %c1_i32 = arith.constant 1 : i32
      %91 = arith.subi %0, %c1_i32 : i32
      %c0_i32_75 = arith.constant 0 : i32
      %92 = arith.maxsi %91, %c0_i32_75 : i32
      %c0_76 = arith.constant 0 : index
      %93 = arith.index_cast %92 : i32 to index
      %c0_77 = arith.constant 0 : index
      %c0_78 = arith.constant 0 : index
      %94 = vector.load %arg2[%c0_76, %93, %c0_77, %c0_78] : memref<1x16x16x4xbf16, #tpu.memory_space<vmem>>, vector<1x1x16x4xbf16>
      %95 = vector.shape_cast %94 : vector<1x1x16x4xbf16> to vector<1x16x4xbf16>
      %96 = arith.extf %95 : vector<1x16x4xbf16> to vector<1x16x4xf32>
      %c0_79 = arith.constant 0 : index
      %c1_80 = arith.constant 1 : index
      %c0_81 = arith.constant 0 : index
      %97 = vector.load %arg6[%c0_79, %c1_80, %c0_81] : memref<18x18x4xf32, #tpu.memory_space<vmem>>, vector<1x16x4xf32>
      tpu.vector_store %arg6[%c0_79, %c1_80, %c0_81], %96 {strides = array<i32>} : memref<18x18x4xf32, #tpu.memory_space<vmem>>, vector<1x16x4xf32>,
    } else {
    }
    %c0_i32_8 = arith.constant 0 : i32
    %11 = arith.cmpi slt, %arg1, %c0_i32_8 : i32
    %12 = arith.extui %11 : i1 to i32
    %c0_i32_9 = arith.constant 0 : i32
    %13 = arith.cmpi ne, %12, %c0_i32_9 : i32
    scf.if %13 {
      %c16_i32_75 = arith.constant 16 : i32
      %91 = arith.addi %0, %c16_i32_75 : i32
      %c15_i32 = arith.constant 15 : i32
      %92 = arith.minsi %91, %c15_i32 : i32
      %c0_76 = arith.constant 0 : index
      %93 = arith.index_cast %92 : i32 to index
      %c0_77 = arith.constant 0 : index
      %c0_78 = arith.constant 0 : index
      %94 = vector.load %arg2[%c0_76, %93, %c0_77, %c0_78] : memref<1x16x16x4xbf16, #tpu.memory_space<vmem>>, vector<1x1x16x4xbf16>
      %95 = vector.shape_cast %94 : vector<1x1x16x4xbf16> to vector<1x16x4xbf16>
      %96 = arith.extf %95 : vector<1x16x4xbf16> to vector<1x16x4xf32>
      %c17 = arith.constant 17 : index
      %c1_79 = arith.constant 1 : index
      %c0_80 = arith.constant 0 : index
      %97 = vector.load %arg6[%c17, %c1_79, %c0_80] : memref<18x18x4xf32, #tpu.memory_space<vmem>>, vector<1x16x4xf32>
      tpu.vector_store %arg6[%c17, %c1_79, %c0_80], %96 {strides = array<i32>} : memref<18x18x4xf32, #tpu.memory_space<vmem>>, vector<1x16x4xf32>,
    } else {
    }
    %cst_10 = arith.constant 0.000000e+00 : f32
    %14 = vector.broadcast %cst_10 : f32 to vector<256x8xf32>
    %c0_11 = arith.constant 0 : index
    %c0_12 = arith.constant 0 : index
    %c0_13 = arith.constant 0 : index
    %15 = vector.load %arg6[%c0_11, %c0_12, %c0_13] : memref<18x18x4xf32, #tpu.memory_space<vmem>>, vector<16x16x4xf32>
    %16 = arith.truncf %15 : vector<16x16x4xf32> to vector<16x16x4xbf16>
    %17 = vector.shape_cast %16 : vector<16x16x4xbf16> to vector<256x4xbf16>
    %c0_14 = arith.constant 0 : index
    %c0_15 = arith.constant 0 : index
    %c0_16 = arith.constant 0 : index
    %18 = vector.load %arg3[%c0_14, %c0_15, %c0_16] : memref<9x4x8xbf16, #tpu.memory_space<vmem>>, vector<1x4x8xbf16>
    %19 = vector.shape_cast %18 : vector<1x4x8xbf16> to vector<4x8xbf16>
    %cst_17 = arith.constant dense<0.000000e+00> : vector<256x8xf32>
    %20 = tpu.matmul %17, %19, %cst_17 {dimension_numbers = #tpu.dot_dimension_numbers<[1], [0], [0], [1], [0, 0, 1, 1], [], []>} : vector<256x4xbf16>, vector<4x8xbf16>, vector<256x8xf32> -> vector<256x8xf32>
    %21 = arith.addf %14, %20 : vector<256x8xf32>
    %c0_18 = arith.constant 0 : index
    %c1_19 = arith.constant 1 : index
    %c0_20 = arith.constant 0 : index
    %22 = vector.load %arg6[%c0_18, %c1_19, %c0_20] : memref<18x18x4xf32, #tpu.memory_space<vmem>>, vector<16x16x4xf32>
    %23 = arith.truncf %22 : vector<16x16x4xf32> to vector<16x16x4xbf16>
    %24 = vector.shape_cast %23 : vector<16x16x4xbf16> to vector<256x4xbf16>
    %c1_21 = arith.constant 1 : index
    %c0_22 = arith.constant 0 : index
    %c0_23 = arith.constant 0 : index
    %25 = vector.load %arg3[%c1_21, %c0_22, %c0_23] : memref<9x4x8xbf16, #tpu.memory_space<vmem>>, vector<1x4x8xbf16>
    %26 = vector.shape_cast %25 : vector<1x4x8xbf16> to vector<4x8xbf16>
    %cst_24 = arith.constant dense<0.000000e+00> : vector<256x8xf32>
    %27 = tpu.matmul %24, %26, %cst_24 {dimension_numbers = #tpu.dot_dimension_numbers<[1], [0], [0], [1], [0, 0, 1, 1], [], []>} : vector<256x4xbf16>, vector<4x8xbf16>, vector<256x8xf32> -> vector<256x8xf32>
    %28 = arith.addf %21, %27 : vector<256x8xf32>
    %c0_25 = arith.constant 0 : index
    %c2 = arith.constant 2 : index
    %c0_26 = arith.constant 0 : index
    %29 = vector.load %arg6[%c0_25, %c2, %c0_26] : memref<18x18x4xf32, #tpu.memory_space<vmem>>, vector<16x16x4xf32>
    %30 = arith.truncf %29 : vector<16x16x4xf32> to vector<16x16x4xbf16>
    %31 = vector.shape_cast %30 : vector<16x16x4xbf16> to vector<256x4xbf16>
    %c2_27 = arith.constant 2 : index
    %c0_28 = arith.constant 0 : index
    %c0_29 = arith.constant 0 : index
    %32 = vector.load %arg3[%c2_27, %c0_28, %c0_29] : memref<9x4x8xbf16, #tpu.memory_space<vmem>>, vector<1x4x8xbf16>
    %33 = vector.shape_cast %32 : vector<1x4x8xbf16> to vector<4x8xbf16>
    %cst_30 = arith.constant dense<0.000000e+00> : vector<256x8xf32>
    %34 = tpu.matmul %31, %33, %cst_30 {dimension_numbers = #tpu.dot_dimension_numbers<[1], [0], [0], [1], [0, 0, 1, 1], [], []>} : vector<256x4xbf16>, vector<4x8xbf16>, vector<256x8xf32> -> vector<256x8xf32>
    %35 = arith.addf %28, %34 : vector<256x8xf32>
    %c1_31 = arith.constant 1 : index
    %c0_32 = arith.constant 0 : index
    %c0_33 = arith.constant 0 : index
    %36 = vector.load %arg6[%c1_31, %c0_32, %c0_33] : memref<18x18x4xf32, #tpu.memory_space<vmem>>, vector<16x16x4xf32>
    %37 = arith.truncf %36 : vector<16x16x4xf32> to vector<16x16x4xbf16>
    %38 = vector.shape_cast %37 : vector<16x16x4xbf16> to vector<256x4xbf16>
    %c3 = arith.constant 3 : index
    %c0_34 = arith.constant 0 : index
    %c0_35 = arith.constant 0 : index
    %39 = vector.load %arg3[%c3, %c0_34, %c0_35] : memref<9x4x8xbf16, #tpu.memory_space<vmem>>, vector<1x4x8xbf16>
    %40 = vector.shape_cast %39 : vector<1x4x8xbf16> to vector<4x8xbf16>
    %cst_36 = arith.constant dense<0.000000e+00> : vector<256x8xf32>
    %41 = tpu.matmul %38, %40, %cst_36 {dimension_numbers = #tpu.dot_dimension_numbers<[1], [0], [0], [1], [0, 0, 1, 1], [], []>} : vector<256x4xbf16>, vector<4x8xbf16>, vector<256x8xf32> -> vector<256x8xf32>
    %42 = arith.addf %35, %41 : vector<256x8xf32>
    %c1_37 = arith.constant 1 : index
    %c1_38 = arith.constant 1 : index
    %c0_39 = arith.constant 0 : index
    %43 = vector.load %arg6[%c1_37, %c1_38, %c0_39] : memref<18x18x4xf32, #tpu.memory_space<vmem>>, vector<16x16x4xf32>
    %44 = arith.truncf %43 : vector<16x16x4xf32> to vector<16x16x4xbf16>
    %45 = vector.shape_cast %44 : vector<16x16x4xbf16> to vector<256x4xbf16>
    %c4 = arith.constant 4 : index
    %c0_40 = arith.constant 0 : index
    %c0_41 = arith.constant 0 : index
    %46 = vector.load %arg3[%c4, %c0_40, %c0_41] : memref<9x4x8xbf16, #tpu.memory_space<vmem>>, vector<1x4x8xbf16>
    %47 = vector.shape_cast %46 : vector<1x4x8xbf16> to vector<4x8xbf16>
    %cst_42 = arith.constant dense<0.000000e+00> : vector<256x8xf32>
    %48 = tpu.matmul %45, %47, %cst_42 {dimension_numbers = #tpu.dot_dimension_numbers<[1], [0], [0], [1], [0, 0, 1, 1], [], []>} : vector<256x4xbf16>, vector<4x8xbf16>, vector<256x8xf32> -> vector<256x8xf32>
    %49 = arith.addf %42, %48 : vector<256x8xf32>
    %c1_43 = arith.constant 1 : index
    %c2_44 = arith.constant 2 : index
    %c0_45 = arith.constant 0 : index
    %50 = vector.load %arg6[%c1_43, %c2_44, %c0_45] : memref<18x18x4xf32, #tpu.memory_space<vmem>>, vector<16x16x4xf32>
    %51 = arith.truncf %50 : vector<16x16x4xf32> to vector<16x16x4xbf16>
    %52 = vector.shape_cast %51 : vector<16x16x4xbf16> to vector<256x4xbf16>
    %c5 = arith.constant 5 : index
    %c0_46 = arith.constant 0 : index
    %c0_47 = arith.constant 0 : index
    %53 = vector.load %arg3[%c5, %c0_46, %c0_47] : memref<9x4x8xbf16, #tpu.memory_space<vmem>>, vector<1x4x8xbf16>
    %54 = vector.shape_cast %53 : vector<1x4x8xbf16> to vector<4x8xbf16>
    %cst_48 = arith.constant dense<0.000000e+00> : vector<256x8xf32>
    %55 = tpu.matmul %52, %54, %cst_48 {dimension_numbers = #tpu.dot_dimension_numbers<[1], [0], [0], [1], [0, 0, 1, 1], [], []>} : vector<256x4xbf16>, vector<4x8xbf16>, vector<256x8xf32> -> vector<256x8xf32>
    %56 = arith.addf %49, %55 : vector<256x8xf32>
    %c2_49 = arith.constant 2 : index
    %c0_50 = arith.constant 0 : index
    %c0_51 = arith.constant 0 : index
    %57 = vector.load %arg6[%c2_49, %c0_50, %c0_51] : memref<18x18x4xf32, #tpu.memory_space<vmem>>, vector<16x16x4xf32>
    %58 = arith.truncf %57 : vector<16x16x4xf32> to vector<16x16x4xbf16>
    %59 = vector.shape_cast %58 : vector<16x16x4xbf16> to vector<256x4xbf16>
    %c6 = arith.constant 6 : index
    %c0_52 = arith.constant 0 : index
    %c0_53 = arith.constant 0 : index
    %60 = vector.load %arg3[%c6, %c0_52, %c0_53] : memref<9x4x8xbf16, #tpu.memory_space<vmem>>, vector<1x4x8xbf16>
    %61 = vector.shape_cast %60 : vector<1x4x8xbf16> to vector<4x8xbf16>
    %cst_54 = arith.constant dense<0.000000e+00> : vector<256x8xf32>
    %62 = tpu.matmul %59, %61, %cst_54 {dimension_numbers = #tpu.dot_dimension_numbers<[1], [0], [0], [1], [0, 0, 1, 1], [], []>} : vector<256x4xbf16>, vector<4x8xbf16>, vector<256x8xf32> -> vector<256x8xf32>
    %63 = arith.addf %56, %62 : vector<256x8xf32>
    %c2_55 = arith.constant 2 : index
    %c1_56 = arith.constant 1 : index
    %c0_57 = arith.constant 0 : index
    %64 = vector.load %arg6[%c2_55, %c1_56, %c0_57] : memref<18x18x4xf32, #tpu.memory_space<vmem>>, vector<16x16x4xf32>
    %65 = arith.truncf %64 : vector<16x16x4xf32> to vector<16x16x4xbf16>
    %66 = vector.shape_cast %65 : vector<16x16x4xbf16> to vector<256x4xbf16>
    %c7 = arith.constant 7 : index
    %c0_58 = arith.constant 0 : index
    %c0_59 = arith.constant 0 : index
    %67 = vector.load %arg3[%c7, %c0_58, %c0_59] : memref<9x4x8xbf16, #tpu.memory_space<vmem>>, vector<1x4x8xbf16>
    %68 = vector.shape_cast %67 : vector<1x4x8xbf16> to vector<4x8xbf16>
    %cst_60 = arith.constant dense<0.000000e+00> : vector<256x8xf32>
    %69 = tpu.matmul %66, %68, %cst_60 {dimension_numbers = #tpu.dot_dimension_numbers<[1], [0], [0], [1], [0, 0, 1, 1], [], []>} : vector<256x4xbf16>, vector<4x8xbf16>, vector<256x8xf32> -> vector<256x8xf32>
    %70 = arith.addf %63, %69 : vector<256x8xf32>
    %c2_61 = arith.constant 2 : index
    %c2_62 = arith.constant 2 : index
    %c0_63 = arith.constant 0 : index
    %71 = vector.load %arg6[%c2_61, %c2_62, %c0_63] : memref<18x18x4xf32, #tpu.memory_space<vmem>>, vector<16x16x4xf32>
    %72 = arith.truncf %71 : vector<16x16x4xf32> to vector<16x16x4xbf16>
    %73 = vector.shape_cast %72 : vector<16x16x4xbf16> to vector<256x4xbf16>
    %c8 = arith.constant 8 : index
    %c0_64 = arith.constant 0 : index
    %c0_65 = arith.constant 0 : index
    %74 = vector.load %arg3[%c8, %c0_64, %c0_65] : memref<9x4x8xbf16, #tpu.memory_space<vmem>>, vector<1x4x8xbf16>
    %75 = vector.shape_cast %74 : vector<1x4x8xbf16> to vector<4x8xbf16>
    %cst_66 = arith.constant dense<0.000000e+00> : vector<256x8xf32>
    %76 = tpu.matmul %73, %75, %cst_66 {dimension_numbers = #tpu.dot_dimension_numbers<[1], [0], [0], [1], [0, 0, 1, 1], [], []>} : vector<256x4xbf16>, vector<4x8xbf16>, vector<256x8xf32> -> vector<256x8xf32>
    %77 = arith.addf %70, %76 : vector<256x8xf32>
    %c0_67 = arith.constant 0 : index
    %c0_68 = arith.constant 0 : index
    %78 = vector.load %arg4[%c0_67, %c0_68] : memref<1x8xf32, #tpu.memory_space<vmem>>, vector<1x8xf32>
    %79 = vector.broadcast %78 : vector<1x8xf32> to vector<256x8xf32>
    %80 = arith.addf %77, %79 : vector<256x8xf32>
    %cst_69 = arith.constant 0.000000e+00 : f32
    %81 = vector.broadcast %cst_69 : f32 to vector<256x8xf32>
    %82 = arith.cmpf oge, %80, %81 : vector<256x8xf32>
    %cst_70 = arith.constant 1.000000e-01 : f32
    %83 = vector.broadcast %cst_70 : f32 to vector<256x8xf32>
    %84 = arith.mulf %83, %80 : vector<256x8xf32>
    %85 = arith.select %82, %80, %84 : vector<256x8xi1>, vector<256x8xf32>
    %86 = vector.shape_cast %85 : vector<256x8xf32> to vector<16x16x8xf32>
    %87 = arith.truncf %86 : vector<16x16x8xf32> to vector<16x16x8xbf16>
    %c0_71 = arith.constant 0 : index
    %c0_72 = arith.constant 0 : index
    %c0_73 = arith.constant 0 : index
    %c0_74 = arith.constant 0 : index
    %88 = vector.load %arg5[%c0_71, %c0_72, %c0_73, %c0_74] : memref<1x16x16x8xbf16, #tpu.memory_space<vmem>>, vector<1x16x16x8xbf16>
    %89 = vector.shape_cast %88 : vector<1x16x16x8xbf16> to vector<16x16x8xbf16>
    %90 = vector.shape_cast %87 : vector<16x16x8xbf16> to vector<1x16x16x8xbf16>
    tpu.vector_store %arg5[%c0_71, %c0_72, %c0_73, %c0_74], %90 {strides = array<i32>} : memref<1x16x16x8xbf16, #tpu.memory_space<vmem>>, vector<1x16x16x8xbf16>,
    return
  }
  func.func @transform_0(%arg0: i32, %arg1: i32) -> (i32, i32, i32, i32) {
    %c0_i32 = arith.constant 0 : i32
    %c0_i32_0 = arith.constant 0 : i32
    %c0_i32_1 = arith.constant 0 : i32
    %c0_i32_2 = arith.constant 0 : i32
    return %arg0, %c0_i32, %c0_i32_0, %c0_i32_1 : i32, i32, i32, i32
  }
  func.func @transform_1(%arg0: i32, %arg1: i32) -> (i32, i32, i32) {
    %c0_i32 = arith.constant 0 : i32
    %c0_i32_0 = arith.constant 0 : i32
    %c0_i32_1 = arith.constant 0 : i32
    %c0_i32_2 = arith.constant 0 : i32
    return %c0_i32, %c0_i32_0, %c0_i32_1 : i32, i32, i32
  }
  func.func @transform_2(%arg0: i32, %arg1: i32) -> (i32, i32) {
    %c0_i32 = arith.constant 0 : i32
    %c0_i32_0 = arith.constant 0 : i32
    %c0_i32_1 = arith.constant 0 : i32
    return %c0_i32, %c0_i32_0 : i32, i32
  }
  func.func @transform_3(%arg0: i32, %arg1: i32) -> (i32, i32, i32, i32) {
    %c0_i32 = arith.constant 0 : i32
    %c0_i32_0 = arith.constant 0 : i32
    %c0_i32_1 = arith.constant 0 : i32
    return %arg0, %arg1, %c0_i32, %c0_i32_0 : i32, i32, i32, i32
  }
}

module attributes {stable_mosaic.version = 11 : i64} {
  func.func @_conv1x1_kernel(%arg0: i32, %arg1: i32, %arg2: memref<1x256x8xbf16, #tpu.memory_space<vmem>>, %arg3: memref<8x8xbf16, #tpu.memory_space<vmem>>, %arg4: memref<1x8xf32, #tpu.memory_space<vmem>>, %arg5: memref<1x256x8xbf16, #tpu.memory_space<vmem>>) attributes {dimension_semantics = [#tpu.dimension_semantics<parallel>, #tpu.dimension_semantics<parallel>], iteration_bounds = array<i64: 2, 1>, scalar_prefetch = 0 : i64, scratch_operands = 0 : i64, tpu.core_type = #tpu.core_type<tc>, window_params = [{transform_indices = @transform_0, window_bounds = array<i64: 1, 256, 8>}, {pipeline_mode = #tpu.pipeline_mode<synchronous>, transform_indices = @transform_1, window_bounds = array<i64: 8, 8>}, {pipeline_mode = #tpu.pipeline_mode<synchronous>, transform_indices = @transform_2, window_bounds = array<i64: 1, 8>}, {transform_indices = @transform_3, window_bounds = array<i64: 1, 256, 8>}]} {
    %c0 = arith.constant 0 : index
    %c0_0 = arith.constant 0 : index
    %c0_1 = arith.constant 0 : index
    %0 = vector.load %arg2[%c0, %c0_0, %c0_1] : memref<1x256x8xbf16, #tpu.memory_space<vmem>>, vector<1x256x8xbf16>
    %1 = vector.shape_cast %0 : vector<1x256x8xbf16> to vector<256x8xbf16>
    %c0_2 = arith.constant 0 : index
    %c0_3 = arith.constant 0 : index
    %2 = vector.load %arg3[%c0_2, %c0_3] : memref<8x8xbf16, #tpu.memory_space<vmem>>, vector<8x8xbf16>
    %cst = arith.constant dense<0.000000e+00> : vector<256x8xf32>
    %3 = tpu.matmul %1, %2, %cst {dimension_numbers = #tpu.dot_dimension_numbers<[1], [0], [0], [1], [0, 0, 1, 1], [], []>} : vector<256x8xbf16>, vector<8x8xbf16>, vector<256x8xf32> -> vector<256x8xf32>
    %c0_4 = arith.constant 0 : index
    %c0_5 = arith.constant 0 : index
    %4 = vector.load %arg4[%c0_4, %c0_5] : memref<1x8xf32, #tpu.memory_space<vmem>>, vector<1x8xf32>
    %5 = vector.broadcast %4 : vector<1x8xf32> to vector<256x8xf32>
    %6 = arith.addf %3, %5 : vector<256x8xf32>
    %cst_6 = arith.constant 0.000000e+00 : f32
    %7 = vector.broadcast %cst_6 : f32 to vector<256x8xf32>
    %8 = arith.cmpf oge, %6, %7 : vector<256x8xf32>
    %cst_7 = arith.constant 1.000000e-01 : f32
    %9 = vector.broadcast %cst_7 : f32 to vector<256x8xf32>
    %10 = arith.mulf %9, %6 : vector<256x8xf32>
    %11 = arith.select %8, %6, %10 : vector<256x8xi1>, vector<256x8xf32>
    %12 = arith.truncf %11 : vector<256x8xf32> to vector<256x8xbf16>
    %c0_8 = arith.constant 0 : index
    %c0_9 = arith.constant 0 : index
    %c0_10 = arith.constant 0 : index
    %13 = vector.load %arg5[%c0_8, %c0_9, %c0_10] : memref<1x256x8xbf16, #tpu.memory_space<vmem>>, vector<1x256x8xbf16>
    %14 = vector.shape_cast %13 : vector<1x256x8xbf16> to vector<256x8xbf16>
    %15 = vector.shape_cast %12 : vector<256x8xbf16> to vector<1x256x8xbf16>
    tpu.vector_store %arg5[%c0_8, %c0_9, %c0_10], %15 {strides = array<i32>} : memref<1x256x8xbf16, #tpu.memory_space<vmem>>, vector<1x256x8xbf16>,
    return
  }
  func.func @transform_0(%arg0: i32, %arg1: i32) -> (i32, i32, i32) {
    %c0_i32 = arith.constant 0 : i32
    %c0_i32_0 = arith.constant 0 : i32
    return %arg0, %arg1, %c0_i32 : i32, i32, i32
  }
  func.func @transform_1(%arg0: i32, %arg1: i32) -> (i32, i32) {
    %c0_i32 = arith.constant 0 : i32
    %c0_i32_0 = arith.constant 0 : i32
    %c0_i32_1 = arith.constant 0 : i32
    return %c0_i32, %c0_i32_0 : i32, i32
  }
  func.func @transform_2(%arg0: i32, %arg1: i32) -> (i32, i32) {
    %c0_i32 = arith.constant 0 : i32
    %c0_i32_0 = arith.constant 0 : i32
    %c0_i32_1 = arith.constant 0 : i32
    return %c0_i32, %c0_i32_0 : i32, i32
  }
  func.func @transform_3(%arg0: i32, %arg1: i32) -> (i32, i32, i32) {
    %c0_i32 = arith.constant 0 : i32
    %c0_i32_0 = arith.constant 0 : i32
    return %arg0, %arg1, %c0_i32 : i32, i32, i32
  }
}

</mosaic_0001>

<bundles_post_ra>
// kernel: spp_block_forward.5
= control target key start
LH: loop header
LB: loop body
LE: loop exit
PB: predicated region body
PF: predicated region fallthrough
CT: control target
= control target key end

     0   :  { %s1138_s12 = smov 0   ;;  %s1140_s13 = smov 0   ;;  %s1320_s0 = inlined_call_operand.vmem [shape: bf16[2,256,8], index: 0, kind: input, shape index: {}]   ;;  %s1321_s1 = inlined_call_operand.vmem [shape: bf16[8,4], index: 1, kind: input, shape index: {}]   ;;  %s1322_s2 = inlined_call_operand.vmem [shape: f32[1,4], index: 2, kind: input, shape index: {}]   ;;  %s1323_s3 = inlined_call_operand.vmem [shape: bf16[2,256,4], index: 3, kind: output, shape index: {}]  }
   0x1   :  { %s1142_s14 = smov 0  }
   0x2 LB: > { %s25_s15 = sadd.s32 1, %s1112_s13  ;;  %p893_p0 = scmp.ge.s32.totalorder %s1116_s14, 1  ;;  %s1116_s14 = sphi %s1142_s14, %s13_s14   ;;  %s1112_s13 = sphi %s1140_s13, %s1325_s13   ;;  %s1108_s12 = sphi %s1138_s12, %s1324_s12  }
   0x3   : > { %p27_p1 = scmp.ge.s32.totalorder %s25_s15, 2  ;;  %p158_p2 = scmp.lt.s32.totalorder %s1116_s14, 3 }
   0x5   : > { %s1327_s15 = smov (%p27_p1, %s25_s15), 0  ;;  %p159_p3 = pnand %p893_p0, %p158_p2 }
   0x6   : > { %v243_v0 = vld [vmem:[%s1321_s1] sm:$0xf] (!%p159_p3)  ;;  %vm380_vm0 = vcmask (!%p159_p3), 1043456   ;;  %p191_p4 = scmp.lt.s32.totalorder (!%p159_p3), %s1108_s12, 1  ;;  %vm331_vm1 = vcmask (!%p159_p3), 64512   ;;  %vm769_vm2 = vcmask (!%p159_p3), 27648  }
   0x7   : > { %162 = sbr.rel (%p159_p3) target bundleno = 277 (0x115), region = 32  ;;  %1052 = vmatprep.subr.msk.bf16.mxu0 (!%p159_p3), %vm380_vm0, %v243_v0  ;;  %1053 = vmatprep.subr.msk.bf16.mxu1 (!%p159_p3), %vm380_vm0, %v243_v0  ;;  %v382_v1 = vsel (!%p159_p3), %vm380_vm0, %v243_v0, 0  ;;  %v1204_v18 = vld [vmem:[%s1322_s2] ss:$0 sm:$0xff] (!%p159_p3) }
   0x8   : > { %1017 = vmatpush3.bf16.msra.mxu0 (!%p159_p3), %v382_v1  ;;  %1051 = vmatpush3.bf16.msra.mxu1 (!%p159_p3), %v382_v1 }
   0xe   : > { %s1329_s12 = smov (!%p191_p4, %s1108_s12), 1 }
   0xf   : > { %s965_s18 = sshll.u32 %s1329_s12, 7 }
  0x10   : > { %s1167_s21 = scalar_lea.vmem %s1320_s0, %s965_s18  ;;  %s1216_s26 = scalar_lea.vmem %s1323_s3, %s965_s18 }
  0x11   : > { %v1078_v2 = vld [vmem:[%s1167_s21] sm:$0xff]   ;;  %v1080_v4 = vld [vmem:[%s1167_s21 + $0x8] sm:$0xff]   ;;  %v1082_v6 = vld [vmem:[%s1167_s21 + $0x10] sm:$0xff]  }
  0x12   : > { %v1079_v3 = vld [vmem:[%s1167_s21 + $0x40] sm:$0xff]   ;;  %1018 = vmatprep.mubr.msk.bf16.mxu0 %vm331_vm1, %v1078_v2  ;;  %v1081_v5 = vld [vmem:[%s1167_s21 + $0x48] sm:$0xff]   ;;  %v1083_v7 = vld [vmem:[%s1167_s21 + $0x50] sm:$0xff]  }
  0x13   : > { %1034 = vmatprep.mubr.msk.bf16.mxu1 %vm331_vm1, %v1079_v3  ;;  %1019 = vmatmul.mubr.msk.bf16.vlgmr.msra.gmra.mrb[0].mxu0 %vm331_vm1, %v1080_v4  ;;  %v1084_v8 = vld [vmem:[%s1167_s21 + $0x18] sm:$0xff]   ;;  %v1086_v10 = vld [vmem:[%s1167_s21 + $0x20] sm:$0xff]   ;;  %v1088_v12 = vld [vmem:[%s1167_s21 + $0x28] sm:$0xff]  }
  0x14   : > { %1035 = vmatmul.mubr.msk.bf16.vlgmr.msra.gmra.mrb[0].mxu1 %vm331_vm1, %v1081_v5  ;;  %1022 = vmatprep.mubr.msk.bf16.mxu0 %vm331_vm1, %v1082_v6  ;;  %v1085_v9 = vld [vmem:[%s1167_s21 + $0x58] sm:$0xff]   ;;  %v1087_v11 = vld [vmem:[%s1167_s21 + $0x60] sm:$0xff]   ;;  %v1089_v13 = vld [vmem:[%s1167_s21 + $0x68] sm:$0xff]  }
  0x15   : > { %1038 = vmatprep.mubr.msk.bf16.mxu1 %vm331_vm1, %v1083_v7  ;;  %v1090_v14 = vld [vmem:[%s1167_s21 + $0x30] sm:$0xff]   ;;  %v1092_v16 = vld [vmem:[%s1167_s21 + $0x38] sm:$0xff]  }
  0x16   : > { %v1091_v15 = vld [vmem:[%s1167_s21 + $0x70] sm:$0xff]   ;;  %v1093_v17 = vld [vmem:[%s1167_s21 + $0x78] sm:$0xff]  }
  0x1b   : > { %1023 = vmatmul.mubr.msk.bf16.gmra.mrb[4].mxu0 %vm331_vm1, %v1084_v8 }
  0x1c   : > { %1039 = vmatmul.mubr.msk.bf16.gmra.mrb[4].mxu1 %vm331_vm1, %v1085_v9  ;;  %1026 = vmatprep.mubr.msk.bf16.mxu0 %vm331_vm1, %v1086_v10 }
  0x1d   : > { %1042 = vmatprep.mubr.msk.bf16.mxu1 %vm331_vm1, %v1087_v11 }
  0x23   : > { %1027 = vmatmul.mubr.msk.bf16.gmra.mrb[8].mxu0 %vm331_vm1, %v1088_v12 }
  0x24   : > { %1043 = vmatmul.mubr.msk.bf16.gmra.mrb[8].mxu1 %vm331_vm1, %v1089_v13  ;;  %1030 = vmatprep.mubr.msk.bf16.mxu0 %vm331_vm1, %v1090_v14 }
  0x25   : > { %1046 = vmatprep.mubr.msk.bf16.mxu1 %vm331_vm1, %v1091_v15 }
  0x2b   : > { %1031 = vmatmul.mubr.msk.bf16.gmra.mrb[12].mxu0 %vm331_vm1, %v1092_v16 }
  0x2c   : > { %1047 = vmatmul.mubr.msk.bf16.gmra.mrb[12].mxu1 %vm331_vm1, %v1093_v17 }
  0xe6   : > { %v1020_v19 = vpop.f32.mrb[0].mxu0 }
  0xe7   : > { %v427_v20 = vadd.f32 %v1020_v19, %v1204_v18  ;;  %v1036_v21 = vpop.f32.mrb[0].mxu1  ;;  %v418_v22 = vpop.f32.mrb[1].mxu0 }
  0xe8   : > { %v491_v23 = vadd.f32 %v1036_v21, %v1204_v18  ;;  %v419_v24 = vadd.f32 %v1204_v18, %v418_v22  ;;  %v482_v25 = vpop.f32.mrb[1].mxu1  ;;  %v1021_v26 = vpop.f32.mrb[2].mxu0 }
  0xe9   : > { %vm547_vm3 = vcmp.ge.f32.partialorder %v427_v20, 0.0  ;;  %v579_v27 = vmul.f32 0.1, %v427_v20  ;;  %v483_v28 = vadd.f32 %v1204_v18, %v482_v25  ;;  %v430_v29 = vadd.f32 %v1021_v26, %v1204_v18  ;;  %v1037_v30 = vpop.f32.mrb[2].mxu1  ;;  %v421_v31 = vpop.f32.mrb[3].mxu0 }
  0xea   : > { %vm563_vm4 = vcmp.ge.f32.partialorder %v491_v23, 0.0  ;;  %v595_v32 = vmul.f32 0.1, %v491_v23  ;;  %vm545_vm5 = vcmp.ge.f32.partialorder %v419_v24, 0.0  ;;  %v577_v33 = vmul.f32 0.1, %v419_v24 }
  0xeb   : > { %v611_v34 = vsel %vm547_vm3, %v427_v20, %v579_v27  ;;  %vm561_vm6 = vcmp.ge.f32.partialorder %v483_v28, 0.0  ;;  %v593_v35 = vmul.f32 0.1, %v483_v28  ;;  %vm548_vm7 = vcmp.ge.f32.partialorder %v430_v29, 0.0  ;;  %v485_v36 = vpop.f32.mrb[3].mxu1 }
  0xec   : > { %v969_v37 = vpack.c.bf16 %v611_v34, %v611_v34  ;;  %v627_v38 = vsel %vm563_vm4, %v491_v23, %v595_v32  ;;  %v609_v39 = vsel %vm545_vm5, %v419_v24, %v577_v33  ;;  %v580_v40 = vmul.f32 0.1, %v430_v29 }
  0xed   : > { %v985_v41 = vpack.c.bf16 %v627_v38, %v627_v38  ;;  %v967_v42 = vpack.c.bf16 %v609_v39, %v609_v39  ;;  %v625_v43 = vsel %vm561_vm6, %v483_v28, %v593_v35  ;;  %v494_v44 = vadd.f32 %v1037_v30, %v1204_v18 }
  0xee   : > { %772 = vst.msk [vmem:[%s1216_s26 + $0x8] sm:$0xf] %vm769_vm2, %v969_v37  ;;  %v983_v45 = vpack.c.bf16 %v625_v43, %v625_v43  ;;  %v612_v46 = vsel %vm548_vm7, %v430_v29, %v580_v40  ;;  %v422_v47 = vadd.f32 %v1204_v18, %v421_v31  ;;  %v486_v48 = vadd.f32 %v1204_v18, %v485_v36  ;;  %v1024_v49 = vpop.f32.mrb[4].mxu0 }
  0xef   : > { %788 = vst.msk [vmem:[%s1216_s26 + $0x48] sm:$0xf] %vm769_vm2, %v985_v41  ;;  %770 = vst.msk [vmem:[%s1216_s26] sm:$0xf] %vm769_vm2, %v967_v42  ;;  %v970_v50 = vpack.c.bf16 %v612_v46, %v612_v46  ;;  %vm564_vm8 = vcmp.ge.f32.partialorder %v494_v44, 0.0  ;;  %v443_v52 = vadd.f32 %v1024_v49, %v1204_v18  ;;  %v1040_v53 = vpop.f32.mrb[4].mxu1 }
  0xf0   : > { %v596_v51 = vmul.f32 0.1, %v494_v44  ;;  %v434_v54 = vpop.f32.mrb[5].mxu0  ;;  %786 = vst.msk [vmem:[%s1216_s26 + $0x40] sm:$0xf] %vm769_vm2, %v983_v45  ;;  %vm546_vm9 = vcmp.ge.f32.partialorder %v422_v47, 0.0  ;;  %v507_v59 = vadd.f32 %v1040_v53, %v1204_v18 }
  0xf1   : > { %v578_v55 = vmul.f32 0.1, %v422_v47  ;;  %vm562_vm10 = vcmp.ge.f32.partialorder %v486_v48, 0.0  ;;  %v594_v56 = vmul.f32 0.1, %v486_v48  ;;  %vm551_vm11 = vcmp.ge.f32.partialorder %v443_v52, 0.0 }
  0xf2   : > { %773 = vst.msk [vmem:[%s1216_s26 + $0xc] sm:$0xf] %vm769_vm2, %v970_v50  ;;  %v628_v57 = vsel %vm564_vm8, %v494_v44, %v596_v51  ;;  %v583_v58 = vmul.f32 0.1, %v443_v52  ;;  %v498_v60 = vpop.f32.mrb[5].mxu1  ;;  %v1025_v61 = vpop.f32.mrb[6].mxu0  ;;  %v435_v1 = vadd.f32 %v1204_v18, %v434_v54 }
  0xf3   : > { %v986_v62 = vpack.c.bf16 %v628_v57, %v628_v57  ;;  %v610_v63 = vsel %vm546_vm9, %v422_v47, %v578_v55  ;;  %v626_v0 = vsel %vm562_vm10, %v486_v48, %v594_v56  ;;  %v1041_v2 = vpop.f32.mrb[6].mxu1  ;;  %v437_v3 = vpop.f32.mrb[7].mxu0  ;;  %vm567_vm12 = vcmp.ge.f32.partialorder %v507_v59, 0.0 }
  0xf4   : > { %v968_v4 = vpack.c.bf16 %v610_v63, %v610_v63  ;;  %v984_v5 = vpack.c.bf16 %v626_v0, %v626_v0  ;;  %v615_v6 = vsel %vm551_vm11, %v443_v52, %v583_v58  ;;  %v501_v7 = vpop.f32.mrb[7].mxu1  ;;  %v599_v9 = vmul.f32 0.1, %v507_v59 }
  0xf5   : > { %789 = vst.msk [vmem:[%s1216_s26 + $0x4c] sm:$0xf] %vm769_vm2, %v986_v62  ;;  %v973_v8 = vpack.c.bf16 %v615_v6, %v615_v6  ;;  %vm549_vm13 = vcmp.ge.f32.partialorder %v435_v1, 0.0  ;;  %v581_v10 = vmul.f32 0.1, %v435_v1  ;;  %v499_v11 = vadd.f32 %v1204_v18, %v498_v60 }
  0xf6   : > { %771 = vst.msk [vmem:[%s1216_s26 + $0x4] sm:$0xf] %vm769_vm2, %v968_v4  ;;  %787 = vst.msk [vmem:[%s1216_s26 + $0x44] sm:$0xf] %vm769_vm2, %v984_v5  ;;  %v446_v12 = vadd.f32 %v1025_v61, %v1204_v18  ;;  %v510_v13 = vadd.f32 %v1041_v2, %v1204_v18  ;;  %v438_v14 = vadd.f32 %v1204_v18, %v437_v3  ;;  %v1028_v19 = vpop.f32.mrb[8].mxu0 }
  0xf7   : > { %776 = vst.msk [vmem:[%s1216_s26 + $0x18] sm:$0xf] %vm769_vm2, %v973_v8  ;;  %v631_v15 = vsel %vm567_vm12, %v507_v59, %v599_v9  ;;  %v613_v16 = vsel %vm549_vm13, %v435_v1, %v581_v10  ;;  %v502_v17 = vadd.f32 %v1204_v18, %v501_v7  ;;  %vm565_vm14 = vcmp.ge.f32.partialorder %v499_v11, 0.0  ;;  %v1044_v23 = vpop.f32.mrb[8].mxu1  ;;  %v450_v24 = vpop.f32.mrb[9].mxu0 }
  0xf8   : > { %v989_v20 = vpack.c.bf16 %v631_v15, %v631_v15  ;;  %v971_v21 = vpack.c.bf16 %v613_v16, %v613_v16  ;;  %v597_v22 = vmul.f32 0.1, %v499_v11  ;;  %vm552_vm15 = vcmp.ge.f32.partialorder %v446_v12, 0.0  ;;  %v514_v29 = vpop.f32.mrb[9].mxu1  ;;  %v1029_v30 = vpop.f32.mrb[10].mxu0 }
  0xf9   : > { %v584_v25 = vmul.f32 0.1, %v446_v12  ;;  %vm568_vm0 = vcmp.ge.f32.partialorder %v510_v13, 0.0  ;;  %v600_v26 = vmul.f32 0.1, %v510_v13  ;;  %vm550_vm1 = vcmp.ge.f32.partialorder %v438_v14, 0.0 }
  0xfa   : > { %792 = vst.msk [vmem:[%s1216_s26 + $0x58] sm:$0xf] %vm769_vm2, %v989_v20  ;;  %774 = vst.msk [vmem:[%s1216_s26 + $0x10] sm:$0xf] %vm769_vm2, %v971_v21  ;;  %v629_v27 = vsel %vm565_vm14, %v499_v11, %v597_v22  ;;  %v582_v28 = vmul.f32 0.1, %v438_v14  ;;  %v459_v40 = vadd.f32 %v1028_v19, %v1204_v18  ;;  %v523_v44 = vadd.f32 %v1044_v23, %v1204_v18 }
  0xfb   : > { %vm566_vm3 = vcmp.ge.f32.partialorder %v502_v17, 0.0  ;;  %v987_v31 = vpack.c.bf16 %v629_v27, %v629_v27  ;;  %v616_v32 = vsel %vm552_vm15, %v446_v12, %v584_v25  ;;  %v632_v33 = vsel %vm568_vm0, %v510_v13, %v600_v26  ;;  %v1045_v35 = vpop.f32.mrb[10].mxu1  ;;  %v453_v36 = vpop.f32.mrb[11].mxu0 }
  0xfc   : > { %v598_v34 = vmul.f32 0.1, %v502_v17  ;;  %v974_v37 = vpack.c.bf16 %v616_v32, %v616_v32  ;;  %v990_v38 = vpack.c.bf16 %v632_v33, %v632_v33  ;;  %v614_v39 = vsel %vm550_vm1, %v438_v14, %v582_v28  ;;  %v517_v41 = vpop.f32.mrb[11].mxu1 }
  0xfd   : > { %790 = vst.msk [vmem:[%s1216_s26 + $0x50] sm:$0xf] %vm769_vm2, %v987_v31  ;;  %v972_v42 = vpack.c.bf16 %v614_v39, %v614_v39  ;;  %v451_v45 = vadd.f32 %v1204_v18, %v450_v24  ;;  %vm555_vm4 = vcmp.ge.f32.partialorder %v459_v40, 0.0  ;;  %v587_v47 = vmul.f32 0.1, %v459_v40 }
  0xfe   : > { %v630_v43 = vsel %vm566_vm3, %v502_v17, %v598_v34  ;;  %777 = vst.msk [vmem:[%s1216_s26 + $0x1c] sm:$0xf] %vm769_vm2, %v974_v37  ;;  %793 = vst.msk [vmem:[%s1216_s26 + $0x5c] sm:$0xf] %vm769_vm2, %v990_v38  ;;  %v515_v48 = vadd.f32 %v1204_v18, %v514_v29  ;;  %vm571_vm5 = vcmp.ge.f32.partialorder %v523_v44, 0.0  ;;  %v462_v53 = vadd.f32 %v1029_v30, %v1204_v18  ;;  %v1032_v54 = vpop.f32.mrb[12].mxu0 }
  0xff   : > { %v988_v46 = vpack.c.bf16 %v630_v43, %v630_v43  ;;  %775 = vst.msk [vmem:[%s1216_s26 + $0x14] sm:$0xf] %vm769_vm2, %v972_v42  ;;  %v603_v49 = vmul.f32 0.1, %v523_v44  ;;  %vm553_vm6 = vcmp.ge.f32.partialorder %v451_v45, 0.0  ;;  %v619_v51 = vsel %vm555_vm4, %v459_v40, %v587_v47  ;;  %v1048_v55 = vpop.f32.mrb[12].mxu1 }
 0x100   : > { %v585_v50 = vmul.f32 0.1, %v451_v45  ;;  %vm569_vm7 = vcmp.ge.f32.partialorder %v515_v48, 0.0  ;;  %v601_v52 = vmul.f32 0.1, %v515_v48  ;;  %v977_v56 = vpack.c.bf16 %v619_v51, %v619_v51  ;;  %v466_v60 = vpop.f32.mrb[13].mxu0 }
 0x101   : > { %791 = vst.msk [vmem:[%s1216_s26 + $0x54] sm:$0xf] %vm769_vm2, %v988_v46  ;;  %v635_v57 = vsel %vm571_vm5, %v523_v44, %v603_v49  ;;  %v526_v59 = vadd.f32 %v1045_v35, %v1204_v18  ;;  %v530_v61 = vpop.f32.mrb[13].mxu1  ;;  %vm556_vm8 = vcmp.ge.f32.partialorder %v462_v53, 0.0  ;;  %v1033_v1 = vpop.f32.mrb[14].mxu0  ;;  %v454_v7 = vadd.f32 %v1204_v18, %v453_v36 }
 0x102   : > { %v617_v58 = vsel %vm553_vm6, %v451_v45, %v585_v50  ;;  %v993_v62 = vpack.c.bf16 %v635_v57, %v635_v57  ;;  %v633_v0 = vsel %vm569_vm7, %v515_v48, %v601_v52  ;;  %v1049_v2 = vpop.f32.mrb[14].mxu1  ;;  %780 = vst.msk [vmem:[%s1216_s26 + $0x28] sm:$0xf] %vm769_vm2, %v977_v56  ;;  %v588_v4 = vmul.f32 0.1, %v462_v53  ;;  %v469_v6 = vpop.f32.mrb[15].mxu0 }
 0x103   : > { %v975_v63 = vpack.c.bf16 %v617_v58, %v617_v58  ;;  %v991_v3 = vpack.c.bf16 %v633_v0, %v633_v0  ;;  %vm572_vm9 = vcmp.ge.f32.partialorder %v526_v59, 0.0  ;;  %v604_v5 = vmul.f32 0.1, %v526_v59  ;;  %v533_v11 = vpop.f32.mrb[15].mxu1 }
 0x104   : > { %796 = vst.msk [vmem:[%s1216_s26 + $0x68] sm:$0xf] %vm769_vm2, %v993_v62  ;;  %v518_v8 = vadd.f32 %v1204_v18, %v517_v41  ;;  %v475_v9 = vadd.f32 %v1032_v54, %v1204_v18  ;;  %v539_v10 = vadd.f32 %v1048_v55, %v1204_v18  ;;  %v620_v12 = vsel %vm556_vm8, %v462_v53, %v588_v4 }
 0x105   : > { %778 = vst.msk [vmem:[%s1216_s26 + $0x20] sm:$0xf] %vm769_vm2, %v975_v63  ;;  %794 = vst.msk [vmem:[%s1216_s26 + $0x60] sm:$0xf] %vm769_vm2, %v991_v3  ;;  %v636_v13 = vsel %vm572_vm9, %v526_v59, %v604_v5  ;;  %v467_v14 = vadd.f32 %v1204_v18, %v466_v60  ;;  %v531_v15 = vadd.f32 %v1204_v18, %v530_v61  ;;  %vm554_vm10 = vcmp.ge.f32.partialorder %v454_v7, 0.0 }
 0x106   : > { %v978_v16 = vpack.c.bf16 %v620_v12, %v620_v12  ;;  %v994_v17 = vpack.c.bf16 %v636_v13, %v636_v13  ;;  %v586_v19 = vmul.f32 0.1, %v454_v7  ;;  %vm570_vm11 = vcmp.ge.f32.partialorder %v518_v8, 0.0 }
 0x107   : > { %v602_v20 = vmul.f32 0.1, %v518_v8  ;;  %vm559_vm12 = vcmp.ge.f32.partialorder %v475_v9, 0.0  ;;  %v591_v21 = vmul.f32 0.1, %v475_v9  ;;  %vm575_vm13 = vcmp.ge.f32.partialorder %v539_v10, 0.0 }
 0x108   : > { %781 = vst.msk [vmem:[%s1216_s26 + $0x2c] sm:$0xf] %vm769_vm2, %v978_v16  ;;  %797 = vst.msk [vmem:[%s1216_s26 + $0x6c] sm:$0xf] %vm769_vm2, %v994_v17  ;;  %v618_v22 = vsel %vm554_vm10, %v454_v7, %v586_v19  ;;  %v607_v23 = vmul.f32 0.1, %v539_v10  ;;  %v478_v34 = vadd.f32 %v1033_v1, %v1204_v18  ;;  %v542_v36 = vadd.f32 %v1049_v2, %v1204_v18 }
 0x109   : > { %vm557_vm14 = vcmp.ge.f32.partialorder %v467_v14, 0.0  ;;  %v976_v24 = vpack.c.bf16 %v618_v22, %v618_v22  ;;  %v634_v25 = vsel %vm570_vm11, %v518_v8, %v602_v20  ;;  %v623_v26 = vsel %vm559_vm12, %v475_v9, %v591_v21 }
 0x10a   : > { %v589_v27 = vmul.f32 0.1, %v467_v14  ;;  %v992_v28 = vpack.c.bf16 %v634_v25, %v634_v25  ;;  %v981_v29 = vpack.c.bf16 %v623_v26, %v623_v26  ;;  %v639_v30 = vsel %vm575_vm13, %v539_v10, %v607_v23 }
 0x10b   : > { %vm573_vm15 = vcmp.ge.f32.partialorder %v531_v15, 0.0  ;;  %779 = vst.msk [vmem:[%s1216_s26 + $0x24] sm:$0xf] %vm769_vm2, %v976_v24  ;;  %v997_v31 = vpack.c.bf16 %v639_v30, %v639_v30  ;;  %v605_v33 = vmul.f32 0.1, %v531_v15  ;;  %v470_v37 = vadd.f32 %v1204_v18, %v469_v6 }
 0x10c   : > { %v621_v32 = vsel %vm557_vm14, %v467_v14, %v589_v27  ;;  %795 = vst.msk [vmem:[%s1216_s26 + $0x64] sm:$0xf] %vm769_vm2, %v992_v28  ;;  %784 = vst.msk [vmem:[%s1216_s26 + $0x38] sm:$0xf] %vm769_vm2, %v981_v29  ;;  %v534_v38 = vadd.f32 %v1204_v18, %v533_v11  ;;  %vm560_vm0 = vcmp.ge.f32.partialorder %v478_v34, 0.0  ;;  %vm576_vm1 = vcmp.ge.f32.partialorder %v542_v36, 0.0 }
 0x10d   : > { %v979_v35 = vpack.c.bf16 %v621_v32, %v621_v32  ;;  %800 = vst.msk [vmem:[%s1216_s26 + $0x78] sm:$0xf] %vm769_vm2, %v997_v31  ;;  %v637_v39 = vsel %vm573_vm15, %v531_v15, %v605_v33  ;;  %v592_v40 = vmul.f32 0.1, %v478_v34  ;;  %v608_v42 = vmul.f32 0.1, %v542_v36 }
 0x10e   : > { %v995_v41 = vpack.c.bf16 %v637_v39, %v637_v39  ;;  %vm558_vm3 = vcmp.ge.f32.partialorder %v470_v37, 0.0  ;;  %v590_v44 = vmul.f32 0.1, %v470_v37  ;;  %vm574_vm4 = vcmp.ge.f32.partialorder %v534_v38, 0.0 }
 0x10f   : > { %782 = vst.msk [vmem:[%s1216_s26 + $0x30] sm:$0xf] %vm769_vm2, %v979_v35  ;;  %v624_v43 = vsel %vm560_vm0, %v478_v34, %v592_v40  ;;  %v606_v45 = vmul.f32 0.1, %v534_v38  ;;  %v640_v46 = vsel %vm576_vm1, %v542_v36, %v608_v42 }
 0x110   : > { %798 = vst.msk [vmem:[%s1216_s26 + $0x70] sm:$0xf] %vm769_vm2, %v995_v41  ;;  %v982_v18 = vpack.c.bf16 %v624_v43, %v624_v43  ;;  %v998_v47 = vpack.c.bf16 %v640_v46, %v640_v46  ;;  %v622_v48 = vsel %vm558_vm3, %v470_v37, %v590_v44 }
 0x111   : > { %v638_v49 = vsel %vm574_vm4, %v534_v38, %v606_v45  ;;  %v980_v50 = vpack.c.bf16 %v622_v48, %v622_v48 }
 0x112   : > { %785 = vst.msk [vmem:[%s1216_s26 + $0x3c] sm:$0xf] %vm769_vm2, %v982_v18  ;;  %v996_v51 = vpack.c.bf16 %v638_v49, %v638_v49  ;;  %801 = vst.msk [vmem:[%s1216_s26 + $0x7c] sm:$0xf] %vm769_vm2, %v998_v47 }
 0x113   : > { %783 = vst.msk [vmem:[%s1216_s26 + $0x34] sm:$0xf] %vm769_vm2, %v980_v50 }
 0x114   : > { %799 = vst.msk [vmem:[%s1216_s26 + $0x74] sm:$0xf] %vm769_vm2, %v996_v51 }
 0x115 PF: > { %s13_s14 = sadd.s32 1, %s1116_s14   ;;  %s1324_s12 = smov %s1112_s13 }
 0x116   : > { %p10_p5 = scmp.ge.s32.totalorder %s13_s14, 4   ;;  %s1325_s13 = smov %s1327_s15 }
 0x118   :  { %12 = sbr.rel (!%p10_p5) target bundleno = 2 (0x2), region = 62 }

// kernel: spp_block_forward.9
= control target key start
LH: loop header
LB: loop body
LE: loop exit
PB: predicated region body
PF: predicated region fallthrough
CT: control target
= control target key end

     0   :  { %s1138_s12 = smov 0   ;;  %s1140_s13 = smov 0   ;;  %s1320_s0 = inlined_call_operand.vmem [shape: bf16[2,256,8], index: 0, kind: input, shape index: {}]   ;;  %s1321_s1 = inlined_call_operand.vmem [shape: bf16[8,8], index: 1, kind: input, shape index: {}]   ;;  %s1322_s2 = inlined_call_operand.vmem [shape: f32[1,8], index: 2, kind: input, shape index: {}]   ;;  %s1323_s3 = inlined_call_operand.vmem [shape: bf16[2,256,8], index: 3, kind: output, shape index: {}]  }
   0x1   :  { %s1142_s14 = smov 0  }
   0x2 LB: > { %s25_s15 = sadd.s32 1, %s1112_s13  ;;  %p893_p0 = scmp.ge.s32.totalorder %s1116_s14, 1  ;;  %s1116_s14 = sphi %s1142_s14, %s13_s14   ;;  %s1112_s13 = sphi %s1140_s13, %s1325_s13   ;;  %s1108_s12 = sphi %s1138_s12, %s1324_s12  }
   0x3   : > { %p27_p1 = scmp.ge.s32.totalorder %s25_s15, 2  ;;  %p158_p2 = scmp.lt.s32.totalorder %s1116_s14, 3 }
   0x5   : > { %s1327_s15 = smov (%p27_p1, %s25_s15), 0  ;;  %p159_p3 = pnand %p893_p0, %p158_p2 }
   0x6   : > { %v243_v0 = vld [vmem:[%s1321_s1] sm:$0xf] (!%p159_p3)  ;;  %vm380_vm0 = vcmask (!%p159_p3), 1043456   ;;  %p191_p4 = scmp.lt.s32.totalorder (!%p159_p3), %s1108_s12, 1  ;;  %vm331_vm1 = vcmask (!%p159_p3), 64512   ;;  %vm769_vm2 = vcmask (!%p159_p3), 60416  }
   0x7   : > { %162 = sbr.rel (%p159_p3) target bundleno = 277 (0x115), region = 32  ;;  %1052 = vmatprep.subr.msk.bf16.mxu0 (!%p159_p3), %vm380_vm0, %v243_v0  ;;  %1053 = vmatprep.subr.msk.bf16.mxu1 (!%p159_p3), %vm380_vm0, %v243_v0  ;;  %v382_v1 = vsel (!%p159_p3), %vm380_vm0, %v243_v0, 0  ;;  %v1204_v18 = vld [vmem:[%s1322_s2] ss:$0 sm:$0xff] (!%p159_p3) }
   0x8   : > { %1017 = vmatpush3.bf16.msra.mxu0 (!%p159_p3), %v382_v1  ;;  %1051 = vmatpush3.bf16.msra.mxu1 (!%p159_p3), %v382_v1 }
   0xe   : > { %s1329_s12 = smov (!%p191_p4, %s1108_s12), 1 }
   0xf   : > { %s965_s18 = sshll.u32 %s1329_s12, 7 }
  0x10   : > { %s1167_s21 = scalar_lea.vmem %s1320_s0, %s965_s18  ;;  %s1216_s26 = scalar_lea.vmem %s1323_s3, %s965_s18 }
  0x11   : > { %v1078_v2 = vld [vmem:[%s1167_s21] sm:$0xff]   ;;  %v1080_v4 = vld [vmem:[%s1167_s21 + $0x8] sm:$0xff]   ;;  %v1082_v6 = vld [vmem:[%s1167_s21 + $0x10] sm:$0xff]  }
  0x12   : > { %v1079_v3 = vld [vmem:[%s1167_s21 + $0x40] sm:$0xff]   ;;  %1018 = vmatprep.mubr.msk.bf16.mxu0 %vm331_vm1, %v1078_v2  ;;  %v1081_v5 = vld [vmem:[%s1167_s21 + $0x48] sm:$0xff]   ;;  %v1083_v7 = vld [vmem:[%s1167_s21 + $0x50] sm:$0xff]  }
  0x13   : > { %1034 = vmatprep.mubr.msk.bf16.mxu1 %vm331_vm1, %v1079_v3  ;;  %1019 = vmatmul.mubr.msk.bf16.vlgmr.msra.gmra.mrb[0].mxu0 %vm331_vm1, %v1080_v4  ;;  %v1084_v8 = vld [vmem:[%s1167_s21 + $0x18] sm:$0xff]   ;;  %v1086_v10 = vld [vmem:[%s1167_s21 + $0x20] sm:$0xff]   ;;  %v1088_v12 = vld [vmem:[%s1167_s21 + $0x28] sm:$0xff]  }
  0x14   : > { %1035 = vmatmul.mubr.msk.bf16.vlgmr.msra.gmra.mrb[0].mxu1 %vm331_vm1, %v1081_v5  ;;  %1022 = vmatprep.mubr.msk.bf16.mxu0 %vm331_vm1, %v1082_v6  ;;  %v1085_v9 = vld [vmem:[%s1167_s21 + $0x58] sm:$0xff]   ;;  %v1087_v11 = vld [vmem:[%s1167_s21 + $0x60] sm:$0xff]   ;;  %v1089_v13 = vld [vmem:[%s1167_s21 + $0x68] sm:$0xff]  }
  0x15   : > { %1038 = vmatprep.mubr.msk.bf16.mxu1 %vm331_vm1, %v1083_v7  ;;  %v1090_v14 = vld [vmem:[%s1167_s21 + $0x30] sm:$0xff]   ;;  %v1092_v16 = vld [vmem:[%s1167_s21 + $0x38] sm:$0xff]  }
  0x16   : > { %v1091_v15 = vld [vmem:[%s1167_s21 + $0x70] sm:$0xff]   ;;  %v1093_v17 = vld [vmem:[%s1167_s21 + $0x78] sm:$0xff]  }
  0x1b   : > { %1023 = vmatmul.mubr.msk.bf16.gmra.mrb[4].mxu0 %vm331_vm1, %v1084_v8 }
  0x1c   : > { %1039 = vmatmul.mubr.msk.bf16.gmra.mrb[4].mxu1 %vm331_vm1, %v1085_v9  ;;  %1026 = vmatprep.mubr.msk.bf16.mxu0 %vm331_vm1, %v1086_v10 }
  0x1d   : > { %1042 = vmatprep.mubr.msk.bf16.mxu1 %vm331_vm1, %v1087_v11 }
  0x23   : > { %1027 = vmatmul.mubr.msk.bf16.gmra.mrb[8].mxu0 %vm331_vm1, %v1088_v12 }
  0x24   : > { %1043 = vmatmul.mubr.msk.bf16.gmra.mrb[8].mxu1 %vm331_vm1, %v1089_v13  ;;  %1030 = vmatprep.mubr.msk.bf16.mxu0 %vm331_vm1, %v1090_v14 }
  0x25   : > { %1046 = vmatprep.mubr.msk.bf16.mxu1 %vm331_vm1, %v1091_v15 }
  0x2b   : > { %1031 = vmatmul.mubr.msk.bf16.gmra.mrb[12].mxu0 %vm331_vm1, %v1092_v16 }
  0x2c   : > { %1047 = vmatmul.mubr.msk.bf16.gmra.mrb[12].mxu1 %vm331_vm1, %v1093_v17 }
  0xe6   : > { %v1020_v19 = vpop.f32.mrb[0].mxu0 }
  0xe7   : > { %v427_v20 = vadd.f32 %v1020_v19, %v1204_v18  ;;  %v1036_v21 = vpop.f32.mrb[0].mxu1  ;;  %v418_v22 = vpop.f32.mrb[1].mxu0 }
  0xe8   : > { %v491_v23 = vadd.f32 %v1036_v21, %v1204_v18  ;;  %v419_v24 = vadd.f32 %v1204_v18, %v418_v22  ;;  %v482_v25 = vpop.f32.mrb[1].mxu1  ;;  %v1021_v26 = vpop.f32.mrb[2].mxu0 }
  0xe9   : > { %vm547_vm3 = vcmp.ge.f32.partialorder %v427_v20, 0.0  ;;  %v579_v27 = vmul.f32 0.1, %v427_v20  ;;  %v483_v28 = vadd.f32 %v1204_v18, %v482_v25  ;;  %v430_v29 = vadd.f32 %v1021_v26, %v1204_v18  ;;  %v1037_v30 = vpop.f32.mrb[2].mxu1  ;;  %v421_v31 = vpop.f32.mrb[3].mxu0 }
  0xea   : > { %vm563_vm4 = vcmp.ge.f32.partialorder %v491_v23, 0.0  ;;  %v595_v32 = vmul.f32 0.1, %v491_v23  ;;  %vm545_vm5 = vcmp.ge.f32.partialorder %v419_v24, 0.0  ;;  %v577_v33 = vmul.f32 0.1, %v419_v24 }
  0xeb   : > { %v611_v34 = vsel %vm547_vm3, %v427_v20, %v579_v27  ;;  %vm561_vm6 = vcmp.ge.f32.partialorder %v483_v28, 0.0  ;;  %v593_v35 = vmul.f32 0.1, %v483_v28  ;;  %vm548_vm7 = vcmp.ge.f32.partialorder %v430_v29, 0.0  ;;  %v485_v36 = vpop.f32.mrb[3].mxu1 }
  0xec   : > { %v969_v37 = vpack.c.bf16 %v611_v34, %v611_v34  ;;  %v627_v38 = vsel %vm563_vm4, %v491_v23, %v595_v32  ;;  %v609_v39 = vsel %vm545_vm5, %v419_v24, %v577_v33  ;;  %v580_v40 = vmul.f32 0.1, %v430_v29 }
  0xed   : > { %v985_v41 = vpack.c.bf16 %v627_v38, %v627_v38  ;;  %v967_v42 = vpack.c.bf16 %v609_v39, %v609_v39  ;;  %v625_v43 = vsel %vm561_vm6, %v483_v28, %v593_v35  ;;  %v494_v44 = vadd.f32 %v1037_v30, %v1204_v18 }
  0xee   : > { %772 = vst.msk [vmem:[%s1216_s26 + $0x8] sm:$0xf] %vm769_vm2, %v969_v37  ;;  %v983_v45 = vpack.c.bf16 %v625_v43, %v625_v43  ;;  %v612_v46 = vsel %vm548_vm7, %v430_v29, %v580_v40  ;;  %v422_v47 = vadd.f32 %v1204_v18, %v421_v31  ;;  %v486_v48 = vadd.f32 %v1204_v18, %v485_v36  ;;  %v1024_v49 = vpop.f32.mrb[4].mxu0 }
  0xef   : > { %788 = vst.msk [vmem:[%s1216_s26 + $0x48] sm:$0xf] %vm769_vm2, %v985_v41  ;;  %770 = vst.msk [vmem:[%s1216_s26] sm:$0xf] %vm769_vm2, %v967_v42  ;;  %v970_v50 = vpack.c.bf16 %v612_v46, %v612_v46  ;;  %vm564_vm8 = vcmp.ge.f32.partialorder %v494_v44, 0.0  ;;  %v443_v52 = vadd.f32 %v1024_v49, %v1204_v18  ;;  %v1040_v53 = vpop.f32.mrb[4].mxu1 }
  0xf0   : > { %v596_v51 = vmul.f32 0.1, %v494_v44  ;;  %v434_v54 = vpop.f32.mrb[5].mxu0  ;;  %786 = vst.msk [vmem:[%s1216_s26 + $0x40] sm:$0xf] %vm769_vm2, %v983_v45  ;;  %vm546_vm9 = vcmp.ge.f32.partialorder %v422_v47, 0.0  ;;  %v507_v59 = vadd.f32 %v1040_v53, %v1204_v18 }
  0xf1   : > { %v578_v55 = vmul.f32 0.1, %v422_v47  ;;  %vm562_vm10 = vcmp.ge.f32.partialorder %v486_v48, 0.0  ;;  %v594_v56 = vmul.f32 0.1, %v486_v48  ;;  %vm551_vm11 = vcmp.ge.f32.partialorder %v443_v52, 0.0 }
  0xf2   : > { %773 = vst.msk [vmem:[%s1216_s26 + $0xc] sm:$0xf] %vm769_vm2, %v970_v50  ;;  %v628_v57 = vsel %vm564_vm8, %v494_v44, %v596_v51  ;;  %v583_v58 = vmul.f32 0.1, %v443_v52  ;;  %v498_v60 = vpop.f32.mrb[5].mxu1  ;;  %v1025_v61 = vpop.f32.mrb[6].mxu0  ;;  %v435_v1 = vadd.f32 %v1204_v18, %v434_v54 }
  0xf3   : > { %v986_v62 = vpack.c.bf16 %v628_v57, %v628_v57  ;;  %v610_v63 = vsel %vm546_vm9, %v422_v47, %v578_v55  ;;  %v626_v0 = vsel %vm562_vm10, %v486_v48, %v594_v56  ;;  %v1041_v2 = vpop.f32.mrb[6].mxu1  ;;  %v437_v3 = vpop.f32.mrb[7].mxu0  ;;  %vm567_vm12 = vcmp.ge.f32.partialorder %v507_v59, 0.0 }
  0xf4   : > { %v968_v4 = vpack.c.bf16 %v610_v63, %v610_v63  ;;  %v984_v5 = vpack.c.bf16 %v626_v0, %v626_v0  ;;  %v615_v6 = vsel %vm551_vm11, %v443_v52, %v583_v58  ;;  %v501_v7 = vpop.f32.mrb[7].mxu1  ;;  %v599_v9 = vmul.f32 0.1, %v507_v59 }
  0xf5   : > { %789 = vst.msk [vmem:[%s1216_s26 + $0x4c] sm:$0xf] %vm769_vm2, %v986_v62  ;;  %v973_v8 = vpack.c.bf16 %v615_v6, %v615_v6  ;;  %vm549_vm13 = vcmp.ge.f32.partialorder %v435_v1, 0.0  ;;  %v581_v10 = vmul.f32 0.1, %v435_v1  ;;  %v499_v11 = vadd.f32 %v1204_v18, %v498_v60 }
  0xf6   : > { %771 = vst.msk [vmem:[%s1216_s26 + $0x4] sm:$0xf] %vm769_vm2, %v968_v4  ;;  %787 = vst.msk [vmem:[%s1216_s26 + $0x44] sm:$0xf] %vm769_vm2, %v984_v5  ;;  %v446_v12 = vadd.f32 %v1025_v61, %v1204_v18  ;;  %v510_v13 = vadd.f32 %v1041_v2, %v1204_v18  ;;  %v438_v14 = vadd.f32 %v1204_v18, %v437_v3  ;;  %v1028_v19 = vpop.f32.mrb[8].mxu0 }
  0xf7   : > { %776 = vst.msk [vmem:[%s1216_s26 + $0x18] sm:$0xf] %vm769_vm2, %v973_v8  ;;  %v631_v15 = vsel %vm567_vm12, %v507_v59, %v599_v9  ;;  %v613_v16 = vsel %vm549_vm13, %v435_v1, %v581_v10  ;;  %v502_v17 = vadd.f32 %v1204_v18, %v501_v7  ;;  %vm565_vm14 = vcmp.ge.f32.partialorder %v499_v11, 0.0  ;;  %v1044_v23 = vpop.f32.mrb[8].mxu1  ;;  %v450_v24 = vpop.f32.mrb[9].mxu0 }
  0xf8   : > { %v989_v20 = vpack.c.bf16 %v631_v15, %v631_v15  ;;  %v971_v21 = vpack.c.bf16 %v613_v16, %v613_v16  ;;  %v597_v22 = vmul.f32 0.1, %v499_v11  ;;  %vm552_vm15 = vcmp.ge.f32.partialorder %v446_v12, 0.0  ;;  %v514_v29 = vpop.f32.mrb[9].mxu1  ;;  %v1029_v30 = vpop.f32.mrb[10].mxu0 }
  0xf9   : > { %v584_v25 = vmul.f32 0.1, %v446_v12  ;;  %vm568_vm0 = vcmp.ge.f32.partialorder %v510_v13, 0.0  ;;  %v600_v26 = vmul.f32 0.1, %v510_v13  ;;  %vm550_vm1 = vcmp.ge.f32.partialorder %v438_v14, 0.0 }
  0xfa   : > { %792 = vst.msk [vmem:[%s1216_s26 + $0x58] sm:$0xf] %vm769_vm2, %v989_v20  ;;  %774 = vst.msk [vmem:[%s1216_s26 + $0x10] sm:$0xf] %vm769_vm2, %v971_v21  ;;  %v629_v27 = vsel %vm565_vm14, %v499_v11, %v597_v22  ;;  %v582_v28 = vmul.f32 0.1, %v438_v14  ;;  %v459_v40 = vadd.f32 %v1028_v19, %v1204_v18  ;;  %v523_v44 = vadd.f32 %v1044_v23, %v1204_v18 }
  0xfb   : > { %vm566_vm3 = vcmp.ge.f32.partialorder %v502_v17, 0.0  ;;  %v987_v31 = vpack.c.bf16 %v629_v27, %v629_v27  ;;  %v616_v32 = vsel %vm552_vm15, %v446_v12, %v584_v25  ;;  %v632_v33 = vsel %vm568_vm0, %v510_v13, %v600_v26  ;;  %v1045_v35 = vpop.f32.mrb[10].mxu1  ;;  %v453_v36 = vpop.f32.mrb[11].mxu0 }
  0xfc   : > { %v598_v34 = vmul.f32 0.1, %v502_v17  ;;  %v974_v37 = vpack.c.bf16 %v616_v32, %v616_v32  ;;  %v990_v38 = vpack.c.bf16 %v632_v33, %v632_v33  ;;  %v614_v39 = vsel %vm550_vm1, %v438_v14, %v582_v28  ;;  %v517_v41 = vpop.f32.mrb[11].mxu1 }
  0xfd   : > { %790 = vst.msk [vmem:[%s1216_s26 + $0x50] sm:$0xf] %vm769_vm2, %v987_v31  ;;  %v972_v42 = vpack.c.bf16 %v614_v39, %v614_v39  ;;  %v451_v45 = vadd.f32 %v1204_v18, %v450_v24  ;;  %vm555_vm4 = vcmp.ge.f32.partialorder %v459_v40, 0.0  ;;  %v587_v47 = vmul.f32 0.1, %v459_v40 }
  0xfe   : > { %v630_v43 = vsel %vm566_vm3, %v502_v17, %v598_v34  ;;  %777 = vst.msk [vmem:[%s1216_s26 + $0x1c] sm:$0xf] %vm769_vm2, %v974_v37  ;;  %793 = vst.msk [vmem:[%s1216_s26 + $0x5c] sm:$0xf] %vm769_vm2, %v990_v38  ;;  %v515_v48 = vadd.f32 %v1204_v18, %v514_v29  ;;  %vm571_vm5 = vcmp.ge.f32.partialorder %v523_v44, 0.0  ;;  %v462_v53 = vadd.f32 %v1029_v30, %v1204_v18  ;;  %v1032_v54 = vpop.f32.mrb[12].mxu0 }
  0xff   : > { %v988_v46 = vpack.c.bf16 %v630_v43, %v630_v43  ;;  %775 = vst.msk [vmem:[%s1216_s26 + $0x14] sm:$0xf] %vm769_vm2, %v972_v42  ;;  %v603_v49 = vmul.f32 0.1, %v523_v44  ;;  %vm553_vm6 = vcmp.ge.f32.partialorder %v451_v45, 0.0  ;;  %v619_v51 = vsel %vm555_vm4, %v459_v40, %v587_v47  ;;  %v1048_v55 = vpop.f32.mrb[12].mxu1 }
 0x100   : > { %v585_v50 = vmul.f32 0.1, %v451_v45  ;;  %vm569_vm7 = vcmp.ge.f32.partialorder %v515_v48, 0.0  ;;  %v601_v52 = vmul.f32 0.1, %v515_v48  ;;  %v977_v56 = vpack.c.bf16 %v619_v51, %v619_v51  ;;  %v466_v60 = vpop.f32.mrb[13].mxu0 }
 0x101   : > { %791 = vst.msk [vmem:[%s1216_s26 + $0x54] sm:$0xf] %vm769_vm2, %v988_v46  ;;  %v635_v57 = vsel %vm571_vm5, %v523_v44, %v603_v49  ;;  %v526_v59 = vadd.f32 %v1045_v35, %v1204_v18  ;;  %v530_v61 = vpop.f32.mrb[13].mxu1  ;;  %vm556_vm8 = vcmp.ge.f32.partialorder %v462_v53, 0.0  ;;  %v1033_v1 = vpop.f32.mrb[14].mxu0  ;;  %v454_v7 = vadd.f32 %v1204_v18, %v453_v36 }
 0x102   : > { %v617_v58 = vsel %vm553_vm6, %v451_v45, %v585_v50  ;;  %v993_v62 = vpack.c.bf16 %v635_v57, %v635_v57  ;;  %v633_v0 = vsel %vm569_vm7, %v515_v48, %v601_v52  ;;  %v1049_v2 = vpop.f32.mrb[14].mxu1  ;;  %780 = vst.msk [vmem:[%s1216_s26 + $0x28] sm:$0xf] %vm769_vm2, %v977_v56  ;;  %v588_v4 = vmul.f32 0.1, %v462_v53  ;;  %v469_v6 = vpop.f32.mrb[15].mxu0 }
 0x103   : > { %v975_v63 = vpack.c.bf16 %v617_v58, %v617_v58  ;;  %v991_v3 = vpack.c.bf16 %v633_v0, %v633_v0  ;;  %vm572_vm9 = vcmp.ge.f32.partialorder %v526_v59, 0.0  ;;  %v604_v5 = vmul.f32 0.1, %v526_v59  ;;  %v533_v11 = vpop.f32.mrb[15].mxu1 }
 0x104   : > { %796 = vst.msk [vmem:[%s1216_s26 + $0x68] sm:$0xf] %vm769_vm2, %v993_v62  ;;  %v518_v8 = vadd.f32 %v1204_v18, %v517_v41  ;;  %v475_v9 = vadd.f32 %v1032_v54, %v1204_v18  ;;  %v539_v10 = vadd.f32 %v1048_v55, %v1204_v18  ;;  %v620_v12 = vsel %vm556_vm8, %v462_v53, %v588_v4 }
 0x105   : > { %778 = vst.msk [vmem:[%s1216_s26 + $0x20] sm:$0xf] %vm769_vm2, %v975_v63  ;;  %794 = vst.msk [vmem:[%s1216_s26 + $0x60] sm:$0xf] %vm769_vm2, %v991_v3  ;;  %v636_v13 = vsel %vm572_vm9, %v526_v59, %v604_v5  ;;  %v467_v14 = vadd.f32 %v1204_v18, %v466_v60  ;;  %v531_v15 = vadd.f32 %v1204_v18, %v530_v61  ;;  %vm554_vm10 = vcmp.ge.f32.partialorder %v454_v7, 0.0 }
 0x106   : > { %v978_v16 = vpack.c.bf16 %v620_v12, %v620_v12  ;;  %v994_v17 = vpack.c.bf16 %v636_v13, %v636_v13  ;;  %v586_v19 = vmul.f32 0.1, %v454_v7  ;;  %vm570_vm11 = vcmp.ge.f32.partialorder %v518_v8, 0.0 }
 0x107   : > { %v602_v20 = vmul.f32 0.1, %v518_v8  ;;  %vm559_vm12 = vcmp.ge.f32.partialorder %v475_v9, 0.0  ;;  %v591_v21 = vmul.f32 0.1, %v475_v9  ;;  %vm575_vm13 = vcmp.ge.f32.partialorder %v539_v10, 0.0 }
 0x108   : > { %781 = vst.msk [vmem:[%s1216_s26 + $0x2c] sm:$0xf] %vm769_vm2, %v978_v16  ;;  %797 = vst.msk [vmem:[%s1216_s26 + $0x6c] sm:$0xf] %vm769_vm2, %v994_v17  ;;  %v618_v22 = vsel %vm554_vm10, %v454_v7, %v586_v19  ;;  %v607_v23 = vmul.f32 0.1, %v539_v10  ;;  %v478_v34 = vadd.f32 %v1033_v1, %v1204_v18  ;;  %v542_v36 = vadd.f32 %v1049_v2, %v1204_v18 }
 0x109   : > { %vm557_vm14 = vcmp.ge.f32.partialorder %v467_v14, 0.0  ;;  %v976_v24 = vpack.c.bf16 %v618_v22, %v618_v22  ;;  %v634_v25 = vsel %vm570_vm11, %v518_v8, %v602_v20  ;;  %v623_v26 = vsel %vm559_vm12, %v475_v9, %v591_v21 }
 0x10a   : > { %v589_v27 = vmul.f32 0.1, %v467_v14  ;;  %v992_v28 = vpack.c.bf16 %v634_v25, %v634_v25  ;;  %v981_v29 = vpack.c.bf16 %v623_v26, %v623_v26  ;;  %v639_v30 = vsel %vm575_vm13, %v539_v10, %v607_v23 }
 0x10b   : > { %vm573_vm15 = vcmp.ge.f32.partialorder %v531_v15, 0.0  ;;  %779 = vst.msk [vmem:[%s1216_s26 + $0x24] sm:$0xf] %vm769_vm2, %v976_v24  ;;  %v997_v31 = vpack.c.bf16 %v639_v30, %v639_v30  ;;  %v605_v33 = vmul.f32 0.1, %v531_v15  ;;  %v470_v37 = vadd.f32 %v1204_v18, %v469_v6 }
 0x10c   : > { %v621_v32 = vsel %vm557_vm14, %v467_v14, %v589_v27  ;;  %795 = vst.msk [vmem:[%s1216_s26 + $0x64] sm:$0xf] %vm769_vm2, %v992_v28  ;;  %784 = vst.msk [vmem:[%s1216_s26 + $0x38] sm:$0xf] %vm769_vm2, %v981_v29  ;;  %v534_v38 = vadd.f32 %v1204_v18, %v533_v11  ;;  %vm560_vm0 = vcmp.ge.f32.partialorder %v478_v34, 0.0  ;;  %vm576_vm1 = vcmp.ge.f32.partialorder %v542_v36, 0.0 }
 0x10d   : > { %v979_v35 = vpack.c.bf16 %v621_v32, %v621_v32  ;;  %800 = vst.msk [vmem:[%s1216_s26 + $0x78] sm:$0xf] %vm769_vm2, %v997_v31  ;;  %v637_v39 = vsel %vm573_vm15, %v531_v15, %v605_v33  ;;  %v592_v40 = vmul.f32 0.1, %v478_v34  ;;  %v608_v42 = vmul.f32 0.1, %v542_v36 }
 0x10e   : > { %v995_v41 = vpack.c.bf16 %v637_v39, %v637_v39  ;;  %vm558_vm3 = vcmp.ge.f32.partialorder %v470_v37, 0.0  ;;  %v590_v44 = vmul.f32 0.1, %v470_v37  ;;  %vm574_vm4 = vcmp.ge.f32.partialorder %v534_v38, 0.0 }
 0x10f   : > { %782 = vst.msk [vmem:[%s1216_s26 + $0x30] sm:$0xf] %vm769_vm2, %v979_v35  ;;  %v624_v43 = vsel %vm560_vm0, %v478_v34, %v592_v40  ;;  %v606_v45 = vmul.f32 0.1, %v534_v38  ;;  %v640_v46 = vsel %vm576_vm1, %v542_v36, %v608_v42 }
 0x110   : > { %798 = vst.msk [vmem:[%s1216_s26 + $0x70] sm:$0xf] %vm769_vm2, %v995_v41  ;;  %v982_v18 = vpack.c.bf16 %v624_v43, %v624_v43  ;;  %v998_v47 = vpack.c.bf16 %v640_v46, %v640_v46  ;;  %v622_v48 = vsel %vm558_vm3, %v470_v37, %v590_v44 }
 0x111   : > { %v638_v49 = vsel %vm574_vm4, %v534_v38, %v606_v45  ;;  %v980_v50 = vpack.c.bf16 %v622_v48, %v622_v48 }
 0x112   : > { %785 = vst.msk [vmem:[%s1216_s26 + $0x3c] sm:$0xf] %vm769_vm2, %v982_v18  ;;  %v996_v51 = vpack.c.bf16 %v638_v49, %v638_v49  ;;  %801 = vst.msk [vmem:[%s1216_s26 + $0x7c] sm:$0xf] %vm769_vm2, %v998_v47 }
 0x113   : > { %783 = vst.msk [vmem:[%s1216_s26 + $0x34] sm:$0xf] %vm769_vm2, %v980_v50 }
 0x114   : > { %799 = vst.msk [vmem:[%s1216_s26 + $0x74] sm:$0xf] %vm769_vm2, %v996_v51 }
 0x115 PF: > { %s13_s14 = sadd.s32 1, %s1116_s14   ;;  %s1324_s12 = smov %s1112_s13 }
 0x116   : > { %p10_p5 = scmp.ge.s32.totalorder %s13_s14, 4   ;;  %s1325_s13 = smov %s1327_s15 }
 0x118   :  { %12 = sbr.rel (!%p10_p5) target bundleno = 2 (0x2), region = 62 }

// kernel: spp_block_forward.6
= control target key start
LH: loop header
LB: loop body
LE: loop exit
PB: predicated region body
PF: predicated region fallthrough
CT: control target
= control target key end

     0   :  { %s4467_s12 = smov 0   ;;  %s4469_s13 = smov 0   ;;  %s5189_s0 = inlined_call_operand.vmem [shape: bf16[2,16,16,4], index: 0, kind: input, shape index: {}]   ;;  %s5190_s1 = inlined_call_operand.vmem [shape: bf16[9,4,8], index: 1, kind: input, shape index: {}]   ;;  %s5191_s2 = inlined_call_operand.vmem [shape: f32[1,8], index: 2, kind: input, shape index: {}]   ;;  %s5192_s3 = inlined_call_operand.vmem [shape: bf16[2,16,16,8], index: 3, kind: output, shape index: {}]  }
   0x1   :  { %s4471_s14 = smov 0  }
   0x2 LB: > { %s25_s15 = sadd.s32 1, %s4440_s13  ;;  %p3363_p0 = scmp.ge.s32.totalorder %s4444_s14, 1  ;;  %s4444_s14 = sphi %s4471_s14, %s13_s14   ;;  %s4440_s13 = sphi %s4469_s13, %s5194_s13   ;;  %s4436_s12 = sphi %s4467_s12, %s5193_s12  }
   0x3   : > { %p27_p1 = scmp.ge.s32.totalorder %s25_s15, 2  ;;  %p151_p2 = scmp.lt.s32.totalorder %s4444_s14, 3 }
   0x5   : > { %s5196_s15 = smov (%p27_p1, %s25_s15), 0  ;;  %p152_p3 = pnand %p3363_p0, %p151_p2 }
   0x6   : > { %v3370_v0 = vld [vmem:[%s5190_s1 + $0x2] sm:$0x3] (!%p152_p3)  ;;  %vm534_vm0 = vcmask (!%p152_p3), 1041408   ;;  %v4493_v1 = vld [vmem:[%s5190_s1 + $0x8] sm:$0x3] (!%p152_p3)  ;;  %vm198_vm1 = vcmask (!%p152_p3), 31744  }
   0x7   : > { %155 = sbr.rel (%p152_p3) target bundleno = 551 (0x227), region = 32  ;;  %4387 = vmatprep.subr.msk.bf16.mxu1 (!%p152_p3), %vm534_vm0, %v3370_v0  ;;  %4391 = vmatprep.subr.msk.bf16.mxu0 (!%p152_p3), %vm534_vm0, %v4493_v1  ;;  %v536_v2 = vsel (!%p152_p3), %vm534_vm0, %v3370_v0, 0  ;;  %v4501_v3 = vsel (!%p152_p3), %vm534_vm0, %v4493_v1, 0  ;;  %vm201_vm2 = vcmask (!%p152_p3), 25600   ;;  %p180_p4 = scmp.lt.s32.totalorder (!%p152_p3), %s4436_s12, 1  ;;  %v4446_v4 = vmov (!%p152_p3), 0.0  }
   0x8   : > { %3824 = vmatpush3.bf16.msra.mxu1 (!%p152_p3), %v536_v2  ;;  %3960 = vmatpush3.bf16.msra.mxu0 (!%p152_p3), %v4501_v3  ;;  %199 = vst.msk [vmem:[#allocation2] sm:$0xff] (!%p152_p3), %vm198_vm1, %v4446_v4  ;;  %200 = vst.msk [vmem:[#allocation2 + $0x8] sm:$0xff] (!%p152_p3), %vm198_vm1, %v4446_v4  ;;  %v4562_v5 = vld [vmem:[%s5190_s1] sm:$0x3] (!%p152_p3)  ;;  %v4567_v6 = vld [vmem:[%s5190_s1 + $0xa] sm:$0x3] (!%p152_p3) }
   0x9   : > { %202 = vst.msk [vmem:[#allocation2 + $0x10] sm:$0x3] (!%p152_p3), %vm201_vm2, %v4446_v4  ;;  %205 = vst.msk [vmem:[#allocation2 + $0x28] sm:$0x3] (!%p152_p3), %vm201_vm2, %v4446_v4  ;;  %4388 = vmatprep.subr.msk.bf16.mxu1 (!%p152_p3), %vm534_vm0, %v4562_v5  ;;  %4393 = vmatprep.subr.msk.bf16.mxu0 (!%p152_p3), %vm534_vm0, %v4567_v6  ;;  %v748_v62 = vsel (!%p152_p3), %vm534_vm0, %v4562_v5, 0  ;;  %vm3233_vm5 = vcmask (!%p152_p3), 60416  }
   0xa   : > { %203 = vst.msk [vmem:[#allocation2 + $0x18] sm:$0xff] (!%p152_p3), %vm198_vm1, %v4446_v4  ;;  %204 = vst.msk [vmem:[#allocation2 + $0x20] sm:$0xff] (!%p152_p3), %vm198_vm1, %v4446_v4  ;;  %v3471_v5 = vld [vmem:[%s5190_s1 + $0xc] sm:$0x3] (!%p152_p3) }
   0xb   : > { %206 = vst.msk [vmem:[#allocation2 + $0x30] sm:$0xff] (!%p152_p3), %vm198_vm1, %v4446_v4  ;;  %207 = vst.msk [vmem:[#allocation2 + $0x38] sm:$0xff] (!%p152_p3), %vm198_vm1, %v4446_v4 }
   0xc   : > { %208 = vst.msk [vmem:[#allocation2 + $0x40] sm:$0x3] (!%p152_p3), %vm201_vm2, %v4446_v4  ;;  %211 = vst.msk [vmem:[#allocation2 + $0x58] sm:$0x3] (!%p152_p3), %vm201_vm2, %v4446_v4 }
   0xd   : > { %209 = vst.msk [vmem:[#allocation2 + $0x48] sm:$0xff] (!%p152_p3), %vm198_vm1, %v4446_v4  ;;  %210 = vst.msk [vmem:[#allocation2 + $0x50] sm:$0xff] (!%p152_p3), %vm198_vm1, %v4446_v4 }
   0xe   : > { %212 = vst.msk [vmem:[#allocation2 + $0x60] sm:$0xff] %vm198_vm1, %v4446_v4  ;;  %213 = vst.msk [vmem:[#allocation2 + $0x68] sm:$0xff] %vm198_vm1, %v4446_v4  ;;  %s5198_s12 = smov (!%p180_p4, %s4436_s12), 1 }
   0xf   : > { %214 = vst.msk [vmem:[#allocation2 + $0x70] sm:$0x3] %vm201_vm2, %v4446_v4  ;;  %217 = vst.msk [vmem:[#allocation2 + $0x88] sm:$0x3] %vm201_vm2, %v4446_v4  ;;  %s3557_s24 = sshll.u32 %s5198_s12, 7  ;;  %v436_v17 = vld [vmem:[#allocation2 + $0x1] sm:$0xff] }
  0x10   : > { %215 = vst.msk [vmem:[#allocation2 + $0x78] sm:$0xff] %vm198_vm1, %v4446_v4  ;;  %216 = vst.msk [vmem:[#allocation2 + $0x80] sm:$0xff] %vm198_vm1, %v4446_v4  ;;  %s4584_s27 = scalar_lea.vmem %s5189_s0, %s3557_s24  ;;  %v437_v18 = vld [vmem:[#allocation2 + $0x9] sm:$0xff]  ;;  %s5078_s19 = scalar_lea.vmem %s5192_s3, %s3557_s24 }
  0x11   : > { %218 = vst.msk [vmem:[#allocation2 + $0x90] sm:$0xff] %vm198_vm1, %v4446_v4  ;;  %219 = vst.msk [vmem:[#allocation2 + $0x98] sm:$0xff] %vm198_vm1, %v4446_v4  ;;  %v3592_v7 = vld [vmem:[%s4584_s27] sm:$0xff]   ;;  %v3655_v8 = vld [vmem:[%s4584_s27 + $0x8] sm:$0xff]   ;;  %v468_v24 = vpack.c.bf16 %v437_v18, %v436_v17 }
  0x12   : > { %220 = vst.msk [vmem:[#allocation2 + $0xa0] sm:$0x3] %vm201_vm2, %v4446_v4  ;;  %223 = vst.msk [vmem:[#allocation2 + $0xb8] sm:$0x3] %vm201_vm2, %v4446_v4  ;;  %v3656_v9 = vld [vmem:[%s4584_s27 + $0x10] sm:$0xff]   ;;  %v3593_v10 = vunpack.c.l.bf16 %v3592_v7  ;;  %v3594_v11 = vunpack.c.h.bf16 %v3592_v7  ;;  %v3597_v12 = vunpack.c.l.bf16 %v3655_v8  ;;  %v3598_v13 = vunpack.c.h.bf16 %v3655_v8  ;;  %v3657_v14 = vld [vmem:[%s4584_s27 + $0x18] sm:$0xff]  }
  0x13   : > { %221 = vst.msk [vmem:[#allocation2 + $0xa8] sm:$0xff] %vm198_vm1, %v4446_v4  ;;  %222 = vst.msk [vmem:[#allocation2 + $0xb0] sm:$0xff] %vm198_vm1, %v4446_v4  ;;  %v3658_v15 = vld [vmem:[%s4584_s27 + $0x20] sm:$0xff]   ;;  %v3659_v16 = vld [vmem:[%s4584_s27 + $0x28] sm:$0xff]   ;;  %v3601_v19 = vunpack.c.l.bf16 %v3656_v9  ;;  %v3602_v20 = vunpack.c.h.bf16 %v3656_v9  ;;  %v3605_v21 = vunpack.c.l.bf16 %v3657_v14  ;;  %v3606_v22 = vunpack.c.h.bf16 %v3657_v14  ;;  %3825 = vmatprep.mubr.msk.bf16.mxu1 %vm198_vm1, %v468_v24 }
  0x14   : > { %224 = vst.msk [vmem:[#allocation2 + $0xc0] sm:$0xff] %vm198_vm1, %v4446_v4  ;;  %225 = vst.msk [vmem:[#allocation2 + $0xc8] sm:$0xff] %vm198_vm1, %v4446_v4  ;;  %v3660_v23 = vld [vmem:[%s4584_s27 + $0x30] sm:$0xff]   ;;  %v3609_v25 = vunpack.c.l.bf16 %v3658_v15  ;;  %v3610_v26 = vunpack.c.h.bf16 %v3658_v15  ;;  %v3613_v27 = vunpack.c.l.bf16 %v3659_v16  ;;  %v3661_v28 = vld [vmem:[%s4584_s27 + $0x38] sm:$0xff]   ;;  %v3614_v31 = vunpack.c.h.bf16 %v3659_v16 }
  0x15   : > { %226 = vst.msk [vmem:[#allocation2 + $0xd0] sm:$0x3] %vm201_vm2, %v4446_v4  ;;  %229 = vst.msk [vmem:[#allocation2 + $0xe8] sm:$0x3] %vm201_vm2, %v4446_v4  ;;  %v3662_v29 = vld [vmem:[%s4584_s27 + $0x40] sm:$0xff]   ;;  %v3663_v30 = vld [vmem:[%s4584_s27 + $0x48] sm:$0xff]   ;;  %v3617_v32 = vunpack.c.l.bf16 %v3660_v23  ;;  %v3618_v33 = vunpack.c.h.bf16 %v3660_v23  ;;  %v3621_v34 = vunpack.c.l.bf16 %v3661_v28  ;;  %v3622_v38 = vunpack.c.h.bf16 %v3661_v28 }
  0x16   : > { %227 = vst.msk [vmem:[#allocation2 + $0xd8] sm:$0xff] %vm198_vm1, %v4446_v4  ;;  %228 = vst.msk [vmem:[#allocation2 + $0xe0] sm:$0xff] %vm198_vm1, %v4446_v4  ;;  %v3664_v35 = vld [vmem:[%s4584_s27 + $0x50] sm:$0xff]   ;;  %v3665_v36 = vld [vmem:[%s4584_s27 + $0x58] sm:$0xff]   ;;  %v3625_v39 = vunpack.c.l.bf16 %v3662_v29  ;;  %v3626_v40 = vunpack.c.h.bf16 %v3662_v29  ;;  %v3629_v41 = vunpack.c.l.bf16 %v3663_v30  ;;  %v3630_v44 = vunpack.c.h.bf16 %v3663_v30 }
  0x17   : > { %230 = vst.msk [vmem:[#allocation2 + $0xf0] sm:$0xff] %vm198_vm1, %v4446_v4  ;;  %231 = vst.msk [vmem:[#allocation2 + $0xf8] sm:$0xff] %vm198_vm1, %v4446_v4  ;;  %v3666_v37 = vld [vmem:[%s4584_s27 + $0x60] sm:$0xff]   ;;  %v3667_v42 = vld [vmem:[%s4584_s27 + $0x68] sm:$0xff]   ;;  %v3633_v45 = vunpack.c.l.bf16 %v3664_v35  ;;  %v3634_v46 = vunpack.c.h.bf16 %v3664_v35  ;;  %v3637_v47 = vunpack.c.l.bf16 %v3665_v36  ;;  %v3638_v49 = vunpack.c.h.bf16 %v3665_v36 }
  0x18   : > { %232 = vst.msk [vmem:[#allocation2 + $0x100] sm:$0x3] %vm201_vm2, %v4446_v4  ;;  %235 = vst.msk [vmem:[#allocation2 + $0x118] sm:$0x3] %vm201_vm2, %v4446_v4  ;;  %v3668_v43 = vld [vmem:[%s4584_s27 + $0x70] sm:$0xff]   ;;  %v3669_v48 = vld [vmem:[%s4584_s27 + $0x78] sm:$0xff]   ;;  %v3641_v50 = vunpack.c.l.bf16 %v3666_v37  ;;  %v3642_v51 = vunpack.c.h.bf16 %v3666_v37  ;;  %v3645_v52 = vunpack.c.l.bf16 %v3667_v42  ;;  %v3646_v53 = vunpack.c.h.bf16 %v3667_v42 }
  0x19   : > { %233 = vst.msk [vmem:[#allocation2 + $0x108] sm:$0xff] %vm198_vm1, %v4446_v4  ;;  %234 = vst.msk [vmem:[#allocation2 + $0x110] sm:$0xff] %vm198_vm1, %v4446_v4  ;;  %v3649_v54 = vunpack.c.l.bf16 %v3668_v43  ;;  %v3650_v55 = vunpack.c.h.bf16 %v3668_v43  ;;  %v3653_v56 = vunpack.c.l.bf16 %v3669_v48  ;;  %v3654_v57 = vunpack.c.h.bf16 %v3669_v48  ;;  %v4653_v9 = vld [vmem:[%s5190_s1 + $0x4] sm:$0x3] }
  0x1a   : > { %236 = vst.msk [vmem:[#allocation2 + $0x120] sm:$0xff] %vm198_vm1, %v4446_v4  ;;  %237 = vst.msk [vmem:[#allocation2 + $0x128] sm:$0xff] %vm198_vm1, %v4446_v4  ;;  %v1892_v7 = vsel %vm534_vm0, %v4567_v6, 0 }
  0x1b   : > { %238 = vst.msk [vmem:[#allocation2 + $0x130] sm:$0x3] %vm201_vm2, %v4446_v4  ;;  %241 = vst.msk [vmem:[#allocation2 + $0x148] sm:$0x3] %vm201_vm2, %v4446_v4 }
  0x1c   : > { %239 = vst.msk [vmem:[#allocation2 + $0x138] sm:$0xff] %vm198_vm1, %v4446_v4  ;;  %240 = vst.msk [vmem:[#allocation2 + $0x140] sm:$0xff] %vm198_vm1, %v4446_v4 }
  0x1d   : > { %242 = vst.msk [vmem:[#allocation2 + $0x150] sm:$0xff] %vm198_vm1, %v4446_v4  ;;  %243 = vst.msk [vmem:[#allocation2 + $0x158] sm:$0xff] %vm198_vm1, %v4446_v4 }
  0x1e   : > { %244 = vst.msk [vmem:[#allocation2 + $0x160] sm:$0x3] %vm201_vm2, %v4446_v4  ;;  %247 = vst.msk [vmem:[#allocation2 + $0x178] sm:$0x3] %vm201_vm2, %v4446_v4 }
  0x1f   : > { %245 = vst.msk [vmem:[#allocation2 + $0x168] sm:$0xff] %vm198_vm1, %v4446_v4  ;;  %246 = vst.msk [vmem:[#allocation2 + $0x170] sm:$0xff] %vm198_vm1, %v4446_v4 }
  0x20   : > { %248 = vst.msk [vmem:[#allocation2 + $0x180] sm:$0xff] %vm198_vm1, %v4446_v4  ;;  %249 = vst.msk [vmem:[#allocation2 + $0x188] sm:$0xff] %vm198_vm1, %v4446_v4 }
  0x21   : > { %250 = vst.msk [vmem:[#allocation2 + $0x190] sm:$0x3] %vm201_vm2, %v4446_v4  ;;  %253 = vst.msk [vmem:[#allocation2 + $0x1a8] sm:$0x3] %vm201_vm2, %v4446_v4 }
  0x22   : > { %251 = vst.msk [vmem:[#allocation2 + $0x198] sm:$0xff] %vm198_vm1, %v4446_v4  ;;  %252 = vst.msk [vmem:[#allocation2 + $0x1a0] sm:$0xff] %vm198_vm1, %v4446_v4 }
  0x23   : > { %322 = vst.msk [vmem:[#allocation2 + $0x19] sm:$0xff] %vm198_vm1, %v3593_v10  ;;  %323 = vst.msk [vmem:[#allocation2 + $0x21] sm:$0xff] %vm198_vm1, %v3594_v11 }
  0x24   : > { %324 = vst.msk [vmem:[#allocation2 + $0x31] sm:$0xff] %vm198_vm1, %v3597_v12  ;;  %325 = vst.msk [vmem:[#allocation2 + $0x39] sm:$0xff] %vm198_vm1, %v3598_v13 }
  0x25   : > { %326 = vst.msk [vmem:[#allocation2 + $0x49] sm:$0xff] %vm198_vm1, %v3601_v19  ;;  %327 = vst.msk [vmem:[#allocation2 + $0x51] sm:$0xff] %vm198_vm1, %v3602_v20 }
  0x26   : > { %328 = vst.msk [vmem:[#allocation2 + $0x61] sm:$0xff] %vm198_vm1, %v3605_v21  ;;  %329 = vst.msk [vmem:[#allocation2 + $0x69] sm:$0xff] %vm198_vm1, %v3606_v22 }
  0x27   : > { %330 = vst.msk [vmem:[#allocation2 + $0x79] sm:$0xff] %vm198_vm1, %v3609_v25  ;;  %331 = vst.msk [vmem:[#allocation2 + $0x81] sm:$0xff] %vm198_vm1, %v3610_v26 }
  0x28   : > { %332 = vst.msk [vmem:[#allocation2 + $0x91] sm:$0xff] %vm198_vm1, %v3613_v27  ;;  %333 = vst.msk [vmem:[#allocation2 + $0x99] sm:$0xff] %vm198_vm1, %v3614_v31 }
  0x29   : > { %334 = vst.msk [vmem:[#allocation2 + $0xa9] sm:$0xff] %vm198_vm1, %v3617_v32  ;;  %335 = vst.msk [vmem:[#allocation2 + $0xb1] sm:$0xff] %vm198_vm1, %v3618_v33 }
  0x2a   : > { %336 = vst.msk [vmem:[#allocation2 + $0xc1] sm:$0xff] %vm198_vm1, %v3621_v34  ;;  %337 = vst.msk [vmem:[#allocation2 + $0xc9] sm:$0xff] %vm198_vm1, %v3622_v38  ;;  %v438_v58 = vld [vmem:[#allocation2 + $0x19] sm:$0xff]  ;;  %v439_v59 = vld [vmem:[#allocation2 + $0x21] sm:$0xff] }
  0x2b   : > { %338 = vst.msk [vmem:[#allocation2 + $0xd9] sm:$0xff] %vm198_vm1, %v3625_v39  ;;  %339 = vst.msk [vmem:[#allocation2 + $0xe1] sm:$0xff] %vm198_vm1, %v3626_v40  ;;  %v1501_v60 = vld [vmem:[#allocation2 + $0x31] sm:$0xff]  ;;  %v469_v61 = vpack.c.bf16 %v439_v59, %v438_v58  ;;  %v1502_v63 = vld [vmem:[#allocation2 + $0x39] sm:$0xff]  ;;  %v2187_v39 = vsel %vm534_vm0, %v3471_v5, 0 }
  0x2c   : > { %340 = vst.msk [vmem:[#allocation2 + $0xf1] sm:$0xff] %vm198_vm1, %v3629_v41  ;;  %341 = vst.msk [vmem:[#allocation2 + $0xf9] sm:$0xff] %vm198_vm1, %v3630_v44  ;;  %v442_v0 = vld [vmem:[#allocation2 + $0x49] sm:$0xff]  ;;  %v443_v2 = vld [vmem:[#allocation2 + $0x51] sm:$0xff]  ;;  %v4637_v4 = vpack.c.bf16 %v1502_v63, %v1501_v60 }
  0x2d   : > { %342 = vst.msk [vmem:[#allocation2 + $0x109] sm:$0xff] %vm198_vm1, %v3633_v45  ;;  %343 = vst.msk [vmem:[#allocation2 + $0x111] sm:$0xff] %vm198_vm1, %v3634_v46  ;;  %v4641_v8 = vpack.c.bf16 %v443_v2, %v442_v0  ;;  %3826 = vmatmul.mubr.msk.bf16.vlgmr.msra.gmra.mrb[0].mxu1 %vm198_vm1, %v469_v61  ;;  %3961 = vmatprep.mubr.msk.bf16.mxu0 %vm198_vm1, %v469_v61  ;;  %v1505_v6 = vld [vmem:[#allocation2 + $0x61] sm:$0xff]  ;;  %v1506_v10 = vld [vmem:[#allocation2 + $0x69] sm:$0xff] }
  0x2e   : > { %344 = vst.msk [vmem:[#allocation2 + $0x121] sm:$0xff] %vm198_vm1, %v3637_v47  ;;  %345 = vst.msk [vmem:[#allocation2 + $0x129] sm:$0xff] %vm198_vm1, %v3638_v49  ;;  %3858 = vmatpush3.bf16.msra.mxu1 %v748_v62  ;;  %3962 = vmatmul.mubr.msk.bf16.vlgmr.msra.gmra.mrb[0].mxu0 %vm198_vm1, %v4637_v4  ;;  %v446_v11 = vld [vmem:[#allocation2 + $0x79] sm:$0xff]  ;;  %v447_v12 = vld [vmem:[#allocation2 + $0x81] sm:$0xff]  ;;  %v4662_v13 = vpack.c.bf16 %v1506_v10, %v1505_v6 }
  0x2f   : > { %346 = vst.msk [vmem:[#allocation2 + $0x139] sm:$0xff] %vm198_vm1, %v3641_v50  ;;  %347 = vst.msk [vmem:[#allocation2 + $0x141] sm:$0xff] %vm198_vm1, %v3642_v51  ;;  %3994 = vmatpush3.bf16.msra.mxu0 %v1892_v7  ;;  %3829 = vmatprep.mubr.msk.bf16.mxu1 %vm198_vm1, %v4637_v4  ;;  %v4664_v14 = vpack.c.bf16 %v447_v12, %v446_v11  ;;  %v1509_v15 = vld [vmem:[#allocation2 + $0x91] sm:$0xff]  ;;  %v1510_v16 = vld [vmem:[#allocation2 + $0x99] sm:$0xff] }
  0x30   : > { %348 = vst.msk [vmem:[#allocation2 + $0x151] sm:$0xff] %vm198_vm1, %v3645_v52  ;;  %349 = vst.msk [vmem:[#allocation2 + $0x159] sm:$0xff] %vm198_vm1, %v3646_v53  ;;  %3965 = vmatprep.mubr.msk.bf16.mxu0 %vm198_vm1, %v4641_v8  ;;  %4394 = vmatprep.subr.msk.bf16.mxu0 %vm534_vm0, %v3471_v5  ;;  %v450_v17 = vld [vmem:[#allocation2 + $0xa9] sm:$0xff]  ;;  %v451_v18 = vld [vmem:[#allocation2 + $0xb1] sm:$0xff]  ;;  %v4674_v19 = vpack.c.bf16 %v1510_v16, %v1509_v15 }
  0x31   : > { %350 = vst.msk [vmem:[#allocation2 + $0x169] sm:$0xff] %vm198_vm1, %v3649_v54  ;;  %351 = vst.msk [vmem:[#allocation2 + $0x171] sm:$0xff] %vm198_vm1, %v3650_v55  ;;  %4389 = vmatprep.subr.msk.bf16.mxu1 %vm534_vm0, %v4653_v9  ;;  %v4676_v20 = vpack.c.bf16 %v451_v18, %v450_v17  ;;  %v1513_v21 = vld [vmem:[#allocation2 + $0xc1] sm:$0xff]  ;;  %v1514_v22 = vld [vmem:[#allocation2 + $0xc9] sm:$0xff] }
  0x32   : > { %352 = vst.msk [vmem:[#allocation2 + $0x181] sm:$0xff] %vm198_vm1, %v3653_v56  ;;  %353 = vst.msk [vmem:[#allocation2 + $0x189] sm:$0xff] %vm198_vm1, %v3654_v57  ;;  %v1793_v23 = vld [vmem:[#allocation2 + $0x1a] sm:$0xff]  ;;  %v1794_v24 = vld [vmem:[#allocation2 + $0x22] sm:$0xff]  ;;  %v4686_v25 = vpack.c.bf16 %v1514_v22, %v1513_v21 }
  0x33   : > { %v4688_v26 = vpack.c.bf16 %v1794_v24, %v1793_v23  ;;  %v454_v27 = vld [vmem:[#allocation2 + $0xd9] sm:$0xff]  ;;  %v455_v28 = vld [vmem:[#allocation2 + $0xe1] sm:$0xff]  ;;  %v456_v31 = vld [vmem:[#allocation2 + $0xf1] sm:$0xff] }
  0x34   : > { %v1795_v29 = vld [vmem:[#allocation2 + $0x32] sm:$0xff]  ;;  %v1796_v30 = vld [vmem:[#allocation2 + $0x3a] sm:$0xff]  ;;  %v1797_v33 = vld [vmem:[#allocation2 + $0x4a] sm:$0xff]  ;;  %v4698_v35 = vpack.c.bf16 %v455_v28, %v454_v27 }
  0x35   : > { %3830 = vmatmul.mubr.msk.bf16.gmra.mrb[4].mxu1 %vm198_vm1, %v4641_v8  ;;  %v457_v32 = vld [vmem:[#allocation2 + $0xf9] sm:$0xff]  ;;  %v4700_v36 = vpack.c.bf16 %v1796_v30, %v1795_v29  ;;  %v4712_v40 = vld [vmem:[%s5190_s1 + $0xe] sm:$0x3]  ;;  %v459_v42 = vld [vmem:[#allocation2 + $0x111] sm:$0xff] }
  0x36   : > { %3966 = vmatmul.mubr.msk.bf16.gmra.mrb[4].mxu0 %vm198_vm1, %v4662_v13  ;;  %3833 = vmatprep.mubr.msk.bf16.mxu1 %vm198_vm1, %v4662_v13  ;;  %v1798_v34 = vld [vmem:[#allocation2 + $0x52] sm:$0xff]  ;;  %v4702_v37 = vpack.c.bf16 %v457_v32, %v456_v31  ;;  %v458_v41 = vld [vmem:[#allocation2 + $0x109] sm:$0xff]  ;;  %v460_v45 = vld [vmem:[#allocation2 + $0x121] sm:$0xff] }
  0x37   : > { %3969 = vmatprep.mubr.msk.bf16.mxu0 %vm198_vm1, %v4664_v14  ;;  %v4704_v38 = vpack.c.bf16 %v1798_v34, %v1797_v33  ;;  %v1799_v43 = vld [vmem:[#allocation2 + $0x62] sm:$0xff]  ;;  %v1800_v44 = vld [vmem:[#allocation2 + $0x6a] sm:$0xff]  ;;  %v1801_v47 = vld [vmem:[#allocation2 + $0x7a] sm:$0xff]  ;;  %v4722_v49 = vpack.c.bf16 %v459_v42, %v458_v41  ;;  %v1010_v34 = vsel %vm534_vm0, %v4653_v9, 0 }
  0x38   : > { %v461_v46 = vld [vmem:[#allocation2 + $0x129] sm:$0xff]  ;;  %v4724_v50 = vpack.c.bf16 %v1800_v44, %v1799_v43  ;;  %v462_v53 = vld [vmem:[#allocation2 + $0x139] sm:$0xff]  ;;  %v463_v54 = vld [vmem:[#allocation2 + $0x141] sm:$0xff] }
  0x39   : > { %v1802_v48 = vld [vmem:[#allocation2 + $0x82] sm:$0xff]  ;;  %v4726_v51 = vpack.c.bf16 %v461_v46, %v460_v45  ;;  %v1803_v55 = vld [vmem:[#allocation2 + $0x92] sm:$0xff]  ;;  %v1804_v56 = vld [vmem:[#allocation2 + $0x9a] sm:$0xff]  ;;  %v4738_v61 = vpack.c.bf16 %v463_v54, %v462_v53 }
  0x3a   : > { %v4728_v52 = vpack.c.bf16 %v1802_v48, %v1801_v47  ;;  %v464_v57 = vld [vmem:[#allocation2 + $0x151] sm:$0xff]  ;;  %v465_v58 = vld [vmem:[#allocation2 + $0x159] sm:$0xff]  ;;  %v4740_v62 = vpack.c.bf16 %v1804_v56, %v1803_v55  ;;  %v466_v2 = vld [vmem:[#allocation2 + $0x169] sm:$0xff] }
  0x3b   : > { %v1805_v59 = vld [vmem:[#allocation2 + $0xaa] sm:$0xff]  ;;  %v1806_v60 = vld [vmem:[#allocation2 + $0xb2] sm:$0xff]  ;;  %v4742_v63 = vpack.c.bf16 %v465_v58, %v464_v57  ;;  %v387_v5 = vld [vmem:[#allocation2] sm:$0xff] }
  0x3c   : > { %v4744_v0 = vpack.c.bf16 %v1806_v60, %v1805_v59  ;;  %v467_v7 = vld [vmem:[#allocation2 + $0x171] sm:$0xff]  ;;  %v1807_v6 = vld [vmem:[#allocation2 + $0xc2] sm:$0xff]  ;;  %v1809_v12 = vld [vmem:[#allocation2 + $0xda] sm:$0xff] }
  0x3d   : > { %3834 = vmatmul.mubr.msk.bf16.gmra.mrb[8].mxu1 %vm198_vm1, %v4664_v14  ;;  %v1808_v10 = vld [vmem:[#allocation2 + $0xca] sm:$0xff]  ;;  %v1810_v15 = vld [vmem:[#allocation2 + $0xe2] sm:$0xff]  ;;  %v4754_v16 = vpack.c.bf16 %v467_v7, %v466_v2  ;;  %v389_v22 = vld [vmem:[#allocation2 + $0x18] sm:$0xff] }
  0x3e   : > { %3970 = vmatmul.mubr.msk.bf16.gmra.mrb[8].mxu0 %vm198_vm1, %v4674_v19  ;;  %3837 = vmatprep.mubr.msk.bf16.mxu1 %vm198_vm1, %v4674_v19  ;;  %v388_v11 = vld [vmem:[#allocation2 + $0x8] sm:$0xff]  ;;  %v4756_v17 = vpack.c.bf16 %v1808_v10, %v1807_v6  ;;  %v4758_v21 = vpack.c.bf16 %v1810_v15, %v1809_v12  ;;  %v390_v23 = vld [vmem:[#allocation2 + $0x20] sm:$0xff]  ;;  %v1811_v24 = vld [vmem:[#allocation2 + $0xf2] sm:$0xff] }
  0x3f   : > { %3973 = vmatprep.mubr.msk.bf16.mxu0 %vm198_vm1, %v4676_v20  ;;  %v419_v18 = vpack.c.bf16 %v388_v11, %v387_v5  ;;  %v1812_v27 = vld [vmem:[#allocation2 + $0xfa] sm:$0xff]  ;;  %v391_v28 = vld [vmem:[#allocation2 + $0x30] sm:$0xff]  ;;  %v4767_v32 = vpack.c.bf16 %v390_v23, %v389_v22  ;;  %v4782_v42 = vld [vmem:[%s5190_s1 + $0x6] sm:$0x3] }
  0x40   : > { %v392_v29 = vld [vmem:[#allocation2 + $0x38] sm:$0xff]  ;;  %v1813_v30 = vld [vmem:[#allocation2 + $0x10a] sm:$0xff]  ;;  %v4769_v33 = vpack.c.bf16 %v1812_v27, %v1811_v24  ;;  %v1815_v45 = vld [vmem:[#allocation2 + $0x122] sm:$0xff] }
  0x41   : > { %v1814_v31 = vld [vmem:[#allocation2 + $0x112] sm:$0xff]  ;;  %v393_v43 = vld [vmem:[#allocation2 + $0x48] sm:$0xff]  ;;  %v395_v46 = vld [vmem:[#allocation2 + $0x60] sm:$0xff] }
  0x42   : > { %v4775_v41 = vpack.c.bf16 %v1814_v31, %v1813_v30  ;;  %v394_v44 = vld [vmem:[#allocation2 + $0x50] sm:$0xff]  ;;  %v396_v47 = vld [vmem:[#allocation2 + $0x68] sm:$0xff]  ;;  %v1817_v48 = vld [vmem:[#allocation2 + $0x13a] sm:$0xff] }
  0x43   : > { %v1816_v9 = vld [vmem:[#allocation2 + $0x12a] sm:$0xff]  ;;  %v1818_v53 = vld [vmem:[#allocation2 + $0x142] sm:$0xff]  ;;  %v4792_v54 = vpack.c.bf16 %v394_v44, %v393_v43  ;;  %v4796_v56 = vpack.c.bf16 %v396_v47, %v395_v46  ;;  %v397_v58 = vld [vmem:[#allocation2 + $0x78] sm:$0xff] }
  0x44   : > { %v4794_v55 = vpack.c.bf16 %v1816_v9, %v1815_v45  ;;  %v4798_v57 = vpack.c.bf16 %v1818_v53, %v1817_v48  ;;  %v398_v59 = vld [vmem:[#allocation2 + $0x80] sm:$0xff]  ;;  %v1819_v60 = vld [vmem:[#allocation2 + $0x152] sm:$0xff]  ;;  %v1821_v6 = vld [vmem:[#allocation2 + $0x16a] sm:$0xff]  ;;  %v2481_v48 = vsel %vm534_vm0, %v4712_v40, 0 }
  0x45   : > { %3838 = vmatmul.mubr.msk.bf16.gmra.mrb[12].mxu1 %vm198_vm1, %v4676_v20  ;;  %v1820_v2 = vld [vmem:[#allocation2 + $0x15a] sm:$0xff]  ;;  %v399_v7 = vld [vmem:[#allocation2 + $0x90] sm:$0xff]  ;;  %v4808_v11 = vpack.c.bf16 %v398_v59, %v397_v58  ;;  %v401_v22 = vld [vmem:[#allocation2 + $0xa8] sm:$0xff] }
  0x46   : > { %3974 = vmatmul.mubr.msk.bf16.gmra.mrb[12].mxu0 %vm198_vm1, %v4686_v25  ;;  %3841 = vmatprep.mubr.msk.bf16.mxu1 %vm198_vm1, %v4686_v25  ;;  %v400_v5 = vld [vmem:[#allocation2 + $0x98] sm:$0xff]  ;;  %v4810_v12 = vpack.c.bf16 %v1820_v2, %v1819_v60  ;;  %v402_v23 = vld [vmem:[#allocation2 + $0xb0] sm:$0xff]  ;;  %v1823_v24 = vld [vmem:[#allocation2 + $0x182] sm:$0xff] }
  0x47   : > { %3995 = vmatprep.mubr.msk.bf16.mxu0 %vm198_vm1, %v4688_v26  ;;  %v1822_v10 = vld [vmem:[#allocation2 + $0x172] sm:$0xff]  ;;  %v4812_v15 = vpack.c.bf16 %v400_v5, %v399_v7  ;;  %v1824_v27 = vld [vmem:[#allocation2 + $0x18a] sm:$0xff]  ;;  %v4824_v30 = vpack.c.bf16 %v402_v23, %v401_v22  ;;  %v406_v44 = vld [vmem:[#allocation2 + $0xe0] sm:$0xff] }
  0x48   : > { %v4826_v31 = vpack.c.bf16 %v1824_v27, %v1823_v24  ;;  %v405_v43 = vld [vmem:[#allocation2 + $0xd8] sm:$0xff]  ;;  %v407_v45 = vld [vmem:[#allocation2 + $0xf0] sm:$0xff]  ;;  %v409_v58 = vld [vmem:[#allocation2 + $0x108] sm:$0xff] }
  0x49   : > { %v408_v9 = vld [vmem:[#allocation2 + $0xf8] sm:$0xff]  ;;  %v4838_v46 = vpack.c.bf16 %v406_v44, %v405_v43  ;;  %v3505_v53 = vld [vmem:[%s5190_s1 + $0x10] sm:$0x3]  ;;  %v412_v60 = vld [vmem:[#allocation2 + $0x128] sm:$0xff] }
  0x4a   : > { %v4840_v47 = vpack.c.bf16 %v408_v9, %v407_v45  ;;  %v410_v59 = vld [vmem:[#allocation2 + $0x110] sm:$0xff]  ;;  %v413_v5 = vld [vmem:[#allocation2 + $0x138] sm:$0xff]  ;;  %v417_v27 = vld [vmem:[#allocation2 + $0x168] sm:$0xff]  ;;  %v1304_v9 = vsel %vm534_vm0, %v4782_v42, 0 }
  0x4b   : > { %v4856_v2 = vpack.c.bf16 %v410_v59, %v409_v58  ;;  %v416_v22 = vld [vmem:[#allocation2 + $0x158] sm:$0xff]  ;;  %v912_v43 = vld [vmem:[#allocation2 + $0xa] sm:$0xff]  ;;  %v2119_v58 = vld [vmem:[#allocation2 + $0x1a0] sm:$0xff] }
  0x4d   : > { %3842 = vmatmul.mubr.msk.bf16.gmra.mrb[16].mxu1 %vm198_vm1, %v4698_v35 }
  0x4e   : > { %3996 = vmatmul.mubr.msk.bf16.vlgmr.msra.gmra.mrb[0].mxu0 %vm198_vm1, %v4700_v36  ;;  %3845 = vmatprep.mubr.msk.bf16.mxu1 %vm198_vm1, %v4702_v37 }
  0x4f   : > { %4028 = vmatpush3.bf16.msra.mxu0 %v2187_v39  ;;  %3999 = vmatprep.mubr.msk.bf16.mxu0 %vm198_vm1, %v4704_v38  ;;  %v4773_v39 = vpack.c.bf16 %v392_v29, %v391_v28  ;;  %v403_v28 = vld [vmem:[#allocation2 + $0xc0] sm:$0xff]  ;;  %v404_v29 = vld [vmem:[#allocation2 + $0xc8] sm:$0xff] }
  0x50   : > { %4395 = vmatprep.subr.msk.bf16.mxu0 %vm534_vm0, %v4712_v40  ;;  %v411_v40 = vld [vmem:[#allocation2 + $0x120] sm:$0xff] }
  0x51   : > { %v4858_v7 = vpack.c.bf16 %v412_v60, %v411_v40  ;;  %v2775_v40 = vsel %vm534_vm0, %v3505_v53, 0 }
  0x55   : > { %3846 = vmatmul.mubr.msk.bf16.gmra.mrb[20].mxu1 %vm198_vm1, %v4722_v49 }
  0x56   : > { %4000 = vmatmul.mubr.msk.bf16.gmra.mrb[4].mxu0 %vm198_vm1, %v4724_v50  ;;  %3849 = vmatprep.mubr.msk.bf16.mxu1 %vm198_vm1, %v4726_v51 }
  0x57   : > { %4003 = vmatprep.mubr.msk.bf16.mxu0 %vm198_vm1, %v4728_v52 }
  0x5d   : > { %3850 = vmatmul.mubr.msk.bf16.gmra.mrb[24].mxu1 %vm198_vm1, %v4738_v61 }
  0x5e   : > { %4004 = vmatmul.mubr.msk.bf16.gmra.mrb[8].mxu0 %vm198_vm1, %v4740_v62  ;;  %3853 = vmatprep.mubr.msk.bf16.mxu1 %vm198_vm1, %v4742_v63 }
  0x5f   : > { %4007 = vmatprep.mubr.msk.bf16.mxu0 %vm198_vm1, %v4744_v0 }
  0x65   : > { %3854 = vmatmul.mubr.msk.bf16.gmra.mrb[28].mxu1 %vm198_vm1, %v4754_v16 }
  0x66   : > { %4008 = vmatmul.mubr.msk.bf16.gmra.mrb[12].mxu0 %vm198_vm1, %v4756_v17  ;;  %3859 = vmatprep.mubr.msk.bf16.mxu1 %vm198_vm1, %v419_v18  ;;  %v4814_v18 = vpack.c.bf16 %v1822_v10, %v1821_v6  ;;  %v414_v6 = vld [vmem:[#allocation2 + $0x140] sm:$0xff]  ;;  %v415_v10 = vld [vmem:[#allocation2 + $0x150] sm:$0xff] }
  0x67   : > { %4011 = vmatprep.mubr.msk.bf16.mxu0 %vm198_vm1, %v4758_v21  ;;  %v4868_v23 = vpack.c.bf16 %v414_v6, %v413_v5  ;;  %v4870_v24 = vpack.c.bf16 %v416_v22, %v415_v10 }
  0x6d   : > { %3860 = vmatmul.mubr.msk.bf16.vlgmr.msra.gmra.mrb[0].mxu1 %vm198_vm1, %v4767_v32 }
  0x6e   : > { %3892 = vmatpush3.bf16.msra.mxu1 %v1010_v34  ;;  %4012 = vmatmul.mubr.msk.bf16.gmra.mrb[16].mxu0 %vm198_vm1, %v4769_v33  ;;  %v4828_v34 = vpack.c.bf16 %v404_v29, %v403_v28  ;;  %v418_v28 = vld [vmem:[#allocation2 + $0x170] sm:$0xff]  ;;  %v911_v29 = vld [vmem:[#allocation2 + $0x2] sm:$0xff] }
  0x6f   : > { %3863 = vmatprep.mubr.msk.bf16.mxu1 %vm198_vm1, %v4773_v39  ;;  %4015 = vmatprep.mubr.msk.bf16.mxu0 %vm198_vm1, %v4775_v41  ;;  %v4880_v44 = vpack.c.bf16 %v418_v28, %v417_v27  ;;  %v943_v45 = vpack.c.bf16 %v912_v43, %v911_v29 }
  0x70   : > { %4390 = vmatprep.subr.msk.bf16.mxu1 %vm534_vm0, %v4782_v42  ;;  %v2117_v42 = vld [vmem:[#allocation2 + $0x188] sm:$0xff] }
  0x75   : > { %3864 = vmatmul.mubr.msk.bf16.gmra.mrb[4].mxu1 %vm198_vm1, %v4792_v54 }
  0x76   : > { %4016 = vmatmul.mubr.msk.bf16.gmra.mrb[20].mxu0 %vm198_vm1, %v4794_v55  ;;  %3867 = vmatprep.mubr.msk.bf16.mxu1 %vm198_vm1, %v4796_v56 }
  0x77   : > { %4019 = vmatprep.mubr.msk.bf16.mxu0 %vm198_vm1, %v4798_v57 }
  0x7d   : > { %3868 = vmatmul.mubr.msk.bf16.gmra.mrb[8].mxu1 %vm198_vm1, %v4808_v11 }
  0x7e   : > { %4020 = vmatmul.mubr.msk.bf16.gmra.mrb[24].mxu0 %vm198_vm1, %v4810_v12  ;;  %3871 = vmatprep.mubr.msk.bf16.mxu1 %vm198_vm1, %v4812_v15 }
  0x7f   : > { %4023 = vmatprep.mubr.msk.bf16.mxu0 %vm198_vm1, %v4814_v18 }
  0x85   : > { %3872 = vmatmul.mubr.msk.bf16.gmra.mrb[12].mxu1 %vm198_vm1, %v4824_v30 }
  0x86   : > { %4024 = vmatmul.mubr.msk.bf16.gmra.mrb[28].mxu0 %vm198_vm1, %v4826_v31  ;;  %3875 = vmatprep.mubr.msk.bf16.mxu1 %vm198_vm1, %v4828_v34 }
  0x87   : > { %4029 = vmatprep.mubr.msk.bf16.mxu0 %vm198_vm1, %v4773_v39 }
  0x8d   : > { %3876 = vmatmul.mubr.msk.bf16.gmra.mrb[16].mxu1 %vm198_vm1, %v4838_v46 }
  0x8e   : > { %4030 = vmatmul.mubr.msk.bf16.vlgmr.msra.gmra.mrb[0].mxu0 %vm198_vm1, %v4792_v54  ;;  %3879 = vmatprep.mubr.msk.bf16.mxu1 %vm198_vm1, %v4840_v47 }
  0x8f   : > { %4062 = vmatpush3.bf16.msra.mxu0 %v2481_v48  ;;  %4033 = vmatprep.mubr.msk.bf16.mxu0 %vm198_vm1, %v4796_v56 }
  0x90   : > { %4396 = vmatprep.subr.msk.bf16.mxu0 %vm534_vm0, %v3505_v53 }
  0x95   : > { %3880 = vmatmul.mubr.msk.bf16.gmra.mrb[20].mxu1 %vm198_vm1, %v4856_v2 }
  0x96   : > { %4034 = vmatmul.mubr.msk.bf16.gmra.mrb[4].mxu0 %vm198_vm1, %v4808_v11  ;;  %3883 = vmatprep.mubr.msk.bf16.mxu1 %vm198_vm1, %v4858_v7 }
  0x97   : > { %4037 = vmatprep.mubr.msk.bf16.mxu0 %vm198_vm1, %v4812_v15 }
  0x9d   : > { %3884 = vmatmul.mubr.msk.bf16.gmra.mrb[24].mxu1 %vm198_vm1, %v4868_v23 }
  0x9e   : > { %4038 = vmatmul.mubr.msk.bf16.gmra.mrb[8].mxu0 %vm198_vm1, %v4824_v30  ;;  %3887 = vmatprep.mubr.msk.bf16.mxu1 %vm198_vm1, %v4870_v24 }
  0x9f   : > { %4041 = vmatprep.mubr.msk.bf16.mxu0 %vm198_vm1, %v4828_v34 }
  0xa5   : > { %3888 = vmatmul.mubr.msk.bf16.gmra.mrb[28].mxu1 %vm198_vm1, %v4880_v44 }
  0xa6   : > { %4042 = vmatmul.mubr.msk.bf16.gmra.mrb[12].mxu0 %vm198_vm1, %v4838_v46  ;;  %3893 = vmatprep.mubr.msk.bf16.mxu1 %vm198_vm1, %v943_v45 }
  0xa7   : > { %4045 = vmatprep.mubr.msk.bf16.mxu0 %vm198_vm1, %v4840_v47 }
  0xad   : > { %3894 = vmatmul.mubr.msk.bf16.vlgmr.msra.gmra.mrb[0].mxu1 %vm198_vm1, %v4688_v26  ;;  %v2116_v26 = vld [vmem:[#allocation2 + $0x180] sm:$0xff] }
  0xae   : > { %3926 = vmatpush3.bf16.msra.mxu1 %v1304_v9  ;;  %4046 = vmatmul.mubr.msk.bf16.gmra.mrb[16].mxu0 %vm198_vm1, %v4856_v2  ;;  %v4909_v48 = vpack.c.bf16 %v2117_v42, %v2116_v26 }
  0xaf   : > { %3897 = vmatprep.mubr.msk.bf16.mxu1 %vm198_vm1, %v4700_v36  ;;  %4049 = vmatprep.mubr.msk.bf16.mxu0 %vm198_vm1, %v4858_v7 }
  0xb0   : > { %4392 = vmatprep.subr.msk.bf16.mxu1 %vm534_vm0, %v4493_v1  ;;  %v2118_v1 = vld [vmem:[#allocation2 + $0x198] sm:$0xff] }
  0xb1   : > { %v2135_v59 = vpack.c.bf16 %v2119_v58, %v2118_v1 }
  0xb5   : > { %3898 = vmatmul.mubr.msk.bf16.gmra.mrb[4].mxu1 %vm198_vm1, %v4704_v38 }
  0xb6   : > { %4050 = vmatmul.mubr.msk.bf16.gmra.mrb[20].mxu0 %vm198_vm1, %v4868_v23  ;;  %3901 = vmatprep.mubr.msk.bf16.mxu1 %vm198_vm1, %v4724_v50 }
  0xb7   : > { %4053 = vmatprep.mubr.msk.bf16.mxu0 %vm198_vm1, %v4870_v24 }
  0xbd   : > { %3902 = vmatmul.mubr.msk.bf16.gmra.mrb[8].mxu1 %vm198_vm1, %v4728_v52 }
  0xbe   : > { %4054 = vmatmul.mubr.msk.bf16.gmra.mrb[24].mxu0 %vm198_vm1, %v4880_v44  ;;  %3905 = vmatprep.mubr.msk.bf16.mxu1 %vm198_vm1, %v4740_v62 }
  0xbf   : > { %4057 = vmatprep.mubr.msk.bf16.mxu0 %vm198_vm1, %v4909_v48 }
  0xc5   : > { %3906 = vmatmul.mubr.msk.bf16.gmra.mrb[12].mxu1 %vm198_vm1, %v4744_v0 }
  0xc6   : > { %4058 = vmatmul.mubr.msk.bf16.gmra.mrb[28].mxu0 %vm198_vm1, %v2135_v59  ;;  %3909 = vmatprep.mubr.msk.bf16.mxu1 %vm198_vm1, %v4756_v17 }
  0xc7   : > { %4063 = vmatprep.mubr.msk.bf16.mxu0 %vm198_vm1, %v4637_v4  ;;  %v2411_v4 = vld [vmem:[#allocation2 + $0x189] sm:$0xff] }
  0xcd   : > { %3910 = vmatmul.mubr.msk.bf16.gmra.mrb[16].mxu1 %vm198_vm1, %v4758_v21 }
  0xce   : > { %4064 = vmatmul.mubr.msk.bf16.vlgmr.msra.gmra.mrb[0].mxu0 %vm198_vm1, %v4641_v8  ;;  %3913 = vmatprep.mubr.msk.bf16.mxu1 %vm198_vm1, %v4769_v33 }
  0xcf   : > { %4096 = vmatpush3.bf16.msra.mxu0 %v2775_v40  ;;  %4067 = vmatprep.mubr.msk.bf16.mxu0 %vm198_vm1, %v4662_v13  ;;  %v2412_v13 = vld [vmem:[#allocation2 + $0x199] sm:$0xff] }
  0xd5   : > { %3914 = vmatmul.mubr.msk.bf16.gmra.mrb[20].mxu1 %vm198_vm1, %v4775_v41 }
  0xd6   : > { %4068 = vmatmul.mubr.msk.bf16.gmra.mrb[4].mxu0 %vm198_vm1, %v4664_v14  ;;  %3917 = vmatprep.mubr.msk.bf16.mxu1 %vm198_vm1, %v4794_v55  ;;  %v2413_v14 = vld [vmem:[#allocation2 + $0x1a1] sm:$0xff] }
  0xd7   : > { %4071 = vmatprep.mubr.msk.bf16.mxu0 %vm198_vm1, %v4674_v19  ;;  %v2429_v19 = vpack.c.bf16 %v2413_v14, %v2412_v13 }
  0xdd   : > { %3918 = vmatmul.mubr.msk.bf16.gmra.mrb[24].mxu1 %vm198_vm1, %v4798_v57 }
  0xde   : > { %4072 = vmatmul.mubr.msk.bf16.gmra.mrb[8].mxu0 %vm198_vm1, %v4676_v20  ;;  %3921 = vmatprep.mubr.msk.bf16.mxu1 %vm198_vm1, %v4810_v12  ;;  %v2706_v20 = vld [vmem:[#allocation2 + $0x19a] sm:$0xff] }
  0xdf   : > { %4075 = vmatprep.mubr.msk.bf16.mxu0 %vm198_vm1, %v4686_v25  ;;  %v2707_v25 = vld [vmem:[#allocation2 + $0x1a2] sm:$0xff] }
  0xe5   : > { %3922 = vmatmul.mubr.msk.bf16.gmra.mrb[28].mxu1 %vm198_vm1, %v4814_v18 }
  0xe6   : > { %4076 = vmatmul.mubr.msk.bf16.gmra.mrb[12].mxu0 %vm198_vm1, %v4698_v35  ;;  %3927 = vmatprep.mubr.msk.bf16.mxu1 %vm198_vm1, %v4767_v32 }
  0xe7   : > { %4079 = vmatprep.mubr.msk.bf16.mxu0 %vm198_vm1, %v4702_v37 }
  0xed   : > { %3928 = vmatmul.mubr.msk.bf16.vlgmr.msra.gmra.mrb[0].mxu1 %vm198_vm1, %v4773_v39 }
  0xee   : > { %4130 = vmatpush3.bf16.msra.mxu1 %v4501_v3  ;;  %4080 = vmatmul.mubr.msk.bf16.gmra.mrb[16].mxu0 %vm198_vm1, %v4722_v49  ;;  %v2410_v3 = vld [vmem:[#allocation2 + $0x181] sm:$0xff] }
  0xef   : > { %3931 = vmatprep.mubr.msk.bf16.mxu1 %vm198_vm1, %v4792_v54  ;;  %4083 = vmatprep.mubr.msk.bf16.mxu0 %vm198_vm1, %v4726_v51  ;;  %v2428_v8 = vpack.c.bf16 %v2411_v4, %v2410_v3 }
  0xf5   : > { %3932 = vmatmul.mubr.msk.bf16.gmra.mrb[4].mxu1 %vm198_vm1, %v4796_v56 }
  0xf6   : > { %4084 = vmatmul.mubr.msk.bf16.gmra.mrb[20].mxu0 %vm198_vm1, %v4738_v61  ;;  %3935 = vmatprep.mubr.msk.bf16.mxu1 %vm198_vm1, %v4808_v11 }
  0xf7   : > { %4087 = vmatprep.mubr.msk.bf16.mxu0 %vm198_vm1, %v4742_v63 }
  0xfd   : > { %3936 = vmatmul.mubr.msk.bf16.gmra.mrb[8].mxu1 %vm198_vm1, %v4812_v15 }
  0xfe   : > { %4088 = vmatmul.mubr.msk.bf16.gmra.mrb[24].mxu0 %vm198_vm1, %v4754_v16  ;;  %3939 = vmatprep.mubr.msk.bf16.mxu1 %vm198_vm1, %v4824_v30 }
  0xff   : > { %4091 = vmatprep.mubr.msk.bf16.mxu0 %vm198_vm1, %v2428_v8 }
 0x105   : > { %3940 = vmatmul.mubr.msk.bf16.gmra.mrb[12].mxu1 %vm198_vm1, %v4828_v34 }
 0x106   : > { %4092 = vmatmul.mubr.msk.bf16.gmra.mrb[28].mxu0 %vm198_vm1, %v2429_v19  ;;  %3943 = vmatprep.mubr.msk.bf16.mxu1 %vm198_vm1, %v4838_v46 }
 0x107   : > { %4097 = vmatprep.mubr.msk.bf16.mxu0 %vm198_vm1, %v4700_v36 }
 0x10d   : > { %3944 = vmatmul.mubr.msk.bf16.gmra.mrb[16].mxu1 %vm198_vm1, %v4840_v47 }
 0x10e   : > { %4098 = vmatmul.mubr.msk.bf16.vlgmr.msra.gmra.mrb[0].mxu0 %vm198_vm1, %v4704_v38  ;;  %3947 = vmatprep.mubr.msk.bf16.mxu1 %vm198_vm1, %v4856_v2 }
 0x10f   : > { %4101 = vmatprep.mubr.msk.bf16.mxu0 %vm198_vm1, %v4724_v50 }
 0x115   : > { %3948 = vmatmul.mubr.msk.bf16.gmra.mrb[20].mxu1 %vm198_vm1, %v4858_v7 }
 0x116   : > { %4102 = vmatmul.mubr.msk.bf16.gmra.mrb[4].mxu0 %vm198_vm1, %v4728_v52  ;;  %3951 = vmatprep.mubr.msk.bf16.mxu1 %vm198_vm1, %v4868_v23 }
 0x117   : > { %4105 = vmatprep.mubr.msk.bf16.mxu0 %vm198_vm1, %v4740_v62 }
 0x11d   : > { %3952 = vmatmul.mubr.msk.bf16.gmra.mrb[24].mxu1 %vm198_vm1, %v4870_v24 }
 0x11e   : > { %4106 = vmatmul.mubr.msk.bf16.gmra.mrb[8].mxu0 %vm198_vm1, %v4744_v0  ;;  %3955 = vmatprep.mubr.msk.bf16.mxu1 %vm198_vm1, %v4880_v44 }
 0x11f   : > { %4109 = vmatprep.mubr.msk.bf16.mxu0 %vm198_vm1, %v4756_v17 }
 0x125   : > { %3956 = vmatmul.mubr.msk.bf16.gmra.mrb[28].mxu1 %vm198_vm1, %v4909_v48 }
 0x126   : > { %4110 = vmatmul.mubr.msk.bf16.gmra.mrb[12].mxu0 %vm198_vm1, %v4758_v21  ;;  %3977 = vmatprep.mubr.msk.bf16.mxu1 %vm198_vm1, %v4698_v35  ;;  %v2723_v35 = vpack.c.bf16 %v2707_v25, %v2706_v20 }
 0x127   : > { %4113 = vmatprep.mubr.msk.bf16.mxu0 %vm198_vm1, %v4769_v33 }
 0x12d   : > { %3978 = vmatmul.mubr.msk.bf16.vlgmr.msra.gmra.mrb[16].mxu1 %vm198_vm1, %v4702_v37 }
 0x12e   : > { %4114 = vmatmul.mubr.msk.bf16.gmra.mrb[16].mxu0 %vm198_vm1, %v4775_v41  ;;  %3981 = vmatprep.mubr.msk.bf16.mxu1 %vm198_vm1, %v4722_v49  ;;  %v5067_v41 = vld [vmem:[%s5191_s2] ss:$0 sm:$0xff] }
 0x12f   : > { %4117 = vmatprep.mubr.msk.bf16.mxu0 %vm198_vm1, %v4794_v55 }
 0x135   : > { %3982 = vmatmul.mubr.msk.bf16.gmra.mrb[20].mxu1 %vm198_vm1, %v4726_v51 }
 0x136   : > { %4118 = vmatmul.mubr.msk.bf16.gmra.mrb[20].mxu0 %vm198_vm1, %v4798_v57  ;;  %3985 = vmatprep.mubr.msk.bf16.mxu1 %vm198_vm1, %v4738_v61 }
 0x137   : > { %4121 = vmatprep.mubr.msk.bf16.mxu0 %vm198_vm1, %v4810_v12 }
 0x13d   : > { %3986 = vmatmul.mubr.msk.bf16.gmra.mrb[24].mxu1 %vm198_vm1, %v4742_v63 }
 0x13e   : > { %4122 = vmatmul.mubr.msk.bf16.gmra.mrb[24].mxu0 %vm198_vm1, %v4814_v18  ;;  %3989 = vmatprep.mubr.msk.bf16.mxu1 %vm198_vm1, %v4754_v16 }
 0x13f   : > { %4125 = vmatprep.mubr.msk.bf16.mxu0 %vm198_vm1, %v4826_v31 }
 0x145   : > { %3990 = vmatmul.mubr.msk.bf16.gmra.mrb[28].mxu1 %vm198_vm1, %v2428_v8 }
 0x146   : > { %4126 = vmatmul.mubr.msk.bf16.gmra.mrb[28].mxu0 %vm198_vm1, %v2723_v35 }
 0x1c0   : > { %v3929_v36 = vpop.f32.mrb[0].mxu1 }
 0x1c1   : > { %v1340_v37 = vpop.f32.mrb[1].mxu1 }
 0x1c2   : > { %v3930_v38 = vpop.f32.mrb[2].mxu1 }
 0x1c3   : > { %v1343_v49 = vpop.f32.mrb[3].mxu1 }
 0x1c8   : > { %v3933_v50 = vpop.f32.mrb[4].mxu1 }
 0x1c9   : > { %v1356_v51 = vpop.f32.mrb[5].mxu1 }
 0x1ca   : > { %v3934_v52 = vpop.f32.mrb[6].mxu1 }
 0x1cb   : > { %v1359_v61 = vpop.f32.mrb[7].mxu1 }
 0x1d0   : > { %v5048_v62 = vpop.f32.mrb[8].mxu1 }
 0x1d1   : > { %v5050_v63 = vpop.f32.mrb[9].mxu1 }
 0x1d2   : > { %v5052_v0 = vpop.f32.mrb[10].mxu1 }
 0x1d3   : > { %v5054_v16 = vpop.f32.mrb[11].mxu1 }
 0x1d8   : > { %v5056_v17 = vpop.f32.mrb[12].mxu1 }
 0x1d9   : > { %v5058_v21 = vpop.f32.mrb[13].mxu1 }
 0x1da   : > { %v5060_v32 = vpop.f32.mrb[14].mxu1 }
 0x1db   : > { %v5062_v33 = vpop.f32.mrb[15].mxu1 }
 0x1e1   : > { %v4099_v39 = vpop.f32.mrb[0].mxu0 }
 0x1e2   : > { %v4131_v54 = vadd.f32 %v4099_v39, %v3929_v36  ;;  %v2811_v55 = vpop.f32.mrb[1].mxu0 }
 0x1e3   : > { %v4132_v56 = vadd.f32 %v2811_v55, %v1340_v37  ;;  %v4100_v57 = vpop.f32.mrb[2].mxu0 }
 0x1e4   : > { %v2979_v11 = vadd.f32 %v4131_v54, %v5067_v41  ;;  %v4133_v12 = vadd.f32 %v4100_v57, %v3930_v38  ;;  %v2814_v15 = vpop.f32.mrb[3].mxu0 }
 0x1e5   : > { %v2977_v18 = vadd.f32 %v4132_v56, %v5067_v41  ;;  %v4134_v30 = vadd.f32 %v2814_v15, %v1343_v49 }
 0x1e6   : > { %vm3011_vm3 = vcmp.ge.f32.partialorder %v2979_v11, 0.0  ;;  %v3043_v31 = vmul.f32 0.1, %v2979_v11  ;;  %v2980_v34 = vadd.f32 %v4133_v12, %v5067_v41 }
 0x1e7   : > { %vm3009_vm4 = vcmp.ge.f32.partialorder %v2977_v18, 0.0  ;;  %v3041_v46 = vmul.f32 0.1, %v2977_v18  ;;  %v2978_v47 = vadd.f32 %v4134_v30, %v5067_v41 }
 0x1e8   : > { %v3075_v53 = vsel %vm3011_vm3, %v2979_v11, %v3043_v31  ;;  %vm3012_vm6 = vcmp.ge.f32.partialorder %v2980_v34, 0.0  ;;  %v3044_v60 = vmul.f32 0.1, %v2980_v34 }
 0x1e9   : > { %v3561_v2 = vpack.c.bf16 %v3075_v53, %v3075_v53  ;;  %v3073_v7 = vsel %vm3009_vm4, %v2977_v18, %v3041_v46  ;;  %vm3010_vm7 = vcmp.ge.f32.partialorder %v2978_v47, 0.0  ;;  %v3042_v5 = vmul.f32 0.1, %v2978_v47  ;;  %v4103_v6 = vpop.f32.mrb[4].mxu0 }
 0x1ea   : > { %v3559_v10 = vpack.c.bf16 %v3073_v7, %v3073_v7  ;;  %v3076_v22 = vsel %vm3012_vm6, %v2980_v34, %v3044_v60  ;;  %v4135_v23 = vadd.f32 %v4103_v6, %v3933_v50  ;;  %v2827_v24 = vpop.f32.mrb[5].mxu0 }
 0x1eb   : > { %3236 = vst.msk [vmem:[%s5078_s19 + $0x8] sm:$0xf] %vm3233_vm5, %v3561_v2  ;;  %v3562_v27 = vpack.c.bf16 %v3076_v22, %v3076_v22  ;;  %v3074_v28 = vsel %vm3010_vm7, %v2978_v47, %v3042_v5  ;;  %v4136_v29 = vadd.f32 %v2827_v24, %v1356_v51  ;;  %v4104_v43 = vpop.f32.mrb[6].mxu0 }
 0x1ec   : > { %3234 = vst.msk [vmem:[%s5078_s19] sm:$0xf] %vm3233_vm5, %v3559_v10  ;;  %v3560_v44 = vpack.c.bf16 %v3074_v28, %v3074_v28  ;;  %v2983_v45 = vadd.f32 %v4135_v23, %v5067_v41  ;;  %v4137_v9 = vadd.f32 %v4104_v43, %v3934_v52  ;;  %v2830_v26 = vpop.f32.mrb[7].mxu0 }
 0x1ed   : > { %3237 = vst.msk [vmem:[%s5078_s19 + $0xc] sm:$0xf] %vm3233_vm5, %v3562_v27  ;;  %v2981_v42 = vadd.f32 %v4136_v29, %v5067_v41  ;;  %v4138_v48 = vadd.f32 %v2830_v26, %v1359_v61 }
 0x1ee   : > { %3235 = vst.msk [vmem:[%s5078_s19 + $0x4] sm:$0xf] %vm3233_vm5, %v3560_v44  ;;  %vm3015_vm8 = vcmp.ge.f32.partialorder %v2983_v45, 0.0  ;;  %v3047_v1 = vmul.f32 0.1, %v2983_v45  ;;  %v2984_v58 = vadd.f32 %v4137_v9, %v5067_v41 }
 0x1ef   : > { %vm3013_vm9 = vcmp.ge.f32.partialorder %v2981_v42, 0.0  ;;  %v3045_v59 = vmul.f32 0.1, %v2981_v42  ;;  %v2982_v40 = vadd.f32 %v4138_v48, %v5067_v41 }
 0x1f0   : > { %v3079_v3 = vsel %vm3015_vm8, %v2983_v45, %v3047_v1  ;;  %vm3016_vm10 = vcmp.ge.f32.partialorder %v2984_v58, 0.0  ;;  %v3048_v4 = vmul.f32 0.1, %v2984_v58 }
 0x1f1   : > { %v3565_v8 = vpack.c.bf16 %v3079_v3, %v3079_v3  ;;  %v3077_v13 = vsel %vm3013_vm9, %v2981_v42, %v3045_v59  ;;  %vm3014_vm11 = vcmp.ge.f32.partialorder %v2982_v40, 0.0  ;;  %v3046_v14 = vmul.f32 0.1, %v2982_v40  ;;  %v4107_v19 = vpop.f32.mrb[8].mxu0 }
 0x1f2   : > { %v3563_v20 = vpack.c.bf16 %v3077_v13, %v3077_v13  ;;  %v3080_v25 = vsel %vm3016_vm10, %v2984_v58, %v3048_v4  ;;  %v4139_v35 = vadd.f32 %v4107_v19, %v5048_v62  ;;  %v2843_v36 = vpop.f32.mrb[9].mxu0 }
 0x1f3   : > { %3240 = vst.msk [vmem:[%s5078_s19 + $0x18] sm:$0xf] %vm3233_vm5, %v3565_v8  ;;  %v3566_v37 = vpack.c.bf16 %v3080_v25, %v3080_v25  ;;  %v3078_v38 = vsel %vm3014_vm11, %v2982_v40, %v3046_v14  ;;  %v4140_v49 = vadd.f32 %v2843_v36, %v5050_v63  ;;  %v4108_v50 = vpop.f32.mrb[10].mxu0 }
 0x1f4   : > { %3238 = vst.msk [vmem:[%s5078_s19 + $0x10] sm:$0xf] %vm3233_vm5, %v3563_v20  ;;  %v3564_v51 = vpack.c.bf16 %v3078_v38, %v3078_v38  ;;  %v2987_v52 = vadd.f32 %v4139_v35, %v5067_v41  ;;  %v4141_v61 = vadd.f32 %v4108_v50, %v5052_v0  ;;  %v2846_v39 = vpop.f32.mrb[11].mxu0 }
 0x1f5   : > { %3241 = vst.msk [vmem:[%s5078_s19 + $0x1c] sm:$0xf] %vm3233_vm5, %v3566_v37  ;;  %v2985_v62 = vadd.f32 %v4140_v49, %v5067_v41  ;;  %v4142_v54 = vadd.f32 %v2846_v39, %v5054_v16 }
 0x1f6   : > { %3239 = vst.msk [vmem:[%s5078_s19 + $0x14] sm:$0xf] %vm3233_vm5, %v3564_v51  ;;  %vm3019_vm12 = vcmp.ge.f32.partialorder %v2987_v52, 0.0  ;;  %v3051_v55 = vmul.f32 0.1, %v2987_v52  ;;  %v2988_v63 = vadd.f32 %v4141_v61, %v5067_v41 }
 0x1f7   : > { %vm3017_vm13 = vcmp.ge.f32.partialorder %v2985_v62, 0.0  ;;  %v3049_v56 = vmul.f32 0.1, %v2985_v62  ;;  %v2986_v57 = vadd.f32 %v4142_v54, %v5067_v41 }
 0x1f8   : > { %v3083_v11 = vsel %vm3019_vm12, %v2987_v52, %v3051_v55  ;;  %vm3020_vm14 = vcmp.ge.f32.partialorder %v2988_v63, 0.0  ;;  %v3052_v0 = vmul.f32 0.1, %v2988_v63 }
 0x1f9   : > { %v3569_v12 = vpack.c.bf16 %v3083_v11, %v3083_v11  ;;  %v3081_v15 = vsel %vm3017_vm13, %v2985_v62, %v3049_v56  ;;  %vm3018_vm15 = vcmp.ge.f32.partialorder %v2986_v57, 0.0  ;;  %v3050_v18 = vmul.f32 0.1, %v2986_v57  ;;  %v4111_v16 = vpop.f32.mrb[12].mxu0 }
 0x1fa   : > { %v3567_v30 = vpack.c.bf16 %v3081_v15, %v3081_v15  ;;  %v3084_v31 = vsel %vm3020_vm14, %v2988_v63, %v3052_v0  ;;  %v4143_v34 = vadd.f32 %v4111_v16, %v5056_v17  ;;  %v2859_v46 = vpop.f32.mrb[13].mxu0 }
 0x1fb   : > { %3244 = vst.msk [vmem:[%s5078_s19 + $0x28] sm:$0xf] %vm3233_vm5, %v3569_v12  ;;  %v3570_v47 = vpack.c.bf16 %v3084_v31, %v3084_v31  ;;  %v3082_v53 = vsel %vm3018_vm15, %v2986_v57, %v3050_v18  ;;  %v4144_v60 = vadd.f32 %v2859_v46, %v5058_v21  ;;  %v4112_v2 = vpop.f32.mrb[14].mxu0 }
 0x1fc   : > { %3242 = vst.msk [vmem:[%s5078_s19 + $0x20] sm:$0xf] %vm3233_vm5, %v3567_v30  ;;  %v3568_v7 = vpack.c.bf16 %v3082_v53, %v3082_v53  ;;  %v2991_v5 = vadd.f32 %v4143_v34, %v5067_v41  ;;  %v4145_v6 = vadd.f32 %v4112_v2, %v5060_v32  ;;  %v2862_v10 = vpop.f32.mrb[15].mxu0 }
 0x1fd   : > { %3245 = vst.msk [vmem:[%s5078_s19 + $0x2c] sm:$0xf] %vm3233_vm5, %v3570_v47  ;;  %v2989_v17 = vadd.f32 %v4144_v60, %v5067_v41  ;;  %v4146_v22 = vadd.f32 %v2862_v10, %v5062_v33 }
 0x1fe   : > { %3243 = vst.msk [vmem:[%s5078_s19 + $0x24] sm:$0xf] %vm3233_vm5, %v3568_v7  ;;  %vm3023_vm0 = vcmp.ge.f32.partialorder %v2991_v5, 0.0  ;;  %v3055_v23 = vmul.f32 0.1, %v2991_v5  ;;  %v2992_v21 = vadd.f32 %v4145_v6, %v5067_v41 }
 0x1ff   : > { %vm3021_vm1 = vcmp.ge.f32.partialorder %v2989_v17, 0.0  ;;  %v3053_v24 = vmul.f32 0.1, %v2989_v17  ;;  %v2990_v27 = vadd.f32 %v4146_v22, %v5067_v41 }
 0x200   : > { %v3087_v28 = vsel %vm3023_vm0, %v2991_v5, %v3055_v23  ;;  %vm3024_vm2 = vcmp.ge.f32.partialorder %v2992_v21, 0.0  ;;  %v3056_v32 = vmul.f32 0.1, %v2992_v21  ;;  %v3979_v29 = vpop.f32.mrb[16].mxu1 }
 0x201   : > { %v3573_v43 = vpack.c.bf16 %v3087_v28, %v3087_v28  ;;  %v3085_v44 = vsel %vm3021_vm1, %v2989_v17, %v3053_v24  ;;  %vm3022_vm3 = vcmp.ge.f32.partialorder %v2990_v27, 0.0  ;;  %v3054_v33 = vmul.f32 0.1, %v2990_v27  ;;  %v1698_v45 = vpop.f32.mrb[17].mxu1  ;;  %v4115_v9 = vpop.f32.mrb[16].mxu0 }
 0x202   : > { %v3571_v26 = vpack.c.bf16 %v3085_v44, %v3085_v44  ;;  %v3088_v42 = vsel %vm3024_vm2, %v2992_v21, %v3056_v32  ;;  %v4147_v48 = vadd.f32 %v4115_v9, %v3979_v29  ;;  %v3980_v1 = vpop.f32.mrb[18].mxu1  ;;  %v2875_v58 = vpop.f32.mrb[17].mxu0 }
 0x203   : > { %3248 = vst.msk [vmem:[%s5078_s19 + $0x38] sm:$0xf] %vm3233_vm5, %v3573_v43  ;;  %v3574_v59 = vpack.c.bf16 %v3088_v42, %v3088_v42  ;;  %v3086_v40 = vsel %vm3022_vm3, %v2990_v27, %v3054_v33  ;;  %v4148_v3 = vadd.f32 %v2875_v58, %v1698_v45  ;;  %v1701_v4 = vpop.f32.mrb[19].mxu1  ;;  %v4116_v8 = vpop.f32.mrb[18].mxu0 }
 0x204   : > { %3246 = vst.msk [vmem:[%s5078_s19 + $0x30] sm:$0xf] %vm3233_vm5, %v3571_v26  ;;  %v3572_v13 = vpack.c.bf16 %v3086_v40, %v3086_v40  ;;  %v2995_v14 = vadd.f32 %v4147_v48, %v5067_v41  ;;  %v4149_v19 = vadd.f32 %v4116_v8, %v3980_v1  ;;  %v2878_v20 = vpop.f32.mrb[19].mxu0 }
 0x205   : > { %3249 = vst.msk [vmem:[%s5078_s19 + $0x3c] sm:$0xf] %vm3233_vm5, %v3574_v59  ;;  %v2993_v25 = vadd.f32 %v4148_v3, %v5067_v41  ;;  %v4150_v35 = vadd.f32 %v2878_v20, %v1701_v4 }
 0x206   : > { %3247 = vst.msk [vmem:[%s5078_s19 + $0x34] sm:$0xf] %vm3233_vm5, %v3572_v13  ;;  %vm3027_vm4 = vcmp.ge.f32.partialorder %v2995_v14, 0.0  ;;  %v3059_v36 = vmul.f32 0.1, %v2995_v14  ;;  %v2996_v37 = vadd.f32 %v4149_v19, %v5067_v41 }
 0x207   : > { %vm3025_vm6 = vcmp.ge.f32.partialorder %v2993_v25, 0.0  ;;  %v3057_v38 = vmul.f32 0.1, %v2993_v25  ;;  %v2994_v49 = vadd.f32 %v4150_v35, %v5067_v41 }
 0x208   : > { %v3091_v50 = vsel %vm3027_vm4, %v2995_v14, %v3059_v36  ;;  %vm3028_vm7 = vcmp.ge.f32.partialorder %v2996_v37, 0.0  ;;  %v3060_v51 = vmul.f32 0.1, %v2996_v37  ;;  %v3983_v52 = vpop.f32.mrb[20].mxu1 }
 0x209   : > { %v3577_v61 = vpack.c.bf16 %v3091_v50, %v3091_v50  ;;  %v3089_v39 = vsel %vm3025_vm6, %v2993_v25, %v3057_v38  ;;  %vm3026_vm8 = vcmp.ge.f32.partialorder %v2994_v49, 0.0  ;;  %v3058_v62 = vmul.f32 0.1, %v2994_v49  ;;  %v1714_v54 = vpop.f32.mrb[21].mxu1  ;;  %v4119_v55 = vpop.f32.mrb[20].mxu0 }
 0x20a   : > { %v3575_v63 = vpack.c.bf16 %v3089_v39, %v3089_v39  ;;  %v3092_v56 = vsel %vm3028_vm7, %v2996_v37, %v3060_v51  ;;  %v4151_v57 = vadd.f32 %v4119_v55, %v3983_v52  ;;  %v3984_v11 = vpop.f32.mrb[22].mxu1  ;;  %v2891_v0 = vpop.f32.mrb[21].mxu0 }
 0x20b   : > { %3252 = vst.msk [vmem:[%s5078_s19 + $0x48] sm:$0xf] %vm3233_vm5, %v3577_v61  ;;  %v3578_v12 = vpack.c.bf16 %v3092_v56, %v3092_v56  ;;  %v3090_v15 = vsel %vm3026_vm8, %v2994_v49, %v3058_v62  ;;  %v4152_v18 = vadd.f32 %v2891_v0, %v1714_v54  ;;  %v1717_v16 = vpop.f32.mrb[23].mxu1  ;;  %v4120_v30 = vpop.f32.mrb[22].mxu0 }
 0x20c   : > { %3250 = vst.msk [vmem:[%s5078_s19 + $0x40] sm:$0xf] %vm3233_vm5, %v3575_v63  ;;  %v3576_v31 = vpack.c.bf16 %v3090_v15, %v3090_v15  ;;  %v2999_v34 = vadd.f32 %v4151_v57, %v5067_v41  ;;  %v4153_v46 = vadd.f32 %v4120_v30, %v3984_v11  ;;  %v2894_v47 = vpop.f32.mrb[23].mxu0 }
 0x20d   : > { %3253 = vst.msk [vmem:[%s5078_s19 + $0x4c] sm:$0xf] %vm3233_vm5, %v3578_v12  ;;  %v2997_v53 = vadd.f32 %v4152_v18, %v5067_v41  ;;  %v4154_v60 = vadd.f32 %v2894_v47, %v1717_v16 }
 0x20e   : > { %3251 = vst.msk [vmem:[%s5078_s19 + $0x44] sm:$0xf] %vm3233_vm5, %v3576_v31  ;;  %vm3031_vm9 = vcmp.ge.f32.partialorder %v2999_v34, 0.0  ;;  %v3063_v2 = vmul.f32 0.1, %v2999_v34  ;;  %v3000_v7 = vadd.f32 %v4153_v46, %v5067_v41 }
 0x20f   : > { %vm3029_vm10 = vcmp.ge.f32.partialorder %v2997_v53, 0.0  ;;  %v3061_v5 = vmul.f32 0.1, %v2997_v53  ;;  %v2998_v6 = vadd.f32 %v4154_v60, %v5067_v41 }
 0x210   : > { %v3095_v10 = vsel %vm3031_vm9, %v2999_v34, %v3063_v2  ;;  %vm3032_vm11 = vcmp.ge.f32.partialorder %v3000_v7, 0.0  ;;  %v3064_v17 = vmul.f32 0.1, %v3000_v7  ;;  %v3987_v22 = vpop.f32.mrb[24].mxu1 }
 0x211   : > { %v3581_v23 = vpack.c.bf16 %v3095_v10, %v3095_v10  ;;  %v3093_v21 = vsel %vm3029_vm10, %v2997_v53, %v3061_v5  ;;  %vm3030_vm12 = vcmp.ge.f32.partialorder %v2998_v6, 0.0  ;;  %v3062_v24 = vmul.f32 0.1, %v2998_v6  ;;  %v1730_v27 = vpop.f32.mrb[25].mxu1  ;;  %v4123_v28 = vpop.f32.mrb[24].mxu0 }
 0x212   : > { %v3579_v32 = vpack.c.bf16 %v3093_v21, %v3093_v21  ;;  %v3096_v29 = vsel %vm3032_vm11, %v3000_v7, %v3064_v17  ;;  %v4155_v43 = vadd.f32 %v4123_v28, %v3987_v22  ;;  %v3988_v44 = vpop.f32.mrb[26].mxu1  ;;  %v2907_v33 = vpop.f32.mrb[25].mxu0 }
 0x213   : > { %3256 = vst.msk [vmem:[%s5078_s19 + $0x58] sm:$0xf] %vm3233_vm5, %v3581_v23  ;;  %v3582_v45 = vpack.c.bf16 %v3096_v29, %v3096_v29  ;;  %v3094_v9 = vsel %vm3030_vm12, %v2998_v6, %v3062_v24  ;;  %v4156_v26 = vadd.f32 %v2907_v33, %v1730_v27  ;;  %v1733_v42 = vpop.f32.mrb[27].mxu1  ;;  %v4124_v48 = vpop.f32.mrb[26].mxu0 }
 0x214   : > { %3254 = vst.msk [vmem:[%s5078_s19 + $0x50] sm:$0xf] %vm3233_vm5, %v3579_v32  ;;  %v3580_v1 = vpack.c.bf16 %v3094_v9, %v3094_v9  ;;  %v3003_v58 = vadd.f32 %v4155_v43, %v5067_v41  ;;  %v4157_v59 = vadd.f32 %v4124_v48, %v3988_v44  ;;  %v2910_v40 = vpop.f32.mrb[27].mxu0 }
 0x215   : > { %3257 = vst.msk [vmem:[%s5078_s19 + $0x5c] sm:$0xf] %vm3233_vm5, %v3582_v45  ;;  %v3001_v3 = vadd.f32 %v4156_v26, %v5067_v41  ;;  %v4158_v4 = vadd.f32 %v2910_v40, %v1733_v42 }
 0x216   : > { %3255 = vst.msk [vmem:[%s5078_s19 + $0x54] sm:$0xf] %vm3233_vm5, %v3580_v1  ;;  %vm3035_vm13 = vcmp.ge.f32.partialorder %v3003_v58, 0.0  ;;  %v3067_v8 = vmul.f32 0.1, %v3003_v58  ;;  %v3004_v13 = vadd.f32 %v4157_v59, %v5067_v41 }
 0x217   : > { %vm3033_vm14 = vcmp.ge.f32.partialorder %v3001_v3, 0.0  ;;  %v3065_v14 = vmul.f32 0.1, %v3001_v3  ;;  %v3002_v19 = vadd.f32 %v4158_v4, %v5067_v41 }
 0x218   : > { %v3099_v20 = vsel %vm3035_vm13, %v3003_v58, %v3067_v8  ;;  %vm3036_vm15 = vcmp.ge.f32.partialorder %v3004_v13, 0.0  ;;  %v3068_v25 = vmul.f32 0.1, %v3004_v13  ;;  %v3991_v35 = vpop.f32.mrb[28].mxu1 }
 0x219   : > { %v3585_v36 = vpack.c.bf16 %v3099_v20, %v3099_v20  ;;  %v3097_v37 = vsel %vm3033_vm14, %v3001_v3, %v3065_v14  ;;  %vm3034_vm0 = vcmp.ge.f32.partialorder %v3002_v19, 0.0  ;;  %v3066_v38 = vmul.f32 0.1, %v3002_v19  ;;  %v1746_v49 = vpop.f32.mrb[29].mxu1  ;;  %v4127_v50 = vpop.f32.mrb[28].mxu0 }
 0x21a   : > { %v3583_v51 = vpack.c.bf16 %v3097_v37, %v3097_v37  ;;  %v3100_v52 = vsel %vm3036_vm15, %v3004_v13, %v3068_v25  ;;  %v4159_v61 = vadd.f32 %v4127_v50, %v3991_v35  ;;  %v3992_v39 = vpop.f32.mrb[30].mxu1  ;;  %v2923_v62 = vpop.f32.mrb[29].mxu0 }
 0x21b   : > { %3260 = vst.msk [vmem:[%s5078_s19 + $0x68] sm:$0xf] %vm3233_vm5, %v3585_v36  ;;  %v3586_v54 = vpack.c.bf16 %v3100_v52, %v3100_v52  ;;  %v3098_v55 = vsel %vm3034_vm0, %v3002_v19, %v3066_v38  ;;  %v4160_v63 = vadd.f32 %v2923_v62, %v1746_v49  ;;  %v1749_v56 = vpop.f32.mrb[31].mxu1  ;;  %v4128_v57 = vpop.f32.mrb[30].mxu0 }
 0x21c   : > { %3258 = vst.msk [vmem:[%s5078_s19 + $0x60] sm:$0xf] %vm3233_vm5, %v3583_v51  ;;  %v3584_v11 = vpack.c.bf16 %v3098_v55, %v3098_v55  ;;  %v3007_v0 = vadd.f32 %v4159_v61, %v5067_v41  ;;  %v4161_v12 = vadd.f32 %v4128_v57, %v3992_v39  ;;  %v2926_v15 = vpop.f32.mrb[31].mxu0 }
 0x21d   : > { %3261 = vst.msk [vmem:[%s5078_s19 + $0x6c] sm:$0xf] %vm3233_vm5, %v3586_v54  ;;  %v3005_v18 = vadd.f32 %v4160_v63, %v5067_v41  ;;  %v4162_v16 = vadd.f32 %v2926_v15, %v1749_v56 }
 0x21e   : > { %3259 = vst.msk [vmem:[%s5078_s19 + $0x64] sm:$0xf] %vm3233_vm5, %v3584_v11  ;;  %vm3039_vm1 = vcmp.ge.f32.partialorder %v3007_v0, 0.0  ;;  %v3071_v30 = vmul.f32 0.1, %v3007_v0  ;;  %v3008_v31 = vadd.f32 %v4161_v12, %v5067_v41 }
 0x21f   : > { %vm3037_vm2 = vcmp.ge.f32.partialorder %v3005_v18, 0.0  ;;  %v3069_v34 = vmul.f32 0.1, %v3005_v18  ;;  %v3006_v46 = vadd.f32 %v4162_v16, %v5067_v41 }
 0x220   : > { %v3103_v47 = vsel %vm3039_vm1, %v3007_v0, %v3071_v30  ;;  %vm3040_vm3 = vcmp.ge.f32.partialorder %v3008_v31, 0.0  ;;  %v3072_v53 = vmul.f32 0.1, %v3008_v31 }
 0x221   : > { %v3589_v60 = vpack.c.bf16 %v3103_v47, %v3103_v47  ;;  %v3101_v2 = vsel %vm3037_vm2, %v3005_v18, %v3069_v34  ;;  %vm3038_vm4 = vcmp.ge.f32.partialorder %v3006_v46, 0.0  ;;  %v3070_v7 = vmul.f32 0.1, %v3006_v46 }
 0x222   : > { %v3587_v5 = vpack.c.bf16 %v3101_v2, %v3101_v2  ;;  %v3104_v6 = vsel %vm3040_vm3, %v3008_v31, %v3072_v53 }
 0x223   : > { %3264 = vst.msk [vmem:[%s5078_s19 + $0x78] sm:$0xf] %vm3233_vm5, %v3589_v60  ;;  %v3590_v10 = vpack.c.bf16 %v3104_v6, %v3104_v6  ;;  %v3102_v17 = vsel %vm3038_vm4, %v3006_v46, %v3070_v7 }
 0x224   : > { %3262 = vst.msk [vmem:[%s5078_s19 + $0x70] sm:$0xf] %vm3233_vm5, %v3587_v5  ;;  %v3588_v22 = vpack.c.bf16 %v3102_v17, %v3102_v17 }
 0x225   : > { %3265 = vst.msk [vmem:[%s5078_s19 + $0x7c] sm:$0xf] %vm3233_vm5, %v3590_v10 }
 0x226   : > { %3263 = vst.msk [vmem:[%s5078_s19 + $0x74] sm:$0xf] %vm3233_vm5, %v3588_v22 }
 0x227 PF: > { %s13_s14 = sadd.s32 1, %s4444_s14   ;;  %s5193_s12 = smov %s4440_s13 }
 0x228   : > { %p10_p5 = scmp.ge.s32.totalorder %s13_s14, 4   ;;  %s5194_s13 = smov %s5196_s15 }
 0x22a   :  { %12 = sbr.rel (!%p10_p5) target bundleno = 2 (0x2), region = 84 }

// kernel: spp_block_forward.7
= control target key start
LH: loop header
LB: loop body
LE: loop exit
PB: predicated region body
PF: predicated region fallthrough
CT: control target
= control target key end

     0   :  { %s7018_s18 = smov 0   ;;  %s11719_s0 = inlined_call_operand.vmem [shape: bf16[2,16,16,8], index: 0, kind: input, shape index: {}]   ;;  %s11720_s1 = inlined_call_operand.vmem [shape: bf16[8,4], index: 1, kind: input, shape index: {}]   ;;  %s11721_s2 = inlined_call_operand.vmem [shape: f32[1,4], index: 2, kind: input, shape index: {}]   ;;  %s11722_s3 = inlined_call_operand.vmem [shape: bf16[4,4,4], index: 3, kind: input, shape index: {}]   ;;  %s11723_s4 = inlined_call_operand.vmem [shape: f32[1,4], index: 4, kind: input, shape index: {}]   ;;  %s11724_s5 = inlined_call_operand.vmem [shape: bf16[2,16,16,4], index: 5, kind: output, shape index: {}]  }
   0x1 LB: > { %s6416_s19 = sadd.s32 4294967295, %s6985_s18   ;;  %p6420_p0 = scmp.ge.s32.totalorder %s6985_s18, 1  ;;  %s6985_s18 = sphi %s7018_s18, %s15_s18  }
   0x2   : > { %p187_p1 = scmp.lt.s32.totalorder %s6985_s18, 3 }
   0x4   : > { %p188_p2 = pnand %p6420_p0, %p187_p1 }
   0x6   : > { %191 = sbr.rel (%p188_p2) target bundleno = 1231 (0x4cf), region = 40 }
   0xd   : > { %v258_v0 = vld [vmem:[%s11720_s1] sm:$0xf]  ;;  %vm395_vm0 = vcmask 1043456   ;;  %p215_p3 = scmp.lt.s32.totalorder %s6416_s19, 1  ;;  %vm346_vm1 = vcmask 64512   ;;  %vm672_vm2 = vcmask 31744  }
   0xe   : > { %6947 = vmatprep.subr.msk.bf16.mxu0 %vm395_vm0, %v258_v0  ;;  %v397_v1 = vsel %vm395_vm0, %v258_v0, 0  ;;  %v6987_v18 = vmov -inf   ;;  %vm676_vm3 = vcmask 27648   ;;  %vm1075_vm4 = vcmask 1046528  }
   0xf   : > { %6680 = vmatpush3.bf16.msra.mxu0 %v397_v1  ;;  %s12295_s19 = smov (!%p215_p3, %s6416_s19), 1  ;;  %702 = vst.msk [vmem:[#allocation2 + $0xe0] sm:$0xff] %vm672_vm2, %v6987_v18  ;;  %703 = vst.msk [vmem:[#allocation2 + $0xe8] sm:$0xff] %vm672_vm2, %v6987_v18  ;;  %vm1440_vm5 = vcmask 1045504   ;;  %vm5197_vm6 = vcmask 1041408   ;;  %vm1805_vm7 = vcmask 1044480  }
  0x10   : > { %s6560_s22 = sshll.u32 %s12295_s19, 7  ;;  %704 = vst.msk [vmem:[#allocation2 + $0xf0] sm:$0xff] %vm672_vm2, %v6987_v18  ;;  %673 = vst.msk [vmem:[#allocation2] sm:$0xff] %vm672_vm2, %v6987_v18 }
  0x11   : > { %s7039_s25 = scalar_lea.vmem %s11719_s0, %s6560_s22  ;;  %674 = vst.msk [vmem:[#allocation2 + $0x8] sm:$0xff] %vm672_vm2, %v6987_v18  ;;  %675 = vst.msk [vmem:[#allocation2 + $0x10] sm:$0xff] %vm672_vm2, %v6987_v18  ;;  %s11598_s17 = scalar_lea.vmem %s11724_s5, %s6560_s22 }
  0x12   : > { %v6962_v2 = vld [vmem:[%s7039_s25] sm:$0xff]   ;;  %v6963_v3 = vld [vmem:[%s7039_s25 + $0x8] sm:$0xff]   ;;  %v6964_v4 = vld [vmem:[%s7039_s25 + $0x10] sm:$0xff]   ;;  %678 = vst.msk [vmem:[#allocation2 + $0x20] sm:$0xff] %vm672_vm2, %v6987_v18 }
  0x13   : > { %6681 = vmatprep.mubr.msk.bf16.mxu0 %vm346_vm1, %v6962_v2  ;;  %v6965_v5 = vld [vmem:[%s7039_s25 + $0x18] sm:$0xff]   ;;  %v6966_v6 = vld [vmem:[%s7039_s25 + $0x20] sm:$0xff]   ;;  %v6967_v7 = vld [vmem:[%s7039_s25 + $0x28] sm:$0xff]   ;;  %679 = vst.msk [vmem:[#allocation2 + $0x28] sm:$0xff] %vm672_vm2, %v6987_v18 }
  0x14   : > { %6682 = vmatmul.mubr.msk.bf16.vlgmr.msra.gmra.mrb[0].mxu0 %vm346_vm1, %v6963_v3  ;;  %v6968_v8 = vld [vmem:[%s7039_s25 + $0x30] sm:$0xff]   ;;  %v6969_v9 = vld [vmem:[%s7039_s25 + $0x38] sm:$0xff]   ;;  %v6970_v10 = vld [vmem:[%s7039_s25 + $0x40] sm:$0xff]   ;;  %680 = vst.msk [vmem:[#allocation2 + $0x30] sm:$0xff] %vm672_vm2, %v6987_v18 }
  0x15   : > { %6685 = vmatprep.mubr.msk.bf16.mxu0 %vm346_vm1, %v6964_v4  ;;  %v6971_v11 = vld [vmem:[%s7039_s25 + $0x48] sm:$0xff]   ;;  %v6972_v12 = vld [vmem:[%s7039_s25 + $0x50] sm:$0xff]   ;;  %v6973_v13 = vld [vmem:[%s7039_s25 + $0x58] sm:$0xff]   ;;  %682 = vst.msk [vmem:[#allocation2 + $0x40] sm:$0xff] %vm672_vm2, %v6987_v18 }
  0x16   : > { %v6974_v14 = vld [vmem:[%s7039_s25 + $0x60] sm:$0xff]   ;;  %v6975_v15 = vld [vmem:[%s7039_s25 + $0x68] sm:$0xff]   ;;  %v6976_v16 = vld [vmem:[%s7039_s25 + $0x70] sm:$0xff]   ;;  %683 = vst.msk [vmem:[#allocation2 + $0x48] sm:$0xff] %vm672_vm2, %v6987_v18 }
  0x17   : > { %v6977_v17 = vld [vmem:[%s7039_s25 + $0x78] sm:$0xff]   ;;  %684 = vst.msk [vmem:[#allocation2 + $0x50] sm:$0xff] %vm672_vm2, %v6987_v18  ;;  %686 = vst.msk [vmem:[#allocation2 + $0x60] sm:$0xff] %vm672_vm2, %v6987_v18  ;;  %v7297_v19 = vld [vmem:[#allocation2] sm:$0xff] }
  0x18   : > { %687 = vst.msk [vmem:[#allocation2 + $0x68] sm:$0xff] %vm672_vm2, %v6987_v18  ;;  %688 = vst.msk [vmem:[#allocation2 + $0x70] sm:$0xff] %vm672_vm2, %v6987_v18  ;;  %v7299_v20 = vld [vmem:[#allocation2 + $0x8] sm:$0xff]  ;;  %v7301_v21 = vld [vmem:[#allocation2 + $0x10] sm:$0xff]  ;;  %v1076_v27 = vrot.slane %v7297_v19, 1 }
  0x19   : > { %690 = vst.msk [vmem:[#allocation2 + $0x80] sm:$0xff] %vm672_vm2, %v6987_v18  ;;  %691 = vst.msk [vmem:[#allocation2 + $0x88] sm:$0xff] %vm672_vm2, %v6987_v18  ;;  %v7305_v23 = vld [vmem:[#allocation2 + $0x20] sm:$0xff]  ;;  %v1077_v28 = vrot.slane %v7299_v20, 1  ;;  %v1079_v29 = vrot.slane %v7301_v21, 1 }
  0x1a   : > { %692 = vst.msk [vmem:[#allocation2 + $0x90] sm:$0xff] %vm672_vm2, %v6987_v18  ;;  %694 = vst.msk [vmem:[#allocation2 + $0xa0] sm:$0xff] %vm672_vm2, %v6987_v18  ;;  %v7307_v24 = vld [vmem:[#allocation2 + $0x28] sm:$0xff]  ;;  %v1083_v40 = vrot.slane %v7305_v23, 1 }
  0x1b   : > { %695 = vst.msk [vmem:[#allocation2 + $0xa8] sm:$0xff] %vm672_vm2, %v6987_v18  ;;  %696 = vst.msk [vmem:[#allocation2 + $0xb0] sm:$0xff] %vm672_vm2, %v6987_v18  ;;  %v7309_v25 = vld [vmem:[#allocation2 + $0x30] sm:$0xff]  ;;  %v1084_v41 = vrot.slane %v7307_v24, 1  ;;  %v7344_v45 = vsel %vm1075_vm4, %v1076_v27, %v1077_v28  ;;  %v7347_v46 = vsel %vm1075_vm4, %v1077_v28, %v1079_v29  ;;  %v6458_v27 = vld [vmem:[%s11722_s3 + $0x2] sm:$0x3] }
  0x1c   : > { %6686 = vmatmul.mubr.msk.bf16.gmra.mrb[4].mxu0 %vm346_vm1, %v6965_v5  ;;  %698 = vst.msk [vmem:[#allocation2 + $0xc0] sm:$0xff] %vm672_vm2, %v6987_v18  ;;  %699 = vst.msk [vmem:[#allocation2 + $0xc8] sm:$0xff] %vm672_vm2, %v6987_v18  ;;  %v7316_v30 = vld [vmem:[#allocation2 + $0x40] sm:$0xff]  ;;  %v1086_v47 = vrot.slane %v7309_v25, 1  ;;  %6948 = vmatprep.subr.msk.bf16.mxu0 %vm5197_vm6, %v6458_v27 }
  0x1d   : > { %6689 = vmatprep.mubr.msk.bf16.mxu0 %vm346_vm1, %v6966_v6  ;;  %700 = vst.msk [vmem:[#allocation2 + $0xd0] sm:$0xff] %vm672_vm2, %v6987_v18  ;;  %706 = vst.msk [vmem:[#allocation2 + $0x100] sm:$0xff] %vm672_vm2, %v6987_v18  ;;  %v7318_v31 = vld [vmem:[#allocation2 + $0x48] sm:$0xff]  ;;  %v1090_v53 = vrot.slane %v7316_v30, 1  ;;  %v7374_v1 = vsel %vm1075_vm4, %v1083_v40, %v1084_v41 }
  0x1e   : > { %707 = vst.msk [vmem:[#allocation2 + $0x108] sm:$0xff] %vm672_vm2, %v6987_v18  ;;  %708 = vst.msk [vmem:[#allocation2 + $0x110] sm:$0xff] %vm672_vm2, %v6987_v18  ;;  %v7320_v32 = vld [vmem:[#allocation2 + $0x50] sm:$0xff]  ;;  %v7325_v35 = vld [vmem:[#allocation2 + $0x60] sm:$0xff]  ;;  %v1091_v54 = vrot.slane %v7318_v31, 1  ;;  %v7380_v5 = vsel %vm1075_vm4, %v1084_v41, %v1086_v47 }
  0x1f   : > { %710 = vst.msk [vmem:[#allocation2 + $0x120] sm:$0xff] %vm672_vm2, %v6987_v18  ;;  %711 = vst.msk [vmem:[#allocation2 + $0x128] sm:$0xff] %vm672_vm2, %v6987_v18  ;;  %v7327_v36 = vld [vmem:[#allocation2 + $0x68] sm:$0xff]  ;;  %v7329_v37 = vld [vmem:[#allocation2 + $0x70] sm:$0xff]  ;;  %v1093_v55 = vrot.slane %v7320_v32, 1  ;;  %v1097_v58 = vrot.slane %v7325_v35, 1 }
  0x20   : > { %712 = vst.msk [vmem:[#allocation2 + $0x130] sm:$0xff] %vm672_vm2, %v6987_v18  ;;  %714 = vst.msk [vmem:[#allocation2 + $0x140] sm:$0xff] %vm672_vm2, %v6987_v18  ;;  %v7333_v39 = vld [vmem:[#allocation2 + $0x80] sm:$0xff]  ;;  %v7337_v42 = vld [vmem:[#allocation2 + $0x88] sm:$0xff]  ;;  %v1098_v59 = vrot.slane %v7327_v36, 1  ;;  %v1100_v60 = vrot.slane %v7329_v37, 1 }
  0x21   : > { %715 = vst.msk [vmem:[#allocation2 + $0x148] sm:$0xff] %vm672_vm2, %v6987_v18  ;;  %716 = vst.msk [vmem:[#allocation2 + $0x150] sm:$0xff] %vm672_vm2, %v6987_v18  ;;  %v7339_v43 = vld [vmem:[#allocation2 + $0x90] sm:$0xff]  ;;  %v7351_v49 = vld [vmem:[#allocation2 + $0xa0] sm:$0xff]  ;;  %v1104_v62 = vrot.slane %v7333_v39, 1  ;;  %v1105_v63 = vrot.slane %v7337_v42, 1 }
  0x22   : > { %718 = vst.msk [vmem:[#allocation2 + $0x160] sm:$0xff] %vm672_vm2, %v6987_v18  ;;  %719 = vst.msk [vmem:[#allocation2 + $0x168] sm:$0xff] %vm672_vm2, %v6987_v18  ;;  %v7353_v50 = vld [vmem:[#allocation2 + $0xa8] sm:$0xff]  ;;  %v7355_v51 = vld [vmem:[#allocation2 + $0xb0] sm:$0xff]  ;;  %v1107_v0 = vrot.slane %v7339_v43, 1  ;;  %v1111_v3 = vrot.slane %v7351_v49, 1 }
  0x23   : > { %720 = vst.msk [vmem:[#allocation2 + $0x170] sm:$0xff] %vm672_vm2, %v6987_v18  ;;  %722 = vst.msk [vmem:[#allocation2 + $0x180] sm:$0xff] %vm672_vm2, %v6987_v18  ;;  %v1112_v4 = vrot.slane %v7353_v50, 1  ;;  %v1463_v41 = vrot.slane %v7327_v36, 2  ;;  %v1472_v40 = vrot.slane %v7339_v43, 2 }
  0x24   : > { %6690 = vmatmul.mubr.msk.bf16.gmra.mrb[8].mxu0 %vm346_vm1, %v6967_v7  ;;  %723 = vst.msk [vmem:[#allocation2 + $0x188] sm:$0xff] %vm672_vm2, %v6987_v18  ;;  %724 = vst.msk [vmem:[#allocation2 + $0x190] sm:$0xff] %vm672_vm2, %v6987_v18  ;;  %v1114_v7 = vrot.slane %v7355_v51, 1 }
  0x25   : > { %6693 = vmatprep.mubr.msk.bf16.mxu0 %vm346_vm1, %v6968_v8  ;;  %726 = vst.msk [vmem:[#allocation2 + $0x1a0] sm:$0xff] %vm672_vm2, %v6987_v18  ;;  %727 = vst.msk [vmem:[#allocation2 + $0x1a8] sm:$0xff] %vm672_vm2, %v6987_v18 }
  0x26   : > { %728 = vst.msk [vmem:[#allocation2 + $0x1b0] sm:$0xff] %vm672_vm2, %v6987_v18  ;;  %730 = vst.msk [vmem:[#allocation2 + $0x1c0] sm:$0xff] %vm672_vm2, %v6987_v18 }
  0x27   : > { %731 = vst.msk [vmem:[#allocation2 + $0x1c8] sm:$0xff] %vm672_vm2, %v6987_v18  ;;  %732 = vst.msk [vmem:[#allocation2 + $0x1d0] sm:$0xff] %vm672_vm2, %v6987_v18 }
  0x28   : > { %734 = vst.msk [vmem:[#allocation2 + $0x1e0] sm:$0xff] %vm672_vm2, %v6987_v18  ;;  %735 = vst.msk [vmem:[#allocation2 + $0x1e8] sm:$0xff] %vm672_vm2, %v6987_v18 }
  0x29   : > { %736 = vst.msk [vmem:[#allocation2 + $0x1f0] sm:$0xff] %vm672_vm2, %v6987_v18  ;;  %738 = vst.msk [vmem:[#allocation2 + $0x200] sm:$0xff] %vm672_vm2, %v6987_v18 }
  0x2a   : > { %739 = vst.msk [vmem:[#allocation2 + $0x208] sm:$0xff] %vm672_vm2, %v6987_v18  ;;  %740 = vst.msk [vmem:[#allocation2 + $0x210] sm:$0xff] %vm672_vm2, %v6987_v18 }
  0x2b   : > { %742 = vst.msk [vmem:[#allocation2 + $0x220] sm:$0xff] %vm672_vm2, %v6987_v18  ;;  %743 = vst.msk [vmem:[#allocation2 + $0x228] sm:$0xff] %vm672_vm2, %v6987_v18 }
  0x2c   : > { %6694 = vmatmul.mubr.msk.bf16.gmra.mrb[12].mxu0 %vm346_vm1, %v6969_v9  ;;  %744 = vst.msk [vmem:[#allocation2 + $0x230] sm:$0xff] %vm672_vm2, %v6987_v18  ;;  %746 = vst.msk [vmem:[#allocation2 + $0x240] sm:$0xff] %vm672_vm2, %v6987_v18  ;;  %v7388_v9 = vsel %vm1075_vm4, %v1090_v53, %v1091_v54  ;;  %v1458_v53 = vrot.slane %v7320_v32, 2 }
  0x2d   : > { %6697 = vmatprep.mubr.msk.bf16.mxu0 %vm346_vm1, %v6970_v10  ;;  %747 = vst.msk [vmem:[#allocation2 + $0x248] sm:$0xff] %vm672_vm2, %v6987_v18  ;;  %748 = vst.msk [vmem:[#allocation2 + $0x250] sm:$0xff] %vm672_vm2, %v6987_v18  ;;  %v7391_v10 = vsel %vm1075_vm4, %v1091_v54, %v1093_v55  ;;  %v1456_v54 = vrot.slane %v7318_v31, 2 }
  0x2e   : > { %750 = vst.msk [vmem:[#allocation2 + $0x260] sm:$0xff] %vm672_vm2, %v6987_v18  ;;  %751 = vst.msk [vmem:[#allocation2 + $0x268] sm:$0xff] %vm672_vm2, %v6987_v18 }
  0x2f   : > { %752 = vst.msk [vmem:[#allocation2 + $0x270] sm:$0xff] %vm672_vm2, %v6987_v18  ;;  %754 = vst.msk [vmem:[#allocation2 + $0x280] sm:$0xff] %vm672_vm2, %v6987_v18 }
  0x30   : > { %755 = vst.msk [vmem:[#allocation2 + $0x288] sm:$0xff] %vm672_vm2, %v6987_v18  ;;  %756 = vst.msk [vmem:[#allocation2 + $0x290] sm:$0xff] %vm672_vm2, %v6987_v18 }
  0x31   : > { %758 = vst.msk [vmem:[#allocation2 + $0x2a0] sm:$0xff] %vm672_vm2, %v6987_v18  ;;  %759 = vst.msk [vmem:[#allocation2 + $0x2a8] sm:$0xff] %vm672_vm2, %v6987_v18 }
  0x32   : > { %760 = vst.msk [vmem:[#allocation2 + $0x2b0] sm:$0xff] %vm672_vm2, %v6987_v18  ;;  %762 = vst.msk [vmem:[#allocation2 + $0x2c0] sm:$0xff] %vm672_vm2, %v6987_v18 }
  0x33   : > { %763 = vst.msk [vmem:[#allocation2 + $0x2c8] sm:$0xff] %vm672_vm2, %v6987_v18  ;;  %764 = vst.msk [vmem:[#allocation2 + $0x2d0] sm:$0xff] %vm672_vm2, %v6987_v18 }
  0x34   : > { %6698 = vmatmul.mubr.msk.bf16.gmra.mrb[16].mxu0 %vm346_vm1, %v6971_v11  ;;  %766 = vst.msk [vmem:[#allocation2 + $0x2e0] sm:$0xff] %vm672_vm2, %v6987_v18  ;;  %767 = vst.msk [vmem:[#allocation2 + $0x2e8] sm:$0xff] %vm672_vm2, %v6987_v18 }
  0x35   : > { %6701 = vmatprep.mubr.msk.bf16.mxu0 %vm346_vm1, %v6972_v12  ;;  %768 = vst.msk [vmem:[#allocation2 + $0x2f0] sm:$0xff] %vm672_vm2, %v6987_v18  ;;  %770 = vst.msk [vmem:[#allocation2 + $0x300] sm:$0xff] %vm672_vm2, %v6987_v18  ;;  %v7397_v12 = vsel %vm1075_vm4, %v1097_v58, %v1098_v59 }
  0x36   : > { %771 = vst.msk [vmem:[#allocation2 + $0x308] sm:$0xff] %vm672_vm2, %v6987_v18  ;;  %772 = vst.msk [vmem:[#allocation2 + $0x310] sm:$0xff] %vm672_vm2, %v6987_v18 }
  0x37   : > { %774 = vst.msk [vmem:[#allocation2 + $0x320] sm:$0xff] %vm672_vm2, %v6987_v18  ;;  %775 = vst.msk [vmem:[#allocation2 + $0x328] sm:$0xff] %vm672_vm2, %v6987_v18 }
  0x38   : > { %776 = vst.msk [vmem:[#allocation2 + $0x330] sm:$0xff] %vm672_vm2, %v6987_v18  ;;  %778 = vst.msk [vmem:[#allocation2 + $0x340] sm:$0xff] %vm672_vm2, %v6987_v18 }
  0x39   : > { %779 = vst.msk [vmem:[#allocation2 + $0x348] sm:$0xff] %vm672_vm2, %v6987_v18  ;;  %780 = vst.msk [vmem:[#allocation2 + $0x350] sm:$0xff] %vm672_vm2, %v6987_v18 }
  0x3a   : > { %782 = vst.msk [vmem:[#allocation2 + $0x360] sm:$0xff] %vm672_vm2, %v6987_v18  ;;  %783 = vst.msk [vmem:[#allocation2 + $0x368] sm:$0xff] %vm672_vm2, %v6987_v18 }
  0x3b   : > { %784 = vst.msk [vmem:[#allocation2 + $0x370] sm:$0xff] %vm672_vm2, %v6987_v18  ;;  %11884 = vst [vmem:[#allocation7_spill] sm:$0xff] %v7333_v39 }
  0x3c   : > { %6702 = vmatmul.mubr.msk.bf16.gmra.mrb[20].mxu0 %vm346_vm1, %v6973_v13  ;;  %677 = vst.msk [vmem:[#allocation2 + $0x18] sm:$0xf] %vm676_vm3, %v6987_v18  ;;  %681 = vst.msk [vmem:[#allocation2 + $0x38] sm:$0xf] %vm676_vm3, %v6987_v18  ;;  %v7400_v13 = vsel %vm1075_vm4, %v1098_v59, %v1100_v60  ;;  %v1448_v59 = vrot.slane %v7305_v23, 2 }
  0x3d   : > { %6705 = vmatprep.mubr.msk.bf16.mxu0 %vm346_vm1, %v6974_v14  ;;  %685 = vst.msk [vmem:[#allocation2 + $0x58] sm:$0xf] %vm676_vm3, %v6987_v18  ;;  %689 = vst.msk [vmem:[#allocation2 + $0x78] sm:$0xf] %vm676_vm3, %v6987_v18 }
  0x3e   : > { %693 = vst.msk [vmem:[#allocation2 + $0x98] sm:$0xf] %vm676_vm3, %v6987_v18  ;;  %697 = vst.msk [vmem:[#allocation2 + $0xb8] sm:$0xf] %vm676_vm3, %v6987_v18 }
  0x3f   : > { %701 = vst.msk [vmem:[#allocation2 + $0xd8] sm:$0xf] %vm676_vm3, %v6987_v18  ;;  %705 = vst.msk [vmem:[#allocation2 + $0xf8] sm:$0xf] %vm676_vm3, %v6987_v18 }
  0x40   : > { %709 = vst.msk [vmem:[#allocation2 + $0x118] sm:$0xf] %vm676_vm3, %v6987_v18  ;;  %713 = vst.msk [vmem:[#allocation2 + $0x138] sm:$0xf] %vm676_vm3, %v6987_v18 }
  0x41   : > { %717 = vst.msk [vmem:[#allocation2 + $0x158] sm:$0xf] %vm676_vm3, %v6987_v18  ;;  %721 = vst.msk [vmem:[#allocation2 + $0x178] sm:$0xf] %vm676_vm3, %v6987_v18 }
  0x42   : > { %725 = vst.msk [vmem:[#allocation2 + $0x198] sm:$0xf] %vm676_vm3, %v6987_v18  ;;  %729 = vst.msk [vmem:[#allocation2 + $0x1b8] sm:$0xf] %vm676_vm3, %v6987_v18 }
  0x43   : > { %733 = vst.msk [vmem:[#allocation2 + $0x1d8] sm:$0xf] %vm676_vm3, %v6987_v18  ;;  %737 = vst.msk [vmem:[#allocation2 + $0x1f8] sm:$0xf] %vm676_vm3, %v6987_v18  ;;  %v7303_v22 = vld [vmem:[#allocation2 + $0x18] sm:$0xf] }
  0x44   : > { %6706 = vmatmul.mubr.msk.bf16.gmra.mrb[24].mxu0 %vm346_vm1, %v6975_v15  ;;  %741 = vst.msk [vmem:[#allocation2 + $0x218] sm:$0xf] %vm676_vm3, %v6987_v18  ;;  %745 = vst.msk [vmem:[#allocation2 + $0x238] sm:$0xf] %vm676_vm3, %v6987_v18  ;;  %v7311_v26 = vld [vmem:[#allocation2 + $0x38] sm:$0xf]  ;;  %v7406_v15 = vsel %vm1075_vm4, %v1104_v62, %v1105_v63 }
  0x45   : > { %6709 = vmatprep.mubr.msk.bf16.mxu0 %vm346_vm1, %v6976_v16  ;;  %749 = vst.msk [vmem:[#allocation2 + $0x258] sm:$0xf] %vm676_vm3, %v6987_v18  ;;  %753 = vst.msk [vmem:[#allocation2 + $0x278] sm:$0xf] %vm676_vm3, %v6987_v18  ;;  %v1081_v33 = vrot.slane %v7303_v22, 1  ;;  %v1088_v48 = vrot.slane %v7311_v26, 1  ;;  %v7409_v16 = vsel %vm1075_vm4, %v1105_v63, %v1107_v0 }
  0x46   : > { %757 = vst.msk [vmem:[#allocation2 + $0x298] sm:$0xf] %vm676_vm3, %v6987_v18  ;;  %761 = vst.msk [vmem:[#allocation2 + $0x2b8] sm:$0xf] %vm676_vm3, %v6987_v18  ;;  %v7323_v34 = vld [vmem:[#allocation2 + $0x58] sm:$0xf] }
  0x47   : > { %765 = vst.msk [vmem:[#allocation2 + $0x2d8] sm:$0xf] %vm676_vm3, %v6987_v18  ;;  %769 = vst.msk [vmem:[#allocation2 + $0x2f8] sm:$0xf] %vm676_vm3, %v6987_v18  ;;  %v7331_v38 = vld [vmem:[#allocation2 + $0x78] sm:$0xf]  ;;  %v7358_v52 = vsel %vm1075_vm4, %v1079_v29, %v1081_v33  ;;  %v7383_v6 = vsel %vm1075_vm4, %v1086_v47, %v1088_v48  ;;  %v7422_v29 = vsel %vm1075_vm4, %v1112_v4, %v1114_v7 }
  0x48   : > { %773 = vst.msk [vmem:[#allocation2 + $0x318] sm:$0xf] %vm676_vm3, %v6987_v18  ;;  %777 = vst.msk [vmem:[#allocation2 + $0x338] sm:$0xf] %vm676_vm3, %v6987_v18  ;;  %v7341_v44 = vld [vmem:[#allocation2 + $0x98] sm:$0xf] }
  0x49   : > { %781 = vst.msk [vmem:[#allocation2 + $0x358] sm:$0xf] %vm676_vm3, %v6987_v18  ;;  %785 = vst.msk [vmem:[#allocation2 + $0x378] sm:$0xf] %vm676_vm3, %v6987_v18  ;;  %v7363_v56 = vld [vmem:[#allocation2 + $0xb8] sm:$0xf]  ;;  %v7415_v18 = vsel %vm1075_vm4, %v1111_v3, %v1112_v4 }
  0x4a   : > { %11880 = vst [vmem:[#allocation3_spill] sm:$0xff] %v7303_v22  ;;  %11881 = vst [vmem:[#allocation4_spill] sm:$0xff] %v7311_v26  ;;  %v1095_v57 = vrot.slane %v7323_v34, 1  ;;  %v1102_v61 = vrot.slane %v7331_v38, 1  ;;  %v1109_v2 = vrot.slane %v7341_v44, 1  ;;  %v1116_v8 = vrot.slane %v7363_v56, 1 }
  0x4b   : > { %11882 = vst [vmem:[#allocation5_spill] sm:$0xff] %v7323_v34  ;;  %11883 = vst [vmem:[#allocation6_spill] sm:$0xff] %v7331_v38  ;;  %v1444_v62 = vrot.slane %v7301_v21, 2  ;;  %v1446_v63 = vrot.slane %v7303_v22, 2  ;;  %v1451_v3 = vrot.slane %v7309_v25, 2  ;;  %v1453_v58 = vrot.slane %v7311_v26, 2 }
  0x4c   : > { %6710 = vmatmul.mubr.msk.bf16.gmra.mrb[28].mxu0 %vm346_vm1, %v6977_v17  ;;  %11885 = vst [vmem:[#allocation8_spill] sm:$0xff] %v7337_v42  ;;  %11886 = vst [vmem:[#allocation9_spill] sm:$0xff] %v7339_v43  ;;  %v7394_v11 = vsel %vm1075_vm4, %v1093_v55, %v1095_v57  ;;  %v7403_v14 = vsel %vm1075_vm4, %v1100_v60, %v1102_v61  ;;  %v7412_v17 = vsel %vm1075_vm4, %v1107_v0, %v1109_v2  ;;  %v5146_v0 = vld [vmem:[%s11722_s3] sm:$0x3] }
  0x4d   : > { %11887 = vst [vmem:[#allocation10_spill] sm:$0xff] %v7341_v44  ;;  %11888 = vst [vmem:[#allocation11_spill] sm:$0xff] %v7351_v49  ;;  %v7425_v33 = vsel %vm1075_vm4, %v1114_v7, %v1116_v8  ;;  %v1441_v60 = vrot.slane %v7297_v19, 2  ;;  %v1442_v61 = vrot.slane %v7299_v20, 2  ;;  %v1449_v2 = vrot.slane %v7307_v24, 2  ;;  %6950 = vmatprep.subr.msk.bf16.mxu1 %vm5197_vm6, %v5146_v0 }
  0x4e   : > { %11889 = vst [vmem:[#allocation12_spill] sm:$0xff] %v7353_v50  ;;  %11890 = vst [vmem:[#allocation13_spill] sm:$0xff] %v7355_v51  ;;  %v7472_v7 = vsel %vm5197_vm6, %v5146_v0, 0  ;;  %v1447_v57 = vsel %vm1440_vm5, %v1444_v62, %v1446_v63  ;;  %v1455_v55 = vrot.slane %v7316_v30, 2  ;;  %v1460_v48 = vrot.slane %v7323_v34, 2 }
  0x4f   : > { %11891 = vst [vmem:[#allocation14_spill] sm:$0xff] %v7363_v56  ;;  %11892 = vst [vmem:[#allocation15_spill] sm:$0xff] %v7412_v17  ;;  %v1443_v8 = vsel %vm1440_vm5, %v1441_v60, %v1442_v61  ;;  %v1445_v4 = vsel %vm1440_vm5, %v1442_v61, %v1444_v62  ;;  %6850 = vmatpush3.bf16.msra.mxu1 %v7472_v7  ;;  %v1462_v47 = vrot.slane %v7325_v35, 2  ;;  %v1465_v60 = vrot.slane %v7329_v37, 2 }
  0x50   : > { %11893 = vst [vmem:[#allocation16_spill] sm:$0xff] %v7415_v18  ;;  %11894 = vst [vmem:[#allocation17_spill] sm:$0xff] %v7422_v29  ;;  %v1467_v61 = vrot.slane %v7331_v38, 2  ;;  %v1469_v62 = vrot.slane %v7333_v39, 2  ;;  %v1470_v63 = vrot.slane %v7337_v42, 2  ;;  %v1474_v28 = vrot.slane %v7341_v44, 2 }
  0x51   : > { %11895 = vst [vmem:[#allocation18_spill] sm:$0xff] %v7425_v33  ;;  %11896 = vst [vmem:[#allocation19_spill] sm:$0xff] %v7472_v7  ;;  %v1476_v7 = vrot.slane %v7351_v49, 2  ;;  %v1477_v34 = vrot.slane %v7353_v50, 2  ;;  %v1479_v26 = vrot.slane %v7355_v51, 2  ;;  %v1481_v38 = vrot.slane %v7363_v56, 2 }
  0x52   : > { %v5199_v33 = vsel %vm5197_vm6, %v6458_v27, 0  ;;  %v1450_v29 = vsel %vm1440_vm5, %v1448_v59, %v1449_v2  ;;  %v1452_v44 = vsel %vm1440_vm5, %v1449_v2, %v1451_v3  ;;  %v1454_v18 = vsel %vm1440_vm5, %v1451_v3, %v1453_v58 }
  0x53   : > { %6714 = vmatpush3.bf16.msra.mxu0 %v5199_v33  ;;  %v1457_v22 = vsel %vm1440_vm5, %v1455_v55, %v1456_v54  ;;  %v1459_v49 = vsel %vm1440_vm5, %v1456_v54, %v1458_v53  ;;  %v1461_v50 = vsel %vm1440_vm5, %v1458_v53, %v1460_v48  ;;  %v1464_v51 = vsel %vm1440_vm5, %v1462_v47, %v1463_v41 }
  0x54   : > { %v1466_v56 = vsel %vm1440_vm5, %v1463_v41, %v1465_v60  ;;  %v1468_v17 = vsel %vm1440_vm5, %v1465_v60, %v1467_v61  ;;  %v1471_v27 = vsel %vm1440_vm5, %v1469_v62, %v1470_v63  ;;  %v1473_v59 = vsel %vm1440_vm5, %v1470_v63, %v1472_v40  ;;  %6949 = vmatprep.subr.msk.bf16.mxu0 %vm5197_vm6, %v5146_v0  ;;  %v11914_v60 = vld [vmem:[#allocation3_spill] sm:$0xff] }
  0x55   : > { %v1475_v33 = vsel %vm1440_vm5, %v1472_v40, %v1474_v28  ;;  %v1478_v55 = vsel %vm1440_vm5, %v1476_v7, %v1477_v34  ;;  %v1480_v54 = vsel %vm1440_vm5, %v1477_v34, %v1479_v26  ;;  %v1482_v48 = vsel %vm1440_vm5, %v1479_v26, %v1481_v38 }
  0x56   : > { %v11897_v47 = vmax.f32 %v7297_v19, %v7344_v45  ;;  %v1806_v53 = vrot.slane %v7297_v19, 3  ;;  %v1807_v58 = vrot.slane %v7299_v20, 3  ;;  %v1809_v2 = vrot.slane %v7301_v21, 3 }
  0x57   : > { %v11898_v28 = vmax.f32 %v7299_v20, %v7347_v46  ;;  %v11899_v34 = vmax.f32 %v7301_v21, %v7358_v52  ;;  %v11900_v38 = vmax.f32 %v7305_v23, %v7374_v1  ;;  %v11901_v0 = vmax.f32 %v7307_v24, %v7380_v5  ;;  %v11916_v63 = vld [vmem:[#allocation16_spill] sm:$0xff] }
  0x58   : > { %v7518_v41 = vmax.f32 %v11897_v47, %v1443_v8  ;;  %v11902_v46 = vmax.f32 %v7309_v25, %v7383_v6  ;;  %v11903_v52 = vmax.f32 %v7316_v30, %v7388_v9  ;;  %v11904_v1 = vmax.f32 %v7318_v31, %v7391_v10  ;;  %v11919_v47 = vld [vmem:[#allocation12_spill] sm:$0xff] }
  0x59   : > { %v7526_v40 = vmax.f32 %v11898_v28, %v1445_v4  ;;  %v7531_v26 = vmax.f32 %v11899_v34, %v1447_v57  ;;  %v7536_v45 = vmax.f32 %v11900_v38, %v1450_v29  ;;  %v7541_v3 = vmax.f32 %v11901_v0, %v1452_v44  ;;  %v7561_v44 = vld [vmem:[%s11722_s3 + $0x4] sm:$0x3]  ;;  %v11924_v38 = vld [vmem:[#allocation18_spill] sm:$0xff] }
  0x5a   : > { %v7546_v4 = vmax.f32 %v11902_v46, %v1454_v18  ;;  %v7551_v57 = vmax.f32 %v11903_v52, %v1457_v22  ;;  %v7556_v29 = vmax.f32 %v11904_v1, %v1459_v49  ;;  %11905 = vst [vmem:[#allocation20_spill] sm:$0xff] %v7561_v44  ;;  %v11906_v5 = vmax.f32 %v7320_v32, %v7394_v11  ;;  %v11927_v52 = vld [vmem:[#allocation4_spill] sm:$0xff] }
  0x5b   : > { %v11907_v9 = vmax.f32 %v7325_v35, %v7397_v12  ;;  %v11908_v10 = vmax.f32 %v7327_v36, %v7400_v13  ;;  %v11909_v18 = vmax.f32 %v7329_v37, %v7403_v14  ;;  %6951 = vmatprep.subr.msk.bf16.mxu1 %vm5197_vm6, %v7561_v44  ;;  %v7601_v14 = vsel %vm1805_vm7, %v1806_v53, %v1807_v58  ;;  %v11923_v53 = vld [vmem:[#allocation13_spill] sm:$0xff] }
  0x5c   : > { %v7566_v6 = vmax.f32 %v11906_v5, %v1461_v50  ;;  %v11910_v50 = vmax.f32 %v7333_v39, %v7406_v15  ;;  %v1811_v15 = vrot.slane %v11914_v60, 3  ;;  %v1813_v61 = vrot.slane %v7305_v23, 3 }
  0x5d   : > { %v7571_v22 = vmax.f32 %v11907_v9, %v1464_v51  ;;  %v7576_v49 = vmax.f32 %v11908_v10, %v1466_v56  ;;  %v7581_v7 = vmax.f32 %v11909_v18, %v1468_v17  ;;  %v11911_v51 = vmax.f32 %v7337_v42, %v7409_v16  ;;  %v11912_v56 = vld [vmem:[#allocation15_spill] sm:$0xff]  ;;  %v11928_v10 = vld [vmem:[#allocation5_spill] sm:$0xff] }
  0x5e   : > { %v7588_v11 = vmax.f32 %v11910_v50, %v1471_v27  ;;  %v11913_v13 = vmax.f32 %v7339_v43, %v11912_v56  ;;  %v7604_v17 = vsel %vm1805_vm7, %v1807_v58, %v1809_v2  ;;  %v1814_v62 = vrot.slane %v7307_v24, 3  ;;  %v11915_v16 = vld [vmem:[#allocation11_spill] sm:$0xff] }
  0x5f   : > { %v7593_v12 = vmax.f32 %v11911_v51, %v1473_v59  ;;  %v11917_v27 = vmax.f32 %v11915_v16, %v11916_v63  ;;  %v11925_v58 = vmax.f32 %v11923_v53, %v11924_v38  ;;  %v1816_v46 = vrot.slane %v7309_v25, 3 }
  0x60   : > { %v7598_v8 = vmax.f32 %v11913_v13, %v1475_v33  ;;  %v11920_v33 = vld [vmem:[#allocation17_spill] sm:$0xff]  ;;  %v1818_v1 = vrot.slane %v11927_v52, 3  ;;  %v1820_v5 = vrot.slane %v7316_v30, 3  ;;  %v1821_v9 = vrot.slane %v7318_v31, 3 }
  0x61   : > { %v7612_v59 = vmax.f32 %v11917_v27, %v1478_v55  ;;  %v11921_v28 = vmax.f32 %v11919_v47, %v11920_v33  ;;  %v7622_v0 = vmax.f32 %v11925_v58, %v1482_v48  ;;  %v1823_v55 = vrot.slane %v7320_v32, 3  ;;  %v11929_v48 = vld [vmem:[#allocation6_spill] sm:$0xff] }
  0x62   : > { %v1825_v18 = vrot.slane %v11928_v10, 3  ;;  %v1828_v50 = vrot.slane %v7327_v36, 3  ;;  %v1830_v51 = vrot.slane %v7329_v37, 3  ;;  %v1832_v56 = vrot.slane %v11929_v48, 3  ;;  %v11930_v33 = vld [vmem:[#allocation10_spill] sm:$0xff] }
  0x63   : > { %11918 = vst [vmem:[#allocation15_spill] sm:$0xff] %v7612_v59  ;;  %v7617_v34 = vmax.f32 %v11921_v28, %v1480_v54  ;;  %11926 = vst [vmem:[#allocation16_spill] sm:$0xff] %v7622_v0  ;;  %v1827_v54 = vrot.slane %v7325_v35, 3  ;;  %v1834_v13 = vrot.slane %v7333_v39, 3  ;;  %v1835_v63 = vrot.slane %v7337_v42, 3  ;;  %v11931_v42 = vld [vmem:[#allocation14_spill] sm:$0xff] }
  0x64   : > { %v1837_v27 = vrot.slane %v7339_v43, 3  ;;  %v1839_v28 = vrot.slane %v11930_v33, 3  ;;  %v1841_v38 = vrot.slane %v11915_v16, 3  ;;  %v1842_v58 = vrot.slane %v11919_v47, 3 }
  0x65   : > { %11922 = vst [vmem:[#allocation3_spill] sm:$0xff] %v7617_v34  ;;  %v1844_v44 = vrot.slane %v11923_v53, 3  ;;  %v7642_v0 = vsel %vm1805_vm7, %v1809_v2, %v1811_v15  ;;  %v7645_v34 = vsel %vm1805_vm7, %v1813_v61, %v1814_v62  ;;  %v7648_v59 = vsel %vm1805_vm7, %v1814_v62, %v1816_v46 }
  0x66   : > { %v1846_v39 = vrot.slane %v11931_v42, 3  ;;  %v7652_v43 = vsel %vm1805_vm7, %v1816_v46, %v1818_v1  ;;  %v7655_v16 = vsel %vm1805_vm7, %v1820_v5, %v1821_v9  ;;  %v7658_v47 = vsel %vm1805_vm7, %v1821_v9, %v1823_v55 }
  0x67   : > { %v7661_v2 = vsel %vm1805_vm7, %v1823_v55, %v1825_v18  ;;  %v7664_v15 = vsel %vm1805_vm7, %v1827_v54, %v1828_v50  ;;  %v7667_v61 = vsel %vm1805_vm7, %v1828_v50, %v1830_v51  ;;  %v7670_v62 = vsel %vm1805_vm7, %v1830_v51, %v1832_v56 }
  0x68   : > { %v7673_v46 = vsel %vm1805_vm7, %v1834_v13, %v1835_v63  ;;  %v7676_v1 = vsel %vm1805_vm7, %v1835_v63, %v1837_v27  ;;  %v7679_v5 = vsel %vm1805_vm7, %v1837_v27, %v1839_v28  ;;  %v7682_v9 = vsel %vm1805_vm7, %v1841_v38, %v1842_v58  ;;  %v11934_v28 = vld [vmem:[#allocation9_spill] sm:$0xff] }
  0x69   : > { %v7685_v55 = vsel %vm1805_vm7, %v1842_v58, %v1844_v44  ;;  %v7688_v18 = vsel %vm1805_vm7, %v1844_v44, %v1846_v39  ;;  %v2086_v54 = vmax.f32 %v7518_v41, %v7601_v14  ;;  %v2087_v50 = vmax.f32 %v7526_v40, %v7604_v17 }
  0x6a   : > { %v2088_v51 = vmax.f32 %v7531_v26, %v7642_v0  ;;  %v2089_v56 = vmax.f32 %v7536_v45, %v7645_v34  ;;  %v2090_v13 = vmax.f32 %v7541_v3, %v7648_v59  ;;  %v2091_v63 = vmax.f32 %v7546_v4, %v7652_v43 }
  0x6b   : > { %v2092_v39 = vmax.f32 %v7551_v57, %v7655_v16  ;;  %v2093_v41 = vmax.f32 %v7556_v29, %v7658_v47  ;;  %v2094_v40 = vmax.f32 %v7566_v6, %v7661_v2  ;;  %v2095_v26 = vmax.f32 %v7571_v22, %v7664_v15  ;;  %v11932_v16 = vld [vmem:[#allocation7_spill] sm:$0xff]  ;;  %v11933_v47 = vld [vmem:[#allocation8_spill] sm:$0xff] }
  0x6c   : > { %v2096_v45 = vmax.f32 %v7576_v49, %v7667_v61  ;;  %v2097_v3 = vmax.f32 %v7581_v7, %v7670_v62  ;;  %v2098_v43 = vmax.f32 %v7588_v11, %v7673_v46  ;;  %v2170_v4 = vrot.slane %v7297_v19, 4 }
  0x6d   : > { %v2171_v57 = vrot.slane %v7299_v20, 4  ;;  %v2173_v29 = vrot.slane %v7301_v21, 4  ;;  %v2175_v44 = vrot.slane %v11914_v60, 4  ;;  %v2177_v6 = vrot.slane %v7305_v23, 4 }
  0x6e   : > { %v2178_v22 = vrot.slane %v7307_v24, 4  ;;  %v2180_v49 = vrot.slane %v7309_v25, 4  ;;  %v2182_v14 = vrot.slane %v11927_v52, 4  ;;  %v2184_v7 = vrot.slane %v7316_v30, 4 }
  0x6f   : > { %v2185_v17 = vrot.slane %v7318_v31, 4  ;;  %v2187_v19 = vrot.slane %v7320_v32, 4  ;;  %v2189_v20 = vrot.slane %v11928_v10, 4  ;;  %v2191_v21 = vrot.slane %v7325_v35, 4 }
  0x70   : > { %v2192_v60 = vrot.slane %v7327_v36, 4  ;;  %v2099_v23 = vmax.f32 %v7593_v12, %v7676_v1  ;;  %v2100_v24 = vmax.f32 %v7598_v8, %v7679_v5  ;;  %v2194_v25 = vrot.slane %v7329_v37, 4 }
  0x71   : > { %v2196_v30 = vrot.slane %v11929_v48, 4  ;;  %v2172_v31 = vsel %vm395_vm0, %v2170_v4, %v2171_v57  ;;  %v2174_v32 = vsel %vm395_vm0, %v2171_v57, %v2173_v29  ;;  %v2198_v59 = vrot.slane %v11932_v16, 4 }
  0x72   : > { %v2199_v35 = vrot.slane %v11933_v47, 4  ;;  %v2176_v36 = vsel %vm395_vm0, %v2173_v29, %v2175_v44  ;;  %v2179_v34 = vsel %vm395_vm0, %v2177_v6, %v2178_v22  ;;  %v2181_v12 = vsel %vm395_vm0, %v2178_v22, %v2180_v49  ;;  %v11935_v29 = vld [vmem:[#allocation11_spill] sm:$0xff]  ;;  %v11936_v6 = vld [vmem:[#allocation12_spill] sm:$0xff] }
  0x73   : > { %v2183_v8 = vsel %vm395_vm0, %v2180_v49, %v2182_v14  ;;  %v2186_v37 = vsel %vm395_vm0, %v2184_v7, %v2185_v17  ;;  %v2188_v0 = vsel %vm395_vm0, %v2185_v17, %v2187_v19  ;;  %v2190_v52 = vsel %vm395_vm0, %v2187_v19, %v2189_v20  ;;  %v11937_v19 = vld [vmem:[#allocation15_spill] sm:$0xff] }
  0x74   : > { %v2193_v10 = vsel %vm395_vm0, %v2191_v21, %v2192_v60  ;;  %v2195_v48 = vsel %vm395_vm0, %v2192_v60, %v2194_v25  ;;  %v2197_v27 = vsel %vm395_vm0, %v2194_v25, %v2196_v30  ;;  %v2201_v38 = vrot.slane %v11934_v28, 4 }
  0x75   : > { %v2203_v58 = vrot.slane %v11930_v33, 4  ;;  %v2200_v2 = vsel %vm395_vm0, %v2198_v59, %v2199_v35  ;;  %v2450_v15 = vmax.f32 %v2086_v54, %v2172_v31  ;;  %v2451_v61 = vmax.f32 %v2087_v50, %v2174_v32 }
  0x76   : > { %v2452_v62 = vmax.f32 %v2088_v51, %v2176_v36  ;;  %v2453_v1 = vmax.f32 %v2089_v56, %v2179_v34  ;;  %v2454_v5 = vmax.f32 %v2090_v13, %v2181_v12  ;;  %v2455_v4 = vmax.f32 %v2091_v63, %v2183_v8 }
  0x77   : > { %v7753_v57 = vmax.f32 %v2092_v39, %v2186_v37  ;;  %v2205_v44 = vrot.slane %v11935_v29, 4  ;;  %v2206_v22 = vrot.slane %v11936_v6, 4  ;;  %v7757_v49 = vmax.f32 %v2093_v41, %v2188_v0 }
  0x78   : > { %v7759_v14 = vmax.f32 %v2094_v40, %v2190_v52  ;;  %v2202_v33 = vsel %vm395_vm0, %v2199_v35, %v2201_v38  ;;  %v2204_v7 = vsel %vm395_vm0, %v2201_v38, %v2203_v58  ;;  %v2208_v54 = vrot.slane %v11923_v53, 4  ;;  %v11938_v53 = vld [vmem:[#allocation3_spill] sm:$0xff] }
  0x79   : > { %v2210_v50 = vrot.slane %v11931_v42, 4  ;;  %v7765_v51 = vmax.f32 %v2095_v26, %v2193_v10  ;;  %v7767_v56 = vmax.f32 %v2096_v45, %v2195_v48  ;;  %v7769_v13 = vmax.f32 %v2097_v3, %v2197_v27  ;;  %v11939_v42 = vld [vmem:[#allocation16_spill] sm:$0xff] }
  0x7a   : > { %v2534_v63 = vmax.f32 %v2450_v15, %v2453_v1  ;;  %v2535_v39 = vmax.f32 %v2451_v61, %v2454_v5  ;;  %v2536_v41 = vmax.f32 %v2452_v62, %v2455_v4  ;;  %v2537_v40 = vmax.f32 %v2453_v1, %v7753_v57 }
  0x7b   : > { %v2538_v17 = vmax.f32 %v2454_v5, %v7757_v49  ;;  %v2101_v20 = vmax.f32 %v11937_v19, %v7682_v9  ;;  %v2102_v21 = vmax.f32 %v11938_v53, %v7685_v55  ;;  %v2103_v26 = vmax.f32 %v11939_v42, %v7688_v18 }
  0x7c   : > { %v2539_v45 = vmax.f32 %v2455_v4, %v7759_v14  ;;  %v2207_v3 = vsel %vm395_vm0, %v2205_v44, %v2206_v22  ;;  %v2209_v60 = vsel %vm395_vm0, %v2206_v22, %v2208_v54  ;;  %v2211_v25 = vsel %vm395_vm0, %v2208_v54, %v2210_v50 }
  0x7d   : > { %v7786_v30 = vmax.f32 %v2098_v43, %v2200_v2  ;;  %v7788_v9 = vmax.f32 %v2099_v23, %v2202_v33  ;;  %v7790_v31 = vmax.f32 %v2100_v24, %v2204_v7  ;;  %v2606_v55 = vmax.f32 %v2534_v63, %v7753_v57 }
  0x7e   : > { %v2607_v18 = vmax.f32 %v2535_v39, %v7757_v49  ;;  %v2608_v32 = vmax.f32 %v2536_v41, %v7759_v14  ;;  %v2609_v16 = vmax.f32 %v2537_v40, %v7765_v51  ;;  %v2610_v59 = vmax.f32 %v2538_v17, %v7767_v56 }
  0x7f   : > { %v2611_v47 = vmax.f32 %v2539_v45, %v7769_v13  ;;  %v7798_v35 = vmax.f32 %v2101_v20, %v2207_v3  ;;  %v7800_v11 = vmax.f32 %v2102_v21, %v2209_v60  ;;  %v7802_v46 = vmax.f32 %v2103_v26, %v2211_v25 }
  0x80   : > { %v2678_v43 = vmax.f32 %v2606_v55, %v7765_v51  ;;  %v2679_v23 = vmax.f32 %v2607_v18, %v7767_v56  ;;  %v2680_v24 = vmax.f32 %v2608_v32, %v7769_v13  ;;  %v2681_v36 = vmax.f32 %v2609_v16, %v7786_v30 }
  0x81   : > { %v2682_v34 = vmax.f32 %v2610_v59, %v7788_v9  ;;  %v2683_v12 = vmax.f32 %v2611_v47, %v7790_v31 }
  0x82   : > { %v2750_v8 = vmax.f32 %v2678_v43, %v7786_v30  ;;  %v2751_v37 = vmax.f32 %v2679_v23, %v7788_v9  ;;  %v2752_v0 = vmax.f32 %v2680_v24, %v7790_v31  ;;  %v7814_v52 = vmax.f32 %v2681_v36, %v7798_v35 }
  0x83   : > { %v7817_v10 = vmax.f32 %v2682_v34, %v7800_v11  ;;  %v7820_v48 = vmax.f32 %v2683_v12, %v7802_v46 }
  0x84   : > { %v2894_v27 = vrot.slane %v2750_v8, 1  ;;  %v3158_v28 = vrot.slane %v2750_v8, 2  ;;  %v3422_v38 = vrot.slane %v2750_v8, 3  ;;  %v2895_v58 = vrot.slane %v2751_v37, 1 }
  0x85   : > { %v2897_v2 = vrot.slane %v2752_v0, 1  ;;  %v2899_v15 = vrot.slane %v7814_v52, 1  ;;  %v2900_v61 = vrot.slane %v7817_v10, 1  ;;  %v2902_v62 = vrot.slane %v7820_v48, 1 }
  0x86   : > { %v3159_v1 = vrot.slane %v2751_v37, 2  ;;  %v3161_v5 = vrot.slane %v2752_v0, 2  ;;  %v3163_v4 = vrot.slane %v7814_v52, 2  ;;  %v2896_v29 = vsel %vm1075_vm4, %v2894_v27, %v2895_v58 }
  0x87   : > { %v2898_v44 = vsel %vm1075_vm4, %v2895_v58, %v2897_v2  ;;  %v2901_v6 = vsel %vm1075_vm4, %v2899_v15, %v2900_v61  ;;  %v3088_v22 = vmax.f32 %v2752_v0, %v2897_v2  ;;  %v2903_v33 = vsel %vm1075_vm4, %v2900_v61, %v2902_v62 }
  0x88   : > { %v3086_v7 = vmax.f32 %v2750_v8, %v2896_v29  ;;  %v3087_v54 = vmax.f32 %v2751_v37, %v2898_v44  ;;  %v3089_v50 = vmax.f32 %v7814_v52, %v2901_v6  ;;  %v3090_v63 = vmax.f32 %v7817_v10, %v2903_v33  ;;  %v7871_v33 = vld [vmem:[#allocation2 + $0xd8] sm:$0xf] }
  0x89   : > { %v3091_v39 = vmax.f32 %v7820_v48, %v2902_v62  ;;  %v3160_v41 = vsel %vm1440_vm5, %v3158_v28, %v3159_v1  ;;  %v3162_v40 = vsel %vm1440_vm5, %v3159_v1, %v3161_v5  ;;  %v3164_v17 = vrot.slane %v7817_v10, 2 }
  0x8a   : > { %v3166_v19 = vrot.slane %v7820_v48, 2  ;;  %v3350_v20 = vmax.f32 %v3086_v7, %v3160_v41  ;;  %v3351_v53 = vmax.f32 %v3087_v54, %v3162_v40  ;;  %v3352_v21 = vmax.f32 %v3088_v22, %v3161_v5  ;;  %v7873_v7 = vld [vmem:[#allocation2 + $0xf8] sm:$0xf] }
  0x8b   : > { %v3423_v42 = vrot.slane %v2751_v37, 3  ;;  %v3425_v26 = vrot.slane %v2752_v0, 3  ;;  %v3427_v45 = vrot.slane %v7814_v52, 3  ;;  %v3165_v3 = vsel %vm1440_vm5, %v3163_v4, %v3164_v17  ;;  %v7875_v54 = vld [vmem:[#allocation2 + $0x118] sm:$0xf] }
  0x8c   : > { %v3167_v60 = vsel %vm1440_vm5, %v3164_v17, %v3166_v19  ;;  %v3355_v25 = vmax.f32 %v3091_v39, %v3166_v19  ;;  %v3428_v55 = vrot.slane %v7817_v10, 3  ;;  %v3353_v18 = vmax.f32 %v3089_v50, %v3165_v3  ;;  %v7880_v50 = vld [vmem:[%s11721_s2] ss:$0 sm:$0xff] }
  0x8d   : > { %v3354_v32 = vmax.f32 %v3090_v63, %v3167_v60  ;;  %v3424_v16 = vsel %vm1805_vm7, %v3422_v38, %v3423_v42  ;;  %v3426_v59 = vsel %vm1805_vm7, %v3423_v42, %v3425_v26  ;;  %v3430_v43 = vrot.slane %v7820_v48, 3 }
  0x8e   : > { %v3429_v47 = vsel %vm1805_vm7, %v3427_v45, %v3428_v55  ;;  %v3614_v23 = vmax.f32 %v3350_v20, %v3424_v16  ;;  %v3615_v24 = vmax.f32 %v3351_v53, %v3426_v59  ;;  %v3616_v36 = vmax.f32 %v3352_v21, %v3425_v26  ;;  %v11940_v20 = vld [vmem:[#allocation20_spill] sm:$0xff] }
  0x8f   : > { %v3617_v34 = vmax.f32 %v3353_v18, %v3429_v47  ;;  %v3686_v12 = vrot.slane %v2750_v8, 4  ;;  %v3687_v27 = vrot.slane %v2751_v37, 4  ;;  %v3431_v28 = vsel %vm1805_vm7, %v3428_v55, %v3430_v43 }
  0x90   : > { %v3619_v58 = vmax.f32 %v3355_v25, %v3430_v43  ;;  %v3689_v2 = vrot.slane %v2752_v0, 4  ;;  %v3691_v15 = vrot.slane %v7814_v52, 4  ;;  %v3618_v61 = vmax.f32 %v3354_v32, %v3431_v28 }
  0x91   : > { %v3688_v38 = vsel %vm395_vm0, %v3686_v12, %v3687_v27  ;;  %v3692_v62 = vrot.slane %v7817_v10, 4  ;;  %v3694_v1 = vrot.slane %v7820_v48, 4  ;;  %v1123_v63 = vrot.slane %v7871_v33, 1 }
  0x92   : > { %v3690_v5 = vsel %vm395_vm0, %v3687_v27, %v3689_v2  ;;  %v7851_v4 = vmax.f32 %v3614_v23, %v3688_v38  ;;  %v7853_v29 = vmax.f32 %v3616_v36, %v3689_v2  ;;  %v1130_v39 = vrot.slane %v7873_v7, 1 }
  0x93   : > { %v3693_v8 = vsel %vm395_vm0, %v3691_v15, %v3692_v62  ;;  %v3695_v37 = vsel %vm395_vm0, %v3692_v62, %v3694_v1  ;;  %v7857_v0 = vmax.f32 %v3615_v24, %v3690_v5  ;;  %v7859_v52 = vmax.f32 %v3619_v58, %v3694_v1 }
  0x94   : > { %v7861_v44 = vmax.f32 %v3617_v34, %v3693_v8  ;;  %v7863_v6 = vmax.f32 %v3618_v61, %v3695_v37  ;;  %v7889_v53 = vsel %vm5197_vm6, %v11940_v20, 0  ;;  %v2540_v59 = vmax.f32 %v7753_v57, %v7765_v51 }
  0x95   : > { %v2541_v47 = vmax.f32 %v7757_v49, %v7767_v56  ;;  %v2542_v36 = vmax.f32 %v7759_v14, %v7769_v13  ;;  %v2543_v34 = vmax.f32 %v7765_v51, %v7786_v30  ;;  %v2544_v57 = vmax.f32 %v7767_v56, %v7788_v9 }
  0x96   : > { %v2545_v28 = vmax.f32 %v7769_v13, %v7790_v31  ;;  %v7921_v56 = vmax.f32 %v2540_v59, %v7786_v30 }
  0x97   : > { %v7926_v5 = vmax.f32 %v2541_v47, %v7788_v9  ;;  %v7932_v20 = vmax.f32 %v2542_v36, %v7790_v31  ;;  %v7941_v47 = vmax.f32 %v2544_v57, %v7800_v11 }
  0xe7   : > { %v6683_v19 = vpop.f32.mrb[0].mxu0 }
  0xe8   : > { %v442_v45 = vadd.f32 %v6683_v19, %v7880_v50  ;;  %v433_v3 = vpop.f32.mrb[1].mxu0 }
  0xe9   : > { %v434_v18 = vadd.f32 %v7880_v50, %v433_v3  ;;  %v6684_v32 = vpop.f32.mrb[2].mxu0 }
  0xea   : > { %v594_v43 = vmul.f32 0.1, %v442_v45  ;;  %v445_v23 = vadd.f32 %v6684_v32, %v7880_v50  ;;  %v436_v24 = vpop.f32.mrb[3].mxu0  ;;  %vm562_vm8 = vcmp.ge.f32.partialorder %v442_v45, 0.0 }
  0xeb   : > { %v592_v12 = vmul.f32 0.1, %v434_v18  ;;  %v437_v27 = vadd.f32 %v7880_v50, %v436_v24  ;;  %vm560_vm9 = vcmp.ge.f32.partialorder %v434_v18, 0.0 }
  0xec   : > { %vm563_vm10 = vcmp.ge.f32.partialorder %v445_v23, 0.0  ;;  %v595_v49 = vmul.f32 0.1, %v445_v23  ;;  %v626_v2 = vsel %vm562_vm8, %v442_v45, %v594_v43  ;;  %v7935_v45 = vmax.f32 %v2543_v34, %v7798_v35  ;;  %v7943_v43 = vld [vmem:[#allocation2 + $0x138] sm:$0xf] }
  0xed   : > { %vm561_vm11 = vcmp.ge.f32.partialorder %v437_v27, 0.0  ;;  %v593_v58 = vmul.f32 0.1, %v437_v27  ;;  %v624_v38 = vsel %vm560_vm9, %v434_v18, %v592_v12  ;;  %11943 = vst [vmem:[#allocation18_spill] sm:$0xff] %v7943_v43  ;;  %v7948_v34 = vmax.f32 %v2545_v28, %v7802_v46 }
  0xee   : > { %v627_v15 = vsel %vm563_vm10, %v445_v23, %v595_v49 }
  0xef   : > { %v7923_v62 = vpack.c.bf16 %v627_v15, %v626_v2  ;;  %v625_v13 = vsel %vm561_vm11, %v437_v27, %v593_v58  ;;  %v6687_v1 = vpop.f32.mrb[4].mxu0 }
  0xf0   : > { %v7928_v8 = vpack.c.bf16 %v625_v13, %v624_v38  ;;  %v458_v37 = vadd.f32 %v6687_v1, %v7880_v50  ;;  %v449_v19 = vpop.f32.mrb[5].mxu0  ;;  %v7963_v38 = vld [vmem:[#allocation2 + $0x158] sm:$0xf] }
  0xf1   : > { %11941 = vst [vmem:[#allocation17_spill] sm:$0xff] %v7923_v62  ;;  %v788_v3 = vunpack.c.l.bf16 %v7923_v62  ;;  %v789_v18 = vunpack.c.h.bf16 %v7923_v62  ;;  %v450_v32 = vadd.f32 %v7880_v50, %v449_v19  ;;  %v6688_v59 = vpop.f32.mrb[6].mxu0  ;;  %11944 = vst [vmem:[#allocation4_spill] sm:$0xff] %v7963_v38  ;;  %v11954_v38 = vrot.slane %v7875_v54, 1 }
  0xf2   : > { %11942 = vst [vmem:[#allocation13_spill] sm:$0xff] %v7928_v8  ;;  %v786_v23 = vunpack.c.l.bf16 %v7928_v8  ;;  %v787_v24 = vunpack.c.h.bf16 %v7928_v8  ;;  %v452_v36 = vpop.f32.mrb[7].mxu0  ;;  %v598_v27 = vmul.f32 0.1, %v458_v37  ;;  %v461_v57 = vadd.f32 %v6688_v59, %v7880_v50 }
  0xf3   : > { %821 = vst.msk [vmem:[#allocation2 + $0xe6] sm:$0xff] %vm672_vm2, %v788_v3  ;;  %822 = vst.msk [vmem:[#allocation2 + $0xee] sm:$0xff] %vm672_vm2, %v789_v18  ;;  %v453_v49 = vadd.f32 %v7880_v50, %v452_v36  ;;  %vm566_vm12 = vcmp.ge.f32.partialorder %v458_v37, 0.0  ;;  %v596_v28 = vmul.f32 0.1, %v450_v32  ;;  %vm564_vm13 = vcmp.ge.f32.partialorder %v450_v32, 0.0 }
  0xf4   : > { %819 = vst.msk [vmem:[#allocation2 + $0xc6] sm:$0xff] %vm672_vm2, %v786_v23  ;;  %820 = vst.msk [vmem:[#allocation2 + $0xce] sm:$0xff] %vm672_vm2, %v787_v24  ;;  %vm567_vm14 = vcmp.ge.f32.partialorder %v461_v57, 0.0  ;;  %v599_v13 = vmul.f32 0.1, %v461_v57  ;;  %v630_v59 = vsel %vm566_vm12, %v458_v37, %v598_v27 }
  0xf5   : > { %vm565_vm15 = vcmp.ge.f32.partialorder %v453_v49, 0.0  ;;  %v597_v1 = vmul.f32 0.1, %v453_v49  ;;  %v628_v10 = vsel %vm564_vm13, %v450_v32, %v596_v28 }
  0xf6   : > { %v631_v23 = vsel %vm567_vm14, %v461_v57, %v599_v13 }
  0xf7   : > { %v6691_v24 = vpop.f32.mrb[8].mxu0  ;;  %v7970_v22 = vpack.c.bf16 %v631_v23, %v630_v59  ;;  %v629_v48 = vsel %vm565_vm15, %v453_v49, %v597_v1 }
  0xf8   : > { %v474_v2 = vadd.f32 %v6691_v24, %v7880_v50  ;;  %v465_v58 = vpop.f32.mrb[9].mxu0  ;;  %v7973_v12 = vpack.c.bf16 %v629_v48, %v628_v10 }
  0xf9   : > { %11945 = vst [vmem:[#allocation5_spill] sm:$0xff] %v7970_v22  ;;  %v466_v3 = vadd.f32 %v7880_v50, %v465_v58  ;;  %v6692_v19 = vpop.f32.mrb[10].mxu0  ;;  %v792_v32 = vunpack.c.l.bf16 %v7970_v22  ;;  %v793_v49 = vunpack.c.h.bf16 %v7970_v22 }
  0xfa   : > { %11946 = vst [vmem:[#allocation6_spill] sm:$0xff] %v7973_v12  ;;  %v7978_v57 = vld [vmem:[#allocation2 + $0xe0] sm:$0xff]  ;;  %v7980_v13 = vld [vmem:[#allocation2 + $0xe8] sm:$0xff]  ;;  %vm570_vm1 = vcmp.ge.f32.partialorder %v474_v2, 0.0  ;;  %v602_v28 = vmul.f32 0.1, %v474_v2  ;;  %v790_v58 = vunpack.c.l.bf16 %v7973_v12  ;;  %v791_v59 = vunpack.c.h.bf16 %v7973_v12 }
  0xfb   : > { %v7984_v1 = vld [vmem:[#allocation2 + $0xc0] sm:$0xff]  ;;  %v7986_v10 = vld [vmem:[#allocation2 + $0xc8] sm:$0xff]  ;;  %v7988_v48 = vld [vmem:[#allocation2 + $0xd0] sm:$0xff]  ;;  %vm568_vm8 = vcmp.ge.f32.partialorder %v466_v3, 0.0  ;;  %v600_v23 = vmul.f32 0.1, %v466_v3  ;;  %v477_v27 = vadd.f32 %v6692_v19, %v7880_v50 }
  0xfc   : > { %825 = vst.msk [vmem:[#allocation2 + $0x126] sm:$0xff] %vm672_vm2, %v792_v32  ;;  %826 = vst.msk [vmem:[#allocation2 + $0x12e] sm:$0xff] %vm672_vm2, %v793_v49  ;;  %v634_v24 = vsel %vm570_vm1, %v474_v2, %v602_v28  ;;  %v468_v37 = vpop.f32.mrb[11].mxu0  ;;  %v1118_v15 = vrot.slane %v7984_v1, 1  ;;  %v1119_v36 = vrot.slane %v7986_v10, 1  ;;  %v7997_v18 = vld [vmem:[#allocation2 + $0xf0] sm:$0xff] }
  0xfd   : > { %823 = vst.msk [vmem:[#allocation2 + $0x106] sm:$0xff] %vm672_vm2, %v790_v58  ;;  %824 = vst.msk [vmem:[#allocation2 + $0x10e] sm:$0xff] %vm672_vm2, %v791_v59  ;;  %v632_v61 = vsel %vm568_vm8, %v466_v3, %v600_v23  ;;  %v469_v51 = vadd.f32 %v7880_v50, %v468_v37  ;;  %v1121_v32 = vrot.slane %v7988_v48, 1  ;;  %v1125_v2 = vrot.slane %v7978_v57, 1 }
  0xfe   : > { %vm571_vm9 = vcmp.ge.f32.partialorder %v477_v27, 0.0  ;;  %v603_v19 = vmul.f32 0.1, %v477_v27  ;;  %v8005_v49 = vsel %vm1075_vm4, %v1118_v15, %v1119_v36  ;;  %v1126_v28 = vrot.slane %v7980_v13, 1 }
  0xff   : > { %vm569_vm10 = vcmp.ge.f32.partialorder %v469_v51, 0.0  ;;  %v601_v14 = vmul.f32 0.1, %v469_v51  ;;  %v6695_v16 = vpop.f32.mrb[12].mxu0  ;;  %v8009_v58 = vsel %vm1075_vm4, %v1119_v36, %v1121_v32  ;;  %v8014_v3 = vsel %vm1075_vm4, %v1121_v32, %v1123_v63 }
 0x100   : > { %v635_v37 = vsel %vm571_vm9, %v477_v27, %v603_v19  ;;  %v490_v59 = vadd.f32 %v6695_v16, %v7880_v50  ;;  %v481_v23 = vpop.f32.mrb[13].mxu0  ;;  %v8018_v15 = vsel %vm1075_vm4, %v1125_v2, %v1126_v28  ;;  %v1128_v55 = vrot.slane %v7997_v18, 1 }
 0x101   : > { %v8021_v25 = vpack.c.bf16 %v635_v37, %v634_v24  ;;  %v633_v60 = vsel %vm569_vm10, %v469_v51, %v601_v14  ;;  %v482_v36 = vadd.f32 %v7880_v50, %v481_v23  ;;  %v6696_v26 = vpop.f32.mrb[14].mxu0 }
 0x102   : > { %v8026_v63 = vpack.c.bf16 %v633_v60, %v632_v61  ;;  %vm574_vm11 = vcmp.ge.f32.partialorder %v490_v59, 0.0  ;;  %v606_v27 = vmul.f32 0.1, %v490_v59  ;;  %v493_v16 = vadd.f32 %v6696_v26, %v7880_v50  ;;  %v484_v32 = vpop.f32.mrb[15].mxu0 }
 0x103   : > { %11947 = vst [vmem:[#allocation10_spill] sm:$0xff] %v8021_v25  ;;  %v8029_v2 = vld [vmem:[#allocation2 + $0x120] sm:$0xff]  ;;  %v8031_v19 = vld [vmem:[#allocation2 + $0x128] sm:$0xff]  ;;  %v8033_v24 = vld [vmem:[#allocation2 + $0x130] sm:$0xff]  ;;  %v796_v14 = vunpack.c.l.bf16 %v8021_v25  ;;  %v797_v51 = vunpack.c.h.bf16 %v8021_v25  ;;  %vm572_vm12 = vcmp.ge.f32.partialorder %v482_v36, 0.0  ;;  %v8059_v17 = vsel %vm1075_vm4, %v1126_v28, %v1128_v55 }
 0x104   : > { %11948 = vst [vmem:[#allocation14_spill] sm:$0xff] %v8026_v63  ;;  %11949 = vst [vmem:[#allocation7_spill] sm:$0xff] %v8029_v2  ;;  %v604_v37 = vmul.f32 0.1, %v482_v36  ;;  %v8041_v21 = vld [vmem:[#allocation2 + $0x100] sm:$0xff]  ;;  %v794_v40 = vunpack.c.l.bf16 %v8026_v63  ;;  %v795_v60 = vunpack.c.h.bf16 %v8026_v63  ;;  %v8049_v41 = vld [vmem:[#allocation2 + $0x108] sm:$0xff]  ;;  %v638_v26 = vsel %vm574_vm11, %v490_v59, %v606_v27 }
 0x105   : > { %11950 = vst [vmem:[#allocation8_spill] sm:$0xff] %v8031_v19  ;;  %11951 = vst [vmem:[#allocation9_spill] sm:$0xff] %v8033_v24  ;;  %v8051_v61 = vld [vmem:[#allocation2 + $0x110] sm:$0xff]  ;;  %vm575_vm13 = vcmp.ge.f32.partialorder %v493_v16, 0.0  ;;  %v607_v42 = vmul.f32 0.1, %v493_v16  ;;  %v8064_v25 = vsel %vm1075_vm4, %v1128_v55, %v1130_v39 }
 0x106   : > { %829 = vst.msk [vmem:[#allocation2 + $0x166] sm:$0xff] %vm672_vm2, %v796_v14  ;;  %830 = vst.msk [vmem:[#allocation2 + $0x16e] sm:$0xff] %vm672_vm2, %v797_v51  ;;  %v636_v23 = vsel %vm572_vm12, %v482_v36, %v604_v37  ;;  %v485_v14 = vadd.f32 %v7880_v50, %v484_v32  ;;  %v1132_v59 = vrot.slane %v8041_v21, 1  ;;  %v2213_v19 = vrot.slane %v7986_v10, 4 }
 0x107   : > { %827 = vst.msk [vmem:[#allocation2 + $0x146] sm:$0xff] %vm672_vm2, %v794_v40  ;;  %828 = vst.msk [vmem:[#allocation2 + $0x14e] sm:$0xff] %vm672_vm2, %v795_v60  ;;  %v6699_v51 = vpop.f32.mrb[16].mxu0  ;;  %v639_v36 = vsel %vm575_vm13, %v493_v16, %v607_v42  ;;  %v1133_v40 = vrot.slane %v8049_v41, 1  ;;  %v1135_v60 = vrot.slane %v8051_v61, 1 }
 0x108   : > { %v506_v27 = vadd.f32 %v6699_v51, %v7880_v50  ;;  %v497_v37 = vpop.f32.mrb[17].mxu0  ;;  %v8070_v32 = vpack.c.bf16 %v639_v36, %v638_v26  ;;  %vm573_vm14 = vcmp.ge.f32.partialorder %v485_v14, 0.0  ;;  %v605_v28 = vmul.f32 0.1, %v485_v14 }
 0x109   : > { %v498_v63 = vadd.f32 %v7880_v50, %v497_v37  ;;  %v6700_v22 = vpop.f32.mrb[18].mxu0  ;;  %v8075_v42 = vsel %vm1075_vm4, %v1132_v59, %v1133_v40  ;;  %v8085_v59 = vsel %vm1075_vm4, %v1133_v40, %v1135_v60 }
 0x10a   : > { %11952 = vst [vmem:[#allocation11_spill] sm:$0xff] %v8070_v32  ;;  %vm578_vm15 = vcmp.ge.f32.partialorder %v506_v27, 0.0  ;;  %v610_v39 = vmul.f32 0.1, %v506_v27  ;;  %v509_v55 = vadd.f32 %v6700_v22, %v7880_v50  ;;  %v500_v12 = vpop.f32.mrb[19].mxu0  ;;  %v800_v16 = vunpack.c.l.bf16 %v8070_v32 }
 0x10b   : > { %v801_v51 = vunpack.c.h.bf16 %v8070_v32  ;;  %v637_v62 = vsel %vm573_vm14, %v485_v14, %v605_v28  ;;  %vm576_vm1 = vcmp.ge.f32.partialorder %v498_v63, 0.0  ;;  %v608_v8 = vmul.f32 0.1, %v498_v63 }
 0x10c   : > { %v8079_v26 = vpack.c.bf16 %v637_v62, %v636_v23  ;;  %v642_v36 = vsel %vm578_vm15, %v506_v27, %v610_v39  ;;  %vm579_vm8 = vcmp.ge.f32.partialorder %v509_v55, 0.0  ;;  %833 = vst.msk [vmem:[#allocation2 + $0x1a6] sm:$0xff] %vm672_vm2, %v800_v16  ;;  %v611_v22 = vmul.f32 0.1, %v509_v55 }
 0x10d   : > { %834 = vst.msk [vmem:[#allocation2 + $0x1ae] sm:$0xff] %vm672_vm2, %v801_v51  ;;  %v501_v37 = vadd.f32 %v7880_v50, %v500_v12  ;;  %v8090_v14 = vsel %vm1075_vm4, %v1135_v60, %v11954_v38  ;;  %v640_v27 = vsel %vm576_vm1, %v498_v63, %v608_v8 }
 0x10e   : > { %11953 = vst [vmem:[#allocation12_spill] sm:$0xff] %v8079_v26  ;;  %v798_v62 = vunpack.c.l.bf16 %v8079_v26  ;;  %v799_v23 = vunpack.c.h.bf16 %v8079_v26  ;;  %v643_v39 = vsel %vm579_vm8, %v509_v55, %v611_v22 }
 0x10f   : > { %vm577_vm9 = vcmp.ge.f32.partialorder %v501_v37, 0.0  ;;  %v609_v16 = vmul.f32 0.1, %v501_v37  ;;  %v6703_v12 = vpop.f32.mrb[20].mxu0  ;;  %v665_v38 = vpack.c.bf16 %v643_v39, %v642_v36 }
 0x110   : > { %831 = vst.msk [vmem:[#allocation2 + $0x186] sm:$0xff] %vm672_vm2, %v798_v62  ;;  %832 = vst.msk [vmem:[#allocation2 + $0x18e] sm:$0xff] %vm672_vm2, %v799_v23  ;;  %v522_v60 = vadd.f32 %v6703_v12, %v7880_v50  ;;  %v513_v51 = vpop.f32.mrb[21].mxu0  ;;  %v1382_v62 = vmax.f32 %v8051_v61, %v8090_v14  ;;  %v1490_v14 = vrot.slane %v7978_v57, 2 }
 0x111   : > { %v514_v55 = vadd.f32 %v7880_v50, %v513_v51  ;;  %v6704_v22 = vpop.f32.mrb[22].mxu0  ;;  %v641_v28 = vsel %vm577_vm9, %v501_v37, %v609_v16  ;;  %v804_v36 = vunpack.c.l.bf16 %v665_v38  ;;  %v805_v23 = vunpack.c.h.bf16 %v665_v38 }
 0x112   : > { %vm582_vm10 = vcmp.ge.f32.partialorder %v522_v60, 0.0  ;;  %v614_v39 = vmul.f32 0.1, %v522_v60  ;;  %v516_v12 = vpop.f32.mrb[23].mxu0  ;;  %v525_v32 = vadd.f32 %v6704_v22, %v7880_v50  ;;  %v664_v16 = vpack.c.bf16 %v641_v28, %v640_v27 }
 0x113   : > { %vm580_vm11 = vcmp.ge.f32.partialorder %v514_v55, 0.0  ;;  %v612_v8 = vmul.f32 0.1, %v514_v55  ;;  %v517_v63 = vadd.f32 %v7880_v50, %v516_v12  ;;  %837 = vst.msk [vmem:[#allocation2 + $0x1e6] sm:$0xff] %vm672_vm2, %v804_v36  ;;  %838 = vst.msk [vmem:[#allocation2 + $0x1ee] sm:$0xff] %vm672_vm2, %v805_v23  ;;  %v1381_v51 = vmax.f32 %v8049_v41, %v8085_v59 }
 0x114   : > { %v646_v37 = vsel %vm582_vm10, %v522_v60, %v614_v39  ;;  %vm583_vm12 = vcmp.ge.f32.partialorder %v525_v32, 0.0  ;;  %v615_v26 = vmul.f32 0.1, %v525_v32  ;;  %v802_v22 = vunpack.c.l.bf16 %v664_v16  ;;  %6765 = vmatprep.mubr.msk.bf16.mxu1 %vm672_vm2, %v664_v16 }
 0x115   : > { %v644_v40 = vsel %vm580_vm11, %v514_v55, %v612_v8  ;;  %vm581_vm13 = vcmp.ge.f32.partialorder %v517_v63, 0.0  ;;  %v613_v43 = vmul.f32 0.1, %v517_v63  ;;  %v803_v24 = vunpack.c.h.bf16 %v664_v16  ;;  %6766 = vmatmul.mubr.msk.bf16.vlgmr.msra.gmra.mrb[0].mxu1 %vm672_vm2, %v665_v38 }
 0x116   : > { %v1483_v36 = vrot.slane %v7984_v1, 2  ;;  %v647_v23 = vsel %vm583_vm12, %v525_v32, %v615_v26  ;;  %v1484_v27 = vrot.slane %v7986_v10, 2  ;;  %v1486_v59 = vrot.slane %v7988_v48, 2  ;;  %835 = vst.msk [vmem:[#allocation2 + $0x1c6] sm:$0xff] %vm672_vm2, %v802_v22  ;;  %6782 = vmatpush3.bf16.msra.mxu1 %v7889_v53 }
 0x117   : > { %v8124_v28 = vpop.f32.mrb[24].mxu0  ;;  %v667_v60 = vpack.c.bf16 %v647_v23, %v646_v37  ;;  %v645_v8 = vsel %vm581_vm13, %v517_v63, %v613_v43  ;;  %836 = vst.msk [vmem:[#allocation2 + $0x1ce] sm:$0xff] %vm672_vm2, %v803_v24  ;;  %v1491_v32 = vrot.slane %v7980_v13, 2  ;;  %v1493_v26 = vrot.slane %v7997_v18, 2 }
 0x118   : > { %v8131_v38 = vpop.f32.mrb[25].mxu0  ;;  %v666_v55 = vpack.c.bf16 %v645_v8, %v644_v40  ;;  %v1485_v39 = vsel %vm1440_vm5, %v1483_v36, %v1484_v27  ;;  %v1487_v12 = vsel %vm1440_vm5, %v1484_v27, %v1486_v59  ;;  %v11955_v37 = vrot.slane %v7871_v33, 2 }
 0x119   : > { %v8138_v63 = vpop.f32.mrb[26].mxu0  ;;  %v808_v24 = vunpack.c.l.bf16 %v667_v60  ;;  %v809_v16 = vunpack.c.h.bf16 %v667_v60  ;;  %v1492_v53 = vsel %vm1440_vm5, %v1490_v14, %v1491_v32  ;;  %v1494_v22 = vsel %vm1440_vm5, %v1491_v32, %v1493_v26 }
 0x11a   : > { %v1489_v43 = vsel %vm1440_vm5, %v1486_v59, %v11955_v37  ;;  %11956 = vst [vmem:[#allocation15_spill] sm:$0xff] %v8138_v63  ;;  %v8142_v23 = vpop.f32.mrb[27].mxu0  ;;  %v806_v2 = vunpack.c.l.bf16 %v666_v55  ;;  %v807_v40 = vunpack.c.h.bf16 %v666_v55  ;;  %v11958_v36 = vrot.slane %v7873_v7, 2  ;;  %6769 = vmatprep.mubr.msk.bf16.mxu1 %vm672_vm2, %v666_v55 }
 0x11b   : > { %11957 = vst [vmem:[#allocation3_spill] sm:$0xff] %v8142_v23  ;;  %v1497_v8 = vrot.slane %v8041_v21, 2  ;;  %841 = vst.msk [vmem:[#allocation2 + $0x226] sm:$0xff] %vm672_vm2, %v808_v24  ;;  %v1498_v59 = vrot.slane %v8049_v41, 2  ;;  %v1500_v14 = vrot.slane %v8051_v61, 2  ;;  %v11959_v32 = vmax.f32 %v7984_v1, %v8005_v49 }
 0x11c   : > { %v1496_v27 = vsel %vm1440_vm5, %v1493_v26, %v11958_v36  ;;  %842 = vst.msk [vmem:[#allocation2 + $0x22e] sm:$0xff] %vm672_vm2, %v809_v16  ;;  %v11960_v26 = vmax.f32 %v7986_v10, %v8009_v58  ;;  %839 = vst.msk [vmem:[#allocation2 + $0x206] sm:$0xff] %vm672_vm2, %v806_v2  ;;  %v11961_v55 = vmax.f32 %v7988_v48, %v8014_v3 }
 0x11d   : > { %v8156_v37 = vmax.f32 %v11959_v32, %v1485_v39  ;;  %840 = vst.msk [vmem:[#allocation2 + $0x20e] sm:$0xff] %vm672_vm2, %v807_v40  ;;  %v11962_v16 = vmax.f32 %v7978_v57, %v8018_v15  ;;  %v11963_v49 = vmax.f32 %v7980_v13, %v8059_v17  ;;  %v11964_v58 = vmax.f32 %v7997_v18, %v8064_v25 }
 0x11e   : > { %v8161_v36 = vmax.f32 %v11960_v26, %v1487_v12  ;;  %v1741_v24 = vmax.f32 %v11961_v55, %v1489_v43  ;;  %v1499_v12 = vsel %vm1440_vm5, %v1497_v8, %v1498_v59  ;;  %v1501_v3 = vsel %vm1440_vm5, %v1498_v59, %v1500_v14  ;;  %6770 = vmatmul.mubr.msk.bf16.gmra.mrb[4].mxu1 %vm672_vm2, %v667_v60 }
 0x11f   : > { %v8171_v23 = vmax.f32 %v11962_v16, %v1492_v53  ;;  %v8176_v39 = vmax.f32 %v11963_v49, %v1494_v22  ;;  %v8181_v2 = vmax.f32 %v11964_v58, %v1496_v27  ;;  %v11965_v43 = vrot.slane %v7875_v54, 2  ;;  %v8194_v27 = vpop.f32.mrb[28].mxu0 }
 0x120   : > { %v1848_v53 = vrot.slane %v7984_v1, 3  ;;  %v11966_v17 = vmax.f32 %v8041_v21, %v8075_v42  ;;  %v1746_v40 = vmax.f32 %v1381_v51, %v1501_v3  ;;  %v1849_v25 = vrot.slane %v7986_v10, 3  ;;  %11967 = vst [vmem:[#allocation16_spill] sm:$0xff] %v8194_v27  ;;  %v8200_v55 = vpop.f32.mrb[29].mxu0 }
 0x121   : > { %v1503_v15 = vsel %vm1440_vm5, %v1500_v14, %v11965_v43  ;;  %v1851_v8 = vrot.slane %v7988_v48, 3  ;;  %v1855_v59 = vrot.slane %v7978_v57, 3  ;;  %v1856_v14 = vrot.slane %v7980_v13, 3  ;;  %11968 = vst [vmem:[#allocation20_spill] sm:$0xff] %v8200_v55  ;;  %v8206_v16 = vpop.f32.mrb[30].mxu0 }
 0x122   : > { %v1745_v22 = vmax.f32 %v11966_v17, %v1499_v12  ;;  %v1747_v32 = vmax.f32 %v1382_v62, %v1503_v15  ;;  %v1858_v26 = vrot.slane %v7997_v18, 3  ;;  %v1850_v42 = vsel %vm1805_vm7, %v1848_v53, %v1849_v25  ;;  %11969 = vst [vmem:[#allocation21_spill] sm:$0xff] %v8206_v16  ;;  %v8214_v15 = vpop.f32.mrb[31].mxu0 }
 0x123   : > { %v1862_v62 = vrot.slane %v8041_v21, 3  ;;  %v1863_v51 = vrot.slane %v8049_v41, 3  ;;  %v1865_v60 = vrot.slane %v8051_v61, 3  ;;  %v1852_v49 = vsel %vm1805_vm7, %v1849_v25, %v1851_v8  ;;  %11971 = vst [vmem:[#allocation22_spill] sm:$0xff] %v8214_v15 }
 0x124   : > { %v11970_v58 = vrot.slane %v7871_v33, 3  ;;  %v1857_v3 = vsel %vm1805_vm7, %v1855_v59, %v1856_v14  ;;  %v1859_v43 = vsel %vm1805_vm7, %v1856_v14, %v1858_v26  ;;  %v11972_v53 = vrot.slane %v7873_v7, 3 }
 0x125   : > { %v1864_v55 = vsel %vm1805_vm7, %v1862_v62, %v1863_v51  ;;  %v1866_v16 = vsel %vm1805_vm7, %v1863_v51, %v1865_v60  ;;  %v11973_v25 = vrot.slane %v7875_v54, 3  ;;  %v2105_v59 = vmax.f32 %v8161_v36, %v1852_v49 }
 0x126   : > { %v1854_v12 = vsel %vm1805_vm7, %v1851_v8, %v11970_v58  ;;  %v1861_v17 = vsel %vm1805_vm7, %v1858_v26, %v11972_v53  ;;  %v2104_v8 = vmax.f32 %v8156_v37, %v1850_v42  ;;  %v2107_v14 = vmax.f32 %v8171_v23, %v1857_v3 }
 0x127   : > { %v1868_v27 = vsel %vm1805_vm7, %v1865_v60, %v11973_v25  ;;  %v2106_v58 = vmax.f32 %v1741_v24, %v1854_v12  ;;  %v2108_v15 = vmax.f32 %v8176_v39, %v1859_v43  ;;  %v2109_v63 = vmax.f32 %v8181_v2, %v1861_v17 }
 0x128   : > { %v2110_v26 = vmax.f32 %v1745_v22, %v1864_v55  ;;  %v2111_v53 = vmax.f32 %v1746_v40, %v1866_v16  ;;  %v2112_v62 = vmax.f32 %v1747_v32, %v1868_v27  ;;  %v2212_v51 = vrot.slane %v7984_v1, 4 }
 0x129   : > { %v2215_v60 = vrot.slane %v7988_v48, 4  ;;  %v2219_v37 = vrot.slane %v7978_v57, 4  ;;  %v2220_v36 = vrot.slane %v7980_v13, 4  ;;  %v2222_v24 = vrot.slane %v7997_v18, 4 }
 0x12a   : > { %v2226_v23 = vrot.slane %v8041_v21, 4  ;;  %v2214_v39 = vsel %vm395_vm0, %v2212_v51, %v2213_v19  ;;  %v11974_v22 = vrot.slane %v7871_v33, 4  ;;  %v2227_v10 = vrot.slane %v8049_v41, 4 }
 0x12b   : > { %v2216_v2 = vsel %vm395_vm0, %v2213_v19, %v2215_v60  ;;  %v2221_v48 = vsel %vm395_vm0, %v2219_v37, %v2220_v36  ;;  %v2223_v57 = vsel %vm395_vm0, %v2220_v36, %v2222_v24  ;;  %v11975_v13 = vrot.slane %v7873_v7, 4 }
 0x12c   : > { %v2218_v1 = vsel %vm395_vm0, %v2215_v60, %v11974_v22  ;;  %v2229_v21 = vrot.slane %v8051_v61, 4  ;;  %v2228_v40 = vsel %vm395_vm0, %v2226_v23, %v2227_v10  ;;  %v8249_v32 = vmax.f32 %v2104_v8, %v2214_v39 }
 0x12d   : > { %v2225_v18 = vsel %vm395_vm0, %v2222_v24, %v11975_v13  ;;  %v8251_v19 = vmax.f32 %v2105_v59, %v2216_v2  ;;  %v8253_v33 = vmax.f32 %v2106_v58, %v2218_v1  ;;  %v11976_v27 = vrot.slane %v7875_v54, 4 }
 0x12e   : > { %v2230_v41 = vsel %vm395_vm0, %v2227_v10, %v2229_v21  ;;  %v8259_v42 = vmax.f32 %v2107_v14, %v2221_v48  ;;  %v8261_v7 = vmax.f32 %v2108_v15, %v2223_v57  ;;  %v8263_v16 = vmax.f32 %v2109_v63, %v2225_v18 }
 0x12f   : > { %v2232_v55 = vsel %vm395_vm0, %v2229_v21, %v11976_v27  ;;  %v8265_v61 = vmax.f32 %v2110_v26, %v2228_v40  ;;  %v8267_v49 = vmax.f32 %v2111_v53, %v2230_v41  ;;  %v11977_v3 = vmax.f32 %v7786_v30, %v7798_v35 }
 0x130   : > { %v8269_v12 = vmax.f32 %v2112_v62, %v2232_v55  ;;  %v11978_v54 = vmax.f32 %v7788_v9, %v7800_v11  ;;  %v11979_v63 = vmax.f32 %v7790_v31, %v7802_v46  ;;  %v2687_v25 = vmax.f32 %v7935_v45, %v8249_v32 }
 0x131   : > { %v2618_v43 = vmax.f32 %v11977_v3, %v8249_v32  ;;  %v2688_v8 = vmax.f32 %v7941_v47, %v8251_v19  ;;  %v2689_v30 = vmax.f32 %v7948_v34, %v8253_v33  ;;  %v11980_v59 = vmax.f32 %v7921_v56, %v7798_v35 }
 0x132   : > { %v2619_v17 = vmax.f32 %v11978_v54, %v8251_v19  ;;  %v2620_v15 = vmax.f32 %v11979_v63, %v8253_v33  ;;  %v11981_v31 = vmax.f32 %v7926_v5, %v7800_v11  ;;  %v11982_v34 = vmax.f32 %v7932_v20, %v7802_v46 }
 0x133   : > { %v8293_v9 = vmax.f32 %v11980_v59, %v8249_v32  ;;  %v2690_v45 = vmax.f32 %v2618_v43, %v8259_v42  ;;  %v8311_v56 = vmax.f32 %v2687_v25, %v8259_v42  ;;  %v8314_v53 = vmax.f32 %v2688_v8, %v8261_v7 }
 0x134   : > { %v8299_v58 = vmax.f32 %v11981_v31, %v8251_v19  ;;  %v2691_v14 = vmax.f32 %v2619_v17, %v8261_v7  ;;  %v2692_v47 = vmax.f32 %v2620_v15, %v8263_v16  ;;  %v8308_v26 = vmax.f32 %v11982_v34, %v8253_v33 }
 0x135   : > { %v8317_v5 = vmax.f32 %v2689_v30, %v8263_v16  ;;  %v2904_v62 = vrot.slane %v8293_v9, 1  ;;  %v8321_v51 = vmax.f32 %v2690_v45, %v8265_v61  ;;  %v2909_v24 = vrot.slane %v8311_v56, 1 }
 0x136   : > { %v8324_v60 = vmax.f32 %v2691_v14, %v8267_v49  ;;  %v8327_v20 = vmax.f32 %v2692_v47, %v8269_v12  ;;  %v2905_v37 = vrot.slane %v8299_v58, 1  ;;  %v2907_v36 = vrot.slane %v8308_v26, 1 }
 0x137   : > { %v2910_v23 = vrot.slane %v8314_v53, 1  ;;  %v2912_v39 = vrot.slane %v8317_v5, 1  ;;  %v2914_v22 = vrot.slane %v8321_v51, 1  ;;  %v3168_v15 = vrot.slane %v8293_v9, 2 }
 0x138   : > { %v2906_v2 = vsel %vm1075_vm4, %v2904_v62, %v2905_v37  ;;  %v2915_v1 = vrot.slane %v8324_v60, 1  ;;  %v2917_v10 = vrot.slane %v8327_v20, 1  ;;  %v2908_v48 = vsel %vm1075_vm4, %v2905_v37, %v2907_v36 }
 0x139   : > { %v2911_v57 = vsel %vm1075_vm4, %v2909_v24, %v2910_v23  ;;  %v2913_v13 = vsel %vm1075_vm4, %v2910_v23, %v2912_v39  ;;  %v3092_v18 = vmax.f32 %v8293_v9, %v2906_v2  ;;  %v3093_v41 = vmax.f32 %v8299_v58, %v2908_v48 }
 0x13a   : > { %v2916_v21 = vsel %vm1075_vm4, %v2914_v22, %v2915_v1  ;;  %v2918_v40 = vsel %vm1075_vm4, %v2915_v1, %v2917_v10  ;;  %v3094_v27 = vmax.f32 %v8308_v26, %v2907_v36  ;;  %v3095_v55 = vmax.f32 %v8311_v56, %v2911_v57 }
 0x13b   : > { %v3096_v3 = vmax.f32 %v8314_v53, %v2913_v13  ;;  %v3097_v43 = vmax.f32 %v8317_v5, %v2912_v39  ;;  %v3098_v54 = vmax.f32 %v8321_v51, %v2916_v21  ;;  %v3099_v17 = vmax.f32 %v8324_v60, %v2918_v40 }
 0x13c   : > { %v3100_v63 = vmax.f32 %v8327_v20, %v2917_v10  ;;  %v3169_v25 = vrot.slane %v8299_v58, 2  ;;  %v3171_v8 = vrot.slane %v8308_v26, 2  ;;  %v3173_v30 = vrot.slane %v8311_v56, 2 }
 0x13d   : > { %v3174_v59 = vrot.slane %v8314_v53, 2  ;;  %v3176_v31 = vrot.slane %v8317_v5, 2  ;;  %v3178_v14 = vrot.slane %v8321_v51, 2  ;;  %v3179_v47 = vrot.slane %v8324_v60, 2 }
 0x13e   : > { %v3170_v45 = vsel %vm1440_vm5, %v3168_v15, %v3169_v25  ;;  %v3181_v34 = vrot.slane %v8327_v20, 2  ;;  %v3172_v62 = vsel %vm1440_vm5, %v3169_v25, %v3171_v8  ;;  %v3358_v22 = vmax.f32 %v3094_v27, %v3171_v8 }
 0x13f   : > { %v3175_v37 = vsel %vm1440_vm5, %v3173_v30, %v3174_v59  ;;  %v3177_v36 = vsel %vm1440_vm5, %v3174_v59, %v3176_v31  ;;  %v3356_v24 = vmax.f32 %v3092_v18, %v3170_v45  ;;  %v3180_v23 = vsel %vm1440_vm5, %v3178_v14, %v3179_v47 }
 0x140   : > { %v3182_v39 = vsel %vm1440_vm5, %v3179_v47, %v3181_v34  ;;  %v3357_v2 = vmax.f32 %v3093_v41, %v3172_v62  ;;  %v3359_v1 = vmax.f32 %v3095_v55, %v3175_v37  ;;  %v3360_v10 = vmax.f32 %v3096_v3, %v3177_v36 }
 0x141   : > { %v3361_v48 = vmax.f32 %v3097_v43, %v3176_v31  ;;  %v3362_v57 = vmax.f32 %v3098_v54, %v3180_v23  ;;  %v3363_v13 = vmax.f32 %v3099_v17, %v3182_v39  ;;  %v3364_v21 = vmax.f32 %v3100_v63, %v3181_v34 }
 0x142   : > { %v3432_v40 = vrot.slane %v8293_v9, 3  ;;  %v3433_v15 = vrot.slane %v8299_v58, 3  ;;  %v3435_v25 = vrot.slane %v8308_v26, 3  ;;  %v3437_v18 = vrot.slane %v8311_v56, 3 }
 0x143   : > { %v3438_v30 = vrot.slane %v8314_v53, 3  ;;  %v3440_v59 = vrot.slane %v8317_v5, 3  ;;  %v3442_v27 = vrot.slane %v8321_v51, 3  ;;  %v3443_v55 = vrot.slane %v8324_v60, 3 }
 0x144   : > { %v3434_v41 = vsel %vm1805_vm7, %v3432_v40, %v3433_v15  ;;  %v3445_v3 = vrot.slane %v8327_v20, 3  ;;  %v3436_v43 = vsel %vm1805_vm7, %v3433_v15, %v3435_v25  ;;  %v3622_v14 = vmax.f32 %v3358_v22, %v3435_v25 }
 0x145   : > { %v3439_v54 = vsel %vm1805_vm7, %v3437_v18, %v3438_v30  ;;  %v3441_v17 = vsel %vm1805_vm7, %v3438_v30, %v3440_v59  ;;  %v3620_v63 = vmax.f32 %v3356_v24, %v3434_v41  ;;  %v3444_v8 = vsel %vm1805_vm7, %v3442_v27, %v3443_v55 }
 0x146   : > { %v3446_v31 = vsel %vm1805_vm7, %v3443_v55, %v3445_v3  ;;  %v3621_v45 = vmax.f32 %v3357_v2, %v3436_v43  ;;  %v3623_v47 = vmax.f32 %v3359_v1, %v3439_v54  ;;  %v3624_v34 = vmax.f32 %v3360_v10, %v3441_v17 }
 0x147   : > { %v3625_v62 = vmax.f32 %v3361_v48, %v3440_v59  ;;  %v3626_v37 = vmax.f32 %v3362_v57, %v3444_v8  ;;  %v3627_v36 = vmax.f32 %v3363_v13, %v3446_v31  ;;  %v3628_v23 = vmax.f32 %v3364_v21, %v3445_v3 }
 0x148   : > { %v3696_v39 = vrot.slane %v8293_v9, 4  ;;  %v3697_v40 = vrot.slane %v8299_v58, 4  ;;  %v3699_v15 = vrot.slane %v8308_v26, 4  ;;  %v3701_v24 = vrot.slane %v8311_v56, 4 }
 0x149   : > { %v3702_v18 = vrot.slane %v8314_v53, 4  ;;  %v3704_v30 = vrot.slane %v8317_v5, 4  ;;  %v3706_v22 = vrot.slane %v8321_v51, 4  ;;  %v3707_v1 = vrot.slane %v8324_v60, 4 }
 0x14a   : > { %v3698_v2 = vsel %vm395_vm0, %v3696_v39, %v3697_v40  ;;  %v3709_v10 = vrot.slane %v8327_v20, 4  ;;  %v3700_v9 = vsel %vm395_vm0, %v3697_v40, %v3699_v15  ;;  %v8397_v57 = vmax.f32 %v3622_v14, %v3699_v15 }
 0x14b   : > { %v3703_v58 = vsel %vm395_vm0, %v3701_v24, %v3702_v18  ;;  %v3705_v26 = vsel %vm395_vm0, %v3702_v18, %v3704_v30  ;;  %v3884_v48 = vmax.f32 %v3620_v63, %v3698_v2  ;;  %v3708_v56 = vsel %vm395_vm0, %v3706_v22, %v3707_v1  ;;  %v11991_v2 = vld [vmem:[#allocation8_spill] sm:$0xff] }
 0x14c   : > { %v3710_v53 = vsel %vm395_vm0, %v3707_v1, %v3709_v10  ;;  %v3885_v5 = vmax.f32 %v3621_v45, %v3700_v9  ;;  %v8399_v13 = vmax.f32 %v3623_v47, %v3703_v58  ;;  %v8401_v51 = vmax.f32 %v3624_v34, %v3705_v26  ;;  %v11993_v1 = vld [vmem:[#allocation7_spill] sm:$0xff]  ;;  %v11995_v58 = vld [vmem:[#allocation9_spill] sm:$0xff] }
 0x14d   : > { %v8403_v60 = vmax.f32 %v3625_v62, %v3704_v30  ;;  %v8405_v20 = vmax.f32 %v3626_v37, %v3708_v56  ;;  %v8407_v21 = vmax.f32 %v3627_v36, %v3710_v53  ;;  %v8409_v25 = vmax.f32 %v3628_v23, %v3709_v10 }
 0x14e   : > { %v3953_v59 = vmax.f32 %v7861_v44, %v3884_v48  ;;  %v3954_v41 = vmax.f32 %v7863_v6, %v3885_v5  ;;  %v3955_v27 = vmax.f32 %v7859_v52, %v8397_v57  ;;  %v3956_v55 = vmax.f32 %v3884_v48, %v8399_v13 }
 0x14f   : > { %11983 = vst [vmem:[#allocation23_spill] sm:$0xff] %v8409_v25  ;;  %v3957_v3 = vmax.f32 %v3885_v5, %v8401_v51  ;;  %v11984_v63 = vmax.f32 %v7851_v4, %v7861_v44  ;;  %v11985_v31 = vmax.f32 %v7857_v0, %v7863_v6  ;;  %v11986_v14 = vmax.f32 %v7853_v29, %v7859_v52 }
 0x150   : > { %v8434_v34 = vmax.f32 %v3953_v59, %v8399_v13  ;;  %v8437_v62 = vmax.f32 %v3954_v41, %v8401_v51  ;;  %v8440_v37 = vmax.f32 %v3955_v27, %v8403_v60  ;;  %v8443_v4 = vmax.f32 %v3956_v55, %v8405_v20 }
 0x151   : > { %v4010_v8 = vmax.f32 %v11984_v63, %v3884_v48  ;;  %v4011_v45 = vmax.f32 %v11985_v31, %v3885_v5  ;;  %v4012_v47 = vmax.f32 %v11986_v14, %v8397_v57  ;;  %v8446_v0 = vmax.f32 %v3957_v3, %v8407_v21 }
 0x152   : > { %11987 = vst [vmem:[#allocation24_spill] sm:$0xff] %v8440_v37  ;;  %v5098_v15 = vpack.c.bf16 %v3710_v53, %v3708_v56  ;;  %v538_v24 = vadd.f32 %v8124_v28, %v7880_v50  ;;  %v530_v30 = vadd.f32 %v7880_v50, %v8131_v38  ;;  %v11992_v22 = vrot.slane %v11991_v2, 1  ;;  %v11998_v53 = vld [vmem:[#allocation18_spill] sm:$0xff] }
 0x153   : > { %v4070_v44 = vmax.f32 %v4010_v8, %v8399_v13  ;;  %v4071_v29 = vmax.f32 %v4011_v45, %v8401_v51  ;;  %v4072_v52 = vmax.f32 %v4012_v47, %v8403_v60  ;;  %v11994_v10 = vrot.slane %v11993_v1, 1 }
 0x154   : > { %v11996_v26 = vrot.slane %v11995_v58, 1  ;;  %v11997_v48 = vmov %v11992_v22  ;;  %6715 = vmatprep.mubr.msk.bf16.mxu0 %vm672_vm2, %v5098_v15  ;;  %vm586_vm14 = vcmp.ge.f32.partialorder %v538_v24, 0.0  ;;  %v618_v28 = vmul.f32 0.1, %v538_v24 }
 0x155   : > { %v8458_v39 = vmax.f32 %v4070_v44, %v8405_v20  ;;  %v8461_v40 = vmax.f32 %v4071_v29, %v8407_v21  ;;  %v8466_v18 = vmax.f32 %v4072_v52, %v8409_v25  ;;  %v1141_v9 = vsel %vm1075_vm4, %v11994_v10, %v11992_v22 }
 0x156   : > { %v1143_v56 = vsel %vm1075_vm4, %v11997_v48, %v11996_v26  ;;  %v11999_v5 = vrot.slane %v11998_v53, 1  ;;  %v12000_v50 = vmov %v11996_v26  ;;  %v1383_v59 = vmax.f32 %v11993_v1, %v1141_v9 }
 0x157   : > { %11988 = vst [vmem:[#allocation25_spill] sm:$0xff] %v8458_v39  ;;  %11989 = vst [vmem:[#allocation26_spill] sm:$0xff] %v8461_v40  ;;  %vm584_vm15 = vcmp.ge.f32.partialorder %v530_v30, 0.0  ;;  %v616_v41 = vmul.f32 0.1, %v530_v30  ;;  %v1384_v27 = vmax.f32 %v11991_v2, %v1143_v56  ;;  %v8489_v3 = vsel %vm586_vm14, %v538_v24, %v618_v28 }
 0x158   : > { %11990 = vst [vmem:[#allocation27_spill] sm:$0xff] %v8466_v18  ;;  %v1145_v38 = vsel %vm1075_vm4, %v12000_v50, %v11999_v5  ;;  %v12001_v63 = vrot.slane %v11991_v2, 2  ;;  %v12002_v8 = vrot.slane %v11993_v1, 2  ;;  %v12003_v45 = vrot.slane %v11995_v58, 2 }
 0x159   : > { %v1385_v55 = vmax.f32 %v11995_v58, %v1145_v38  ;;  %v12005_v44 = vrot.slane %v11998_v53, 2  ;;  %v8506_v15 = vsel %vm584_vm15, %v530_v30, %v616_v41  ;;  %v1869_v9 = vrot.slane %v11993_v1, 3 }
 0x15a   : > { %v1506_v31 = vsel %vm1440_vm5, %v12002_v8, %v12001_v63  ;;  %v12004_v14 = vmov %v12001_v63  ;;  %v12006_v29 = vmov %v12003_v45  ;;  %v1870_v26 = vrot.slane %v11991_v2, 3 }
 0x15b   : > { %v1508_v47 = vsel %vm1440_vm5, %v12004_v14, %v12003_v45  ;;  %v1510_v52 = vsel %vm1440_vm5, %v12006_v29, %v12005_v44  ;;  %v1748_v24 = vmax.f32 %v1383_v59, %v1506_v31  ;;  %v1872_v48 = vrot.slane %v11995_v58, 3  ;;  %v8532_v14 = vld [vmem:[#allocation2 + $0x140] sm:$0xff] }
 0x15c   : > { %v1749_v22 = vmax.f32 %v1384_v27, %v1508_v47  ;;  %v1750_v10 = vmax.f32 %v1385_v55, %v1510_v52  ;;  %v2233_v56 = vrot.slane %v11993_v1, 4  ;;  %v2234_v28 = vrot.slane %v11991_v2, 4  ;;  %v8534_v47 = vld [vmem:[#allocation2 + $0x148] sm:$0xff] }
 0x15d   : > { %v2236_v5 = vrot.slane %v11995_v58, 4  ;;  %v2549_v50 = vmax.f32 %v7798_v35, %v8249_v32  ;;  %v2550_v30 = vmax.f32 %v7800_v11, %v8251_v19  ;;  %v1871_v38 = vsel %vm1805_vm7, %v1869_v9, %v1870_v26  ;;  %v12009_v9 = vld [vmem:[#allocation15_spill] sm:$0xff] }
 0x15e   : > { %v1873_v59 = vsel %vm1805_vm7, %v1870_v26, %v1872_v48  ;;  %v12007_v41 = vrot.slane %v11998_v53, 3  ;;  %v2551_v1 = vmax.f32 %v7802_v46, %v8253_v33  ;;  %v2113_v2 = vmax.f32 %v1748_v24, %v1871_v38  ;;  %v8536_v46 = vld [vmem:[#allocation2 + $0x150] sm:$0xff] }
 0x15f   : > { %v2114_v55 = vmax.f32 %v1749_v22, %v1873_v59  ;;  %v2235_v63 = vsel %vm395_vm0, %v2233_v56, %v2234_v28  ;;  %v2237_v35 = vsel %vm395_vm0, %v2234_v28, %v2236_v5  ;;  %v12008_v11 = vrot.slane %v11998_v53, 4 }
 0x160   : > { %v1875_v27 = vsel %vm1805_vm7, %v1872_v48, %v12007_v41  ;;  %v2621_v31 = vmax.f32 %v2549_v50, %v8259_v42  ;;  %v2622_v45 = vmax.f32 %v2550_v30, %v8261_v7  ;;  %v8538_v44 = vmax.f32 %v2113_v2, %v2235_v63  ;;  %v12010_v48 = vld [vmem:[#allocation3_spill] sm:$0xff] }
 0x161   : > { %v2115_v58 = vmax.f32 %v1750_v10, %v1875_v27  ;;  %v2239_v8 = vsel %vm395_vm0, %v2236_v5, %v12008_v11  ;;  %v8540_v29 = vmax.f32 %v2114_v55, %v2237_v35  ;;  %v2623_v53 = vmax.f32 %v2551_v1, %v8263_v16  ;;  %v8550_v10 = vld [vmem:[%s11721_s2] ss:$0 sm:$0xff] }
 0x162   : > { %v2693_v24 = vmax.f32 %v2621_v31, %v8265_v61  ;;  %v2694_v22 = vmax.f32 %v2622_v45, %v8267_v49  ;;  %v541_v26 = vadd.f32 %v8550_v10, %v12009_v9  ;;  %v533_v56 = vadd.f32 %v8550_v10, %v12010_v48 }
 0x163   : > { %v8542_v52 = vmax.f32 %v2115_v58, %v2239_v8  ;;  %v2695_v28 = vmax.f32 %v2623_v53, %v8269_v12  ;;  %v1146_v5 = vrot.slane %v8532_v14, 1  ;;  %v1147_v50 = vrot.slane %v8534_v47, 1 }
 0x164   : > { %v1149_v30 = vrot.slane %v8536_v46, 1  ;;  %v2765_v38 = vmax.f32 %v2693_v24, %v8538_v44  ;;  %v2766_v59 = vmax.f32 %v2694_v22, %v8540_v29  ;;  %vm587_vm1 = vcmp.ge.f32.partialorder %v541_v26, 0.0 }
 0x165   : > { %v619_v41 = vmul.f32 0.1, %v541_v26  ;;  %v2767_v27 = vmax.f32 %v2695_v28, %v8542_v52  ;;  %vm585_vm8 = vcmp.ge.f32.partialorder %v533_v56, 0.0  ;;  %v617_v1 = vmul.f32 0.1, %v533_v56 }
 0x166   : > { %v8564_v2 = vsel %vm1075_vm4, %v1146_v5, %v1147_v50  ;;  %v2919_v55 = vrot.slane %v2765_v38, 1  ;;  %v2920_v58 = vrot.slane %v2766_v59, 1  ;;  %v3183_v63 = vrot.slane %v2765_v38, 2 }
 0x167   : > { %v3184_v35 = vrot.slane %v2766_v59, 2  ;;  %v2922_v11 = vrot.slane %v2767_v27, 1  ;;  %v3186_v8 = vrot.slane %v2767_v27, 2  ;;  %v3447_v31 = vrot.slane %v2765_v38, 3 }
 0x168   : > { %v3448_v45 = vrot.slane %v2766_v59, 3  ;;  %v2921_v53 = vsel %vm1075_vm4, %v2919_v55, %v2920_v58  ;;  %v3450_v22 = vrot.slane %v2767_v27, 3  ;;  %v3711_v9 = vrot.slane %v2765_v38, 4 }
 0x169   : > { %v3185_v24 = vsel %vm1440_vm5, %v3183_v63, %v3184_v35  ;;  %v2923_v48 = vsel %vm1075_vm4, %v2920_v58, %v2922_v11  ;;  %v3101_v28 = vmax.f32 %v2765_v38, %v2921_v53  ;;  %v3103_v23 = vmax.f32 %v2767_v27, %v2922_v11 }
 0x16a   : > { %v3187_v5 = vsel %vm1440_vm5, %v3184_v35, %v3186_v8  ;;  %v3102_v17 = vmax.f32 %v2766_v59, %v2923_v48  ;;  %v3449_v54 = vsel %vm1805_vm7, %v3447_v31, %v3448_v45  ;;  %v3451_v43 = vsel %vm1805_vm7, %v3448_v45, %v3450_v22 }
 0x16b   : > { %v3712_v36 = vrot.slane %v2766_v59, 4  ;;  %v3365_v6 = vmax.f32 %v3101_v28, %v3185_v24  ;;  %v3367_v18 = vmax.f32 %v3103_v23, %v3186_v8  ;;  %v3714_v40 = vrot.slane %v2767_v27, 4 }
 0x16c   : > { %v651_v55 = vsel %vm587_vm1, %v541_v26, %v619_v41  ;;  %v3366_v63 = vmax.f32 %v3102_v17, %v3187_v5  ;;  %v649_v38 = vsel %vm585_vm8, %v533_v56, %v617_v1  ;;  %v1514_v8 = vrot.slane %v8536_v46, 2 }
 0x16d   : > { %v3713_v39 = vsel %vm395_vm0, %v3711_v9, %v3712_v36  ;;  %v669_v58 = vpack.c.bf16 %v651_v55, %v8489_v3  ;;  %v3629_v11 = vmax.f32 %v3365_v6, %v3449_v54  ;;  %v3631_v35 = vmax.f32 %v3367_v18, %v3450_v22  ;;  %v12012_v54 = vld [vmem:[#allocation4_spill] sm:$0xff] }
 0x16e   : > { %v3715_v53 = vsel %vm395_vm0, %v3712_v36, %v3714_v40  ;;  %v668_v31 = vpack.c.bf16 %v649_v38, %v8506_v15  ;;  %v3630_v45 = vmax.f32 %v3366_v63, %v3451_v43  ;;  %v1150_v43 = vsel %vm1075_vm4, %v1147_v50, %v1149_v30 }
 0x16f   : > { %v5099_v59 = vpack.c.bf16 %v3715_v53, %v3713_v39  ;;  %v812_v24 = vunpack.c.l.bf16 %v669_v58  ;;  %v813_v23 = vunpack.c.h.bf16 %v669_v58  ;;  %v8578_v27 = vmax.f32 %v3629_v11, %v3713_v39 }
 0x170   : > { %v8580_v26 = vmax.f32 %v3631_v35, %v3714_v40  ;;  %v810_v17 = vunpack.c.l.bf16 %v668_v31  ;;  %v811_v41 = vunpack.c.h.bf16 %v668_v31  ;;  %6773 = vmatprep.mubr.msk.bf16.mxu1 %vm672_vm2, %v668_v31  ;;  %v8583_v3 = vmax.f32 %v3630_v45, %v3715_v53 }
 0x171   : > { %6716 = vmatmul.mubr.msk.bf16.vlgmr.msra.gmra.mrb[32].mxu0 %vm672_vm2, %v5099_v59  ;;  %845 = vst.msk [vmem:[#allocation2 + $0x266] sm:$0xff] %vm672_vm2, %v812_v24  ;;  %846 = vst.msk [vmem:[#allocation2 + $0x26e] sm:$0xff] %vm672_vm2, %v813_v23  ;;  %v12013_v6 = vrot.slane %v12012_v54, 1  ;;  %v1386_v39 = vmax.f32 %v8532_v14, %v8564_v2  ;;  %v12014_v40 = vmax.f32 %v8434_v34, %v8405_v20  ;;  %v1511_v50 = vrot.slane %v8532_v14, 2 }
 0x172   : > { %12011 = vst [vmem:[#allocation8_spill] sm:$0xff] %v8580_v26  ;;  %843 = vst.msk [vmem:[#allocation2 + $0x246] sm:$0xff] %vm672_vm2, %v810_v17  ;;  %v1387_v15 = vmax.f32 %v8534_v47, %v1150_v43  ;;  %6774 = vmatmul.mubr.msk.bf16.gmra.mrb[8].mxu1 %vm672_vm2, %v669_v58  ;;  %v12017_v34 = vmax.f32 %v8437_v62, %v8407_v21  ;;  %v1512_v2 = vrot.slane %v8534_v47, 2  ;;  %v1876_v22 = vrot.slane %v8532_v14, 3 }
 0x173   : > { %v1152_v36 = vsel %vm1075_vm4, %v1149_v30, %v12013_v6  ;;  %v8598_v18 = vmax.f32 %v12014_v40, %v8578_v27  ;;  %844 = vst.msk [vmem:[#allocation2 + $0x24e] sm:$0xff] %vm672_vm2, %v811_v41  ;;  %v12016_v30 = vld [vmem:[#allocation19_spill] sm:$0xff]  ;;  %v1877_v9 = vrot.slane %v8534_v47, 3  ;;  %v1879_v48 = vrot.slane %v8536_v46, 3 }
 0x174   : > { %v1388_v56 = vmax.f32 %v8536_v46, %v1152_v36  ;;  %6748 = vmatpush3.bf16.msra.mxu0 %v12016_v30  ;;  %v8611_v1 = vmax.f32 %v12017_v34, %v8583_v3  ;;  %v2240_v28 = vrot.slane %v8532_v14, 4  ;;  %v2241_v5 = vrot.slane %v8534_v47, 4 }
 0x175   : > { %12015 = vst [vmem:[#allocation7_spill] sm:$0xff] %v8598_v18  ;;  %v1513_v55 = vsel %vm1440_vm5, %v1511_v50, %v1512_v2  ;;  %v1515_v62 = vsel %vm1440_vm5, %v1512_v2, %v1514_v8  ;;  %v12019_v63 = vrot.slane %v12012_v54, 2  ;;  %v2243_v38 = vrot.slane %v8536_v46, 4  ;;  %v8661_v2 = vld [vmem:[#allocation2 + $0x160] sm:$0xff]  ;;  %v898_v18 = vld [vmem:[#allocation2 + $0x178] sm:$0xf] }
 0x176   : > { %12018 = vst [vmem:[#allocation9_spill] sm:$0xff] %v8611_v1  ;;  %v1751_v11 = vmax.f32 %v1386_v39, %v1513_v55  ;;  %v1752_v35 = vmax.f32 %v1387_v15, %v1515_v62  ;;  %v1878_v31 = vsel %vm1805_vm7, %v1876_v22, %v1877_v9  ;;  %v1880_v45 = vsel %vm1805_vm7, %v1877_v9, %v1879_v48  ;;  %v8665_v22 = vld [vmem:[#allocation2 + $0x170] sm:$0xff] }
 0x177   : > { %v1517_v58 = vsel %vm1440_vm5, %v1514_v8, %v12019_v63  ;;  %v12020_v14 = vrot.slane %v12012_v54, 3  ;;  %v2242_v59 = vsel %vm395_vm0, %v2240_v28, %v2241_v5  ;;  %v2244_v24 = vsel %vm395_vm0, %v2241_v5, %v2243_v38  ;;  %v8663_v8 = vld [vmem:[#allocation2 + $0x168] sm:$0xff] }
 0x178   : > { %v1753_v53 = vmax.f32 %v1388_v56, %v1517_v58  ;;  %v2116_v23 = vmax.f32 %v1751_v11, %v1878_v31  ;;  %v2117_v17 = vmax.f32 %v1752_v35, %v1880_v45  ;;  %v12021_v46 = vrot.slane %v12012_v54, 4  ;;  %v12025_v58 = vld [vmem:[#allocation16_spill] sm:$0xff] }
 0x179   : > { %v1882_v47 = vsel %vm1805_vm7, %v1879_v48, %v12020_v14  ;;  %v2552_v6 = vmax.f32 %v8249_v32, %v8259_v42  ;;  %v2553_v36 = vmax.f32 %v8251_v19, %v8261_v7  ;;  %v2554_v39 = vmax.f32 %v8253_v33, %v8263_v16  ;;  %v12026_v11 = vld [vmem:[#allocation20_spill] sm:$0xff] }
 0x17a   : > { %v2118_v41 = vmax.f32 %v1753_v53, %v1882_v47  ;;  %v2246_v43 = vsel %vm395_vm0, %v2243_v38, %v12021_v46  ;;  %v8644_v15 = vmax.f32 %v2116_v23, %v2242_v59  ;;  %v8646_v56 = vmax.f32 %v2117_v17, %v2244_v24 }
 0x17b   : > { %v2624_v32 = vmax.f32 %v2552_v6, %v8265_v61  ;;  %v2625_v30 = vmax.f32 %v2553_v36, %v8267_v49  ;;  %v2626_v19 = vmax.f32 %v2554_v39, %v8269_v12  ;;  %v12022_v33 = vmax.f32 %v8399_v13, %v8405_v20 }
 0x17c   : > { %v8648_v50 = vmax.f32 %v2118_v41, %v2246_v43  ;;  %v12023_v9 = vmax.f32 %v8401_v51, %v8407_v21  ;;  %v12024_v28 = vmax.f32 %v8403_v60, %v8409_v25  ;;  %v554_v38 = vadd.f32 %v8550_v10, %v12025_v58 }
 0x17d   : > { %v8659_v34 = vmax.f32 %v12022_v33, %v8578_v27  ;;  %v2696_v62 = vmax.f32 %v2624_v32, %v8538_v44  ;;  %v2697_v63 = vmax.f32 %v2625_v30, %v8540_v29  ;;  %v2698_v51 = vmax.f32 %v2626_v19, %v8542_v52 }
 0x17e   : > { %v8671_v48 = vmax.f32 %v12023_v9, %v8583_v3  ;;  %v8677_v5 = vmax.f32 %v12024_v28, %v8580_v26  ;;  %v546_v35 = vadd.f32 %v8550_v10, %v12026_v11  ;;  %v1153_v53 = vrot.slane %v8661_v2, 1 }
 0x17f   : > { %v1154_v31 = vrot.slane %v8663_v8, 1  ;;  %v1156_v45 = vrot.slane %v8665_v22, 1  ;;  %v2768_v14 = vmax.f32 %v2696_v62, %v8644_v15  ;;  %v2769_v47 = vmax.f32 %v2697_v63, %v8646_v56 }
 0x180   : > { %v2770_v59 = vmax.f32 %v2698_v51, %v8648_v50  ;;  %vm590_vm9 = vcmp.ge.f32.partialorder %v554_v38, 0.0  ;;  %v622_v24 = vmul.f32 0.1, %v554_v38  ;;  %vm588_vm10 = vcmp.ge.f32.partialorder %v546_v35, 0.0 }
 0x181   : > { %v620_v23 = vmul.f32 0.1, %v546_v35  ;;  %v1155_v17 = vsel %vm1075_vm4, %v1153_v53, %v1154_v31  ;;  %v2924_v41 = vrot.slane %v2768_v14, 1  ;;  %v2925_v46 = vrot.slane %v2769_v47, 1 }
 0x182   : > { %v2927_v43 = vrot.slane %v2770_v59, 1  ;;  %v3188_v6 = vrot.slane %v2768_v14, 2  ;;  %v3189_v36 = vrot.slane %v2769_v47, 2  ;;  %v3191_v39 = vrot.slane %v2770_v59, 2 }
 0x183   : > { %v3452_v32 = vrot.slane %v2768_v14, 3  ;;  %v3453_v30 = vrot.slane %v2769_v47, 3  ;;  %v2926_v19 = vsel %vm1075_vm4, %v2924_v41, %v2925_v46  ;;  %v3455_v28 = vrot.slane %v2770_v59, 3 }
 0x184   : > { %v2928_v33 = vsel %vm1075_vm4, %v2925_v46, %v2927_v43  ;;  %v3106_v9 = vmax.f32 %v2770_v59, %v2927_v43  ;;  %v3104_v62 = vmax.f32 %v2768_v14, %v2926_v19  ;;  %v3190_v51 = vsel %vm1440_vm5, %v3188_v6, %v3189_v36 }
 0x185   : > { %v3105_v63 = vmax.f32 %v2769_v47, %v2928_v33  ;;  %v3192_v58 = vsel %vm1440_vm5, %v3189_v36, %v3191_v39  ;;  %v3454_v53 = vsel %vm1805_vm7, %v3452_v32, %v3453_v30  ;;  %v3456_v55 = vsel %vm1805_vm7, %v3453_v30, %v3455_v28 }
 0x186   : > { %v3370_v11 = vmax.f32 %v3106_v9, %v3191_v39  ;;  %v3716_v13 = vrot.slane %v2768_v14, 4  ;;  %v3368_v54 = vmax.f32 %v3104_v62, %v3190_v51  ;;  %v3717_v1 = vrot.slane %v2769_v47, 4 }
 0x187   : > { %v3369_v40 = vmax.f32 %v3105_v63, %v3192_v58  ;;  %v3719_v41 = vrot.slane %v2770_v59, 4  ;;  %v8704_v43 = vsel %vm590_vm9, %v554_v38, %v622_v24  ;;  %v8707_v19 = vsel %vm588_vm10, %v546_v35, %v620_v23 }
 0x188   : > { %v3634_v46 = vmax.f32 %v3370_v11, %v3455_v28  ;;  %v1157_v6 = vsel %vm1075_vm4, %v1154_v31, %v1156_v45  ;;  %v3632_v36 = vmax.f32 %v3368_v54, %v3454_v53  ;;  %v3718_v32 = vsel %vm395_vm0, %v3716_v13, %v3717_v1 }
 0x189   : > { %v3633_v39 = vmax.f32 %v3369_v40, %v3456_v55  ;;  %v3720_v14 = vsel %vm395_vm0, %v3717_v1, %v3719_v41  ;;  %v1158_v59 = vrot.slane %v898_v18, 1  ;;  %v1389_v33 = vmax.f32 %v8661_v2, %v1155_v17 }
 0x18a   : > { %v8712_v30 = vmax.f32 %v3634_v46, %v3719_v41  ;;  %v5100_v47 = vpack.c.bf16 %v3720_v14, %v3718_v32  ;;  %v8715_v9 = vmax.f32 %v3632_v36, %v3718_v32  ;;  %v1390_v35 = vmax.f32 %v8663_v8, %v1157_v6 }
 0x18b   : > { %v8717_v38 = vmax.f32 %v3633_v39, %v3720_v14  ;;  %v1518_v31 = vrot.slane %v8661_v2, 2  ;;  %v1159_v1 = vsel %vm1075_vm4, %v1156_v45, %v1158_v59  ;;  %v1519_v54 = vrot.slane %v8663_v8, 2 }
 0x18c   : > { %12027 = vst [vmem:[#allocation18_spill] sm:$0xff] %v8712_v30  ;;  %6719 = vmatprep.mubr.msk.bf16.mxu0 %vm672_vm2, %v5100_v47  ;;  %v1521_v13 = vrot.slane %v8665_v22, 2  ;;  %v12028_v23 = vmax.f32 %v8405_v20, %v8578_v27  ;;  %v12029_v45 = vmax.f32 %v8407_v21, %v8583_v3  ;;  %v12030_v51 = vmax.f32 %v8443_v4, %v8578_v27 }
 0x18d   : > { %v12031_v20 = vmax.f32 %v8446_v0, %v8583_v3  ;;  %v1391_v21 = vmax.f32 %v8665_v22, %v1159_v1  ;;  %v1520_v53 = vsel %vm1440_vm5, %v1518_v31, %v1519_v54  ;;  %v1523_v46 = vrot.slane %v898_v18, 2 }
 0x18e   : > { %v8735_v17 = vmax.f32 %v12028_v23, %v8715_v9  ;;  %v8741_v28 = vmax.f32 %v12029_v45, %v8717_v38  ;;  %v8751_v58 = vmax.f32 %v12030_v51, %v8715_v9  ;;  %v1522_v41 = vsel %vm1440_vm5, %v1519_v54, %v1521_v13 }
 0x18f   : > { %v8757_v11 = vmax.f32 %v12031_v20, %v8717_v38  ;;  %v1754_v6 = vmax.f32 %v1389_v33, %v1520_v53  ;;  %v1755_v36 = vmax.f32 %v1390_v35, %v1522_v41  ;;  %v1883_v39 = vrot.slane %v8661_v2, 3  ;;  %v8773_v33 = vld [vmem:[%s11722_s3 + $0x6] sm:$0x3] }
 0x190   : > { %v1884_v4 = vrot.slane %v8663_v8, 3  ;;  %v1524_v32 = vsel %vm1440_vm5, %v1521_v13, %v1523_v46  ;;  %v1886_v14 = vrot.slane %v8665_v22, 3  ;;  %v1888_v0 = vrot.slane %v898_v18, 3  ;;  %12033 = vst [vmem:[#allocation3_spill] sm:$0xff] %v8773_v33  ;;  %6952 = vmatprep.subr.msk.bf16.mxu1 %vm5197_vm6, %v8773_v33  ;;  %v8781_v20 = vld [vmem:[#allocation2 + $0x180] sm:$0xff]  ;;  %v8790_v46 = vld [vmem:[#allocation2 + $0x188] sm:$0xff] }
 0x191   : > { %12032 = vst [vmem:[#allocation15_spill] sm:$0xff] %v8757_v11  ;;  %v2247_v47 = vrot.slane %v8661_v2, 4  ;;  %v1756_v59 = vmax.f32 %v1391_v21, %v1524_v32  ;;  %v2248_v31 = vrot.slane %v8663_v8, 4  ;;  %v2250_v54 = vrot.slane %v8665_v22, 4 }
 0x192   : > { %v1885_v1 = vsel %vm1805_vm7, %v1883_v39, %v1884_v4  ;;  %v1887_v35 = vsel %vm1805_vm7, %v1884_v4, %v1886_v14  ;;  %v1889_v13 = vsel %vm1805_vm7, %v1886_v14, %v1888_v0  ;;  %v2252_v45 = vrot.slane %v898_v18, 4  ;;  %v12034_v4 = vld [vmem:[#allocation21_spill] sm:$0xff] }
 0x193   : > { %v2119_v23 = vmax.f32 %v1754_v6, %v1885_v1  ;;  %v2120_v2 = vmax.f32 %v1755_v36, %v1887_v35  ;;  %v2121_v51 = vmax.f32 %v1756_v59, %v1889_v13  ;;  %v2249_v8 = vsel %vm395_vm0, %v2247_v47, %v2248_v31 }
 0x194   : > { %v2251_v22 = vsel %vm395_vm0, %v2248_v31, %v2250_v54  ;;  %v2253_v21 = vsel %vm395_vm0, %v2250_v54, %v2252_v45  ;;  %v2555_v41 = vmax.f32 %v8259_v42, %v8265_v61  ;;  %v2556_v18 = vmax.f32 %v8261_v7, %v8267_v49  ;;  %v12035_v42 = vld [vmem:[#allocation22_spill] sm:$0xff]  ;;  %v8804_v7 = vld [vmem:[#allocation2 + $0x190] sm:$0xff] }
 0x195   : > { %v8784_v53 = vmax.f32 %v2119_v23, %v2249_v8  ;;  %v8792_v6 = vmax.f32 %v2120_v2, %v2251_v22  ;;  %v8794_v36 = vmax.f32 %v2121_v51, %v2253_v21  ;;  %v2557_v39 = vmax.f32 %v8263_v16, %v8269_v12  ;;  %v8811_v23 = vld [vmem:[#allocation2 + $0x198] sm:$0xf] }
 0x196   : > { %v557_v32 = vadd.f32 %v8550_v10, %v12034_v4  ;;  %v2627_v14 = vmax.f32 %v2555_v41, %v8538_v44  ;;  %v2628_v0 = vmax.f32 %v2556_v18, %v8540_v29  ;;  %v549_v47 = vadd.f32 %v8550_v10, %v12035_v42 }
 0x197   : > { %v1160_v59 = vrot.slane %v8781_v20, 1  ;;  %v2629_v1 = vmax.f32 %v2557_v39, %v8542_v52  ;;  %v1161_v16 = vrot.slane %v8790_v46, 1  ;;  %v1163_v51 = vrot.slane %v8804_v7, 1 }
 0x198   : > { %vm591_vm11 = vcmp.ge.f32.partialorder %v557_v32, 0.0  ;;  %v623_v31 = vmul.f32 0.1, %v557_v32  ;;  %v2699_v54 = vmax.f32 %v2627_v14, %v8644_v15  ;;  %v2700_v35 = vmax.f32 %v2628_v0, %v8646_v56 }
 0x199   : > { %vm589_vm12 = vcmp.ge.f32.partialorder %v549_v47, 0.0  ;;  %v621_v13 = vmul.f32 0.1, %v549_v47  ;;  %v2701_v10 = vmax.f32 %v2629_v1, %v8648_v50  ;;  %v8815_v2 = vsel %vm1075_vm4, %v1160_v59, %v1161_v16 }
 0x19a   : > { %v655_v45 = vsel %vm591_vm11, %v557_v32, %v623_v31  ;;  %v2771_v8 = vmax.f32 %v2699_v54, %v8784_v53  ;;  %v2772_v22 = vmax.f32 %v2700_v35, %v8792_v6  ;;  %v8824_v4 = vsel %vm1075_vm4, %v1161_v16, %v1163_v51 }
 0x19b   : > { %v671_v21 = vpack.c.bf16 %v655_v45, %v8704_v43  ;;  %v653_v41 = vsel %vm589_vm12, %v549_v47, %v621_v13  ;;  %v2773_v18 = vmax.f32 %v2701_v10, %v8794_v36  ;;  %v1165_v32 = vrot.slane %v8811_v23, 1 }
 0x19c   : > { %v670_v39 = vpack.c.bf16 %v653_v41, %v8707_v19  ;;  %v2929_v14 = vrot.slane %v2771_v8, 1  ;;  %v2930_v0 = vrot.slane %v2772_v22, 1  ;;  %v3193_v42 = vrot.slane %v2771_v8, 2 }
 0x19d   : > { %v3194_v59 = vrot.slane %v2772_v22, 2  ;;  %v2932_v1 = vrot.slane %v2773_v18, 1  ;;  %v3196_v31 = vrot.slane %v2773_v18, 2  ;;  %v3457_v54 = vrot.slane %v2771_v8, 3 }
 0x19e   : > { %v3458_v35 = vrot.slane %v2772_v22, 3  ;;  %6777 = vmatprep.mubr.msk.bf16.mxu1 %vm672_vm2, %v670_v39  ;;  %v2931_v43 = vsel %vm1075_vm4, %v2929_v14, %v2930_v0  ;;  %v3460_v19 = vrot.slane %v2773_v18, 3  ;;  %v3721_v13 = vrot.slane %v2771_v8, 4 }
 0x19f   : > { %v3195_v47 = vsel %vm1440_vm5, %v3193_v42, %v3194_v59  ;;  %6778 = vmatmul.mubr.msk.bf16.gmra.mrb[12].mxu1 %vm672_vm2, %v671_v21  ;;  %v2933_v16 = vsel %vm1075_vm4, %v2930_v0, %v2932_v1  ;;  %v3107_v10 = vmax.f32 %v2771_v8, %v2931_v43  ;;  %v3109_v45 = vmax.f32 %v2773_v18, %v2932_v1 }
 0x1a0   : > { %v3197_v41 = vsel %vm1440_vm5, %v3194_v59, %v3196_v31  ;;  %v3108_v40 = vmax.f32 %v2772_v22, %v2933_v16  ;;  %v3459_v63 = vsel %vm1805_vm7, %v3457_v54, %v3458_v35  ;;  %v3461_v24 = vsel %vm1805_vm7, %v3458_v35, %v3460_v19 }
 0x1a1   : > { %v3722_v62 = vrot.slane %v2772_v22, 4  ;;  %v3371_v55 = vmax.f32 %v3107_v10, %v3195_v47  ;;  %v3373_v14 = vmax.f32 %v3109_v45, %v3196_v31  ;;  %v3724_v37 = vrot.slane %v2773_v18, 4 }
 0x1a2   : > { %v816_v42 = vunpack.c.l.bf16 %v671_v21  ;;  %v3372_v33 = vmax.f32 %v3108_v40, %v3197_v41  ;;  %v817_v11 = vunpack.c.h.bf16 %v671_v21  ;;  %v814_v25 = vunpack.c.l.bf16 %v670_v39 }
 0x1a3   : > { %v3723_v26 = vsel %vm395_vm0, %v3721_v13, %v3722_v62  ;;  %v3635_v0 = vmax.f32 %v3371_v55, %v3459_v63  ;;  %v3637_v8 = vmax.f32 %v3373_v14, %v3460_v19  ;;  %v3725_v1 = vsel %vm395_vm0, %v3722_v62, %v3724_v37 }
 0x1a4   : > { %849 = vst.msk [vmem:[#allocation2 + $0x2a6] sm:$0xff] %vm672_vm2, %v816_v42  ;;  %v815_v59 = vunpack.c.h.bf16 %v670_v39  ;;  %v3636_v54 = vmax.f32 %v3372_v33, %v3461_v24  ;;  %v5101_v43 = vpack.c.bf16 %v3725_v1, %v3723_v26  ;;  %850 = vst.msk [vmem:[#allocation2 + $0x2ae] sm:$0xff] %vm672_vm2, %v817_v11  ;;  %v1166_v22 = vsel %vm1075_vm4, %v1163_v51, %v1165_v32 }
 0x1a5   : > { %847 = vst.msk [vmem:[#allocation2 + $0x286] sm:$0xff] %vm672_vm2, %v814_v25  ;;  %v1392_v40 = vmax.f32 %v8781_v20, %v8815_v2  ;;  %v8843_v21 = vmax.f32 %v3635_v0, %v3723_v26  ;;  %v8845_v55 = vmax.f32 %v3637_v8, %v3724_v37  ;;  %v1393_v62 = vmax.f32 %v8790_v46, %v8824_v4 }
 0x1a6   : > { %848 = vst.msk [vmem:[#allocation2 + $0x28e] sm:$0xff] %vm672_vm2, %v815_v59  ;;  %v1394_v24 = vmax.f32 %v8804_v7, %v1166_v22  ;;  %v8851_v63 = vmax.f32 %v3636_v54, %v3725_v1  ;;  %6720 = vmatmul.mubr.msk.bf16.gmra.mrb[36].mxu0 %vm672_vm2, %v5101_v43  ;;  %v1525_v25 = vrot.slane %v8781_v20, 2  ;;  %v1526_v11 = vrot.slane %v8790_v46, 2 }
 0x1a7   : > { %12036 = vst [vmem:[#allocation4_spill] sm:$0xff] %v8845_v55  ;;  %v1528_v26 = vrot.slane %v8804_v7, 2  ;;  %v12037_v33 = vmax.f32 %v8578_v27, %v8715_v9  ;;  %v12038_v18 = vmax.f32 %v8659_v34, %v8715_v9  ;;  %v12040_v32 = vmax.f32 %v8583_v3, %v8717_v38 }
 0x1a8   : > { %v12041_v35 = vmax.f32 %v8671_v48, %v8717_v38  ;;  %v12043_v34 = vmax.f32 %v8677_v5, %v8712_v30  ;;  %v1527_v13 = vsel %vm1440_vm5, %v1525_v25, %v1526_v11  ;;  %v1530_v16 = vrot.slane %v8811_v23, 2  ;;  %v8910_v25 = vld [vmem:[#allocation2 + $0x1a0] sm:$0xff] }
 0x1a9   : > { %v8863_v2 = vmax.f32 %v12037_v33, %v8843_v21  ;;  %v8871_v39 = vmax.f32 %v12038_v18, %v8843_v21  ;;  %v8879_v31 = vmax.f32 %v12040_v32, %v8851_v63  ;;  %v1529_v3 = vsel %vm1440_vm5, %v1526_v11, %v1528_v26  ;;  %v8914_v33 = vld [vmem:[#allocation2 + $0x1a8] sm:$0xff] }
 0x1aa   : > { %v8887_v47 = vmax.f32 %v12041_v35, %v8851_v63  ;;  %v8893_v19 = vmax.f32 %v12043_v34, %v8845_v55  ;;  %v1757_v10 = vmax.f32 %v1392_v40, %v1527_v13  ;;  %v1758_v45 = vmax.f32 %v1393_v62, %v1529_v3  ;;  %v8925_v35 = vld [vmem:[#allocation2 + $0x1b8] sm:$0xf] }
 0x1ab   : > { %12039 = vst [vmem:[#allocation19_spill] sm:$0xff] %v8871_v39  ;;  %v1890_v41 = vrot.slane %v8781_v20, 3  ;;  %v1891_v48 = vrot.slane %v8790_v46, 3  ;;  %v1531_v14 = vsel %vm1440_vm5, %v1528_v26, %v1530_v16  ;;  %v1893_v42 = vrot.slane %v8804_v7, 3 }
 0x1ac   : > { %12042 = vst [vmem:[#allocation16_spill] sm:$0xff] %v8887_v47  ;;  %12044 = vst [vmem:[#allocation20_spill] sm:$0xff] %v8893_v19  ;;  %v1895_v5 = vrot.slane %v8811_v23, 3  ;;  %v2254_v0 = vrot.slane %v8781_v20, 4  ;;  %v1759_v8 = vmax.f32 %v1394_v24, %v1531_v14  ;;  %v2255_v59 = vrot.slane %v8790_v46, 4  ;;  %v8916_v46 = vld [vmem:[#allocation2 + $0x1b0] sm:$0xff] }
 0x1ad   : > { %v1892_v1 = vsel %vm1805_vm7, %v1890_v41, %v1891_v48  ;;  %v2257_v54 = vrot.slane %v8804_v7, 4  ;;  %v1894_v43 = vsel %vm1805_vm7, %v1891_v48, %v1893_v42  ;;  %v2259_v62 = vrot.slane %v8811_v23, 4 }
 0x1ae   : > { %v1896_v22 = vsel %vm1805_vm7, %v1893_v42, %v1895_v5  ;;  %v2122_v40 = vmax.f32 %v1757_v10, %v1892_v1  ;;  %v2123_v11 = vmax.f32 %v1758_v45, %v1894_v43  ;;  %v2256_v20 = vsel %vm395_vm0, %v2254_v0, %v2255_v59 }
 0x1af   : > { %v2124_v26 = vmax.f32 %v1759_v8, %v1896_v22  ;;  %v2258_v24 = vsel %vm395_vm0, %v2255_v59, %v2257_v54  ;;  %v2260_v7 = vsel %vm395_vm0, %v2257_v54, %v2259_v62  ;;  %v2558_v32 = vmax.f32 %v8265_v61, %v8538_v44 }
 0x1b0   : > { %v8919_v18 = vmax.f32 %v2122_v40, %v2256_v20  ;;  %v2559_v23 = vmax.f32 %v8267_v49, %v8540_v29  ;;  %v8927_v34 = vmax.f32 %v2123_v11, %v2258_v24  ;;  %v2560_v3 = vmax.f32 %v8269_v12, %v8542_v52 }
 0x1b1   : > { %v8929_v13 = vmax.f32 %v2124_v26, %v2260_v7  ;;  %v1167_v16 = vrot.slane %v8910_v25, 1  ;;  %v2630_v10 = vmax.f32 %v2558_v32, %v8644_v15  ;;  %v1168_v61 = vrot.slane %v8914_v33, 1 }
 0x1b2   : > { %v2631_v45 = vmax.f32 %v2559_v23, %v8646_v56  ;;  %v1170_v41 = vrot.slane %v8916_v46, 1  ;;  %v2632_v49 = vmax.f32 %v2560_v3, %v8648_v50  ;;  %v1172_v48 = vrot.slane %v8925_v35, 1 }
 0x1b3   : > { %v1532_v14 = vrot.slane %v8910_v25, 2  ;;  %v1533_v42 = vrot.slane %v8914_v33, 2  ;;  %v2702_v12 = vmax.f32 %v2630_v10, %v8784_v53  ;;  %v1169_v0 = vsel %vm1075_vm4, %v1167_v16, %v1168_v61 }
 0x1b4   : > { %v2703_v5 = vmax.f32 %v2631_v45, %v8792_v6  ;;  %v1171_v8 = vsel %vm1075_vm4, %v1168_v61, %v1170_v41  ;;  %v2704_v1 = vmax.f32 %v2632_v49, %v8794_v36  ;;  %v1173_v59 = vsel %vm1075_vm4, %v1170_v41, %v1172_v48 }
 0x1b5   : > { %v1395_v54 = vmax.f32 %v8910_v25, %v1169_v0  ;;  %v1396_v43 = vmax.f32 %v8914_v33, %v1171_v8  ;;  %v2774_v22 = vmax.f32 %v2702_v12, %v8919_v18  ;;  %v1397_v62 = vmax.f32 %v8916_v46, %v1173_v59 }
 0x1b6   : > { %v2775_v40 = vmax.f32 %v2703_v5, %v8927_v34  ;;  %v1534_v11 = vsel %vm1440_vm5, %v1532_v14, %v1533_v42  ;;  %v2776_v26 = vmax.f32 %v2704_v1, %v8929_v13  ;;  %v1535_v20 = vrot.slane %v8916_v46, 2 }
 0x1b7   : > { %v1537_v24 = vrot.slane %v8925_v35, 2  ;;  %v8957_v7 = vmax.f32 %v1395_v54, %v1534_v11  ;;  %v2934_v32 = vrot.slane %v2774_v22, 1  ;;  %v3198_v3 = vrot.slane %v2774_v22, 2 }
 0x1b8   : > { %v2935_v23 = vrot.slane %v2775_v40, 1  ;;  %v3199_v16 = vrot.slane %v2775_v40, 2  ;;  %v2937_v10 = vrot.slane %v2776_v26, 1  ;;  %v3201_v45 = vrot.slane %v2776_v26, 2 }
 0x1b9   : > { %v3462_v61 = vrot.slane %v2774_v22, 3  ;;  %v3463_v41 = vrot.slane %v2775_v40, 3  ;;  %v3465_v14 = vrot.slane %v2776_v26, 3  ;;  %v3726_v12 = vrot.slane %v2774_v22, 4 }
 0x1ba   : > { %v2936_v49 = vsel %vm1075_vm4, %v2934_v32, %v2935_v23  ;;  %v3200_v48 = vsel %vm1440_vm5, %v3198_v3, %v3199_v16  ;;  %v2938_v5 = vsel %vm1075_vm4, %v2935_v23, %v2937_v10  ;;  %v3112_v8 = vmax.f32 %v2776_v26, %v2937_v10 }
 0x1bb   : > { %v3110_v0 = vmax.f32 %v2774_v22, %v2936_v49  ;;  %v3202_v1 = vsel %vm1440_vm5, %v3199_v16, %v3201_v45  ;;  %v3111_v59 = vmax.f32 %v2775_v40, %v2938_v5  ;;  %v3464_v54 = vsel %vm1805_vm7, %v3462_v61, %v3463_v41 }
 0x1bc   : > { %v3466_v11 = vsel %vm1805_vm7, %v3463_v41, %v3465_v14  ;;  %v3727_v27 = vrot.slane %v2775_v40, 4  ;;  %v3376_v51 = vmax.f32 %v3112_v8, %v3201_v45  ;;  %v3729_v37 = vrot.slane %v2776_v26, 4 }
 0x1bd   : > { %v3374_v4 = vmax.f32 %v3110_v0, %v3200_v48  ;;  %v1536_v32 = vsel %vm1440_vm5, %v1533_v42, %v1535_v20  ;;  %v3375_v3 = vmax.f32 %v3111_v59, %v3202_v1  ;;  %v1538_v23 = vsel %vm1440_vm5, %v1535_v20, %v1537_v24 }
 0x1be   : > { %v3728_v55 = vsel %vm395_vm0, %v3726_v12, %v3727_v27  ;;  %v1761_v22 = vmax.f32 %v1396_v43, %v1536_v32  ;;  %v3640_v49 = vmax.f32 %v3376_v51, %v3465_v14  ;;  %v3730_v16 = vsel %vm395_vm0, %v3727_v27, %v3729_v37 }
 0x1bf   : > { %v3638_v10 = vmax.f32 %v3374_v4, %v3464_v54  ;;  %v1762_v5 = vmax.f32 %v1397_v62, %v1538_v23  ;;  %v3639_v61 = vmax.f32 %v3375_v3, %v3466_v11  ;;  %v5102_v19 = vpack.c.bf16 %v3730_v16, %v3728_v55 }
 0x1c0   : > { %v1897_v40 = vrot.slane %v8910_v25, 3  ;;  %v1898_v45 = vrot.slane %v8914_v33, 3  ;;  %v8973_v42 = vmax.f32 %v3640_v49, %v3729_v37  ;;  %v1900_v41 = vrot.slane %v8916_v46, 3 }
 0x1c1   : > { %v8971_v26 = vmax.f32 %v3638_v10, %v3728_v55  ;;  %v1902_v20 = vrot.slane %v8925_v35, 3  ;;  %v8977_v43 = vmax.f32 %v3639_v61, %v3730_v16  ;;  %6723 = vmatprep.mubr.msk.bf16.mxu0 %vm672_vm2, %v5102_v19  ;;  %v2261_v4 = vrot.slane %v8910_v25, 4 }
 0x1c2   : > { %12045 = vst [vmem:[#allocation21_spill] sm:$0xff] %v8973_v42  ;;  %v1899_v51 = vsel %vm1805_vm7, %v1897_v40, %v1898_v45  ;;  %v2262_v27 = vrot.slane %v8914_v33, 4  ;;  %v12046_v37 = vmax.f32 %v8715_v9, %v8843_v21  ;;  %v12047_v19 = vmax.f32 %v8735_v17, %v8843_v21  ;;  %v12052_v40 = vld [vmem:[#allocation15_spill] sm:$0xff] }
 0x1c3   : > { %v3971_v55 = vmax.f32 %v8843_v21, %v8971_v26  ;;  %v12048_v33 = vmax.f32 %v8717_v38, %v8851_v63  ;;  %v12049_v12 = vmax.f32 %v8741_v28, %v8851_v63  ;;  %v1901_v17 = vsel %vm1805_vm7, %v1898_v45, %v1900_v41 }
 0x1c4   : > { %v8989_v62 = vmax.f32 %v12046_v37, %v8971_v26  ;;  %v8997_v48 = vmax.f32 %v12047_v19, %v8971_v26  ;;  %v1903_v8 = vsel %vm1805_vm7, %v1900_v41, %v1902_v20  ;;  %v2125_v1 = vmax.f32 %v8957_v7, %v1899_v51 }
 0x1c5   : > { %v9005_v14 = vmax.f32 %v12048_v33, %v8977_v43  ;;  %v9013_v0 = vmax.f32 %v12049_v12, %v8977_v43  ;;  %v2263_v59 = vsel %vm395_vm0, %v2261_v4, %v2262_v27  ;;  %v2126_v38 = vmax.f32 %v1761_v22, %v1901_v17 }
 0x1c6   : > { %v2127_v54 = vmax.f32 %v1762_v5, %v1903_v8  ;;  %v2264_v11 = vrot.slane %v8916_v46, 4  ;;  %v2266_v32 = vrot.slane %v8925_v35, 4  ;;  %v9021_v3 = vmax.f32 %v2125_v1, %v2263_v59 }
 0x1c7   : > { %12050 = vst [vmem:[#allocation22_spill] sm:$0xff] %v9013_v0  ;;  %v2561_v28 = vmax.f32 %v8538_v44, %v8644_v15  ;;  %v2562_v23 = vmax.f32 %v8540_v29, %v8646_v56  ;;  %v2563_v10 = vmax.f32 %v8542_v52, %v8648_v50  ;;  %v3958_v46 = vmax.f32 %v8397_v57, %v8403_v60  ;;  %v12051_v52 = vld [vmem:[#allocation23_spill] sm:$0xff] }
 0x1c8   : > { %v2265_v7 = vsel %vm395_vm0, %v2262_v27, %v2264_v11  ;;  %v2267_v22 = vsel %vm395_vm0, %v2264_v11, %v2266_v32  ;;  %v4260_v35 = vrot.slane %v8751_v58, 1  ;;  %v4261_v45 = vrot.slane %v12052_v40, 1  ;;  %v12053_v27 = vld [vmem:[#allocation8_spill] sm:$0xff] }
 0x1c9   : > { %v9034_v49 = vmax.f32 %v2126_v38, %v2265_v7  ;;  %v9036_v16 = vmax.f32 %v2127_v54, %v2267_v22  ;;  %v2633_v44 = vmax.f32 %v2561_v28, %v8784_v53  ;;  %v2634_v29 = vmax.f32 %v2562_v23, %v8792_v6 }
 0x1ca   : > { %v2635_v5 = vmax.f32 %v2563_v10, %v8794_v36  ;;  %v4018_v61 = vmax.f32 %v3958_v46, %v12051_v52  ;;  %v4440_v41 = vrot.slane %v8751_v58, 2  ;;  %v4441_v20 = vrot.slane %v12052_v40, 2 }
 0x1cb   : > { %v2705_v57 = vmax.f32 %v2633_v44, %v8919_v18  ;;  %v2706_v60 = vmax.f32 %v2634_v29, %v8927_v34  ;;  %v4620_v51 = vrot.slane %v8751_v58, 3  ;;  %v4262_v19 = vsel %vm1075_vm4, %v4260_v35, %v4261_v45 }
 0x1cc   : > { %v2707_v4 = vmax.f32 %v2635_v5, %v8929_v13  ;;  %v4078_v37 = vmax.f32 %v4018_v61, %v12053_v27  ;;  %v11787_v33 = vrot.slane %v12052_v40, 3  ;;  %v4394_v8 = vmax.f32 %v8751_v58, %v4262_v19 }
 0x1cd   : > { %v2777_v12 = vmax.f32 %v2705_v57, %v9021_v3  ;;  %v2778_v17 = vmax.f32 %v2706_v60, %v9034_v49  ;;  %v9056_v1 = vsel %vm1440_vm5, %v4440_v41, %v4441_v20  ;;  %v4800_v11 = vrot.slane %v8751_v58, 4 }
 0x1ce   : > { %v2779_v59 = vmax.f32 %v2707_v4, %v9036_v16  ;;  %v9060_v38 = vmax.f32 %v4078_v37, %v8712_v30  ;;  %v9065_v54 = vsel %vm1805_vm7, %v4620_v51, %v11787_v33 }
 0x1cf   : > { %v2939_v32 = vrot.slane %v2777_v12, 1  ;;  %v2940_v28 = vrot.slane %v2778_v17, 1  ;;  %v3203_v23 = vrot.slane %v2777_v12, 2  ;;  %v3204_v10 = vrot.slane %v2778_v17, 2 }
 0x1d0   : > { %v2942_v7 = vrot.slane %v2779_v59, 1  ;;  %v3206_v22 = vrot.slane %v2779_v59, 2  ;;  %v3467_v46 = vrot.slane %v2777_v12, 3  ;;  %v3468_v35 = vrot.slane %v2778_v17, 3 }
 0x1d1   : > { %v2941_v44 = vsel %vm1075_vm4, %v2939_v32, %v2940_v28  ;;  %v3205_v29 = vsel %vm1440_vm5, %v3203_v23, %v3204_v10  ;;  %v3470_v5 = vrot.slane %v2779_v59, 3  ;;  %v3731_v61 = vrot.slane %v2777_v12, 4 }
 0x1d2   : > { %v2943_v41 = vsel %vm1075_vm4, %v2940_v28, %v2942_v7  ;;  %v3113_v57 = vmax.f32 %v2777_v12, %v2941_v44  ;;  %v3115_v60 = vmax.f32 %v2779_v59, %v2942_v7  ;;  %v3207_v58 = vsel %vm1440_vm5, %v3204_v10, %v3206_v22 }
 0x1d3   : > { %v3114_v51 = vmax.f32 %v2778_v17, %v2943_v41  ;;  %v3469_v4 = vsel %vm1805_vm7, %v3467_v46, %v3468_v35  ;;  %v3471_v37 = vsel %vm1805_vm7, %v3468_v35, %v3470_v5  ;;  %v3732_v19 = vrot.slane %v2778_v17, 4 }
 0x1d4   : > { %v3377_v33 = vmax.f32 %v3113_v57, %v3205_v29  ;;  %v3379_v9 = vmax.f32 %v3115_v60, %v3206_v22  ;;  %v3734_v25 = vrot.slane %v2779_v59, 4  ;;  %v4263_v32 = vrot.slane %v9060_v38, 1  ;;  %v907_v57 = vld [vmem:[#allocation2 + $0x1c0] sm:$0xff]  ;;  %v908_v60 = vld [vmem:[#allocation2 + $0x1c8] sm:$0xff] }
 0x1d5   : > { %v3378_v23 = vmax.f32 %v3114_v51, %v3207_v58  ;;  %v3733_v24 = vsel %vm395_vm0, %v3731_v61, %v3732_v19  ;;  %v4443_v28 = vrot.slane %v9060_v38, 2  ;;  %v4574_v12 = vmax.f32 %v4394_v8, %v9056_v1 }
 0x1d6   : > { %v3641_v7 = vmax.f32 %v3377_v33, %v3469_v4  ;;  %v3643_v10 = vmax.f32 %v3379_v9, %v3470_v5  ;;  %v3735_v44 = vsel %vm395_vm0, %v3732_v19, %v3734_v25  ;;  %v4264_v46 = vsel %vm1075_vm4, %v4261_v45, %v4263_v32  ;;  %v910_v19 = vld [vmem:[#allocation2 + $0x1d8] sm:$0xf] }
 0x1d7   : > { %v3642_v35 = vmax.f32 %v3378_v23, %v3471_v37  ;;  %v5103_v17 = vpack.c.bf16 %v3735_v44, %v3733_v24  ;;  %v4395_v22 = vmax.f32 %v12052_v40, %v4264_v46  ;;  %v4444_v59 = vsel %vm1440_vm5, %v4441_v20, %v4443_v28 }
 0x1d8   : > { %v9082_v29 = vmax.f32 %v3641_v7, %v3733_v24  ;;  %v9084_v41 = vmax.f32 %v3643_v10, %v3734_v25  ;;  %v4623_v61 = vrot.slane %v9060_v38, 3  ;;  %v4754_v8 = vmax.f32 %v4574_v12, %v9065_v54 }
 0x1d9   : > { %v9088_v33 = vmax.f32 %v3642_v35, %v3735_v44  ;;  %6724 = vmatmul.mubr.msk.bf16.gmra.mrb[40].mxu0 %vm672_vm2, %v5103_v17  ;;  %v4575_v9 = vmax.f32 %v4395_v22, %v4444_v59  ;;  %v4801_v45 = vrot.slane %v12052_v40, 4  ;;  %v4803_v5 = vrot.slane %v9060_v38, 4  ;;  %v909_v38 = vld [vmem:[#allocation2 + $0x1d0] sm:$0xff] }
 0x1da   : > { %12054 = vst [vmem:[#allocation15_spill] sm:$0xff] %v9084_v41  ;;  %v9099_v25 = vmax.f32 %v3971_v55, %v9082_v29  ;;  %v12055_v54 = vmax.f32 %v8863_v2, %v8971_v26  ;;  %v12057_v4 = vmax.f32 %v8851_v63, %v8977_v43  ;;  %v12058_v37 = vmax.f32 %v8879_v31, %v8977_v43 }
 0x1db   : > { %v12060_v32 = vrot.slane %v12052_v40, 3  ;;  %v4802_v28 = vsel %vm395_vm0, %v4800_v11, %v4801_v45  ;;  %v4804_v63 = vsel %vm395_vm0, %v4801_v45, %v4803_v5  ;;  %v5114_v12 = vpack.c.bf16 %v4444_v59, %v9056_v1 }
 0x1dc   : > { %v9107_v58 = vmax.f32 %v12055_v54, %v9082_v29  ;;  %v9115_v21 = vmax.f32 %v12057_v4, %v9088_v33  ;;  %v9123_v2 = vmax.f32 %v12058_v37, %v9088_v33  ;;  %v9131_v10 = vmax.f32 %v4754_v8, %v4802_v28 }
 0x1dd   : > { %v4624_v23 = vsel %vm1805_vm7, %v12060_v32, %v4623_v61  ;;  %v1174_v44 = vrot.slane %v907_v57, 1  ;;  %v1175_v46 = vrot.slane %v908_v60, 1  ;;  %6783 = vmatprep.mubr.msk.bf16.mxu1 %vm672_vm2, %v5114_v12  ;;  %v1177_v31 = vrot.slane %v909_v38, 1 }
 0x1de   : > { %12056 = vst [vmem:[#allocation28_spill] sm:$0xff] %v9107_v58  ;;  %12059 = vst [vmem:[#allocation29_spill] sm:$0xff] %v9123_v2  ;;  %v4755_v7 = vmax.f32 %v4575_v9, %v4624_v23  ;;  %v1179_v35 = vrot.slane %v910_v19, 1  ;;  %v1539_v17 = vrot.slane %v907_v57, 2  ;;  %v1540_v22 = vrot.slane %v908_v60, 2 }
 0x1df   : > { %12061 = vst [vmem:[#allocation30_spill] sm:$0xff] %v9131_v10  ;;  %v1176_v61 = vsel %vm1075_vm4, %v1174_v44, %v1175_v46  ;;  %v1542_v11 = vrot.slane %v909_v38, 2  ;;  %v1544_v54 = vrot.slane %v910_v19, 2  ;;  %v1178_v45 = vsel %vm1075_vm4, %v1175_v46, %v1177_v31 }
 0x1e0   : > { %v9134_v40 = vmax.f32 %v4755_v7, %v4804_v63  ;;  %v1180_v1 = vsel %vm1075_vm4, %v1177_v31, %v1179_v35  ;;  %v1398_v59 = vmax.f32 %v907_v57, %v1176_v61  ;;  %v1541_v8 = vsel %vm1440_vm5, %v1539_v17, %v1540_v22 }
 0x1e1   : > { %v1399_v9 = vmax.f32 %v908_v60, %v1178_v45  ;;  %v1400_v5 = vmax.f32 %v909_v38, %v1180_v1  ;;  %v1543_v4 = vsel %vm1440_vm5, %v1540_v22, %v1542_v11  ;;  %v1545_v37 = vsel %vm1440_vm5, %v1542_v11, %v1544_v54  ;;  %v9145_v11 = vld [vmem:[#allocation2 + $0x1e0] sm:$0xff] }
 0x1e2   : > { %12062 = vst [vmem:[#allocation31_spill] sm:$0xff] %v9134_v40  ;;  %v1763_v32 = vmax.f32 %v1398_v59, %v1541_v8  ;;  %v1904_v23 = vrot.slane %v907_v57, 3  ;;  %v1905_v28 = vrot.slane %v908_v60, 3  ;;  %v1907_v63 = vrot.slane %v909_v38, 3 }
 0x1e3   : > { %v1764_v12 = vmax.f32 %v1399_v9, %v1543_v4  ;;  %v1765_v7 = vmax.f32 %v1400_v5, %v1545_v37  ;;  %v1909_v44 = vrot.slane %v910_v19, 3  ;;  %v2268_v55 = vrot.slane %v907_v57, 4  ;;  %v9151_v9 = vld [vmem:[#allocation2 + $0x1e8] sm:$0xff]  ;;  %v9153_v5 = vld [vmem:[#allocation2 + $0x1f0] sm:$0xff] }
 0x1e4   : > { %v1906_v46 = vsel %vm1805_vm7, %v1904_v23, %v1905_v28  ;;  %v1908_v31 = vsel %vm1805_vm7, %v1905_v28, %v1907_v63  ;;  %v2269_v35 = vrot.slane %v908_v60, 4  ;;  %v2271_v17 = vrot.slane %v909_v38, 4  ;;  %v9155_v60 = vld [vmem:[#allocation2 + $0x1f8] sm:$0xf] }
 0x1e5   : > { %v1910_v61 = vsel %vm1805_vm7, %v1907_v63, %v1909_v44  ;;  %v2128_v45 = vmax.f32 %v1763_v32, %v1906_v46  ;;  %v2129_v22 = vmax.f32 %v1764_v12, %v1908_v31  ;;  %v2273_v1 = vrot.slane %v910_v19, 4 }
 0x1e6   : > { %v2130_v54 = vmax.f32 %v1765_v7, %v1910_v61  ;;  %v2270_v59 = vsel %vm395_vm0, %v2268_v55, %v2269_v35  ;;  %v2272_v8 = vsel %vm395_vm0, %v2269_v35, %v2271_v17  ;;  %v2564_v57 = vmax.f32 %v8644_v15, %v8784_v53 }
 0x1e7   : > { %v2274_v38 = vsel %vm395_vm0, %v2271_v17, %v2273_v1  ;;  %v9158_v4 = vmax.f32 %v2128_v45, %v2270_v59  ;;  %v9160_v19 = vmax.f32 %v2129_v22, %v2272_v8  ;;  %v2565_v55 = vmax.f32 %v8646_v56, %v8792_v6 }
 0x1e8   : > { %v9164_v37 = vmax.f32 %v2130_v54, %v2274_v38  ;;  %v2566_v15 = vmax.f32 %v8648_v50, %v8794_v36  ;;  %v2636_v32 = vmax.f32 %v2564_v57, %v8919_v18  ;;  %v1181_v23 = vrot.slane %v9145_v11, 1 }
 0x1e9   : > { %v2637_v28 = vmax.f32 %v2565_v55, %v8927_v34  ;;  %v1182_v63 = vrot.slane %v9151_v9, 1  ;;  %v1184_v12 = vrot.slane %v9153_v5, 1  ;;  %v1186_v7 = vrot.slane %v9155_v60, 1 }
 0x1ea   : > { %v2638_v44 = vmax.f32 %v2566_v15, %v8929_v13  ;;  %v2708_v56 = vmax.f32 %v2636_v32, %v9021_v3  ;;  %v1546_v46 = vrot.slane %v9145_v11, 2  ;;  %v1547_v50 = vrot.slane %v9151_v9, 2 }
 0x1eb   : > { %v2709_v31 = vmax.f32 %v2637_v28, %v9034_v49  ;;  %v1183_v35 = vsel %vm1075_vm4, %v1181_v23, %v1182_v63  ;;  %v1185_v17 = vsel %vm1075_vm4, %v1182_v63, %v1184_v12  ;;  %v1187_v61 = vsel %vm1075_vm4, %v1184_v12, %v1186_v7 }
 0x1ec   : > { %v2710_v45 = vmax.f32 %v2638_v44, %v9036_v16  ;;  %v2780_v22 = vmax.f32 %v2708_v56, %v9158_v4  ;;  %v1401_v1 = vmax.f32 %v9145_v11, %v1183_v35  ;;  %v1402_v54 = vmax.f32 %v9151_v9, %v1185_v17 }
 0x1ed   : > { %v2781_v59 = vmax.f32 %v2709_v31, %v9160_v19  ;;  %v1403_v8 = vmax.f32 %v9153_v5, %v1187_v61  ;;  %v1548_v57 = vsel %vm1440_vm5, %v1546_v46, %v1547_v50  ;;  %v1549_v38 = vrot.slane %v9153_v5, 2 }
 0x1ee   : > { %v2782_v55 = vmax.f32 %v2710_v45, %v9164_v37  ;;  %v2944_v15 = vrot.slane %v2780_v22, 1  ;;  %v3208_v32 = vrot.slane %v2780_v22, 2  ;;  %v3472_v23 = vrot.slane %v2780_v22, 3 }
 0x1ef   : > { %v2945_v28 = vrot.slane %v2781_v59, 1  ;;  %v3209_v63 = vrot.slane %v2781_v59, 2  ;;  %v3473_v12 = vrot.slane %v2781_v59, 3  ;;  %v3736_v7 = vrot.slane %v2780_v22, 4 }
 0x1f0   : > { %v2947_v44 = vrot.slane %v2782_v55, 1  ;;  %v3211_v56 = vrot.slane %v2782_v55, 2  ;;  %v3475_v35 = vrot.slane %v2782_v55, 3  ;;  %v3737_v17 = vrot.slane %v2781_v59, 4 }
 0x1f1   : > { %v2946_v31 = vsel %vm1075_vm4, %v2944_v15, %v2945_v28  ;;  %v3210_v61 = vsel %vm1440_vm5, %v3208_v32, %v3209_v63  ;;  %v3474_v46 = vsel %vm1805_vm7, %v3472_v23, %v3473_v12  ;;  %v3739_v51 = vrot.slane %v2782_v55, 4 }
 0x1f2   : > { %v2948_v45 = vsel %vm1075_vm4, %v2945_v28, %v2947_v44  ;;  %v3116_v20 = vmax.f32 %v2780_v22, %v2946_v31  ;;  %v3118_v24 = vmax.f32 %v2782_v55, %v2947_v44  ;;  %v3212_v40 = vsel %vm1440_vm5, %v3209_v63, %v3211_v56 }
 0x1f3   : > { %v3117_v10 = vmax.f32 %v2781_v59, %v2948_v45  ;;  %v3476_v41 = vsel %vm1805_vm7, %v3473_v12, %v3475_v35  ;;  %v3738_v2 = vsel %vm395_vm0, %v3736_v7, %v3737_v17  ;;  %v3740_v58 = vsel %vm395_vm0, %v3737_v17, %v3739_v51 }
 0x1f4   : > { %v3380_v42 = vmax.f32 %v3116_v20, %v3210_v61  ;;  %v3382_v15 = vmax.f32 %v3118_v24, %v3211_v56  ;;  %v5104_v30 = vpack.c.bf16 %v3740_v58, %v3738_v2  ;;  %v1550_v32 = vsel %vm1440_vm5, %v1547_v50, %v1549_v38 }
 0x1f5   : > { %v3381_v23 = vmax.f32 %v3117_v10, %v3212_v40  ;;  %v1551_v0 = vrot.slane %v9155_v60, 2  ;;  %v1766_v28 = vmax.f32 %v1401_v1, %v1548_v57  ;;  %v1767_v22 = vmax.f32 %v1402_v54, %v1550_v32 }
 0x1f6   : > { %v3644_v55 = vmax.f32 %v3380_v42, %v3474_v46  ;;  %v3646_v44 = vmax.f32 %v3382_v15, %v3475_v35  ;;  %6727 = vmatprep.mubr.msk.bf16.mxu0 %vm672_vm2, %v5104_v30  ;;  %v1911_v59 = vrot.slane %v9145_v11, 3  ;;  %v1912_v63 = vrot.slane %v9151_v9, 3 }
 0x1f7   : > { %v3645_v12 = vmax.f32 %v3381_v23, %v3476_v41  ;;  %v1552_v20 = vsel %vm1440_vm5, %v1549_v38, %v1551_v0  ;;  %v1914_v24 = vrot.slane %v9153_v5, 3  ;;  %v1916_v50 = vrot.slane %v9155_v60, 3 }
 0x1f8   : > { %v9207_v10 = vmax.f32 %v3644_v55, %v3738_v2  ;;  %v9209_v40 = vmax.f32 %v3646_v44, %v3739_v51  ;;  %v1768_v1 = vmax.f32 %v1403_v8, %v1552_v20  ;;  %v1913_v42 = vsel %vm1805_vm7, %v1911_v59, %v1912_v63 }
 0x1f9   : > { %v9212_v54 = vmax.f32 %v3645_v12, %v3740_v58  ;;  %v1915_v30 = vsel %vm1805_vm7, %v1912_v63, %v1914_v24  ;;  %v1917_v57 = vsel %vm1805_vm7, %v1914_v24, %v1916_v50  ;;  %v2131_v41 = vmax.f32 %v1766_v28, %v1913_v42  ;;  %v12068_v12 = vld [vmem:[#allocation20_spill] sm:$0xff] }
 0x1fa   : > { %12063 = vst [vmem:[#allocation32_spill] sm:$0xff] %v9209_v40  ;;  %v12064_v2 = vmax.f32 %v8971_v26, %v9082_v29  ;;  %v12065_v58 = vmax.f32 %v8989_v62, %v9082_v29  ;;  %v12066_v56 = vmax.f32 %v8977_v43, %v9088_v33  ;;  %v12067_v17 = vmax.f32 %v9005_v14, %v9088_v33 }
 0x1fb   : > { %v2132_v62 = vmax.f32 %v1767_v22, %v1915_v30  ;;  %v2133_v61 = vmax.f32 %v1768_v1, %v1917_v57  ;;  %v2275_v46 = vrot.slane %v9145_v11, 4  ;;  %v2276_v45 = vrot.slane %v9151_v9, 4 }
 0x1fc   : > { %v9222_v38 = vmax.f32 %v12064_v2, %v9207_v10  ;;  %v9230_v8 = vmax.f32 %v12065_v58, %v9207_v10  ;;  %v9238_v35 = vmax.f32 %v12066_v56, %v9212_v54  ;;  %v9246_v31 = vmax.f32 %v12067_v17, %v9212_v54  ;;  %v12069_v58 = vld [vmem:[#allocation3_spill] sm:$0xff] }
 0x1fd   : > { %v2278_v15 = vrot.slane %v9153_v5, 4  ;;  %v2280_v43 = vrot.slane %v9155_v60, 4  ;;  %v2567_v32 = vmax.f32 %v8784_v53, %v8919_v18  ;;  %v2568_v23 = vmax.f32 %v8792_v6, %v8927_v34 }
 0x1fe   : > { %v2277_v14 = vsel %vm395_vm0, %v2275_v46, %v2276_v45  ;;  %v2569_v28 = vmax.f32 %v8794_v36, %v8929_v13  ;;  %v4265_v22 = vrot.slane %v8871_v39, 1  ;;  %v4266_v11 = vrot.slane %v8887_v47, 1 }
 0x1ff   : > { %v2279_v9 = vsel %vm395_vm0, %v2276_v45, %v2278_v15  ;;  %v2281_v5 = vsel %vm395_vm0, %v2278_v15, %v2280_v43  ;;  %v9263_v60 = vmax.f32 %v2131_v41, %v2277_v14  ;;  %v2639_v53 = vmax.f32 %v2567_v32, %v9021_v3 }
 0x200   : > { %v9266_v55 = vmax.f32 %v2132_v62, %v2279_v9  ;;  %v9268_v6 = vmax.f32 %v2133_v61, %v2281_v5  ;;  %v2640_v44 = vmax.f32 %v2568_v23, %v9034_v49  ;;  %v2641_v36 = vmax.f32 %v2569_v28, %v9036_v16 }
 0x201   : > { %v2711_v59 = vmax.f32 %v2639_v53, %v9158_v4  ;;  %v4267_v63 = vsel %vm1075_vm4, %v4265_v22, %v4266_v11  ;;  %v4268_v20 = vrot.slane %v12068_v12, 1  ;;  %v4445_v24 = vrot.slane %v8871_v39, 2 }
 0x202   : > { %v2712_v50 = vmax.f32 %v2640_v44, %v9160_v19  ;;  %v2713_v1 = vmax.f32 %v2641_v36, %v9164_v37  ;;  %v4396_v42 = vmax.f32 %v8871_v39, %v4267_v63  ;;  %v4446_v30 = vrot.slane %v8887_v47, 2 }
 0x203   : > { %v2783_v57 = vmax.f32 %v2711_v59, %v9263_v60  ;;  %v4269_v41 = vsel %vm1075_vm4, %v4266_v11, %v4268_v20  ;;  %v4448_v2 = vrot.slane %v12068_v12, 2  ;;  %v5871_v56 = vsel %vm5197_vm6, %v12069_v58, 0 }
 0x204   : > { %v2784_v17 = vmax.f32 %v2712_v50, %v9266_v55  ;;  %v2785_v62 = vmax.f32 %v2713_v1, %v9268_v6  ;;  %v4397_v61 = vmax.f32 %v8887_v47, %v4269_v41  ;;  %v4447_v46 = vsel %vm1440_vm5, %v4445_v24, %v4446_v30 }
 0x205   : > { %v2949_v45 = vrot.slane %v2783_v57, 1  ;;  %v3213_v15 = vrot.slane %v2783_v57, 2  ;;  %v3477_v43 = vrot.slane %v2783_v57, 3  ;;  %v3741_v32 = vrot.slane %v2783_v57, 4 }
 0x206   : > { %v2950_v23 = vrot.slane %v2784_v17, 1  ;;  %v2952_v14 = vrot.slane %v2785_v62, 1  ;;  %v3214_v28 = vrot.slane %v2784_v17, 2  ;;  %v3216_v22 = vrot.slane %v2785_v62, 2 }
 0x207   : > { %v3478_v11 = vrot.slane %v2784_v17, 3  ;;  %v3480_v9 = vrot.slane %v2785_v62, 3  ;;  %v3742_v5 = vrot.slane %v2784_v17, 4  ;;  %v3744_v53 = vrot.slane %v2785_v62, 4 }
 0x208   : > { %v2951_v44 = vsel %vm1075_vm4, %v2949_v45, %v2950_v23  ;;  %v2953_v36 = vsel %vm1075_vm4, %v2950_v23, %v2952_v14  ;;  %v3121_v59 = vmax.f32 %v2785_v62, %v2952_v14  ;;  %v3215_v63 = vsel %vm1440_vm5, %v3213_v15, %v3214_v28 }
 0x209   : > { %v3119_v20 = vmax.f32 %v2783_v57, %v2951_v44  ;;  %v3120_v24 = vmax.f32 %v2784_v17, %v2953_v36  ;;  %v3217_v50 = vsel %vm1440_vm5, %v3214_v28, %v3216_v22  ;;  %v3479_v1 = vsel %vm1805_vm7, %v3477_v43, %v3478_v11 }
 0x20a   : > { %v3385_v41 = vmax.f32 %v3121_v59, %v3216_v22  ;;  %v3481_v58 = vsel %vm1805_vm7, %v3478_v11, %v3480_v9  ;;  %v3743_v26 = vsel %vm395_vm0, %v3741_v32, %v3742_v5  ;;  %v3745_v51 = vsel %vm395_vm0, %v3742_v5, %v3744_v53  ;;  %v9322_v59 = vld [vmem:[#allocation2 + $0x200] sm:$0xff] }
 0x20b   : > { %v3383_v7 = vmax.f32 %v3119_v20, %v3215_v63  ;;  %v3384_v45 = vmax.f32 %v3120_v24, %v3217_v50  ;;  %v5105_v0 = vpack.c.bf16 %v3745_v51, %v3743_v26  ;;  %v4449_v62 = vsel %vm1440_vm5, %v4446_v30, %v4448_v2  ;;  %v12073_v30 = vld [vmem:[#allocation22_spill] sm:$0xff]  ;;  %v9340_v50 = vld [vmem:[#allocation2 + $0x208] sm:$0xff] }
 0x20c   : > { %v3649_v23 = vmax.f32 %v3385_v41, %v3480_v9  ;;  %v9298_v15 = vmax.f32 %v4396_v42, %v4447_v46  ;;  %v9300_v57 = vmax.f32 %v4397_v61, %v4449_v62  ;;  %v5115_v17 = vpack.c.bf16 %v4449_v62, %v4447_v46  ;;  %v9344_v41 = vld [vmem:[#allocation2 + $0x218] sm:$0xf] }
 0x20d   : > { %v3647_v14 = vmax.f32 %v3383_v7, %v3479_v1  ;;  %v3648_v43 = vmax.f32 %v3384_v45, %v3481_v58  ;;  %6728 = vmatmul.mubr.msk.bf16.gmra.mrb[44].mxu0 %vm672_vm2, %v5105_v0  ;;  %v3964_v32 = vmax.f32 %v12051_v52, %v12053_v27  ;;  %v4270_v28 = vrot.slane %v8997_v48, 1  ;;  %v12074_v0 = vld [vmem:[#allocation18_spill] sm:$0xff]  ;;  %v9342_v1 = vld [vmem:[#allocation2 + $0x210] sm:$0xff] }
 0x20e   : > { %12070 = vst [vmem:[#allocation3_spill] sm:$0xff] %v9298_v15  ;;  %12071 = vst [vmem:[#allocation33_spill] sm:$0xff] %v9300_v57  ;;  %v9306_v22 = vmax.f32 %v3649_v23, %v3744_v53  ;;  %6784 = vmatmul.mubr.msk.bf16.vlgmr.msra.gmra.mrb[16].mxu1 %vm672_vm2, %v5115_v17  ;;  %v4271_v2 = vrot.slane %v12073_v30, 1  ;;  %v4450_v42 = vrot.slane %v8997_v48, 2  ;;  %v4451_v61 = vrot.slane %v12073_v30, 2  ;;  %v12081_v17 = vld [vmem:[#allocation4_spill] sm:$0xff] }
 0x20f   : > { %v9312_v46 = vmax.f32 %v3647_v14, %v3743_v26  ;;  %v9314_v7 = vmax.f32 %v3648_v43, %v3745_v51  ;;  %6816 = vmatpush3.bf16.msra.mxu1 %v5871_v56  ;;  %v4024_v11 = vmax.f32 %v3964_v32, %v12074_v0  ;;  %v4630_v9 = vrot.slane %v8997_v48, 3 }
 0x210   : > { %12072 = vst [vmem:[#allocation34_spill] sm:$0xff] %v9306_v22  ;;  %v4272_v5 = vsel %vm1075_vm4, %v4270_v28, %v4271_v2  ;;  %v4452_v53 = vsel %vm1440_vm5, %v4450_v42, %v4451_v61  ;;  %v4631_v44 = vrot.slane %v12073_v30, 3  ;;  %v4810_v36 = vrot.slane %v8997_v48, 4 }
 0x211   : > { %v12075_v56 = vmax.f32 %v9082_v29, %v9207_v10  ;;  %v12076_v20 = vmax.f32 %v9088_v33, %v9212_v54  ;;  %v12077_v45 = vmax.f32 %v9099_v25, %v9207_v10  ;;  %v12079_v33 = vmax.f32 %v9115_v21, %v9212_v54 }
 0x212   : > { %v4084_v14 = vmax.f32 %v4024_v11, %v12081_v17  ;;  %v4398_v43 = vmax.f32 %v8997_v48, %v4272_v5  ;;  %v4632_v32 = vsel %vm1805_vm7, %v4630_v9, %v4631_v44  ;;  %v4811_v28 = vrot.slane %v12073_v30, 4 }
 0x213   : > { %v9332_v63 = vmax.f32 %v12075_v56, %v9312_v46  ;;  %v9338_v24 = vmax.f32 %v12076_v20, %v9314_v7  ;;  %v9354_v62 = vmax.f32 %v12077_v45, %v9312_v46  ;;  %v9360_v23 = vmax.f32 %v12079_v33, %v9314_v7  ;;  %v12082_v45 = vld [vmem:[#allocation21_spill] sm:$0xff] }
 0x214   : > { %v1188_v42 = vrot.slane %v9322_v59, 1  ;;  %v1189_v25 = vrot.slane %v9340_v50, 1  ;;  %v1191_v56 = vrot.slane %v9342_v1, 1  ;;  %v1193_v20 = vrot.slane %v9344_v41, 1 }
 0x215   : > { %12078 = vst [vmem:[#allocation22_spill] sm:$0xff] %v9354_v62  ;;  %12080 = vst [vmem:[#allocation18_spill] sm:$0xff] %v9360_v23  ;;  %v4144_v21 = vmax.f32 %v4084_v14, %v12082_v45  ;;  %v4578_v33 = vmax.f32 %v4398_v43, %v4452_v53  ;;  %v4812_v29 = vsel %vm395_vm0, %v4810_v36, %v4811_v28  ;;  %v1553_v11 = vrot.slane %v9322_v59, 2 }
 0x216   : > { %v1190_v48 = vsel %vm1075_vm4, %v1188_v42, %v1189_v25  ;;  %v1192_v9 = vsel %vm1075_vm4, %v1189_v25, %v1191_v56  ;;  %v1194_v5 = vsel %vm1075_vm4, %v1191_v56, %v1193_v20  ;;  %v1554_v51 = vrot.slane %v9340_v50, 2 }
 0x217   : > { %v4273_v58 = vrot.slane %v4144_v21, 1  ;;  %v4453_v26 = vrot.slane %v4144_v21, 2  ;;  %v4633_v57 = vrot.slane %v4144_v21, 3  ;;  %v4758_v15 = vmax.f32 %v4578_v33, %v4632_v32 }
 0x218   : > { %v4813_v12 = vrot.slane %v4144_v21, 4  ;;  %v1404_v14 = vmax.f32 %v9322_v59, %v1190_v48  ;;  %v1405_v43 = vmax.f32 %v9340_v50, %v1192_v9  ;;  %v1406_v36 = vmax.f32 %v9342_v1, %v1194_v5 }
 0x219   : > { %v4274_v47 = vsel %vm1075_vm4, %v4271_v2, %v4273_v58  ;;  %v4454_v42 = vsel %vm1440_vm5, %v4451_v61, %v4453_v26  ;;  %v4634_v25 = vsel %vm1805_vm7, %v4631_v44, %v4633_v57  ;;  %v9383_v56 = vmax.f32 %v4758_v15, %v4812_v29 }
 0x21a   : > { %v4399_v20 = vmax.f32 %v12073_v30, %v4274_v47  ;;  %v4814_v39 = vsel %vm395_vm0, %v4811_v28, %v4813_v12  ;;  %v5116_v32 = vpack.c.bf16 %v4454_v42, %v4452_v53  ;;  %v1555_v21 = vsel %vm1440_vm5, %v1553_v11, %v1554_v51 }
 0x21b   : > { %12083 = vst [vmem:[#allocation4_spill] sm:$0xff] %v9383_v56  ;;  %v1556_v33 = vrot.slane %v9342_v1, 2  ;;  %v1558_v48 = vrot.slane %v9344_v41, 2  ;;  %v1769_v9 = vmax.f32 %v1404_v14, %v1555_v21  ;;  %v1918_v2 = vrot.slane %v9322_v59, 3 }
 0x21c   : > { %v4579_v58 = vmax.f32 %v4399_v20, %v4454_v42  ;;  %6787 = vmatprep.mubr.msk.bf16.mxu1 %vm672_vm2, %v5116_v32  ;;  %v1919_v15 = vrot.slane %v9340_v50, 3  ;;  %v1921_v57 = vrot.slane %v9342_v1, 3  ;;  %v1923_v47 = vrot.slane %v9344_v41, 3  ;;  %v9403_v20 = vld [vmem:[#allocation2 + $0x220] sm:$0xff] }
 0x21d   : > { %v1557_v12 = vsel %vm1440_vm5, %v1554_v51, %v1556_v33  ;;  %v1559_v30 = vsel %vm1440_vm5, %v1556_v33, %v1558_v48  ;;  %v2282_v61 = vrot.slane %v9322_v59, 4  ;;  %v2283_v53 = vrot.slane %v9340_v50, 4  ;;  %v9405_v51 = vld [vmem:[#allocation2 + $0x228] sm:$0xff]  ;;  %v9417_v48 = vld [vmem:[#allocation2 + $0x230] sm:$0xff] }
 0x21e   : > { %v4759_v44 = vmax.f32 %v4579_v58, %v4634_v25  ;;  %v1770_v26 = vmax.f32 %v1405_v43, %v1557_v12  ;;  %v1771_v29 = vmax.f32 %v1406_v36, %v1559_v30  ;;  %v1920_v28 = vsel %vm1805_vm7, %v1918_v2, %v1919_v15  ;;  %v9422_v2 = vld [vmem:[#allocation2 + $0x238] sm:$0xf] }
 0x21f   : > { %v1922_v11 = vsel %vm1805_vm7, %v1919_v15, %v1921_v57  ;;  %v1924_v5 = vsel %vm1805_vm7, %v1921_v57, %v1923_v47  ;;  %v2134_v14 = vmax.f32 %v1769_v9, %v1920_v28  ;;  %v2284_v42 = vsel %vm395_vm0, %v2282_v61, %v2283_v53 }
 0x220   : > { %v9407_v32 = vmax.f32 %v4759_v44, %v4814_v39  ;;  %v2135_v59 = vmax.f32 %v1770_v26, %v1922_v11  ;;  %v2136_v50 = vmax.f32 %v1771_v29, %v1924_v5  ;;  %v2285_v43 = vrot.slane %v9342_v1, 4 }
 0x221   : > { %v2287_v36 = vrot.slane %v9344_v41, 4  ;;  %v9411_v25 = vmax.f32 %v2134_v14, %v2284_v42  ;;  %v2570_v21 = vmax.f32 %v8919_v18, %v9021_v3  ;;  %v2571_v33 = vmax.f32 %v8927_v34, %v9034_v49 }
 0x222   : > { %12084 = vst [vmem:[#allocation21_spill] sm:$0xff] %v9407_v32  ;;  %v2286_v9 = vsel %vm395_vm0, %v2283_v53, %v2285_v43  ;;  %v2572_v39 = vmax.f32 %v8929_v13, %v9036_v16  ;;  %v1195_v1 = vrot.slane %v9403_v20, 1  ;;  %v1196_v41 = vrot.slane %v9405_v51, 1 }
 0x223   : > { %v2288_v58 = vsel %vm395_vm0, %v2285_v43, %v2287_v36  ;;  %v9427_v15 = vmax.f32 %v2135_v59, %v2286_v9  ;;  %v2642_v18 = vmax.f32 %v2570_v21, %v9158_v4  ;;  %v2643_v34 = vmax.f32 %v2571_v33, %v9160_v19 }
 0x224   : > { %v9431_v57 = vmax.f32 %v2136_v50, %v2288_v58  ;;  %v2644_v47 = vmax.f32 %v2572_v39, %v9164_v37  ;;  %v1197_v13 = vsel %vm1075_vm4, %v1195_v1, %v1196_v41  ;;  %v1198_v12 = vrot.slane %v9417_v48, 1 }
 0x225   : > { %v2714_v30 = vmax.f32 %v2642_v18, %v9263_v60  ;;  %v2715_v61 = vmax.f32 %v2643_v34, %v9266_v55  ;;  %v1200_v53 = vrot.slane %v9422_v2, 1  ;;  %v1407_v44 = vmax.f32 %v9403_v20, %v1197_v13 }
 0x226   : > { %v2716_v26 = vmax.f32 %v2644_v47, %v9268_v6  ;;  %v1199_v29 = vsel %vm1075_vm4, %v1196_v41, %v1198_v12  ;;  %v1560_v28 = vrot.slane %v9403_v20, 2  ;;  %v1561_v11 = vrot.slane %v9405_v51, 2 }
 0x227   : > { %v2786_v5 = vmax.f32 %v2714_v30, %v9411_v25  ;;  %v2787_v14 = vmax.f32 %v2715_v61, %v9427_v15  ;;  %v1201_v42 = vsel %vm1075_vm4, %v1198_v12, %v1200_v53  ;;  %v1408_v59 = vmax.f32 %v9405_v51, %v1199_v29 }
 0x228   : > { %v2788_v50 = vmax.f32 %v2716_v26, %v9431_v57  ;;  %v1409_v43 = vmax.f32 %v9417_v48, %v1201_v42  ;;  %v1562_v36 = vsel %vm1440_vm5, %v1560_v28, %v1561_v11  ;;  %v1563_v21 = vrot.slane %v9417_v48, 2 }
 0x229   : > { %v2954_v33 = vrot.slane %v2786_v5, 1  ;;  %v2955_v9 = vrot.slane %v2787_v14, 1  ;;  %v3218_v39 = vrot.slane %v2786_v5, 2  ;;  %v3219_v1 = vrot.slane %v2787_v14, 2 }
 0x22a   : > { %v2957_v41 = vrot.slane %v2788_v50, 1  ;;  %v3221_v58 = vrot.slane %v2788_v50, 2  ;;  %v3482_v18 = vrot.slane %v2786_v5, 3  ;;  %v3483_v34 = vrot.slane %v2787_v14, 3 }
 0x22b   : > { %v2956_v47 = vsel %vm1075_vm4, %v2954_v33, %v2955_v9  ;;  %v3220_v13 = vsel %vm1440_vm5, %v3218_v39, %v3219_v1  ;;  %v3485_v12 = vrot.slane %v2788_v50, 3  ;;  %v3746_v30 = vrot.slane %v2786_v5, 4 }
 0x22c   : > { %v2958_v61 = vsel %vm1075_vm4, %v2955_v9, %v2957_v41  ;;  %v3122_v53 = vmax.f32 %v2786_v5, %v2956_v47  ;;  %v3124_v26 = vmax.f32 %v2788_v50, %v2957_v41  ;;  %v3222_v29 = vsel %vm1440_vm5, %v3219_v1, %v3221_v58 }
 0x22d   : > { %v3123_v28 = vmax.f32 %v2787_v14, %v2958_v61  ;;  %v3484_v42 = vsel %vm1805_vm7, %v3482_v18, %v3483_v34  ;;  %v3486_v32 = vsel %vm1805_vm7, %v3483_v34, %v3485_v12  ;;  %v3747_v56 = vrot.slane %v2787_v14, 4 }
 0x22e   : > { %v3386_v52 = vmax.f32 %v3122_v53, %v3220_v13  ;;  %v3388_v22 = vmax.f32 %v3124_v26, %v3221_v58  ;;  %v3749_v23 = vrot.slane %v2788_v50, 4  ;;  %v1564_v33 = vsel %vm1440_vm5, %v1561_v11, %v1563_v21 }
 0x22f   : > { %v3387_v39 = vmax.f32 %v3123_v28, %v3222_v29  ;;  %v3748_v62 = vsel %vm395_vm0, %v3746_v30, %v3747_v56  ;;  %v1565_v9 = vrot.slane %v9422_v2, 2  ;;  %v1772_v5 = vmax.f32 %v1407_v44, %v1562_v36 }
 0x230   : > { %v3650_v41 = vmax.f32 %v3386_v52, %v3484_v42  ;;  %v3652_v47 = vmax.f32 %v3388_v22, %v3485_v12  ;;  %v3750_v1 = vsel %vm395_vm0, %v3747_v56, %v3749_v23  ;;  %v1773_v61 = vmax.f32 %v1408_v59, %v1564_v33 }
 0x231   : > { %v3651_v18 = vmax.f32 %v3387_v39, %v3486_v32  ;;  %v5106_v40 = vpack.c.bf16 %v3750_v1, %v3748_v62  ;;  %v1566_v14 = vsel %vm1440_vm5, %v1563_v21, %v1565_v9  ;;  %v1925_v58 = vrot.slane %v9403_v20, 3 }
 0x232   : > { %v9464_v50 = vmax.f32 %v3650_v41, %v3748_v62  ;;  %v9466_v11 = vmax.f32 %v3652_v47, %v3749_v23  ;;  %v1774_v34 = vmax.f32 %v1409_v43, %v1566_v14  ;;  %v1926_v13 = vrot.slane %v9405_v51, 3 }
 0x233   : > { %v9469_v30 = vmax.f32 %v3651_v18, %v3750_v1  ;;  %6731 = vmatprep.mubr.msk.bf16.mxu0 %vm672_vm2, %v5106_v40  ;;  %v1928_v52 = vrot.slane %v9417_v48, 3  ;;  %v1930_v22 = vrot.slane %v9422_v2, 3  ;;  %v2289_v56 = vrot.slane %v9403_v20, 4 }
 0x234   : > { %12085 = vst [vmem:[#allocation35_spill] sm:$0xff] %v9466_v11  ;;  %v12086_v62 = vmax.f32 %v9207_v10, %v9312_v46  ;;  %v12087_v40 = vmax.f32 %v9222_v38, %v9312_v46  ;;  %v12088_v43 = vmax.f32 %v9212_v54, %v9314_v7  ;;  %v12089_v21 = vmax.f32 %v9238_v35, %v9314_v7 }
 0x235   : > { %v1927_v38 = vsel %vm1805_vm7, %v1925_v58, %v1926_v13  ;;  %v1929_v53 = vsel %vm1805_vm7, %v1926_v13, %v1928_v52  ;;  %v1931_v26 = vsel %vm1805_vm7, %v1928_v52, %v1930_v22  ;;  %v2290_v29 = vrot.slane %v9405_v51, 4  ;;  %v12090_v58 = vld [vmem:[#allocation28_spill] sm:$0xff]  ;;  %v12091_v52 = vld [vmem:[#allocation29_spill] sm:$0xff] }
 0x236   : > { %v9481_v23 = vmax.f32 %v12086_v62, %v9464_v50  ;;  %v9489_v59 = vmax.f32 %v12087_v40, %v9464_v50  ;;  %v9497_v36 = vmax.f32 %v12088_v43, %v9469_v30  ;;  %v9505_v12 = vmax.f32 %v12089_v21, %v9469_v30 }
 0x237   : > { %v2137_v54 = vmax.f32 %v1772_v5, %v1927_v38  ;;  %v2138_v28 = vmax.f32 %v1773_v61, %v1929_v53  ;;  %v2139_v42 = vmax.f32 %v1774_v34, %v1931_v26  ;;  %v2292_v33 = vrot.slane %v9417_v48, 4 }
 0x238   : > { %v2291_v39 = vsel %vm395_vm0, %v2289_v56, %v2290_v29  ;;  %v2294_v9 = vrot.slane %v9422_v2, 4  ;;  %v2573_v35 = vmax.f32 %v9021_v3, %v9158_v4  ;;  %v2574_v41 = vmax.f32 %v9034_v49, %v9160_v19 }
 0x239   : > { %v2293_v47 = vsel %vm395_vm0, %v2290_v29, %v2292_v33  ;;  %v9519_v1 = vmax.f32 %v2137_v54, %v2291_v39  ;;  %v2575_v51 = vmax.f32 %v9036_v16, %v9164_v37  ;;  %v3967_v48 = vmax.f32 %v12053_v27, %v12074_v0 }
 0x23a   : > { %v2295_v5 = vsel %vm395_vm0, %v2292_v33, %v2294_v9  ;;  %v9526_v61 = vmax.f32 %v2138_v28, %v2293_v47  ;;  %v2645_v2 = vmax.f32 %v2573_v35, %v9263_v60  ;;  %v2646_v3 = vmax.f32 %v2574_v41, %v9266_v55  ;;  %v12092_v28 = vld [vmem:[#allocation15_spill] sm:$0xff] }
 0x23b   : > { %v9530_v18 = vmax.f32 %v2139_v42, %v2295_v5  ;;  %v2647_v49 = vmax.f32 %v2575_v51, %v9268_v6  ;;  %v4027_v14 = vmax.f32 %v3967_v48, %v12081_v17  ;;  %v4275_v34 = vrot.slane %v12090_v58, 1 }
 0x23c   : > { %v2717_v16 = vmax.f32 %v2645_v2, %v9411_v25  ;;  %v2718_v13 = vmax.f32 %v2646_v3, %v9427_v15  ;;  %v4276_v22 = vrot.slane %v12091_v52, 1  ;;  %v4455_v56 = vrot.slane %v12090_v58, 2 }
 0x23d   : > { %v2719_v62 = vmax.f32 %v2647_v49, %v9431_v57  ;;  %v4087_v40 = vmax.f32 %v4027_v14, %v12082_v45  ;;  %v4456_v43 = vrot.slane %v12091_v52, 2  ;;  %v4635_v21 = vrot.slane %v12090_v58, 3 }
 0x23e   : > { %v2789_v38 = vmax.f32 %v2717_v16, %v9519_v1  ;;  %v2790_v53 = vmax.f32 %v2718_v13, %v9526_v61  ;;  %v4277_v26 = vsel %vm1075_vm4, %v4275_v34, %v4276_v22  ;;  %v4636_v29 = vrot.slane %v12091_v52, 3 }
 0x23f   : > { %v2791_v54 = vmax.f32 %v2719_v62, %v9530_v18  ;;  %v9549_v42 = vmax.f32 %v4087_v40, %v12092_v28  ;;  %v4400_v33 = vmax.f32 %v12090_v58, %v4277_v26  ;;  %v9553_v39 = vsel %vm1440_vm5, %v4455_v56, %v4456_v43 }
 0x240   : > { %v2959_v9 = vrot.slane %v2789_v38, 1  ;;  %v2960_v35 = vrot.slane %v2790_v53, 1  ;;  %v3223_v41 = vrot.slane %v2789_v38, 2  ;;  %v3224_v47 = vrot.slane %v2790_v53, 2 }
 0x241   : > { %v2962_v51 = vrot.slane %v2791_v54, 1  ;;  %v3226_v48 = vrot.slane %v2791_v54, 2  ;;  %v3487_v5 = vrot.slane %v2789_v38, 3  ;;  %v3488_v2 = vrot.slane %v2790_v53, 3 }
 0x242   : > { %v2961_v3 = vsel %vm1075_vm4, %v2959_v9, %v2960_v35  ;;  %v3225_v49 = vsel %vm1440_vm5, %v3223_v41, %v3224_v47  ;;  %v3490_v14 = vrot.slane %v2791_v54, 3  ;;  %v3751_v34 = vrot.slane %v2789_v38, 4 }
 0x243   : > { %v2963_v16 = vsel %vm1075_vm4, %v2960_v35, %v2962_v51  ;;  %v3125_v13 = vmax.f32 %v2789_v38, %v2961_v3  ;;  %v3127_v62 = vmax.f32 %v2791_v54, %v2962_v51  ;;  %v3227_v56 = vsel %vm1440_vm5, %v3224_v47, %v3226_v48 }
 0x244   : > { %v3126_v40 = vmax.f32 %v2790_v53, %v2963_v16  ;;  %v3489_v26 = vsel %vm1805_vm7, %v3487_v5, %v3488_v2  ;;  %v3491_v10 = vsel %vm1805_vm7, %v3488_v2, %v3490_v14  ;;  %v3752_v20 = vrot.slane %v2790_v53, 4 }
 0x245   : > { %v3389_v44 = vmax.f32 %v3125_v13, %v3225_v49  ;;  %v3391_v32 = vmax.f32 %v3127_v62, %v3226_v48  ;;  %v3754_v27 = vrot.slane %v2791_v54, 4  ;;  %v4278_v9 = vrot.slane %v9549_v42, 1 }
 0x246   : > { %v3390_v41 = vmax.f32 %v3126_v40, %v3227_v56  ;;  %v3753_v11 = vsel %vm395_vm0, %v3751_v34, %v3752_v20  ;;  %v4458_v35 = vrot.slane %v9549_v42, 2  ;;  %v4580_v38 = vmax.f32 %v4400_v33, %v9553_v39 }
 0x247   : > { %v3653_v51 = vmax.f32 %v3389_v44, %v3489_v26  ;;  %v3655_v47 = vmax.f32 %v3391_v32, %v3490_v14  ;;  %v3755_v3 = vsel %vm395_vm0, %v3752_v20, %v3754_v27  ;;  %v4279_v5 = vsel %vm1075_vm4, %v4276_v22, %v4278_v9 }
 0x248   : > { %v3654_v2 = vmax.f32 %v3390_v41, %v3491_v10  ;;  %v5107_v53 = vpack.c.bf16 %v3755_v3, %v3753_v11  ;;  %v4401_v48 = vmax.f32 %v12091_v52, %v4279_v5  ;;  %v4459_v54 = vsel %vm1440_vm5, %v4456_v43, %v4458_v35 }
 0x249   : > { %v9569_v49 = vmax.f32 %v3653_v51, %v3753_v11  ;;  %v9571_v16 = vmax.f32 %v3655_v47, %v3754_v27  ;;  %v4637_v34 = vsel %vm1805_vm7, %v4635_v21, %v4636_v29  ;;  %v4638_v33 = vrot.slane %v9549_v42, 3 }
 0x24a   : > { %v9575_v44 = vmax.f32 %v3654_v2, %v3755_v3  ;;  %6732 = vmatmul.mubr.msk.bf16.gmra.mrb[48].mxu0 %vm672_vm2, %v5107_v53  ;;  %v4581_v32 = vmax.f32 %v4401_v48, %v4459_v54  ;;  %v4760_v20 = vmax.f32 %v4580_v38, %v4637_v34  ;;  %v4815_v10 = vrot.slane %v12090_v58, 4  ;;  %v9632_v2 = vld [vmem:[#allocation2 + $0x248] sm:$0xff]  ;;  %v9634_v53 = vld [vmem:[#allocation2 + $0x250] sm:$0xff] }
 0x24b   : > { %12093 = vst [vmem:[#allocation28_spill] sm:$0xff] %v9571_v16  ;;  %v12094_v27 = vmax.f32 %v9312_v46, %v9464_v50  ;;  %v12095_v21 = vmax.f32 %v9332_v63, %v9464_v50  ;;  %v12097_v13 = vmax.f32 %v9314_v7, %v9469_v30  ;;  %v12098_v56 = vmax.f32 %v9338_v24, %v9469_v30 }
 0x24c   : > { %v4639_v63 = vsel %vm1805_vm7, %v4636_v29, %v4638_v33  ;;  %v4816_v26 = vrot.slane %v12091_v52, 4  ;;  %v4818_v9 = vrot.slane %v9549_v42, 4  ;;  %v5117_v41 = vpack.c.bf16 %v4459_v54, %v9553_v39  ;;  %v9624_v42 = vld [vmem:[#allocation2 + $0x240] sm:$0xff] }
 0x24d   : > { %v9585_v11 = vmax.f32 %v12094_v27, %v9569_v49  ;;  %v9593_v14 = vmax.f32 %v12095_v21, %v9569_v49  ;;  %v9601_v62 = vmax.f32 %v12097_v13, %v9575_v44  ;;  %v9609_v40 = vmax.f32 %v12098_v56, %v9575_v44 }
 0x24e   : > { %v4761_v7 = vmax.f32 %v4581_v32, %v4639_v63  ;;  %v3970_v35 = vmax.f32 %v12074_v0, %v12081_v17  ;;  %v4280_v38 = vrot.slane %v9230_v8, 1  ;;  %v4281_v51 = vrot.slane %v9246_v31, 1  ;;  %6788 = vmatmul.mubr.msk.bf16.gmra.mrb[20].mxu1 %vm672_vm2, %v5117_v41  ;;  %v9640_v32 = vld [vmem:[#allocation2 + $0x258] sm:$0xf] }
 0x24f   : > { %12096 = vst [vmem:[#allocation29_spill] sm:$0xff] %v9593_v14  ;;  %12099 = vst [vmem:[#allocation15_spill] sm:$0xff] %v9609_v40  ;;  %v4817_v24 = vsel %vm395_vm0, %v4815_v10, %v4816_v26  ;;  %v4819_v47 = vsel %vm395_vm0, %v4816_v26, %v4818_v9  ;;  %v4460_v52 = vrot.slane %v9230_v8, 2  ;;  %v4461_v29 = vrot.slane %v9246_v31, 2  ;;  %v12102_v9 = vld [vmem:[#allocation32_spill] sm:$0xff] }
 0x250   : > { %v9626_v39 = vmax.f32 %v4760_v20, %v4817_v24  ;;  %v9628_v3 = vmax.f32 %v4761_v7, %v4819_v47  ;;  %v4030_v0 = vmax.f32 %v3970_v35, %v12082_v45  ;;  %v4282_v5 = vsel %vm1075_vm4, %v4280_v38, %v4281_v51 }
 0x251   : > { %v4402_v48 = vmax.f32 %v9230_v8, %v4282_v5  ;;  %v4462_v54 = vsel %vm1440_vm5, %v4460_v52, %v4461_v29  ;;  %v4640_v34 = vrot.slane %v9230_v8, 3  ;;  %v4641_v33 = vrot.slane %v9246_v31, 3 }
 0x252   : > { %12100 = vst [vmem:[#allocation36_spill] sm:$0xff] %v9626_v39  ;;  %12101 = vst [vmem:[#allocation37_spill] sm:$0xff] %v9628_v3  ;;  %v4090_v20 = vmax.f32 %v4030_v0, %v12092_v28  ;;  %v4820_v10 = vrot.slane %v9230_v8, 4  ;;  %v4821_v27 = vrot.slane %v9246_v31, 4  ;;  %v1202_v21 = vrot.slane %v9624_v42, 1 }
 0x253   : > { %v4582_v13 = vmax.f32 %v4402_v48, %v4462_v54  ;;  %v4642_v56 = vsel %vm1805_vm7, %v4640_v34, %v4641_v33  ;;  %v1203_v63 = vrot.slane %v9632_v2, 1  ;;  %v1205_v26 = vrot.slane %v9634_v53, 1 }
 0x254   : > { %v4150_v41 = vmax.f32 %v4090_v20, %v12102_v9  ;;  %v4822_v7 = vsel %vm395_vm0, %v4820_v10, %v4821_v27  ;;  %v1207_v35 = vrot.slane %v9640_v32, 1  ;;  %v1567_v38 = vrot.slane %v9624_v42, 2 }
 0x255   : > { %v4762_v8 = vmax.f32 %v4582_v13, %v4642_v56  ;;  %v1204_v24 = vsel %vm1075_vm4, %v1202_v21, %v1203_v63  ;;  %v1206_v47 = vsel %vm1075_vm4, %v1203_v63, %v1205_v26  ;;  %v1568_v52 = vrot.slane %v9632_v2, 2 }
 0x256   : > { %v4283_v0 = vrot.slane %v4150_v41, 1  ;;  %v4463_v5 = vrot.slane %v4150_v41, 2  ;;  %v4643_v48 = vrot.slane %v4150_v41, 3  ;;  %v4823_v34 = vrot.slane %v4150_v41, 4 }
 0x257   : > { %v9656_v46 = vmax.f32 %v4762_v8, %v4822_v7  ;;  %v1208_v20 = vsel %vm1075_vm4, %v1205_v26, %v1207_v35  ;;  %v1410_v10 = vmax.f32 %v9624_v42, %v1204_v24  ;;  %v1411_v58 = vmax.f32 %v9632_v2, %v1206_v47 }
 0x258   : > { %v4284_v13 = vsel %vm1075_vm4, %v4281_v51, %v4283_v0  ;;  %v4464_v21 = vsel %vm1440_vm5, %v4461_v29, %v4463_v5  ;;  %v4644_v56 = vsel %vm1805_vm7, %v4641_v33, %v4643_v48  ;;  %v4824_v63 = vsel %vm395_vm0, %v4821_v27, %v4823_v34 }
 0x259   : > { %12103 = vst [vmem:[#allocation32_spill] sm:$0xff] %v9656_v46  ;;  %v4403_v43 = vmax.f32 %v9246_v31, %v4284_v13  ;;  %v5118_v22 = vpack.c.bf16 %v4464_v21, %v4462_v54  ;;  %v1412_v41 = vmax.f32 %v9634_v53, %v1208_v20  ;;  %v1569_v7 = vsel %vm1440_vm5, %v1567_v38, %v1568_v52  ;;  %v9683_v13 = vld [vmem:[#allocation2 + $0x260] sm:$0xff] }
 0x25a   : > { %v1570_v26 = vrot.slane %v9634_v53, 2  ;;  %v1572_v35 = vrot.slane %v9640_v32, 2  ;;  %v1775_v8 = vmax.f32 %v1410_v10, %v1569_v7  ;;  %v1932_v51 = vrot.slane %v9624_v42, 3 }
 0x25b   : > { %v4583_v24 = vmax.f32 %v4403_v43, %v4464_v21  ;;  %6791 = vmatprep.mubr.msk.bf16.mxu1 %vm672_vm2, %v5118_v22  ;;  %v1933_v29 = vrot.slane %v9632_v2, 3  ;;  %v1935_v33 = vrot.slane %v9634_v53, 3  ;;  %v1937_v31 = vrot.slane %v9640_v32, 3 }
 0x25c   : > { %v1571_v54 = vsel %vm1440_vm5, %v1568_v52, %v1570_v26  ;;  %v1573_v27 = vsel %vm1440_vm5, %v1570_v26, %v1572_v35  ;;  %v2296_v38 = vrot.slane %v9624_v42, 4  ;;  %v2297_v47 = vrot.slane %v9632_v2, 4  ;;  %v9685_v52 = vld [vmem:[#allocation2 + $0x268] sm:$0xff]  ;;  %v9697_v35 = vld [vmem:[#allocation2 + $0x270] sm:$0xff] }
 0x25d   : > { %v4763_v0 = vmax.f32 %v4583_v24, %v4644_v56  ;;  %v1776_v5 = vmax.f32 %v1411_v58, %v1571_v54  ;;  %v1777_v48 = vmax.f32 %v1412_v41, %v1573_v27  ;;  %v1934_v43 = vsel %vm1805_vm7, %v1932_v51, %v1933_v29  ;;  %v9702_v51 = vld [vmem:[#allocation2 + $0x278] sm:$0xf] }
 0x25e   : > { %v1936_v22 = vsel %vm1805_vm7, %v1933_v29, %v1935_v33  ;;  %v1938_v34 = vsel %vm1805_vm7, %v1935_v33, %v1937_v31  ;;  %v2140_v20 = vmax.f32 %v1775_v8, %v1934_v43  ;;  %v2298_v10 = vsel %vm395_vm0, %v2296_v38, %v2297_v47 }
 0x25f   : > { %v9687_v21 = vmax.f32 %v4763_v0, %v4824_v63  ;;  %v2141_v42 = vmax.f32 %v1776_v5, %v1936_v22  ;;  %v2142_v2 = vmax.f32 %v1777_v48, %v1938_v34  ;;  %v2299_v58 = vrot.slane %v9634_v53, 4 }
 0x260   : > { %v2301_v56 = vrot.slane %v9640_v32, 4  ;;  %v9691_v41 = vmax.f32 %v2140_v20, %v2298_v10  ;;  %v2576_v7 = vmax.f32 %v9158_v4, %v9263_v60  ;;  %v2577_v26 = vmax.f32 %v9160_v19, %v9266_v55 }
 0x261   : > { %12104 = vst [vmem:[#allocation38_spill] sm:$0xff] %v9687_v21  ;;  %v2300_v8 = vsel %vm395_vm0, %v2297_v47, %v2299_v58  ;;  %v2578_v63 = vmax.f32 %v9164_v37, %v9268_v6  ;;  %v1209_v53 = vrot.slane %v9683_v13, 1  ;;  %v1210_v32 = vrot.slane %v9685_v52, 1 }
 0x262   : > { %v2302_v24 = vsel %vm395_vm0, %v2299_v58, %v2301_v56  ;;  %v9707_v29 = vmax.f32 %v2141_v42, %v2300_v8  ;;  %v2648_v4 = vmax.f32 %v2576_v7, %v9411_v25  ;;  %v2649_v19 = vmax.f32 %v2577_v26, %v9427_v15 }
 0x263   : > { %v9711_v33 = vmax.f32 %v2142_v2, %v2302_v24  ;;  %v2650_v31 = vmax.f32 %v2578_v63, %v9431_v57  ;;  %v1211_v37 = vsel %vm1075_vm4, %v1209_v53, %v1210_v32  ;;  %v1212_v54 = vrot.slane %v9697_v35, 1 }
 0x264   : > { %v2720_v27 = vmax.f32 %v2648_v4, %v9519_v1  ;;  %v2721_v38 = vmax.f32 %v2649_v19, %v9526_v61  ;;  %v1214_v47 = vrot.slane %v9702_v51, 1  ;;  %v1413_v0 = vmax.f32 %v9683_v13, %v1211_v37 }
 0x265   : > { %v2722_v5 = vmax.f32 %v2650_v31, %v9530_v18  ;;  %v1213_v48 = vsel %vm1075_vm4, %v1210_v32, %v1212_v54  ;;  %v1574_v43 = vrot.slane %v9683_v13, 2  ;;  %v1575_v22 = vrot.slane %v9685_v52, 2 }
 0x266   : > { %v2792_v34 = vmax.f32 %v2720_v27, %v9691_v41  ;;  %v2793_v20 = vmax.f32 %v2721_v38, %v9707_v29  ;;  %v1215_v10 = vsel %vm1075_vm4, %v1212_v54, %v1214_v47  ;;  %v1414_v42 = vmax.f32 %v9685_v52, %v1213_v48 }
 0x267   : > { %v2794_v2 = vmax.f32 %v2722_v5, %v9711_v33  ;;  %v1415_v58 = vmax.f32 %v9697_v35, %v1215_v10  ;;  %v1576_v56 = vsel %vm1440_vm5, %v1574_v43, %v1575_v22  ;;  %v1577_v7 = vrot.slane %v9697_v35, 2 }
 0x268   : > { %v2964_v26 = vrot.slane %v2792_v34, 1  ;;  %v2965_v8 = vrot.slane %v2793_v20, 1  ;;  %v3228_v63 = vrot.slane %v2792_v34, 2  ;;  %v3229_v53 = vrot.slane %v2793_v20, 2 }
 0x269   : > { %v2967_v32 = vrot.slane %v2794_v2, 1  ;;  %v3231_v24 = vrot.slane %v2794_v2, 2  ;;  %v3492_v4 = vrot.slane %v2792_v34, 3  ;;  %v3493_v19 = vrot.slane %v2793_v20, 3 }
 0x26a   : > { %v2966_v31 = vsel %vm1075_vm4, %v2964_v26, %v2965_v8  ;;  %v3230_v37 = vsel %vm1440_vm5, %v3228_v63, %v3229_v53  ;;  %v3495_v54 = vrot.slane %v2794_v2, 3  ;;  %v3756_v27 = vrot.slane %v2792_v34, 4 }
 0x26b   : > { %v2968_v38 = vsel %vm1075_vm4, %v2965_v8, %v2967_v32  ;;  %v3128_v47 = vmax.f32 %v2792_v34, %v2966_v31  ;;  %v3130_v5 = vmax.f32 %v2794_v2, %v2967_v32  ;;  %v3232_v48 = vsel %vm1440_vm5, %v3229_v53, %v3231_v24 }
 0x26c   : > { %v3129_v43 = vmax.f32 %v2793_v20, %v2968_v38  ;;  %v3494_v10 = vsel %vm1805_vm7, %v3492_v4, %v3493_v19  ;;  %v3496_v21 = vsel %vm1805_vm7, %v3493_v19, %v3495_v54  ;;  %v3757_v46 = vrot.slane %v2793_v20, 4 }
 0x26d   : > { %v3392_v3 = vmax.f32 %v3128_v47, %v3230_v37  ;;  %v3394_v39 = vmax.f32 %v3130_v5, %v3231_v24  ;;  %v3759_v16 = vrot.slane %v2794_v2, 4  ;;  %v1578_v26 = vsel %vm1440_vm5, %v1575_v22, %v1577_v7 }
 0x26e   : > { %v3393_v63 = vmax.f32 %v3129_v43, %v3232_v48  ;;  %v3758_v40 = vsel %vm395_vm0, %v3756_v27, %v3757_v46  ;;  %v1579_v8 = vrot.slane %v9702_v51, 2  ;;  %v1778_v34 = vmax.f32 %v1413_v0, %v1576_v56 }
 0x26f   : > { %v3656_v32 = vmax.f32 %v3392_v3, %v3494_v10  ;;  %v3658_v31 = vmax.f32 %v3394_v39, %v3495_v54  ;;  %v3760_v53 = vsel %vm395_vm0, %v3757_v46, %v3759_v16  ;;  %v1779_v38 = vmax.f32 %v1414_v42, %v1578_v26 }
 0x270   : > { %v3657_v4 = vmax.f32 %v3393_v63, %v3496_v21  ;;  %v5108_v14 = vpack.c.bf16 %v3760_v53, %v3758_v40  ;;  %v1580_v20 = vsel %vm1440_vm5, %v1577_v7, %v1579_v8  ;;  %v1939_v24 = vrot.slane %v9683_v13, 3 }
 0x271   : > { %v9744_v2 = vmax.f32 %v3656_v32, %v3758_v40  ;;  %v9746_v22 = vmax.f32 %v3658_v31, %v3759_v16  ;;  %v1780_v19 = vmax.f32 %v1415_v58, %v1580_v20  ;;  %v1940_v37 = vrot.slane %v9685_v52, 3 }
 0x272   : > { %v9749_v27 = vmax.f32 %v3657_v4, %v3760_v53  ;;  %6735 = vmatprep.mubr.msk.bf16.mxu0 %vm672_vm2, %v5108_v14  ;;  %v1942_v46 = vrot.slane %v9697_v35, 3  ;;  %v1944_v39 = vrot.slane %v9702_v51, 3  ;;  %v2303_v3 = vrot.slane %v9683_v13, 4 }
 0x273   : > { %12105 = vst [vmem:[#allocation39_spill] sm:$0xff] %v9746_v22  ;;  %v12106_v16 = vmax.f32 %v9464_v50, %v9569_v49  ;;  %v12107_v14 = vmax.f32 %v9481_v23, %v9569_v49  ;;  %v12108_v58 = vmax.f32 %v9469_v30, %v9575_v44  ;;  %v12109_v7 = vmax.f32 %v9497_v36, %v9575_v44 }
 0x274   : > { %v1941_v23 = vsel %vm1805_vm7, %v1939_v24, %v1940_v37  ;;  %v1943_v47 = vsel %vm1805_vm7, %v1940_v37, %v1942_v46  ;;  %v1945_v5 = vsel %vm1805_vm7, %v1942_v46, %v1944_v39  ;;  %v2304_v48 = vrot.slane %v9685_v52, 4  ;;  %v12112_v24 = vld [vmem:[#allocation22_spill] sm:$0xff] }
 0x275   : > { %v9761_v40 = vmax.f32 %v12106_v16, %v9744_v2  ;;  %v9769_v42 = vmax.f32 %v12107_v14, %v9744_v2  ;;  %v9777_v56 = vmax.f32 %v12108_v58, %v9749_v27  ;;  %v9785_v54 = vmax.f32 %v12109_v7, %v9749_v27  ;;  %v12113_v37 = vld [vmem:[#allocation18_spill] sm:$0xff] }
 0x276   : > { %v2143_v30 = vmax.f32 %v1778_v34, %v1941_v23  ;;  %v2144_v43 = vmax.f32 %v1779_v38, %v1943_v47  ;;  %v2145_v10 = vmax.f32 %v1780_v19, %v1945_v5  ;;  %v2306_v26 = vrot.slane %v9697_v35, 4 }
 0x277   : > { %v2305_v63 = vsel %vm395_vm0, %v2303_v3, %v2304_v48  ;;  %v2308_v8 = vrot.slane %v9702_v51, 4  ;;  %v2579_v36 = vmax.f32 %v9263_v60, %v9411_v25  ;;  %v2580_v32 = vmax.f32 %v9266_v55, %v9427_v15 }
 0x278   : > { %v2307_v31 = vsel %vm395_vm0, %v2304_v48, %v2306_v26  ;;  %v9799_v53 = vmax.f32 %v2143_v30, %v2305_v63  ;;  %v2581_v52 = vmax.f32 %v9268_v6, %v9431_v57  ;;  %v3973_v35 = vmax.f32 %v12081_v17, %v12082_v45  ;;  %v12114_v30 = vld [vmem:[#allocation34_spill] sm:$0xff] }
 0x279   : > { %v2309_v34 = vsel %vm395_vm0, %v2306_v26, %v2308_v8  ;;  %v9806_v38 = vmax.f32 %v2144_v43, %v2307_v31  ;;  %v2651_v51 = vmax.f32 %v2579_v36, %v9519_v1  ;;  %v2652_v60 = vmax.f32 %v2580_v32, %v9526_v61 }
 0x27a   : > { %v9810_v4 = vmax.f32 %v2145_v10, %v2309_v34  ;;  %v2653_v55 = vmax.f32 %v2581_v52, %v9530_v18  ;;  %v4033_v20 = vmax.f32 %v3973_v35, %v12092_v28  ;;  %v4285_v19 = vrot.slane %v12112_v24, 1 }
 0x27b   : > { %12110 = vst [vmem:[#allocation40_spill] sm:$0xff] %v9806_v38  ;;  %v2723_v6 = vmax.f32 %v2651_v51, %v9691_v41  ;;  %v2724_v17 = vmax.f32 %v2652_v60, %v9707_v29  ;;  %v4286_v46 = vrot.slane %v12113_v37, 1  ;;  %v4465_v39 = vrot.slane %v12112_v24, 2 }
 0x27c   : > { %12111 = vst [vmem:[#allocation41_spill] sm:$0xff] %v9810_v4  ;;  %v2725_v3 = vmax.f32 %v2653_v55, %v9711_v33  ;;  %v4093_v16 = vmax.f32 %v4033_v20, %v12102_v9  ;;  %v4466_v14 = vrot.slane %v12113_v37, 2  ;;  %v4645_v58 = vrot.slane %v12112_v24, 3 }
 0x27d   : > { %v2795_v7 = vmax.f32 %v2723_v6, %v9799_v53  ;;  %v2796_v23 = vmax.f32 %v2724_v17, %v9806_v38  ;;  %v4287_v47 = vsel %vm1075_vm4, %v4285_v19, %v4286_v46  ;;  %v4646_v5 = vrot.slane %v12113_v37, 3 }
 0x27e   : > { %v2797_v48 = vmax.f32 %v2725_v3, %v9810_v4  ;;  %v9829_v43 = vmax.f32 %v4093_v16, %v12114_v30  ;;  %v4404_v10 = vmax.f32 %v12112_v24, %v4287_v47  ;;  %v9833_v26 = vsel %vm1440_vm5, %v4465_v39, %v4466_v14 }
 0x27f   : > { %v2969_v63 = vrot.slane %v2795_v7, 1  ;;  %v2970_v8 = vrot.slane %v2796_v23, 1  ;;  %v3233_v36 = vrot.slane %v2795_v7, 2  ;;  %v3234_v32 = vrot.slane %v2796_v23, 2 }
 0x280   : > { %v2972_v31 = vrot.slane %v2797_v48, 1  ;;  %v3236_v52 = vrot.slane %v2797_v48, 2  ;;  %v3497_v35 = vrot.slane %v2795_v7, 3  ;;  %v3498_v34 = vrot.slane %v2796_v23, 3 }
 0x281   : > { %v2971_v51 = vsel %vm1075_vm4, %v2969_v63, %v2970_v8  ;;  %v3235_v60 = vsel %vm1440_vm5, %v3233_v36, %v3234_v32  ;;  %v3500_v55 = vrot.slane %v2797_v48, 3  ;;  %v3761_v20 = vrot.slane %v2795_v7, 4 }
 0x282   : > { %v2973_v19 = vsel %vm1075_vm4, %v2970_v8, %v2972_v31  ;;  %v3131_v6 = vmax.f32 %v2795_v7, %v2971_v51  ;;  %v3133_v17 = vmax.f32 %v2797_v48, %v2972_v31  ;;  %v3237_v39 = vsel %vm1440_vm5, %v3234_v32, %v3236_v52 }
 0x283   : > { %v3132_v3 = vmax.f32 %v2796_v23, %v2973_v19  ;;  %v3499_v16 = vsel %vm1805_vm7, %v3497_v35, %v3498_v34  ;;  %v3501_v47 = vsel %vm1805_vm7, %v3498_v34, %v3500_v55  ;;  %v3762_v50 = vrot.slane %v2796_v23, 4 }
 0x284   : > { %v3395_v13 = vmax.f32 %v3131_v6, %v3235_v60  ;;  %v3397_v0 = vmax.f32 %v3133_v17, %v3236_v52  ;;  %v3764_v21 = vrot.slane %v2797_v48, 4  ;;  %v4288_v63 = vrot.slane %v9829_v43, 1 }
 0x285   : > { %v3396_v36 = vmax.f32 %v3132_v3, %v3237_v39  ;;  %v3763_v22 = vsel %vm395_vm0, %v3761_v20, %v3762_v50  ;;  %v4468_v8 = vrot.slane %v9829_v43, 2  ;;  %v4584_v7 = vmax.f32 %v4404_v10, %v9833_v26 }
 0x286   : > { %v3659_v31 = vmax.f32 %v3395_v13, %v3499_v16  ;;  %v3661_v32 = vmax.f32 %v3397_v0, %v3500_v55  ;;  %v3765_v51 = vsel %vm395_vm0, %v3762_v50, %v3764_v21  ;;  %v4289_v35 = vsel %vm1075_vm4, %v4286_v46, %v4288_v63 }
 0x287   : > { %v3660_v34 = vmax.f32 %v3396_v36, %v3501_v47  ;;  %v5109_v23 = vpack.c.bf16 %v3765_v51, %v3763_v22  ;;  %v4405_v52 = vmax.f32 %v12113_v37, %v4289_v35  ;;  %v4469_v48 = vsel %vm1440_vm5, %v4466_v14, %v4468_v8 }
 0x288   : > { %v9849_v60 = vmax.f32 %v3659_v31, %v3763_v22  ;;  %v9851_v19 = vmax.f32 %v3661_v32, %v3764_v21  ;;  %v4647_v20 = vsel %vm1805_vm7, %v4645_v58, %v4646_v5  ;;  %v4648_v10 = vrot.slane %v9829_v43, 3 }
 0x289   : > { %v9855_v13 = vmax.f32 %v3660_v34, %v3765_v51  ;;  %6736 = vmatmul.mubr.msk.bf16.gmra.mrb[52].mxu0 %vm672_vm2, %v5109_v23  ;;  %v4585_v0 = vmax.f32 %v4405_v52, %v4469_v48  ;;  %v4764_v50 = vmax.f32 %v4584_v7, %v4647_v20  ;;  %v4825_v46 = vrot.slane %v12112_v24, 4  ;;  %v9912_v34 = vld [vmem:[#allocation2 + $0x288] sm:$0xff]  ;;  %v9914_v23 = vld [vmem:[#allocation2 + $0x290] sm:$0xff] }
 0x28a   : > { %12115 = vst [vmem:[#allocation22_spill] sm:$0xff] %v9851_v19  ;;  %v12116_v22 = vmax.f32 %v9569_v49, %v9744_v2  ;;  %v12117_v58 = vmax.f32 %v9585_v11, %v9744_v2  ;;  %v12119_v17 = vmax.f32 %v9575_v44, %v9749_v27  ;;  %v12120_v3 = vmax.f32 %v9601_v62, %v9749_v27 }
 0x28b   : > { %v4649_v11 = vsel %vm1805_vm7, %v4646_v5, %v4648_v10  ;;  %v4826_v47 = vrot.slane %v12113_v37, 4  ;;  %v4828_v63 = vrot.slane %v9829_v43, 4  ;;  %v5119_v36 = vpack.c.bf16 %v4469_v48, %v9833_v26  ;;  %v9904_v43 = vld [vmem:[#allocation2 + $0x280] sm:$0xff] }
 0x28c   : > { %v9865_v21 = vmax.f32 %v12116_v22, %v9849_v60  ;;  %v9873_v6 = vmax.f32 %v12117_v58, %v9849_v60  ;;  %v9881_v39 = vmax.f32 %v12119_v17, %v9855_v13  ;;  %v9889_v16 = vmax.f32 %v12120_v3, %v9855_v13 }
 0x28d   : > { %v4765_v44 = vmax.f32 %v4585_v0, %v4649_v11  ;;  %v3976_v8 = vmax.f32 %v12082_v45, %v12092_v28  ;;  %v4290_v7 = vrot.slane %v9489_v59, 1  ;;  %v4291_v31 = vrot.slane %v9505_v12, 1  ;;  %6792 = vmatmul.mubr.msk.bf16.gmra.mrb[24].mxu1 %vm672_vm2, %v5119_v36  ;;  %v9920_v0 = vld [vmem:[#allocation2 + $0x298] sm:$0xf] }
 0x28e   : > { %12118 = vst [vmem:[#allocation18_spill] sm:$0xff] %v9873_v6  ;;  %12121 = vst [vmem:[#allocation42_spill] sm:$0xff] %v9889_v16  ;;  %v4827_v62 = vsel %vm395_vm0, %v4825_v46, %v4826_v47  ;;  %v4829_v32 = vsel %vm395_vm0, %v4826_v47, %v4828_v63  ;;  %v4470_v37 = vrot.slane %v9489_v59, 2  ;;  %v4471_v5 = vrot.slane %v9505_v12, 2  ;;  %v12124_v63 = vld [vmem:[#allocation35_spill] sm:$0xff] }
 0x28f   : > { %v9906_v26 = vmax.f32 %v4764_v50, %v4827_v62  ;;  %v9908_v51 = vmax.f32 %v4765_v44, %v4829_v32  ;;  %v4036_v45 = vmax.f32 %v3976_v8, %v12102_v9  ;;  %v4292_v35 = vsel %vm1075_vm4, %v4290_v7, %v4291_v31 }
 0x290   : > { %v4406_v52 = vmax.f32 %v9489_v59, %v4292_v35  ;;  %v4472_v48 = vsel %vm1440_vm5, %v4470_v37, %v4471_v5  ;;  %v4650_v20 = vrot.slane %v9489_v59, 3  ;;  %v4651_v10 = vrot.slane %v9505_v12, 3 }
 0x291   : > { %12122 = vst [vmem:[#allocation43_spill] sm:$0xff] %v9906_v26  ;;  %12123 = vst [vmem:[#allocation44_spill] sm:$0xff] %v9908_v51  ;;  %v4096_v50 = vmax.f32 %v4036_v45, %v12114_v30  ;;  %v4830_v46 = vrot.slane %v9489_v59, 4  ;;  %v4831_v22 = vrot.slane %v9505_v12, 4  ;;  %v1216_v58 = vrot.slane %v9904_v43, 1 }
 0x292   : > { %v4586_v17 = vmax.f32 %v4406_v52, %v4472_v48  ;;  %v4652_v3 = vsel %vm1805_vm7, %v4650_v20, %v4651_v10  ;;  %v1217_v11 = vrot.slane %v9912_v34, 1  ;;  %v1219_v47 = vrot.slane %v9914_v23, 1 }
 0x293   : > { %v4156_v36 = vmax.f32 %v4096_v50, %v12124_v63  ;;  %v4832_v44 = vsel %vm395_vm0, %v4830_v46, %v4831_v22  ;;  %v1221_v8 = vrot.slane %v9920_v0, 1  ;;  %v1581_v7 = vrot.slane %v9904_v43, 2 }
 0x294   : > { %v4766_v59 = vmax.f32 %v4586_v17, %v4652_v3  ;;  %v1218_v62 = vsel %vm1075_vm4, %v1216_v58, %v1217_v11  ;;  %v1220_v32 = vsel %vm1075_vm4, %v1217_v11, %v1219_v47  ;;  %v1582_v37 = vrot.slane %v9912_v34, 2 }
 0x295   : > { %v4293_v45 = vrot.slane %v4156_v36, 1  ;;  %v4473_v35 = vrot.slane %v4156_v36, 2  ;;  %v4653_v52 = vrot.slane %v4156_v36, 3  ;;  %v4833_v20 = vrot.slane %v4156_v36, 4 }
 0x296   : > { %v9936_v49 = vmax.f32 %v4766_v59, %v4832_v44  ;;  %v1222_v50 = vsel %vm1075_vm4, %v1219_v47, %v1221_v8  ;;  %v1416_v46 = vmax.f32 %v9904_v43, %v1218_v62  ;;  %v1417_v24 = vmax.f32 %v9912_v34, %v1220_v32 }
 0x297   : > { %v4294_v17 = vsel %vm1075_vm4, %v4291_v31, %v4293_v45  ;;  %v4474_v58 = vsel %vm1440_vm5, %v4471_v5, %v4473_v35  ;;  %v4654_v3 = vsel %vm1805_vm7, %v4651_v10, %v4653_v52  ;;  %v4834_v11 = vsel %vm395_vm0, %v4831_v22, %v4833_v20 }
 0x298   : > { %12125 = vst [vmem:[#allocation45_spill] sm:$0xff] %v9936_v49  ;;  %v4407_v14 = vmax.f32 %v9505_v12, %v4294_v17  ;;  %v5120_v55 = vpack.c.bf16 %v4474_v58, %v4472_v48  ;;  %v1418_v36 = vmax.f32 %v9914_v23, %v1222_v50  ;;  %v1583_v44 = vsel %vm1440_vm5, %v1581_v7, %v1582_v37  ;;  %v9963_v17 = vld [vmem:[#allocation2 + $0x2a0] sm:$0xff] }
 0x299   : > { %v1584_v47 = vrot.slane %v9914_v23, 2  ;;  %v1586_v8 = vrot.slane %v9920_v0, 2  ;;  %v1781_v59 = vmax.f32 %v1416_v46, %v1583_v44  ;;  %v1946_v31 = vrot.slane %v9904_v43, 3 }
 0x29a   : > { %v4587_v62 = vmax.f32 %v4407_v14, %v4474_v58  ;;  %6795 = vmatprep.mubr.msk.bf16.mxu1 %vm672_vm2, %v5120_v55  ;;  %v1947_v5 = vrot.slane %v9912_v34, 3  ;;  %v1949_v10 = vrot.slane %v9914_v23, 3  ;;  %v1951_v12 = vrot.slane %v9920_v0, 3 }
 0x29b   : > { %v1585_v48 = vsel %vm1440_vm5, %v1582_v37, %v1584_v47  ;;  %v1587_v22 = vsel %vm1440_vm5, %v1584_v47, %v1586_v8  ;;  %v2310_v7 = vrot.slane %v9904_v43, 4  ;;  %v2311_v32 = vrot.slane %v9912_v34, 4  ;;  %v9965_v37 = vld [vmem:[#allocation2 + $0x2a8] sm:$0xff]  ;;  %v9977_v8 = vld [vmem:[#allocation2 + $0x2b0] sm:$0xff] }
 0x29c   : > { %v4767_v45 = vmax.f32 %v4587_v62, %v4654_v3  ;;  %v1782_v35 = vmax.f32 %v1417_v24, %v1585_v48  ;;  %v1783_v52 = vmax.f32 %v1418_v36, %v1587_v22  ;;  %v1948_v14 = vsel %vm1805_vm7, %v1946_v31, %v1947_v5  ;;  %v9982_v31 = vld [vmem:[#allocation2 + $0x2b8] sm:$0xf] }
 0x29d   : > { %v1950_v55 = vsel %vm1805_vm7, %v1947_v5, %v1949_v10  ;;  %v1952_v20 = vsel %vm1805_vm7, %v1949_v10, %v1951_v12  ;;  %v2146_v50 = vmax.f32 %v1781_v59, %v1948_v14  ;;  %v2312_v46 = vsel %vm395_vm0, %v2310_v7, %v2311_v32 }
 0x29e   : > { %v9967_v58 = vmax.f32 %v4767_v45, %v4834_v11  ;;  %v2147_v43 = vmax.f32 %v1782_v35, %v1950_v55  ;;  %v2148_v34 = vmax.f32 %v1783_v52, %v1952_v20  ;;  %v2313_v24 = vrot.slane %v9914_v23, 4 }
 0x29f   : > { %v2315_v3 = vrot.slane %v9920_v0, 4  ;;  %v9971_v36 = vmax.f32 %v2146_v50, %v2312_v46  ;;  %v2582_v44 = vmax.f32 %v9411_v25, %v9519_v1  ;;  %v2583_v47 = vmax.f32 %v9427_v15, %v9526_v61 }
 0x2a0   : > { %12126 = vst [vmem:[#allocation46_spill] sm:$0xff] %v9967_v58  ;;  %v2314_v59 = vsel %vm395_vm0, %v2311_v32, %v2313_v24  ;;  %v2584_v11 = vmax.f32 %v9431_v57, %v9530_v18  ;;  %v1223_v23 = vrot.slane %v9963_v17, 1  ;;  %v1224_v0 = vrot.slane %v9965_v37, 1 }
 0x2a1   : > { %v2316_v62 = vsel %vm395_vm0, %v2313_v24, %v2315_v3  ;;  %v9987_v5 = vmax.f32 %v2147_v43, %v2314_v59  ;;  %v2654_v25 = vmax.f32 %v2582_v44, %v9691_v41  ;;  %v2655_v15 = vmax.f32 %v2583_v47, %v9707_v29 }
 0x2a2   : > { %v9991_v10 = vmax.f32 %v2148_v34, %v2316_v62  ;;  %v2656_v12 = vmax.f32 %v2584_v11, %v9711_v33  ;;  %v1225_v57 = vsel %vm1075_vm4, %v1223_v23, %v1224_v0  ;;  %v1226_v48 = vrot.slane %v9977_v8, 1 }
 0x2a3   : > { %12127 = vst [vmem:[#allocation47_spill] sm:$0xff] %v9987_v5  ;;  %v2726_v22 = vmax.f32 %v2654_v25, %v9799_v53  ;;  %v2727_v7 = vmax.f32 %v2655_v15, %v9806_v38  ;;  %v1228_v32 = vrot.slane %v9982_v31, 1  ;;  %v1419_v45 = vmax.f32 %v9963_v17, %v1225_v57 }
 0x2a4   : > { %12128 = vst [vmem:[#allocation48_spill] sm:$0xff] %v9991_v10  ;;  %v2728_v35 = vmax.f32 %v2656_v12, %v9810_v4  ;;  %v1227_v52 = vsel %vm1075_vm4, %v1224_v0, %v1226_v48  ;;  %v1588_v14 = vrot.slane %v9963_v17, 2  ;;  %v1589_v55 = vrot.slane %v9965_v37, 2 }
 0x2a5   : > { %v2798_v20 = vmax.f32 %v2726_v22, %v9971_v36  ;;  %v2799_v50 = vmax.f32 %v2727_v7, %v9987_v5  ;;  %v1229_v46 = vsel %vm1075_vm4, %v1226_v48, %v1228_v32  ;;  %v1420_v43 = vmax.f32 %v9965_v37, %v1227_v52 }
 0x2a6   : > { %v2800_v34 = vmax.f32 %v2728_v35, %v9991_v10  ;;  %v1421_v24 = vmax.f32 %v9977_v8, %v1229_v46  ;;  %v1590_v3 = vsel %vm1440_vm5, %v1588_v14, %v1589_v55  ;;  %v1591_v44 = vrot.slane %v9977_v8, 2 }
 0x2a7   : > { %v2974_v47 = vrot.slane %v2798_v20, 1  ;;  %v2975_v59 = vrot.slane %v2799_v50, 1  ;;  %v3238_v11 = vrot.slane %v2798_v20, 2  ;;  %v3239_v23 = vrot.slane %v2799_v50, 2 }
 0x2a8   : > { %v2977_v0 = vrot.slane %v2800_v34, 1  ;;  %v3241_v62 = vrot.slane %v2800_v34, 2  ;;  %v3502_v25 = vrot.slane %v2798_v20, 3  ;;  %v3503_v15 = vrot.slane %v2799_v50, 3 }
 0x2a9   : > { %v2976_v12 = vsel %vm1075_vm4, %v2974_v47, %v2975_v59  ;;  %v3240_v57 = vsel %vm1440_vm5, %v3238_v11, %v3239_v23  ;;  %v3505_v48 = vrot.slane %v2800_v34, 3  ;;  %v3766_v22 = vrot.slane %v2798_v20, 4 }
 0x2aa   : > { %v2978_v7 = vsel %vm1075_vm4, %v2975_v59, %v2977_v0  ;;  %v3134_v32 = vmax.f32 %v2798_v20, %v2976_v12  ;;  %v3136_v35 = vmax.f32 %v2800_v34, %v2977_v0  ;;  %v3242_v52 = vsel %vm1440_vm5, %v3239_v23, %v3241_v62 }
 0x2ab   : > { %v3135_v14 = vmax.f32 %v2799_v50, %v2978_v7  ;;  %v3504_v46 = vsel %vm1805_vm7, %v3502_v25, %v3503_v15  ;;  %v3506_v58 = vsel %vm1805_vm7, %v3503_v15, %v3505_v48  ;;  %v3767_v49 = vrot.slane %v2799_v50, 4 }
 0x2ac   : > { %v3398_v51 = vmax.f32 %v3134_v32, %v3240_v57  ;;  %v3400_v26 = vmax.f32 %v3136_v35, %v3241_v62  ;;  %v3769_v19 = vrot.slane %v2800_v34, 4  ;;  %v1592_v47 = vsel %vm1440_vm5, %v1589_v55, %v1591_v44 }
 0x2ad   : > { %v3399_v11 = vmax.f32 %v3135_v14, %v3242_v52  ;;  %v3768_v16 = vsel %vm395_vm0, %v3766_v22, %v3767_v49  ;;  %v1593_v59 = vrot.slane %v9982_v31, 2  ;;  %v1784_v20 = vmax.f32 %v1419_v45, %v1590_v3 }
 0x2ae   : > { %v3662_v0 = vmax.f32 %v3398_v51, %v3504_v46  ;;  %v3664_v12 = vmax.f32 %v3400_v26, %v3505_v48  ;;  %v3770_v23 = vsel %vm395_vm0, %v3767_v49, %v3769_v19  ;;  %v1785_v7 = vmax.f32 %v1420_v43, %v1592_v47 }
 0x2af   : > { %v3663_v25 = vmax.f32 %v3399_v11, %v3506_v58  ;;  %v5110_v6 = vpack.c.bf16 %v3770_v23, %v3768_v16  ;;  %v1594_v50 = vsel %vm1440_vm5, %v1591_v44, %v1593_v59  ;;  %v1953_v62 = vrot.slane %v9963_v17, 3 }
 0x2b0   : > { %v10024_v34 = vmax.f32 %v3662_v0, %v3768_v16  ;;  %v10026_v55 = vmax.f32 %v3664_v12, %v3769_v19  ;;  %v1786_v15 = vmax.f32 %v1421_v24, %v1594_v50  ;;  %v1954_v57 = vrot.slane %v9965_v37, 3 }
 0x2b1   : > { %v10029_v22 = vmax.f32 %v3663_v25, %v3770_v23  ;;  %6739 = vmatprep.mubr.msk.bf16.mxu0 %vm672_vm2, %v5110_v6  ;;  %v1956_v49 = vrot.slane %v9977_v8, 3  ;;  %v1958_v26 = vrot.slane %v9982_v31, 3  ;;  %v2317_v51 = vrot.slane %v9963_v17, 4  ;;  %v10080_v23 = vld [vmem:[#allocation2 + $0x2c8] sm:$0xff] }
 0x2b2   : > { %12129 = vst [vmem:[#allocation49_spill] sm:$0xff] %v10026_v55  ;;  %v12130_v19 = vmax.f32 %v9744_v2, %v9849_v60  ;;  %v12131_v6 = vmax.f32 %v9761_v40, %v9849_v60  ;;  %v12133_v24 = vmax.f32 %v9749_v27, %v9855_v13  ;;  %v12134_v44 = vmax.f32 %v9777_v56, %v9855_v13  ;;  %v10071_v27 = vld [vmem:[#allocation2 + $0x2c0] sm:$0xff] }
 0x2b3   : > { %v1955_v40 = vsel %vm1805_vm7, %v1953_v62, %v1954_v57  ;;  %v1957_v32 = vsel %vm1805_vm7, %v1954_v57, %v1956_v49  ;;  %v1959_v35 = vsel %vm1805_vm7, %v1956_v49, %v1958_v26  ;;  %v2318_v52 = vrot.slane %v9965_v37, 4  ;;  %v10095_v62 = vld [vmem:[#allocation2 + $0x2d8] sm:$0xf] }
 0x2b4   : > { %v10041_v16 = vmax.f32 %v12130_v19, %v10024_v34  ;;  %v10049_v43 = vmax.f32 %v12131_v6, %v10024_v34  ;;  %v10057_v3 = vmax.f32 %v12133_v24, %v10029_v22  ;;  %v10065_v48 = vmax.f32 %v12134_v44, %v10029_v22 }
 0x2b5   : > { %v2149_v14 = vmax.f32 %v1784_v20, %v1955_v40  ;;  %v2150_v46 = vmax.f32 %v1785_v7, %v1957_v32  ;;  %v2151_v47 = vmax.f32 %v1786_v15, %v1959_v35  ;;  %v2320_v11 = vrot.slane %v9977_v8, 4  ;;  %v10087_v8 = vld [vmem:[#allocation2 + $0x2d0] sm:$0xff] }
 0x2b6   : > { %12132 = vst [vmem:[#allocation50_spill] sm:$0xff] %v10049_v43  ;;  %12135 = vst [vmem:[#allocation51_spill] sm:$0xff] %v10065_v48  ;;  %v2319_v59 = vsel %vm395_vm0, %v2317_v51, %v2318_v52  ;;  %v2322_v56 = vrot.slane %v9982_v31, 4  ;;  %v2585_v0 = vmax.f32 %v9519_v1, %v9691_v41  ;;  %v2586_v12 = vmax.f32 %v9526_v61, %v9707_v29 }
 0x2b7   : > { %v2321_v37 = vsel %vm395_vm0, %v2318_v52, %v2320_v11  ;;  %v10083_v25 = vmax.f32 %v2149_v14, %v2319_v59  ;;  %v2587_v20 = vmax.f32 %v9530_v18, %v9711_v33  ;;  %v1230_v7 = vrot.slane %v10071_v27, 1 }
 0x2b8   : > { %v2323_v31 = vsel %vm395_vm0, %v2320_v11, %v2322_v56  ;;  %v10091_v50 = vmax.f32 %v2150_v46, %v2321_v37  ;;  %v2657_v1 = vmax.f32 %v2585_v0, %v9799_v53  ;;  %v2658_v61 = vmax.f32 %v2586_v12, %v9806_v38 }
 0x2b9   : > { %12136 = vst [vmem:[#allocation52_spill] sm:$0xff] %v10083_v25  ;;  %v10097_v15 = vmax.f32 %v2151_v47, %v2323_v31  ;;  %v2659_v18 = vmax.f32 %v2587_v20, %v9810_v4  ;;  %v1231_v49 = vrot.slane %v10080_v23, 1  ;;  %v1233_v6 = vrot.slane %v10087_v8, 1 }
 0x2ba   : > { %12137 = vst [vmem:[#allocation53_spill] sm:$0xff] %v10091_v50  ;;  %v2729_v51 = vmax.f32 %v2657_v1, %v9971_v36  ;;  %v2730_v19 = vmax.f32 %v2658_v61, %v9987_v5  ;;  %v1235_v32 = vrot.slane %v10095_v62, 1  ;;  %v1595_v56 = vrot.slane %v10071_v27, 2 }
 0x2bb   : > { %12138 = vst [vmem:[#allocation54_spill] sm:$0xff] %v10097_v15  ;;  %v2731_v44 = vmax.f32 %v2659_v18, %v9991_v10  ;;  %v1232_v40 = vsel %vm1075_vm4, %v1230_v7, %v1231_v49  ;;  %v1234_v14 = vsel %vm1075_vm4, %v1231_v49, %v1233_v6 }
 0x2bc   : > { %v2801_v35 = vmax.f32 %v2729_v51, %v10083_v25  ;;  %v2802_v52 = vmax.f32 %v2730_v19, %v10091_v50  ;;  %v1422_v46 = vmax.f32 %v10071_v27, %v1232_v40  ;;  %v1236_v11 = vsel %vm1075_vm4, %v1233_v6, %v1235_v32 }
 0x2bd   : > { %v2803_v47 = vmax.f32 %v2731_v44, %v10097_v15  ;;  %v1423_v59 = vmax.f32 %v10080_v23, %v1234_v14 }
 0x2be   : > { %v2979_v0 = vrot.slane %v2801_v35, 1  ;;  %v2980_v12 = vrot.slane %v2802_v52, 1  ;;  %v3243_v37 = vrot.slane %v2801_v35, 2  ;;  %v3244_v20 = vrot.slane %v2802_v52, 2 }
 0x2bf   : > { %v2982_v7 = vrot.slane %v2803_v47, 1  ;;  %v3246_v31 = vrot.slane %v2803_v47, 2  ;;  %v3507_v1 = vrot.slane %v2801_v35, 3  ;;  %v3508_v61 = vrot.slane %v2802_v52, 3 }
 0x2c0   : > { %v2981_v18 = vsel %vm1075_vm4, %v2979_v0, %v2980_v12  ;;  %v3245_v49 = vsel %vm1440_vm5, %v3243_v37, %v3244_v20  ;;  %v3510_v51 = vrot.slane %v2803_v47, 3  ;;  %v3771_v19 = vrot.slane %v2801_v35, 4 }
 0x2c1   : > { %v2983_v6 = vsel %vm1075_vm4, %v2980_v12, %v2982_v7  ;;  %v3137_v44 = vmax.f32 %v2801_v35, %v2981_v18  ;;  %v3139_v40 = vmax.f32 %v2803_v47, %v2982_v7  ;;  %v3247_v32 = vsel %vm1440_vm5, %v3244_v20, %v3246_v31 }
 0x2c2   : > { %v3138_v14 = vmax.f32 %v2802_v52, %v2983_v6  ;;  %v3509_v24 = vsel %vm1805_vm7, %v3507_v1, %v3508_v61  ;;  %v3511_v26 = vsel %vm1805_vm7, %v3508_v61, %v3510_v51  ;;  %v3772_v57 = vrot.slane %v2802_v52, 4 }
 0x2c3   : > { %v3401_v2 = vmax.f32 %v3137_v44, %v3245_v49  ;;  %v3403_v17 = vmax.f32 %v3139_v40, %v3246_v31  ;;  %v3774_v45 = vrot.slane %v2803_v47, 4  ;;  %v1424_v0 = vmax.f32 %v10087_v8, %v1236_v11 }
 0x2c4   : > { %v3402_v37 = vmax.f32 %v3138_v14, %v3247_v32  ;;  %v3773_v58 = vsel %vm395_vm0, %v3771_v19, %v3772_v57  ;;  %v1596_v12 = vrot.slane %v10080_v23, 2  ;;  %v1598_v35 = vrot.slane %v10087_v8, 2 }
 0x2c5   : > { %v3665_v7 = vmax.f32 %v3401_v2, %v3509_v24  ;;  %v3667_v20 = vmax.f32 %v3403_v17, %v3510_v51  ;;  %v3775_v18 = vsel %vm395_vm0, %v3772_v57, %v3774_v45  ;;  %v1600_v1 = vrot.slane %v10095_v62, 2 }
 0x2c6   : > { %v3666_v61 = vmax.f32 %v3402_v37, %v3511_v26  ;;  %v5111_v52 = vpack.c.bf16 %v3775_v18, %v3773_v58  ;;  %v1597_v31 = vsel %vm1440_vm5, %v1595_v56, %v1596_v12  ;;  %v1599_v47 = vsel %vm1440_vm5, %v1596_v12, %v1598_v35 }
 0x2c7   : > { %v10135_v11 = vmax.f32 %v3665_v7, %v3773_v58  ;;  %v10137_v49 = vmax.f32 %v3667_v20, %v3774_v45  ;;  %v1601_v19 = vsel %vm1440_vm5, %v1598_v35, %v1600_v1  ;;  %v1787_v6 = vmax.f32 %v1422_v46, %v1597_v31 }
 0x2c8   : > { %v10140_v44 = vmax.f32 %v3666_v61, %v3775_v18  ;;  %6740 = vmatmul.mubr.msk.bf16.gmra.mrb[56].mxu0 %vm672_vm2, %v5111_v52  ;;  %v1788_v17 = vmax.f32 %v1423_v59, %v1599_v47  ;;  %v1789_v2 = vmax.f32 %v1424_v0, %v1601_v19  ;;  %v1960_v57 = vrot.slane %v10071_v27, 3 }
 0x2c9   : > { %12139 = vst [vmem:[#allocation55_spill] sm:$0xff] %v10135_v11  ;;  %12140 = vst [vmem:[#allocation56_spill] sm:$0xff] %v10137_v49  ;;  %v12142_v58 = vmax.f32 %v9849_v60, %v10024_v34  ;;  %v12144_v46 = vmax.f32 %v9865_v21, %v10024_v34  ;;  %v12146_v51 = vmax.f32 %v9855_v13, %v10029_v22  ;;  %v1961_v21 = vrot.slane %v10080_v23, 3 }
 0x2ca   : > { %12141 = vst [vmem:[#allocation57_spill] sm:$0xff] %v10140_v44  ;;  %v12148_v32 = vmax.f32 %v9881_v39, %v10029_v22  ;;  %v1963_v0 = vrot.slane %v10087_v8, 3  ;;  %v1965_v37 = vrot.slane %v10095_v62, 3  ;;  %v2324_v12 = vrot.slane %v10071_v27, 4 }
 0x2cb   : > { %v10150_v45 = vmax.f32 %v12142_v58, %v10135_v11  ;;  %v10158_v59 = vmax.f32 %v12144_v46, %v10135_v11  ;;  %v10166_v40 = vmax.f32 %v12146_v51, %v10140_v44  ;;  %v2325_v13 = vrot.slane %v10080_v23, 4  ;;  %v12153_v46 = vld [vmem:[#allocation29_spill] sm:$0xff] }
 0x2cc   : > { %v10174_v14 = vmax.f32 %v12148_v32, %v10140_v44  ;;  %v2327_v35 = vrot.slane %v10087_v8, 4  ;;  %v2329_v7 = vrot.slane %v10095_v62, 4  ;;  %v2588_v20 = vmax.f32 %v9691_v41, %v9799_v53 }
 0x2cd   : > { %12143 = vst [vmem:[#allocation58_spill] sm:$0xff] %v10150_v45  ;;  %12145 = vst [vmem:[#allocation59_spill] sm:$0xff] %v10158_v59  ;;  %v1962_v39 = vsel %vm1805_vm7, %v1960_v57, %v1961_v21  ;;  %v1964_v18 = vsel %vm1805_vm7, %v1961_v21, %v1963_v0  ;;  %v1966_v1 = vsel %vm1805_vm7, %v1963_v0, %v1965_v37  ;;  %v4295_v51 = vrot.slane %v12153_v46, 1 }
 0x2ce   : > { %12147 = vst [vmem:[#allocation60_spill] sm:$0xff] %v10166_v40  ;;  %12149 = vst [vmem:[#allocation61_spill] sm:$0xff] %v10174_v14  ;;  %v2589_v61 = vmax.f32 %v9707_v29, %v9806_v38  ;;  %v2152_v52 = vmax.f32 %v1787_v6, %v1962_v39  ;;  %v2153_v27 = vmax.f32 %v1788_v17, %v1964_v18 }
 0x2cf   : > { %v2154_v31 = vmax.f32 %v1789_v2, %v1966_v1  ;;  %v2326_v23 = vsel %vm395_vm0, %v2324_v12, %v2325_v13  ;;  %v2328_v8 = vsel %vm395_vm0, %v2325_v13, %v2327_v35  ;;  %v2330_v62 = vsel %vm395_vm0, %v2327_v35, %v2329_v7  ;;  %v12160_v1 = vld [vmem:[#allocation15_spill] sm:$0xff] }
 0x2d0   : > { %v2590_v41 = vmax.f32 %v9711_v33, %v9810_v4  ;;  %v2660_v47 = vmax.f32 %v2588_v20, %v9971_v36  ;;  %v10196_v19 = vmax.f32 %v2152_v52, %v2326_v23  ;;  %v10198_v57 = vmax.f32 %v2153_v27, %v2328_v8 }
 0x2d1   : > { %v10200_v58 = vmax.f32 %v2154_v31, %v2330_v62  ;;  %v2661_v29 = vmax.f32 %v2589_v61, %v9987_v5  ;;  %v3979_v2 = vmax.f32 %v12092_v28, %v12102_v9  ;;  %v12154_v0 = vmax.f32 %v9971_v36, %v10083_v25 }
 0x2d2   : > { %12150 = vst [vmem:[#allocation62_spill] sm:$0xff] %v10196_v19  ;;  %12151 = vst [vmem:[#allocation63_spill] sm:$0xff] %v10198_v57  ;;  %v2662_v6 = vmax.f32 %v2590_v41, %v9991_v10  ;;  %v2732_v17 = vmax.f32 %v2660_v47, %v10083_v25  ;;  %v12156_v28 = vmax.f32 %v9987_v5, %v10091_v50  ;;  %v4475_v52 = vrot.slane %v12153_v46, 2 }
 0x2d3   : > { %12152 = vst [vmem:[#allocation64_spill] sm:$0xff] %v10200_v58  ;;  %v10218_v37 = vmax.f32 %v12154_v0, %v10196_v19  ;;  %v12158_v13 = vmax.f32 %v9991_v10, %v10097_v15  ;;  %v2733_v7 = vmax.f32 %v2661_v29, %v10091_v50  ;;  %v4039_v18 = vmax.f32 %v3979_v2, %v12114_v30 }
 0x2d4   : > { %v10224_v12 = vmax.f32 %v12156_v28, %v10198_v57  ;;  %v2734_v20 = vmax.f32 %v2662_v6, %v10097_v15  ;;  %v2804_v39 = vmax.f32 %v2732_v17, %v10196_v19  ;;  %v4476_v23 = vrot.slane %v12160_v1, 2 }
 0x2d5   : > { %12155 = vst [vmem:[#allocation29_spill] sm:$0xff] %v10218_v37  ;;  %v10230_v35 = vmax.f32 %v12158_v13, %v10200_v58  ;;  %v2805_v27 = vmax.f32 %v2733_v7, %v10198_v57  ;;  %v4655_v8 = vrot.slane %v12153_v46, 3 }
 0x2d6   : > { %12157 = vst [vmem:[#allocation65_spill] sm:$0xff] %v10224_v12  ;;  %v2806_v31 = vmax.f32 %v2734_v20, %v10200_v58  ;;  %v2984_v62 = vrot.slane %v2804_v39, 1  ;;  %v3248_v41 = vrot.slane %v2804_v39, 2  ;;  %v3512_v47 = vrot.slane %v2804_v39, 3 }
 0x2d7   : > { %12159 = vst [vmem:[#allocation66_spill] sm:$0xff] %v10230_v35  ;;  %v3776_v29 = vrot.slane %v2804_v39, 4  ;;  %v2985_v6 = vrot.slane %v2805_v27, 1  ;;  %v3249_v0 = vrot.slane %v2805_v27, 2  ;;  %v3513_v28 = vrot.slane %v2805_v27, 3 }
 0x2d8   : > { %v2987_v17 = vrot.slane %v2806_v31, 1  ;;  %v3251_v2 = vrot.slane %v2806_v31, 2  ;;  %v3515_v13 = vrot.slane %v2806_v31, 3  ;;  %v3777_v21 = vrot.slane %v2805_v27, 4 }
 0x2d9   : > { %v3779_v32 = vrot.slane %v2806_v31, 4  ;;  %v2986_v7 = vsel %vm1075_vm4, %v2984_v62, %v2985_v6  ;;  %v3250_v60 = vsel %vm1440_vm5, %v3248_v41, %v3249_v0  ;;  %v3514_v61 = vsel %vm1805_vm7, %v3512_v47, %v3513_v28 }
 0x2da   : > { %v2988_v20 = vsel %vm1075_vm4, %v2985_v6, %v2987_v17  ;;  %v3142_v33 = vmax.f32 %v2806_v31, %v2987_v17  ;;  %v3140_v24 = vmax.f32 %v2804_v39, %v2986_v7  ;;  %v3252_v26 = vsel %vm1440_vm5, %v3249_v0, %v3251_v2 }
 0x2db   : > { %v3141_v56 = vmax.f32 %v2805_v27, %v2988_v20  ;;  %v3516_v14 = vsel %vm1805_vm7, %v3513_v28, %v3515_v13  ;;  %v3778_v59 = vsel %vm395_vm0, %v3776_v29, %v3777_v21  ;;  %v3780_v55 = vsel %vm395_vm0, %v3777_v21, %v3779_v32  ;;  %v12162_v29 = vld [vmem:[#allocation28_spill] sm:$0xff] }
 0x2dc   : > { %v3406_v49 = vmax.f32 %v3142_v33, %v3251_v2  ;;  %v3404_v48 = vmax.f32 %v3140_v24, %v3250_v60  ;;  %v5112_v43 = vpack.c.bf16 %v3780_v55, %v3778_v59  ;;  %v4099_v31 = vmax.f32 %v4039_v18, %v12124_v63 }
 0x2dd   : > { %v3405_v62 = vmax.f32 %v3141_v56, %v3252_v26  ;;  %v12161_v39 = vrot.slane %v12160_v1, 1  ;;  %v4477_v41 = vsel %vm1440_vm5, %v4475_v52, %v4476_v23  ;;  %v4656_v33 = vrot.slane %v12160_v1, 3 }
 0x2de   : > { %v3670_v6 = vmax.f32 %v3406_v49, %v3515_v13  ;;  %v3668_v47 = vmax.f32 %v3404_v48, %v3514_v61  ;;  %6743 = vmatprep.mubr.msk.bf16.mxu0 %vm672_vm2, %v5112_v43  ;;  %v4159_v21 = vmax.f32 %v4099_v31, %v12162_v29  ;;  %v4835_v56 = vrot.slane %v12153_v46, 4 }
 0x2df   : > { %v4297_v27 = vsel %vm1075_vm4, %v4295_v51, %v12161_v39  ;;  %v3669_v17 = vmax.f32 %v3405_v62, %v3516_v14  ;;  %v4657_v49 = vsel %vm1805_vm7, %v4655_v8, %v4656_v33  ;;  %v4836_v60 = vrot.slane %v12160_v1, 4 }
 0x2e0   : > { %v4408_v26 = vmax.f32 %v12153_v46, %v4297_v27  ;;  %v10259_v24 = vmax.f32 %v3670_v6, %v3779_v32  ;;  %v10264_v51 = vmax.f32 %v3668_v47, %v3778_v59  ;;  %v4298_v48 = vrot.slane %v4159_v21, 1  ;;  %v10358_v32 = vld [vmem:[#allocation2 + $0x328] sm:$0xff] }
 0x2e1   : > { %v10266_v18 = vmax.f32 %v3669_v17, %v3780_v55  ;;  %v4478_v14 = vrot.slane %v4159_v21, 2  ;;  %v4658_v43 = vrot.slane %v4159_v21, 3  ;;  %v4837_v52 = vsel %vm395_vm0, %v4835_v56, %v4836_v60 }
 0x2e2   : > { %12163 = vst [vmem:[#allocation15_spill] sm:$0xff] %v10259_v24  ;;  %12164 = vst [vmem:[#allocation67_spill] sm:$0xff] %v10264_v51  ;;  %v4588_v61 = vmax.f32 %v4408_v26, %v4477_v41  ;;  %v4838_v0 = vrot.slane %v4159_v21, 4  ;;  %v12166_v59 = vmax.f32 %v10024_v34, %v10135_v11  ;;  %v12168_v55 = vmax.f32 %v10029_v22, %v10140_v44 }
 0x2e3   : > { %12165 = vst [vmem:[#allocation68_spill] sm:$0xff] %v10266_v18  ;;  %v12170_v7 = vmax.f32 %v10041_v16, %v10135_v11  ;;  %v12172_v34 = vmax.f32 %v10057_v3, %v10140_v44  ;;  %v12174_v22 = vmov %v12161_v39  ;;  %v4479_v6 = vsel %vm1440_vm5, %v4476_v23, %v4478_v14 }
 0x2e4   : > { %v10277_v46 = vmax.f32 %v12166_v59, %v10264_v51  ;;  %v10283_v2 = vmax.f32 %v12168_v55, %v10266_v18  ;;  %v4299_v31 = vsel %vm1075_vm4, %v12174_v22, %v4298_v48  ;;  %v4659_v39 = vsel %vm1805_vm7, %v4656_v33, %v4658_v43  ;;  %v10334_v22 = vld [vmem:[#allocation2 + $0x300] sm:$0xff] }
 0x2e5   : > { %v10293_v20 = vmax.f32 %v12170_v7, %v10264_v51  ;;  %v10299_v62 = vmax.f32 %v12172_v34, %v10266_v18  ;;  %v4768_v27 = vmax.f32 %v4588_v61, %v4657_v49  ;;  %v4409_v47 = vmax.f32 %v12160_v1, %v4299_v31  ;;  %v10319_v49 = vld [vmem:[#allocation2 + $0x2e0] sm:$0xff]  ;;  %v10332_v34 = vld [vmem:[#allocation2 + $0x2f8] sm:$0xf]  ;;  %v10336_v31 = vld [vmem:[#allocation2 + $0x308] sm:$0xff] }
 0x2e6   : > { %12167 = vst [vmem:[#allocation69_spill] sm:$0xff] %v10277_v46  ;;  %12169 = vst [vmem:[#allocation70_spill] sm:$0xff] %v10283_v2  ;;  %v4839_v16 = vsel %vm395_vm0, %v4836_v60, %v4838_v0  ;;  %v5121_v17 = vpack.c.bf16 %v4479_v6, %v4477_v41  ;;  %v3982_v21 = vmax.f32 %v12102_v9, %v12114_v30  ;;  %v4300_v26 = vrot.slane %v9769_v42, 1  ;;  %v10321_v9 = vld [vmem:[#allocation2 + $0x2e8] sm:$0xff] }
 0x2e7   : > { %12171 = vst [vmem:[#allocation71_spill] sm:$0xff] %v10293_v20  ;;  %12173 = vst [vmem:[#allocation72_spill] sm:$0xff] %v10299_v62  ;;  %v10310_v3 = vmax.f32 %v4768_v27, %v4837_v52  ;;  %v4301_v56 = vrot.slane %v9785_v54, 1  ;;  %v4480_v48 = vrot.slane %v9769_v42, 2  ;;  %v4589_v23 = vmax.f32 %v4409_v47, %v4479_v6  ;;  %v10327_v52 = vld [vmem:[#allocation2 + $0x2f0] sm:$0xff]  ;;  %v10382_v30 = vld [vmem:[#allocation2 + $0x348] sm:$0xff] }
 0x2e8   : > { %6796 = vmatmul.mubr.msk.bf16.gmra.mrb[28].mxu1 %vm672_vm2, %v5121_v17  ;;  %v4042_v33 = vmax.f32 %v3982_v21, %v12124_v63  ;;  %v4481_v1 = vrot.slane %v9785_v54, 2  ;;  %v4660_v41 = vrot.slane %v9769_v42, 3  ;;  %v4661_v14 = vrot.slane %v9785_v54, 3  ;;  %v12177_v21 = vld [vmem:[#allocation39_spill] sm:$0xff] }
 0x2e9   : > { %12175 = vst [vmem:[#allocation73_spill] sm:$0xff] %v10310_v3  ;;  %v4302_v60 = vsel %vm1075_vm4, %v4300_v26, %v4301_v56  ;;  %v4840_v61 = vrot.slane %v9769_v42, 4  ;;  %v4841_v43 = vrot.slane %v9785_v54, 4  ;;  %v4769_v0 = vmax.f32 %v4589_v23, %v4659_v39 }
 0x2ea   : > { %v4102_v59 = vmax.f32 %v4042_v33, %v12162_v29  ;;  %v4410_v55 = vmax.f32 %v9769_v42, %v4302_v60  ;;  %v4482_v7 = vsel %vm1440_vm5, %v4480_v48, %v4481_v1  ;;  %v4662_v6 = vsel %vm1805_vm7, %v4660_v41, %v4661_v14  ;;  %v10378_v29 = vld [vmem:[#allocation2 + $0x340] sm:$0xff] }
 0x2eb   : > { %v4842_v27 = vsel %vm395_vm0, %v4840_v61, %v4841_v43  ;;  %v1237_v47 = vrot.slane %v10319_v49, 1  ;;  %v1238_v39 = vrot.slane %v10321_v9, 1  ;;  %v10342_v17 = vmax.f32 %v4769_v0, %v4839_v16  ;;  %v10352_v16 = vld [vmem:[#allocation2 + $0x310] sm:$0xff]  ;;  %v10354_v0 = vld [vmem:[#allocation2 + $0x318] sm:$0xf] }
 0x2ec   : > { %v4162_v42 = vmax.f32 %v4102_v59, %v12177_v21  ;;  %v4590_v26 = vmax.f32 %v4410_v55, %v4482_v7  ;;  %v1240_v48 = vrot.slane %v10327_v52, 1  ;;  %v1242_v33 = vrot.slane %v10332_v34, 1  ;;  %v10356_v55 = vld [vmem:[#allocation2 + $0x320] sm:$0xff]  ;;  %v10376_v21 = vld [vmem:[#allocation2 + $0x338] sm:$0xf] }
 0x2ed   : > { %12176 = vst [vmem:[#allocation74_spill] sm:$0xff] %v10342_v17  ;;  %v10347_v23 = vsel %vm1075_vm4, %v1237_v47, %v1238_v39  ;;  %v1244_v41 = vrot.slane %v10334_v22, 1  ;;  %v1245_v60 = vrot.slane %v10336_v31, 1  ;;  %v10360_v47 = vld [vmem:[#allocation2 + $0x330] sm:$0xff]  ;;  %v1617_v51 = vrot.slane %v10358_v32, 2 }
 0x2ee   : > { %v4303_v61 = vrot.slane %v4162_v42, 1  ;;  %v4483_v13 = vrot.slane %v4162_v42, 2  ;;  %v4663_v28 = vrot.slane %v4162_v42, 3  ;;  %v4770_v8 = vmax.f32 %v4590_v26, %v4662_v6 }
 0x2ef   : > { %v4843_v59 = vrot.slane %v4162_v42, 4  ;;  %v10363_v17 = vsel %vm1075_vm4, %v1238_v39, %v1240_v48  ;;  %v10366_v3 = vsel %vm1075_vm4, %v1240_v48, %v1242_v33  ;;  %v10369_v62 = vsel %vm1075_vm4, %v1244_v41, %v1245_v60  ;;  %v10384_v41 = vld [vmem:[#allocation2 + $0x350] sm:$0xff] }
 0x2f0   : > { %v4304_v6 = vsel %vm1075_vm4, %v4301_v56, %v4303_v61  ;;  %v4484_v26 = vsel %vm1440_vm5, %v4481_v1, %v4483_v13  ;;  %v4664_v42 = vsel %vm1805_vm7, %v4661_v14, %v4663_v28  ;;  %v10374_v20 = vmax.f32 %v4770_v8, %v4842_v27  ;;  %v10387_v13 = vld [vmem:[#allocation2 + $0x358] sm:$0xf]  ;;  %v10398_v27 = vld [vmem:[#allocation2 + $0x370] sm:$0xff] }
 0x2f1   : > { %v4411_v39 = vmax.f32 %v9785_v54, %v4304_v6  ;;  %v4844_v48 = vsel %vm395_vm0, %v4841_v43, %v4843_v59  ;;  %v5122_v33 = vpack.c.bf16 %v4484_v26, %v4482_v7  ;;  %v1247_v56 = vrot.slane %v10352_v16, 1  ;;  %v10394_v43 = vld [vmem:[#allocation2 + $0x360] sm:$0xff]  ;;  %v10396_v7 = vld [vmem:[#allocation2 + $0x368] sm:$0xff] }
 0x2f2   : > { %12178 = vst [vmem:[#allocation75_spill] sm:$0xff] %v10374_v20  ;;  %v1249_v8 = vrot.slane %v10354_v0, 1  ;;  %v1251_v28 = vrot.slane %v10356_v55, 1  ;;  %v1252_v1 = vrot.slane %v10358_v32, 1  ;;  %v1254_v14 = vrot.slane %v10360_v47, 1 }
 0x2f3   : > { %v4591_v54 = vmax.f32 %v4411_v39, %v4484_v26  ;;  %6799 = vmatprep.mubr.msk.bf16.mxu1 %vm672_vm2, %v5122_v33  ;;  %v10401_v61 = vsel %vm1075_vm4, %v1245_v60, %v1247_v56  ;;  %v1256_v59 = vrot.slane %v10376_v21, 1  ;;  %v1258_v6 = vrot.slane %v10378_v29, 1  ;;  %v10405_v20 = vld [vmem:[#allocation2 + $0x378] sm:$0xf] }
 0x2f4   : > { %v10408_v63 = vsel %vm1075_vm4, %v1247_v56, %v1249_v8  ;;  %v10411_v26 = vsel %vm1075_vm4, %v1251_v28, %v1252_v1  ;;  %v10414_v39 = vsel %vm1075_vm4, %v1252_v1, %v1254_v14  ;;  %v1259_v33 = vrot.slane %v10382_v30, 1 }
 0x2f5   : > { %v4771_v40 = vmax.f32 %v4591_v54, %v4664_v42  ;;  %v10418_v60 = vsel %vm1075_vm4, %v1254_v14, %v1256_v59  ;;  %v1261_v45 = vrot.slane %v10384_v41, 1  ;;  %v1263_v2 = vrot.slane %v10387_v13, 1 }
 0x2f6   : > { %v10423_v46 = vsel %vm1075_vm4, %v1258_v6, %v1259_v33  ;;  %v1265_v56 = vrot.slane %v10394_v43, 1  ;;  %v1266_v8 = vrot.slane %v10396_v7, 1  ;;  %v1268_v28 = vrot.slane %v10398_v27, 1 }
 0x2f7   : > { %v10428_v1 = vmax.f32 %v4771_v40, %v4844_v48  ;;  %v10431_v42 = vsel %vm1075_vm4, %v1259_v33, %v1261_v45  ;;  %v10434_v14 = vsel %vm1075_vm4, %v1261_v45, %v1263_v2  ;;  %v1270_v54 = vrot.slane %v10405_v20, 1 }
 0x2f8   : > { %v10438_v59 = vsel %vm1075_vm4, %v1265_v56, %v1266_v8  ;;  %v10441_v6 = vsel %vm1075_vm4, %v1266_v8, %v1268_v28  ;;  %v1425_v44 = vmax.f32 %v10319_v49, %v10347_v23  ;;  %v1426_v40 = vmax.f32 %v10321_v9, %v10363_v17 }
 0x2f9   : > { %12179 = vst [vmem:[#allocation76_spill] sm:$0xff] %v10428_v1  ;;  %v10448_v48 = vsel %vm1075_vm4, %v1268_v28, %v1270_v54  ;;  %v1427_v45 = vmax.f32 %v10327_v52, %v10366_v3  ;;  %v1428_v2 = vmax.f32 %v10334_v22, %v10369_v62  ;;  %v1429_v33 = vmax.f32 %v10336_v31, %v10401_v61 }
 0x2fa   : > { %v1430_v56 = vmax.f32 %v10352_v16, %v10408_v63  ;;  %v1431_v23 = vmax.f32 %v10356_v55, %v10411_v26  ;;  %v1432_v17 = vmax.f32 %v10358_v32, %v10414_v39  ;;  %v1433_v8 = vmax.f32 %v10360_v47, %v10418_v60 }
 0x2fb   : > { %v1434_v3 = vmax.f32 %v10378_v29, %v10423_v46  ;;  %v1435_v62 = vmax.f32 %v10382_v30, %v10431_v42  ;;  %v1436_v61 = vmax.f32 %v10384_v41, %v10434_v14  ;;  %v1437_v63 = vmax.f32 %v10394_v43, %v10438_v59 }
 0x2fc   : > { %v1438_v26 = vmax.f32 %v10396_v7, %v10441_v6  ;;  %v1439_v39 = vmax.f32 %v10398_v27, %v10448_v48  ;;  %v1602_v60 = vrot.slane %v10319_v49, 2  ;;  %v1603_v28 = vrot.slane %v10321_v9, 2 }
 0x2fd   : > { %v1605_v46 = vrot.slane %v10327_v52, 2  ;;  %v1607_v42 = vrot.slane %v10332_v34, 2  ;;  %v1609_v54 = vrot.slane %v10334_v22, 2  ;;  %v1610_v14 = vrot.slane %v10336_v31, 2 }
 0x2fe   : > { %v1604_v59 = vsel %vm1440_vm5, %v1602_v60, %v1603_v28  ;;  %v1612_v1 = vrot.slane %v10352_v16, 2  ;;  %v1614_v6 = vrot.slane %v10354_v0, 2  ;;  %v1616_v48 = vrot.slane %v10356_v55, 2 }
 0x2ff   : > { %v1606_v11 = vsel %vm1440_vm5, %v1603_v28, %v1605_v46  ;;  %v1608_v24 = vsel %vm1440_vm5, %v1605_v46, %v1607_v42  ;;  %v1611_v18 = vsel %vm1440_vm5, %v1609_v54, %v1610_v14  ;;  %v1619_v60 = vrot.slane %v10360_v47, 2 }
 0x300   : > { %v1613_v35 = vsel %vm1440_vm5, %v1610_v14, %v1612_v1  ;;  %v1615_v12 = vsel %vm1440_vm5, %v1612_v1, %v1614_v6  ;;  %v1621_v37 = vrot.slane %v10376_v21, 2  ;;  %v1618_v15 = vsel %vm1440_vm5, %v1616_v48, %v1617_v51 }
 0x301   : > { %v1623_v50 = vrot.slane %v10378_v29, 2  ;;  %v1624_v28 = vrot.slane %v10382_v30, 2  ;;  %v1626_v46 = vrot.slane %v10384_v41, 2  ;;  %v1620_v42 = vsel %vm1440_vm5, %v1617_v51, %v1619_v60 }
 0x302   : > { %v1622_v54 = vsel %vm1440_vm5, %v1619_v60, %v1621_v37  ;;  %v1628_v14 = vrot.slane %v10387_v13, 2  ;;  %v1630_v1 = vrot.slane %v10394_v43, 2  ;;  %v1631_v48 = vrot.slane %v10396_v7, 2 }
 0x303   : > { %v1625_v6 = vsel %vm1440_vm5, %v1623_v50, %v1624_v28  ;;  %v1627_v25 = vsel %vm1440_vm5, %v1624_v28, %v1626_v46  ;;  %v1633_v58 = vrot.slane %v10398_v27, 2  ;;  %v1635_v19 = vrot.slane %v10405_v20, 2 }
 0x304   : > { %v1629_v57 = vsel %vm1440_vm5, %v1626_v46, %v1628_v14  ;;  %v10508_v4 = vmax.f32 %v1425_v44, %v1604_v59  ;;  %v10510_v51 = vmax.f32 %v1426_v40, %v1606_v11  ;;  %v1632_v37 = vsel %vm1440_vm5, %v1630_v1, %v1631_v48 }
 0x305   : > { %v1634_v60 = vsel %vm1440_vm5, %v1631_v48, %v1633_v58  ;;  %v10514_v10 = vmax.f32 %v1427_v45, %v1608_v24  ;;  %v10516_v50 = vmax.f32 %v1428_v2, %v1611_v18  ;;  %v1636_v28 = vsel %vm1440_vm5, %v1633_v58, %v1635_v19 }
 0x306   : > { %v10519_v38 = vmax.f32 %v1429_v33, %v1613_v35  ;;  %v10521_v5 = vmax.f32 %v1430_v56, %v1615_v12  ;;  %v10523_v46 = vmax.f32 %v1431_v23, %v1618_v15  ;;  %v10525_v44 = vmax.f32 %v1432_v17, %v1620_v42 }
 0x307   : > { %v10527_v11 = vmax.f32 %v1433_v8, %v1622_v54  ;;  %v10529_v40 = vmax.f32 %v1434_v3, %v1625_v6  ;;  %v10531_v59 = vmax.f32 %v1435_v62, %v1627_v25  ;;  %v10533_v24 = vmax.f32 %v1436_v61, %v1629_v57 }
 0x308   : > { %v10535_v18 = vmax.f32 %v1437_v63, %v1632_v37  ;;  %v10537_v45 = vmax.f32 %v1438_v26, %v1634_v60  ;;  %v10539_v19 = vmax.f32 %v1439_v39, %v1636_v28  ;;  %v1967_v58 = vrot.slane %v10319_v49, 3 }
 0x309   : > { %v1968_v15 = vrot.slane %v10321_v9, 3  ;;  %v1970_v12 = vrot.slane %v10327_v52, 3  ;;  %v1972_v35 = vrot.slane %v10332_v34, 3  ;;  %v1974_v2 = vrot.slane %v10334_v22, 3 }
 0x30a   : > { %v1975_v25 = vrot.slane %v10336_v31, 3  ;;  %v1977_v57 = vrot.slane %v10352_v16, 3  ;;  %v1979_v33 = vrot.slane %v10354_v0, 3  ;;  %v1981_v8 = vrot.slane %v10356_v55, 3 }
 0x30b   : > { %v10550_v56 = vsel %vm1805_vm7, %v1967_v58, %v1968_v15  ;;  %v10553_v23 = vsel %vm1805_vm7, %v1968_v15, %v1970_v12  ;;  %v10556_v17 = vsel %vm1805_vm7, %v1970_v12, %v1972_v35  ;;  %v1982_v63 = vrot.slane %v10358_v32, 3 }
 0x30c   : > { %v10560_v3 = vsel %vm1805_vm7, %v1974_v2, %v1975_v25  ;;  %v10563_v62 = vsel %vm1805_vm7, %v1975_v25, %v1977_v57  ;;  %v10566_v61 = vsel %vm1805_vm7, %v1977_v57, %v1979_v33  ;;  %v1984_v26 = vrot.slane %v10360_v47, 3 }
 0x30d   : > { %v1986_v39 = vrot.slane %v10376_v21, 3  ;;  %v1988_v42 = vrot.slane %v10378_v29, 3  ;;  %v1989_v54 = vrot.slane %v10382_v30, 3  ;;  %v10574_v14 = vsel %vm1805_vm7, %v1981_v8, %v1982_v63 }
 0x30e   : > { %v1991_v1 = vrot.slane %v10384_v41, 3  ;;  %v1993_v6 = vrot.slane %v10387_v13, 3  ;;  %v1995_v48 = vrot.slane %v10394_v43, 3  ;;  %v10580_v37 = vsel %vm1805_vm7, %v1982_v63, %v1984_v26 }
 0x30f   : > { %v10583_v60 = vsel %vm1805_vm7, %v1984_v26, %v1986_v39  ;;  %v10586_v28 = vsel %vm1805_vm7, %v1988_v42, %v1989_v54  ;;  %v1996_v58 = vrot.slane %v10396_v7, 3  ;;  %v1998_v35 = vrot.slane %v10398_v27, 3 }
 0x310   : > { %v10590_v15 = vsel %vm1805_vm7, %v1989_v54, %v1991_v1  ;;  %v10593_v12 = vsel %vm1805_vm7, %v1991_v1, %v1993_v6  ;;  %v2000_v2 = vrot.slane %v10405_v20, 3  ;;  %v2155_v57 = vmax.f32 %v10508_v4, %v10550_v56 }
 0x311   : > { %v10598_v25 = vsel %vm1805_vm7, %v1995_v48, %v1996_v58  ;;  %v2156_v33 = vmax.f32 %v10510_v51, %v10553_v23  ;;  %v2157_v8 = vmax.f32 %v10514_v10, %v10556_v17  ;;  %v10607_v63 = vsel %vm1805_vm7, %v1996_v58, %v1998_v35 }
 0x312   : > { %v10610_v26 = vsel %vm1805_vm7, %v1998_v35, %v2000_v2  ;;  %v2158_v39 = vmax.f32 %v10516_v50, %v10560_v3  ;;  %v2159_v42 = vmax.f32 %v10519_v38, %v10563_v62  ;;  %v2160_v4 = vmax.f32 %v10521_v5, %v10566_v61 }
 0x313   : > { %v2161_v51 = vmax.f32 %v10523_v46, %v10574_v14  ;;  %v2162_v10 = vmax.f32 %v10525_v44, %v10580_v37  ;;  %v2163_v56 = vmax.f32 %v10527_v11, %v10583_v60  ;;  %v2164_v23 = vmax.f32 %v10529_v40, %v10586_v28 }
 0x314   : > { %v2165_v50 = vmax.f32 %v10531_v59, %v10590_v15  ;;  %v2166_v38 = vmax.f32 %v10533_v24, %v10593_v12  ;;  %v2167_v5 = vmax.f32 %v10535_v18, %v10598_v25  ;;  %v2168_v46 = vmax.f32 %v10537_v45, %v10607_v63 }
 0x315   : > { %v2169_v44 = vmax.f32 %v10539_v19, %v10610_v26  ;;  %v2331_v11 = vrot.slane %v10319_v49, 4  ;;  %v2332_v17 = vrot.slane %v10321_v9, 4  ;;  %v2334_v40 = vrot.slane %v10327_v52, 4 }
 0x316   : > { %v2336_v59 = vrot.slane %v10332_v34, 4  ;;  %v2338_v3 = vrot.slane %v10334_v22, 4  ;;  %v2339_v24 = vrot.slane %v10336_v31, 4  ;;  %v2341_v62 = vrot.slane %v10352_v16, 4 }
 0x317   : > { %v2333_v18 = vsel %vm395_vm0, %v2331_v11, %v2332_v17  ;;  %v2343_v45 = vrot.slane %v10354_v0, 4  ;;  %v2345_v19 = vrot.slane %v10356_v55, 4  ;;  %v2335_v49 = vsel %vm395_vm0, %v2332_v17, %v2334_v40 }
 0x318   : > { %v2337_v9 = vsel %vm395_vm0, %v2334_v40, %v2336_v59  ;;  %v2340_v52 = vsel %vm395_vm0, %v2338_v3, %v2339_v24  ;;  %v2346_v34 = vrot.slane %v10358_v32, 4  ;;  %v2342_v22 = vsel %vm395_vm0, %v2339_v24, %v2341_v62  ;;  %v12180_v40 = vld [vmem:[#allocation47_spill] sm:$0xff]  ;;  %v12181_v59 = vld [vmem:[#allocation40_spill] sm:$0xff]  ;;  %v12183_v3 = vld [vmem:[#allocation41_spill] sm:$0xff] }
 0x319   : > { %v2344_v31 = vsel %vm395_vm0, %v2341_v62, %v2343_v45  ;;  %v2348_v61 = vrot.slane %v10360_v47, 4  ;;  %v2350_v16 = vrot.slane %v10376_v21, 4  ;;  %v2352_v55 = vrot.slane %v10378_v29, 4 }
 0x31a   : > { %v2347_v0 = vsel %vm395_vm0, %v2345_v19, %v2346_v34  ;;  %v2353_v54 = vrot.slane %v10382_v30, 4  ;;  %v2355_v14 = vrot.slane %v10384_v41, 4  ;;  %v2357_v6 = vrot.slane %v10387_v13, 4 }
 0x31b   : > { %v2349_v1 = vsel %vm395_vm0, %v2346_v34, %v2348_v61  ;;  %v2351_v32 = vsel %vm395_vm0, %v2348_v61, %v2350_v16  ;;  %v2359_v48 = vrot.slane %v10394_v43, 4  ;;  %v2360_v37 = vrot.slane %v10396_v7, 4 }
 0x31c   : > { %v2354_v47 = vsel %vm395_vm0, %v2352_v55, %v2353_v54  ;;  %v2356_v21 = vsel %vm395_vm0, %v2353_v54, %v2355_v14  ;;  %v2362_v29 = vrot.slane %v10398_v27, 4  ;;  %v2358_v30 = vsel %vm395_vm0, %v2355_v14, %v2357_v6 }
 0x31d   : > { %v2364_v41 = vrot.slane %v10405_v20, 4  ;;  %v2519_v60 = vmax.f32 %v2155_v57, %v2333_v18  ;;  %v2520_v28 = vmax.f32 %v2156_v33, %v2335_v49  ;;  %v2361_v58 = vsel %vm395_vm0, %v2359_v48, %v2360_v37  ;;  %v12188_v18 = vld [vmem:[#allocation53_spill] sm:$0xff] }
 0x31e   : > { %v2363_v13 = vsel %vm395_vm0, %v2360_v37, %v2362_v29  ;;  %v2521_v15 = vmax.f32 %v2157_v8, %v2337_v9  ;;  %v2522_v43 = vmax.f32 %v2158_v39, %v2340_v52  ;;  %v2523_v35 = vmax.f32 %v2159_v42, %v2342_v22  ;;  %v12182_v39 = vld [vmem:[#allocation48_spill] sm:$0xff]  ;;  %v12184_v42 = vld [vmem:[#allocation62_spill] sm:$0xff]  ;;  %v12194_v48 = vld [vmem:[#allocation65_spill] sm:$0xff] }
 0x31f   : > { %v2365_v12 = vsel %vm395_vm0, %v2362_v29, %v2364_v41  ;;  %v2524_v2 = vmax.f32 %v2160_v4, %v2344_v31  ;;  %v2525_v25 = vmax.f32 %v2161_v51, %v2347_v0  ;;  %v2526_v7 = vmax.f32 %v2162_v10, %v2349_v1  ;;  %v12185_v51 = vld [vmem:[#allocation63_spill] sm:$0xff] }
 0x320   : > { %v2527_v63 = vmax.f32 %v2163_v56, %v2351_v32  ;;  %v2528_v27 = vmax.f32 %v2164_v23, %v2354_v47  ;;  %v2529_v26 = vmax.f32 %v2165_v50, %v2356_v21  ;;  %v2530_v11 = vmax.f32 %v2166_v38, %v2358_v30  ;;  %v12186_v56 = vld [vmem:[#allocation64_spill] sm:$0xff]  ;;  %v12193_v32 = vld [vmem:[#allocation29_spill] sm:$0xff]  ;;  %v12195_v21 = vld [vmem:[#allocation66_spill] sm:$0xff] }
 0x321   : > { %v2531_v17 = vmax.f32 %v2167_v5, %v2361_v58  ;;  %v2532_v20 = vmax.f32 %v2168_v46, %v2363_v13  ;;  %v2533_v57 = vmax.f32 %v2169_v44, %v2365_v12  ;;  %v2591_v33 = vmax.f32 %v9799_v53, %v9971_v36  ;;  %v12187_v46 = vld [vmem:[#allocation52_spill] sm:$0xff]  ;;  %v12189_v53 = vld [vmem:[#allocation54_spill] sm:$0xff] }
 0x322   : > { %v2592_v8 = vmax.f32 %v12181_v59, %v12180_v40  ;;  %v2593_v24 = vmax.f32 %v12183_v3, %v12182_v39  ;;  %v2600_v4 = vmax.f32 %v12184_v42, %v2519_v60  ;;  %v2601_v10 = vmax.f32 %v12185_v51, %v2520_v28 }
 0x323   : > { %v2602_v23 = vmax.f32 %v12186_v56, %v2521_v15  ;;  %v2603_v50 = vmax.f32 %v2519_v60, %v2522_v43  ;;  %v2604_v38 = vmax.f32 %v2520_v28, %v2523_v35  ;;  %v2605_v5 = vmax.f32 %v2521_v15, %v2524_v2 }
 0x324   : > { %v2663_v44 = vmax.f32 %v2591_v33, %v12187_v46  ;;  %v2664_v62 = vmax.f32 %v2592_v8, %v12188_v18  ;;  %v2665_v36 = vmax.f32 %v2593_v24, %v12189_v53  ;;  %v12190_v45 = vmax.f32 %v12187_v46, %v12184_v42 }
 0x325   : > { %v12191_v49 = vmax.f32 %v12188_v18, %v12185_v51  ;;  %v12192_v52 = vmax.f32 %v12189_v53, %v12186_v56  ;;  %v2672_v22 = vmax.f32 %v2600_v4, %v2522_v43  ;;  %v2673_v31 = vmax.f32 %v2601_v10, %v2523_v35 }
 0x326   : > { %v2669_v19 = vmax.f32 %v12190_v45, %v2519_v60  ;;  %v2674_v61 = vmax.f32 %v2602_v23, %v2524_v2  ;;  %v2675_v16 = vmax.f32 %v2603_v50, %v2525_v25  ;;  %v2676_v0 = vmax.f32 %v2604_v38, %v2526_v7 }
 0x327   : > { %v2670_v9 = vmax.f32 %v12191_v49, %v2520_v28  ;;  %v2671_v34 = vmax.f32 %v12192_v52, %v2521_v15  ;;  %v2677_v55 = vmax.f32 %v2605_v5, %v2527_v63  ;;  %v2735_v54 = vmax.f32 %v2663_v44, %v12184_v42 }
 0x328   : > { %v2736_v14 = vmax.f32 %v2664_v62, %v12185_v51  ;;  %v2737_v1 = vmax.f32 %v2665_v36, %v12186_v56  ;;  %v2738_v6 = vmax.f32 %v12193_v32, %v2519_v60  ;;  %v2739_v47 = vmax.f32 %v12194_v48, %v2520_v28 }
 0x329   : > { %v2740_v37 = vmax.f32 %v12195_v21, %v2521_v15  ;;  %v2741_v29 = vmax.f32 %v2669_v19, %v2522_v43  ;;  %v2742_v30 = vmax.f32 %v2670_v9, %v2523_v35  ;;  %v2743_v41 = vmax.f32 %v2671_v34, %v2524_v2 }
 0x32a   : > { %v2744_v58 = vmax.f32 %v2672_v22, %v2525_v25  ;;  %v2745_v13 = vmax.f32 %v2673_v31, %v2526_v7  ;;  %v2746_v12 = vmax.f32 %v2674_v61, %v2527_v63  ;;  %v2747_v33 = vmax.f32 %v2675_v16, %v2528_v27 }
 0x32b   : > { %v2748_v40 = vmax.f32 %v2676_v0, %v2529_v26  ;;  %v2749_v59 = vmax.f32 %v2677_v55, %v2530_v11  ;;  %v10698_v8 = vmax.f32 %v2735_v54, %v2519_v60  ;;  %v10700_v39 = vmax.f32 %v2736_v14, %v2520_v28 }
 0x32c   : > { %v10702_v3 = vmax.f32 %v2737_v1, %v2521_v15  ;;  %v10704_v24 = vmax.f32 %v2738_v6, %v2522_v43  ;;  %v10706_v42 = vmax.f32 %v2739_v47, %v2523_v35  ;;  %v10708_v4 = vmax.f32 %v2740_v37, %v2524_v2 }
 0x32d   : > { %v10710_v51 = vmax.f32 %v2741_v29, %v2525_v25  ;;  %v10712_v10 = vmax.f32 %v2742_v30, %v2526_v7  ;;  %v10714_v56 = vmax.f32 %v2743_v41, %v2527_v63  ;;  %v10716_v23 = vmax.f32 %v2744_v58, %v2528_v27 }
 0x32e   : > { %v10718_v60 = vmax.f32 %v2745_v13, %v2529_v26  ;;  %v10720_v28 = vmax.f32 %v2746_v12, %v2530_v11  ;;  %v10722_v15 = vmax.f32 %v2747_v33, %v2531_v17  ;;  %v10724_v43 = vmax.f32 %v2748_v40, %v2532_v20 }
 0x32f   : > { %v10726_v35 = vmax.f32 %v2749_v59, %v2533_v57  ;;  %v2989_v2 = vrot.slane %v10698_v8, 1  ;;  %v2990_v25 = vrot.slane %v10700_v39, 1  ;;  %v2992_v7 = vrot.slane %v10702_v3, 1 }
 0x330   : > { %v2994_v63 = vrot.slane %v10704_v24, 1  ;;  %v2995_v27 = vrot.slane %v10706_v42, 1  ;;  %v2997_v26 = vrot.slane %v10708_v4, 1  ;;  %v2999_v11 = vrot.slane %v10710_v51, 1 }
 0x331   : > { %v3000_v17 = vrot.slane %v10712_v10, 1  ;;  %v11879_v20 = vrot.slane %v10714_v56, 1  ;;  %v2991_v57 = vsel %vm1075_vm4, %v2989_v2, %v2990_v25  ;;  %v2993_v50 = vsel %vm1075_vm4, %v2990_v25, %v2992_v7 }
 0x332   : > { %v2996_v38 = vsel %vm1075_vm4, %v2994_v63, %v2995_v27  ;;  %v3004_v5 = vrot.slane %v10716_v23, 1  ;;  %v2998_v46 = vsel %vm1075_vm4, %v2995_v27, %v2997_v26  ;;  %v3005_v62 = vrot.slane %v10718_v60, 1 }
 0x333   : > { %v3001_v44 = vsel %vm1075_vm4, %v2999_v11, %v3000_v17  ;;  %v3003_v18 = vsel %vm1075_vm4, %v3000_v17, %v11879_v20  ;;  %v11875_v53 = vrot.slane %v10720_v28, 1  ;;  %v3009_v36 = vrot.slane %v10722_v15, 1 }
 0x334   : > { %v3010_v45 = vrot.slane %v10724_v43, 1  ;;  %v11871_v19 = vrot.slane %v10726_v35, 1  ;;  %v3006_v49 = vsel %vm1075_vm4, %v3004_v5, %v3005_v62  ;;  %v3143_v9 = vmax.f32 %v10698_v8, %v2991_v57 }
 0x335   : > { %v3144_v52 = vmax.f32 %v10700_v39, %v2993_v50  ;;  %v3145_v34 = vmax.f32 %v10702_v3, %v2992_v7  ;;  %v3008_v22 = vsel %vm1075_vm4, %v3005_v62, %v11875_v53  ;;  %v3146_v16 = vmax.f32 %v10704_v24, %v2996_v38 }
 0x336   : > { %v3011_v31 = vsel %vm1075_vm4, %v3009_v36, %v3010_v45  ;;  %v3013_v61 = vsel %vm1075_vm4, %v3010_v45, %v11871_v19  ;;  %v3147_v0 = vmax.f32 %v10706_v42, %v2998_v46  ;;  %v3148_v55 = vmax.f32 %v10708_v4, %v2997_v26 }
 0x337   : > { %v3149_v54 = vmax.f32 %v10710_v51, %v3001_v44  ;;  %v3150_v14 = vmax.f32 %v10712_v10, %v3003_v18  ;;  %v3152_v1 = vmax.f32 %v10716_v23, %v3006_v49  ;;  %v3153_v32 = vmax.f32 %v10718_v60, %v3008_v22 }
 0x338   : > { %v3155_v6 = vmax.f32 %v10722_v15, %v3011_v31  ;;  %v3156_v48 = vmax.f32 %v10724_v43, %v3013_v61  ;;  %v3253_v47 = vrot.slane %v10698_v8, 2  ;;  %v3254_v21 = vrot.slane %v10700_v39, 2 }
 0x339   : > { %v3256_v37 = vrot.slane %v10702_v3, 2  ;;  %v3258_v29 = vrot.slane %v10704_v24, 2  ;;  %v3259_v30 = vrot.slane %v10706_v42, 2  ;;  %v3261_v41 = vrot.slane %v10708_v4, 2 }
 0x33a   : > { %v3263_v58 = vrot.slane %v10710_v51, 2  ;;  %v3264_v13 = vrot.slane %v10712_v10, 2  ;;  %v3255_v12 = vsel %vm1440_vm5, %v3253_v47, %v3254_v21  ;;  %v11878_v40 = vrot.slane %v10714_v56, 2 }
 0x33b   : > { %v3257_v33 = vsel %vm1440_vm5, %v3254_v21, %v3256_v37  ;;  %v3268_v59 = vrot.slane %v10716_v23, 2  ;;  %v3260_v2 = vsel %vm1440_vm5, %v3258_v29, %v3259_v30  ;;  %v3262_v25 = vsel %vm1440_vm5, %v3259_v30, %v3261_v41 }
 0x33c   : > { %v3265_v7 = vsel %vm1440_vm5, %v3263_v58, %v3264_v13  ;;  %v3269_v63 = vrot.slane %v10718_v60, 2  ;;  %v3267_v27 = vsel %vm1440_vm5, %v3264_v13, %v11878_v40  ;;  %v11874_v26 = vrot.slane %v10720_v28, 2 }
 0x33d   : > { %v3273_v11 = vrot.slane %v10722_v15, 2  ;;  %v3274_v17 = vrot.slane %v10724_v43, 2  ;;  %v11870_v50 = vrot.slane %v10726_v35, 2  ;;  %v10795_v38 = vmax.f32 %v3143_v9, %v3255_v12 }
 0x33e   : > { %v3270_v57 = vsel %vm1440_vm5, %v3268_v59, %v3269_v63  ;;  %v10797_v5 = vmax.f32 %v3144_v52, %v3257_v33  ;;  %v3272_v46 = vsel %vm1440_vm5, %v3269_v63, %v11874_v26  ;;  %v3409_v18 = vmax.f32 %v3145_v34, %v3256_v37 }
 0x33f   : > { %v3275_v44 = vsel %vm1440_vm5, %v3273_v11, %v3274_v17  ;;  %v10803_v62 = vmax.f32 %v3146_v16, %v3260_v2  ;;  %v3277_v36 = vsel %vm1440_vm5, %v3274_v17, %v11870_v50  ;;  %v10808_v45 = vmax.f32 %v3147_v0, %v3262_v25 }
 0x340   : > { %v3412_v49 = vmax.f32 %v3148_v55, %v3261_v41  ;;  %v10810_v9 = vmax.f32 %v3149_v54, %v3265_v7  ;;  %v10812_v52 = vmax.f32 %v3150_v14, %v3267_v27  ;;  %v10814_v22 = vmax.f32 %v3152_v1, %v3270_v57 }
 0x341   : > { %v10816_v31 = vmax.f32 %v3153_v32, %v3272_v46  ;;  %v10818_v61 = vmax.f32 %v3155_v6, %v3275_v44  ;;  %v10820_v34 = vmax.f32 %v3156_v48, %v3277_v36  ;;  %v3517_v16 = vrot.slane %v10698_v8, 3 }
 0x342   : > { %v3518_v47 = vrot.slane %v10700_v39, 3  ;;  %v3520_v0 = vrot.slane %v10702_v3, 3  ;;  %v3522_v55 = vrot.slane %v10704_v24, 3  ;;  %v3523_v54 = vrot.slane %v10706_v42, 3 }
 0x343   : > { %v3525_v14 = vrot.slane %v10708_v4, 3  ;;  %v3527_v1 = vrot.slane %v10710_v51, 3  ;;  %v3528_v48 = vrot.slane %v10712_v10, 3  ;;  %v11877_v21 = vrot.slane %v10714_v56, 3 }
 0x344   : > { %v3519_v32 = vsel %vm1805_vm7, %v3517_v16, %v3518_v47  ;;  %v3521_v6 = vsel %vm1805_vm7, %v3518_v47, %v3520_v0  ;;  %v3524_v37 = vsel %vm1805_vm7, %v3522_v55, %v3523_v54  ;;  %v3532_v30 = vrot.slane %v10716_v23, 3 }
 0x345   : > { %v3526_v29 = vsel %vm1805_vm7, %v3523_v54, %v3525_v14  ;;  %v3533_v41 = vrot.slane %v10718_v60, 3  ;;  %v3529_v58 = vsel %vm1805_vm7, %v3527_v1, %v3528_v48  ;;  %v3531_v13 = vsel %vm1805_vm7, %v3528_v48, %v11877_v21  ;;  %v12221_v21 = vld [vmem:[#allocation6_spill] sm:$0xff] }
 0x346   : > { %v11873_v12 = vrot.slane %v10720_v28, 3  ;;  %v3537_v33 = vrot.slane %v10722_v15, 3  ;;  %v3538_v2 = vrot.slane %v10724_v43, 3  ;;  %v11869_v25 = vrot.slane %v10726_v35, 3 }
 0x347   : > { %v3534_v59 = vsel %vm1805_vm7, %v3532_v30, %v3533_v41  ;;  %v3671_v7 = vmax.f32 %v10795_v38, %v3519_v32  ;;  %v3672_v27 = vmax.f32 %v10797_v5, %v3521_v6  ;;  %v3673_v11 = vmax.f32 %v3409_v18, %v3520_v0 }
 0x348   : > { %v3536_v63 = vsel %vm1805_vm7, %v3533_v41, %v11873_v12  ;;  %v3674_v17 = vmax.f32 %v10803_v62, %v3524_v37  ;;  %v3539_v57 = vsel %vm1805_vm7, %v3537_v33, %v3538_v2  ;;  %v3541_v46 = vsel %vm1805_vm7, %v3538_v2, %v11869_v25 }
 0x349   : > { %v3675_v44 = vmax.f32 %v10808_v45, %v3526_v29  ;;  %v3676_v36 = vmax.f32 %v3412_v49, %v3525_v14  ;;  %v3677_v38 = vmax.f32 %v10810_v9, %v3529_v58  ;;  %v3678_v16 = vmax.f32 %v10812_v52, %v3531_v13 }
 0x34a   : > { %v3680_v47 = vmax.f32 %v10814_v22, %v3534_v59  ;;  %v3681_v5 = vmax.f32 %v10816_v31, %v3536_v63  ;;  %v3683_v18 = vmax.f32 %v10818_v61, %v3539_v57  ;;  %v3684_v62 = vmax.f32 %v10820_v34, %v3541_v46 }
 0x34b   : > { %v3781_v0 = vrot.slane %v10698_v8, 4  ;;  %v3782_v55 = vrot.slane %v10700_v39, 4  ;;  %v3784_v54 = vrot.slane %v10702_v3, 4  ;;  %v3786_v45 = vrot.slane %v10704_v24, 4 }
 0x34c   : > { %v3787_v49 = vrot.slane %v10706_v42, 4  ;;  %v3789_v9 = vrot.slane %v10708_v4, 4  ;;  %v3791_v22 = vrot.slane %v10710_v51, 4  ;;  %v3792_v31 = vrot.slane %v10712_v10, 4 }
 0x34d   : > { %v3783_v52 = vsel %vm395_vm0, %v3781_v0, %v3782_v55  ;;  %v11876_v61 = vrot.slane %v10714_v56, 4  ;;  %v3785_v8 = vsel %vm395_vm0, %v3782_v55, %v3784_v54  ;;  %v3796_v24 = vrot.slane %v10716_v23, 4 }
 0x34e   : > { %v3788_v39 = vsel %vm395_vm0, %v3786_v45, %v3787_v49  ;;  %v3790_v3 = vsel %vm395_vm0, %v3787_v49, %v3789_v9  ;;  %v3793_v42 = vsel %vm395_vm0, %v3791_v22, %v3792_v31  ;;  %v3797_v51 = vrot.slane %v10718_v60, 4  ;;  %v12203_v49 = vld [vmem:[#allocation69_spill] sm:$0xff]  ;;  %v12204_v22 = vld [vmem:[#allocation70_spill] sm:$0xff] }
 0x34f   : > { %v3795_v4 = vsel %vm395_vm0, %v3792_v31, %v11876_v61  ;;  %v11872_v10 = vrot.slane %v10720_v28, 4  ;;  %v3801_v34 = vrot.slane %v10722_v15, 4  ;;  %v3802_v14 = vrot.slane %v10724_v43, 4  ;;  %v12219_v61 = vld [vmem:[#allocation17_spill] sm:$0xff] }
 0x350   : > { %v11868_v1 = vrot.slane %v10726_v35, 4  ;;  %v10886_v32 = vmax.f32 %v3671_v7, %v3783_v52  ;;  %v3798_v23 = vsel %vm395_vm0, %v3796_v24, %v3797_v51  ;;  %v10892_v48 = vmax.f32 %v3672_v27, %v3785_v8  ;;  %v12196_v7 = vld [vmem:[#allocation67_spill] sm:$0xff]  ;;  %v12197_v27 = vld [vmem:[#allocation68_spill] sm:$0xff] }
 0x351   : > { %v3800_v6 = vsel %vm395_vm0, %v3797_v51, %v11872_v10  ;;  %v10894_v37 = vmax.f32 %v3673_v11, %v3784_v54  ;;  %v3803_v60 = vsel %vm395_vm0, %v3801_v34, %v3802_v14  ;;  %v10900_v43 = vmax.f32 %v3674_v17, %v3788_v39  ;;  %v12198_v17 = vld [vmem:[#allocation15_spill] sm:$0xff]  ;;  %v12205_v34 = vld [vmem:[#allocation58_spill] sm:$0xff] }
 0x352   : > { %v3805_v15 = vsel %vm395_vm0, %v3802_v14, %v11868_v1  ;;  %v10902_v29 = vmax.f32 %v3675_v44, %v3790_v3  ;;  %v10904_v30 = vmax.f32 %v3676_v36, %v3789_v9  ;;  %v10906_v41 = vmax.f32 %v3677_v38, %v3793_v42  ;;  %v12199_v38 = vld [vmem:[#allocation55_spill] sm:$0xff] }
 0x353   : > { %v10908_v58 = vmax.f32 %v3678_v16, %v3795_v4  ;;  %v3944_v13 = vmax.f32 %v3680_v47, %v3798_v23  ;;  %v3945_v33 = vmax.f32 %v3681_v5, %v3800_v6  ;;  %v3947_v59 = vmax.f32 %v3683_v18, %v3803_v60  ;;  %v12201_v5 = vld [vmem:[#allocation57_spill] sm:$0xff]  ;;  %v12207_v6 = vld [vmem:[#allocation60_spill] sm:$0xff] }
 0x354   : > { %v3948_v2 = vmax.f32 %v3684_v62, %v3805_v15  ;;  %v4004_v63 = vmax.f32 %v12196_v7, %v10886_v32  ;;  %v4005_v11 = vmax.f32 %v12197_v27, %v10892_v48  ;;  %v4007_v46 = vmax.f32 %v10886_v32, %v10900_v43 }
 0x355   : > { %v4008_v44 = vmax.f32 %v10892_v48, %v10902_v29  ;;  %v12200_v16 = vmax.f32 %v12199_v38, %v12196_v7  ;;  %v12202_v18 = vmax.f32 %v12201_v5, %v12197_v27  ;;  %v12206_v14 = vmax.f32 %v12205_v34, %v12196_v7  ;;  %v12211_v7 = vld [vmem:[#allocation18_spill] sm:$0xff] }
 0x356   : > { %v4064_v0 = vmax.f32 %v4004_v63, %v10900_v43  ;;  %v4065_v55 = vmax.f32 %v4005_v11, %v10902_v29  ;;  %v4067_v54 = vmax.f32 %v4007_v46, %v10906_v41  ;;  %v12208_v60 = vmax.f32 %v12207_v6, %v12197_v27  ;;  %v12209_v46 = vld [vmem:[#allocation35_spill] sm:$0xff] }
 0x357   : > { %v10926_v47 = vmax.f32 %v12200_v16, %v10886_v32  ;;  %v10932_v62 = vmax.f32 %v12202_v18, %v10892_v48  ;;  %v4068_v45 = vmax.f32 %v4008_v44, %v10908_v58  ;;  %v10952_v23 = vmax.f32 %v12206_v14, %v10886_v32  ;;  %v12210_v44 = vld [vmem:[#allocation34_spill] sm:$0xff] }
 0x358   : > { %v4124_v24 = vmax.f32 %v4064_v0, %v10906_v41  ;;  %v4125_v42 = vmax.f32 %v4065_v55, %v10908_v58  ;;  %v4127_v4 = vmax.f32 %v4067_v54, %v3944_v13  ;;  %v10958_v15 = vmax.f32 %v12208_v60, %v10892_v48  ;;  %v12212_v55 = vld [vmem:[#allocation28_spill] sm:$0xff]  ;;  %v12213_v54 = vld [vmem:[#allocation42_spill] sm:$0xff] }
 0x359   : > { %v4128_v51 = vmax.f32 %v4068_v45, %v3945_v33  ;;  %v5113_v11 = vpack.c.bf16 %v3785_v8, %v3783_v52  ;;  %v3985_v38 = vmax.f32 %v12210_v44, %v12209_v46  ;;  %v4305_v0 = vrot.slane %v12211_v7, 1  ;;  %v12214_v8 = vld [vmem:[#allocation13_spill] sm:$0xff]  ;;  %v12216_v44 = vld [vmem:[#allocation50_spill] sm:$0xff] }
 0x35a   : > { %v10960_v63 = vmax.f32 %v4124_v24, %v3944_v13  ;;  %v10964_v16 = vmax.f32 %v4125_v42, %v3945_v33  ;;  %v10966_v5 = vmax.f32 %v4127_v4, %v3947_v59  ;;  %v4306_v45 = vrot.slane %v12213_v54, 1  ;;  %v12215_v42 = vld [vmem:[#allocation39_spill] sm:$0xff] }
 0x35b   : > { %v10968_v18 = vmax.f32 %v4128_v51, %v3948_v2  ;;  %6744 = vmatmul.mubr.msk.bf16.gmra.mrb[60].mxu0 %vm672_vm2, %v5113_v11  ;;  %v4045_v27 = vmax.f32 %v3985_v38, %v12212_v55  ;;  %v4485_v13 = vrot.slane %v12211_v7, 2  ;;  %v4486_v52 = vrot.slane %v12213_v54, 2 }
 0x35c   : > { %6749 = vmatprep.mubr.msk.bf16.mxu0 %vm672_vm2, %v12214_v8  ;;  %v4665_v33 = vrot.slane %v12211_v7, 3  ;;  %v4666_v59 = vrot.slane %v12213_v54, 3  ;;  %v4845_v2 = vrot.slane %v12211_v7, 4  ;;  %v4846_v24 = vrot.slane %v12213_v54, 4  ;;  %v12217_v8 = vld [vmem:[#allocation22_spill] sm:$0xff] }
 0x35d   : > { %v4105_v4 = vmax.f32 %v4045_v27, %v12215_v42  ;;  %v4307_v51 = vsel %vm1075_vm4, %v4305_v0, %v4306_v45  ;;  %v4487_v34 = vsel %vm1440_vm5, %v4485_v13, %v4486_v52  ;;  %v3988_v14 = vmax.f32 %v12209_v46, %v12212_v55  ;;  %v12218_v27 = vld [vmem:[#allocation51_spill] sm:$0xff] }
 0x35e   : > { %v4412_v6 = vmax.f32 %v12211_v7, %v4307_v51  ;;  %v4667_v60 = vsel %vm1805_vm7, %v4665_v33, %v4666_v59  ;;  %v4847_v11 = vsel %vm395_vm0, %v4845_v2, %v4846_v24  ;;  %v4310_v38 = vrot.slane %v12216_v44, 1 }
 0x35f   : > { %v4165_v1 = vmax.f32 %v4105_v4, %v12217_v8  ;;  %v4048_v25 = vmax.f32 %v3988_v14, %v12215_v42  ;;  %v4311_v50 = vrot.slane %v12218_v27, 1  ;;  %v4490_v0 = vrot.slane %v12216_v44, 2 }
 0x360   : > { %v4592_v13 = vmax.f32 %v4412_v6, %v4487_v34  ;;  %v4491_v36 = vrot.slane %v12218_v27, 2  ;;  %v4670_v46 = vrot.slane %v12216_v44, 3  ;;  %v4671_v7 = vrot.slane %v12218_v27, 3 }
 0x361   : > { %v4308_v33 = vrot.slane %v4165_v1, 1  ;;  %v4488_v51 = vrot.slane %v4165_v1, 2  ;;  %v4668_v2 = vrot.slane %v4165_v1, 3  ;;  %v4848_v19 = vrot.slane %v4165_v1, 4 }
 0x362   : > { %v4772_v10 = vmax.f32 %v4592_v13, %v4667_v60  ;;  %v4108_v4 = vmax.f32 %v4048_v25, %v12217_v8  ;;  %v4312_v14 = vsel %vm1075_vm4, %v4310_v38, %v4311_v50  ;;  %v4492_v12 = vsel %vm1440_vm5, %v4490_v0, %v4491_v36  ;;  %v12220_v13 = vld [vmem:[#allocation49_spill] sm:$0xff] }
 0x363   : > { %v4309_v26 = vsel %vm1075_vm4, %v4306_v45, %v4308_v33  ;;  %v4489_v6 = vsel %vm1440_vm5, %v4486_v52, %v4488_v51  ;;  %v4669_v57 = vsel %vm1805_vm7, %v4666_v59, %v4668_v2  ;;  %v4849_v53 = vsel %vm395_vm0, %v4846_v24, %v4848_v19  ;;  %6750 = vmatmul.mubr.msk.bf16.vlgmr.msra.gmra.mrb[32].mxu0 %vm672_vm2, %v12219_v61 }
 0x364   : > { %v4413_v1 = vmax.f32 %v12213_v54, %v4309_v26  ;;  %v11008_v60 = vmax.f32 %v4772_v10, %v4847_v11  ;;  %v5123_v25 = vpack.c.bf16 %v4489_v6, %v4487_v34  ;;  %v4168_v38 = vmax.f32 %v4108_v4, %v12220_v13  ;;  %6753 = vmatprep.mubr.msk.bf16.mxu0 %vm672_vm2, %v12221_v21 }
 0x365   : > { %v4414_v45 = vmax.f32 %v12216_v44, %v4312_v14  ;;  %v4672_v52 = vsel %vm1805_vm7, %v4670_v46, %v4671_v7  ;;  %v4850_v59 = vrot.slane %v12216_v44, 4  ;;  %v4851_v19 = vrot.slane %v12218_v27, 4 }
 0x366   : > { %v4593_v24 = vmax.f32 %v4413_v1, %v4489_v6  ;;  %6800 = vmatmul.mubr.msk.bf16.gmra.mrb[0].mxu1 %vm672_vm2, %v5123_v25  ;;  %v4313_v26 = vrot.slane %v4168_v38, 1  ;;  %v4493_v61 = vrot.slane %v4168_v38, 2  ;;  %v4673_v10 = vrot.slane %v4168_v38, 3  ;;  %v12222_v25 = vld [vmem:[#allocation59_spill] sm:$0xff] }
 0x367   : > { %v4594_v54 = vmax.f32 %v4414_v45, %v4492_v12  ;;  %v4852_v34 = vsel %vm395_vm0, %v4850_v59, %v4851_v19  ;;  %v4853_v11 = vrot.slane %v4168_v38, 4  ;;  %v3991_v21 = vmax.f32 %v12212_v55, %v12215_v42  ;;  %v12223_v55 = vld [vmem:[#allocation61_spill] sm:$0xff] }
 0x368   : > { %v4773_v0 = vmax.f32 %v4593_v24, %v4669_v57  ;;  %v4314_v46 = vsel %vm1075_vm4, %v4311_v50, %v4313_v26  ;;  %v4494_v44 = vsel %vm1440_vm5, %v4491_v36, %v4493_v61  ;;  %v4674_v33 = vsel %vm1805_vm7, %v4671_v7, %v4673_v10  ;;  %v12224_v7 = vld [vmem:[#allocation5_spill] sm:$0xff]  ;;  %v11044_v24 = vpop.f32.mrb[48].mxu0 }
 0x369   : > { %v4415_v51 = vmax.f32 %v12218_v27, %v4314_v46  ;;  %v4774_v2 = vmax.f32 %v4594_v54, %v4672_v52  ;;  %v4854_v4 = vsel %vm395_vm0, %v4851_v19, %v4853_v11  ;;  %v5124_v14 = vpack.c.bf16 %v4494_v44, %v4492_v12  ;;  %v12225_v19 = vld [vmem:[#allocation14_spill] sm:$0xff]  ;;  %v12226_v11 = vld [vmem:[#allocation56_spill] sm:$0xff] }
 0x36a   : > { %v11026_v6 = vmax.f32 %v4773_v0, %v4849_v53  ;;  %v4051_v1 = vmax.f32 %v3991_v21, %v12217_v8  ;;  %v4315_v38 = vrot.slane %v12222_v25, 1  ;;  %v4316_v57 = vrot.slane %v12223_v55, 1 }
 0x36b   : > { %v4595_v45 = vmax.f32 %v4415_v51, %v4494_v44  ;;  %v11031_v50 = vmax.f32 %v4774_v2, %v4852_v34  ;;  %6803 = vmatprep.mubr.msk.bf16.mxu1 %vm672_vm2, %v5124_v14  ;;  %v4495_v36 = vrot.slane %v12222_v25, 2  ;;  %v4496_v27 = vrot.slane %v12223_v55, 2  ;;  %6754 = vmatmul.mubr.msk.bf16.gmra.mrb[36].mxu0 %vm672_vm2, %v12224_v7  ;;  %v11049_v34 = vpop.f32.mrb[49].mxu0  ;;  %v12227_v14 = vld [vmem:[#allocation71_spill] sm:$0xff] }
 0x36c   : > { %v4111_v53 = vmax.f32 %v4051_v1, %v12220_v13  ;;  %v4317_v12 = vsel %vm1075_vm4, %v4315_v38, %v4316_v57  ;;  %v4675_v52 = vrot.slane %v12222_v25, 3  ;;  %v4676_v59 = vrot.slane %v12223_v55, 3  ;;  %6757 = vmatprep.mubr.msk.bf16.mxu0 %vm672_vm2, %v12225_v19  ;;  %v11056_v51 = vpop.f32.mrb[50].mxu0  ;;  %v12228_v38 = vld [vmem:[#allocation72_spill] sm:$0xff] }
 0x36d   : > { %v4775_v26 = vmax.f32 %v4595_v45, %v4674_v33  ;;  %v4416_v61 = vmax.f32 %v12222_v25, %v4317_v12  ;;  %v4497_v10 = vsel %vm1440_vm5, %v4495_v36, %v4496_v27  ;;  %v4855_v54 = vrot.slane %v12222_v25, 4  ;;  %v11062_v45 = vpop.f32.mrb[51].mxu0 }
 0x36e   : > { %v4171_v21 = vmax.f32 %v4111_v53, %v12226_v11  ;;  %v4677_v0 = vsel %vm1805_vm7, %v4675_v52, %v4676_v59  ;;  %v4856_v46 = vrot.slane %v12223_v55, 4  ;;  %v3994_v44 = vmax.f32 %v12215_v42, %v12217_v8  ;;  %v11065_v52 = vpop.f32.mrb[52].mxu0 }
 0x36f   : > { %v11058_v33 = vmax.f32 %v4775_v26, %v4854_v4  ;;  %v4596_v2 = vmax.f32 %v4416_v61, %v4497_v10  ;;  %v4320_v1 = vrot.slane %v12227_v14, 1  ;;  %v4321_v25 = vrot.slane %v12228_v38, 1  ;;  %v11069_v26 = vpop.f32.mrb[53].mxu0 }
 0x370   : > { %v4318_v36 = vrot.slane %v4171_v21, 1  ;;  %v4498_v7 = vrot.slane %v4171_v21, 2  ;;  %v4678_v53 = vrot.slane %v4171_v21, 3  ;;  %v4857_v12 = vsel %vm395_vm0, %v4855_v54, %v4856_v46  ;;  %12229 = vst [vmem:[#allocation47_spill] sm:$0xff] %v11069_v26  ;;  %v11075_v31 = vpop.f32.mrb[54].mxu0 }
 0x371   : > { %v4776_v19 = vmax.f32 %v4596_v2, %v4677_v0  ;;  %v4858_v42 = vrot.slane %v4171_v21, 4  ;;  %v4054_v3 = vmax.f32 %v3994_v44, %v12220_v13  ;;  %v4322_v4 = vsel %vm1075_vm4, %v4320_v1, %v4321_v25  ;;  %12230 = vst [vmem:[#allocation40_spill] sm:$0xff] %v11075_v31  ;;  %v12231_v2 = vld [vmem:[#allocation10_spill] sm:$0xff]  ;;  %v11083_v1 = vpop.f32.mrb[55].mxu0  ;;  %v12260_v31 = vld [vmem:[#allocation33_spill] sm:$0xff] }
 0x372   : > { %v4319_v61 = vsel %vm1075_vm4, %v4316_v57, %v4318_v36  ;;  %v4499_v40 = vsel %vm1440_vm5, %v4496_v27, %v4498_v7  ;;  %v4679_v39 = vsel %vm1805_vm7, %v4676_v59, %v4678_v53  ;;  %v4418_v20 = vmax.f32 %v12227_v14, %v4322_v4  ;;  %12232 = vst [vmem:[#allocation48_spill] sm:$0xff] %v11083_v1  ;;  %v12233_v7 = vld [vmem:[#allocation12_spill] sm:$0xff] }
 0x373   : > { %v4417_v54 = vmax.f32 %v12223_v55, %v4319_v61  ;;  %v4859_v21 = vsel %vm395_vm0, %v4856_v46, %v4858_v42  ;;  %v11079_v0 = vmax.f32 %v4776_v19, %v4857_v12  ;;  %v5125_v44 = vpack.c.bf16 %v4499_v40, %v4497_v10  ;;  %6758 = vmatmul.mubr.msk.bf16.gmra.mrb[40].mxu0 %vm672_vm2, %v12231_v2 }
 0x374   : > { %v4114_v57 = vmax.f32 %v4054_v3, %v12226_v11  ;;  %v4500_v27 = vrot.slane %v12227_v14, 2  ;;  %v4501_v59 = vrot.slane %v12228_v38, 2  ;;  %v4680_v36 = vrot.slane %v12227_v14, 3  ;;  %6761 = vmatprep.mubr.msk.bf16.mxu0 %vm672_vm2, %v12233_v7 }
 0x375   : > { %v4597_v55 = vmax.f32 %v4417_v54, %v4499_v40  ;;  %6804 = vmatmul.mubr.msk.bf16.gmra.mrb[4].mxu1 %vm672_vm2, %v5125_v44  ;;  %v4681_v10 = vrot.slane %v12228_v38, 3  ;;  %v4860_v46 = vrot.slane %v12227_v14, 4  ;;  %v4861_v53 = vrot.slane %v12228_v38, 4 }
 0x376   : > { %v4174_v3 = vmax.f32 %v4114_v57, %v12198_v17  ;;  %v4502_v12 = vsel %vm1440_vm5, %v4500_v27, %v4501_v59  ;;  %v3997_v19 = vmax.f32 %v12217_v8, %v12220_v13  ;;  %v4325_v42 = vrot.slane %v10952_v23, 1 }
 0x377   : > { %v4777_v4 = vmax.f32 %v4597_v55, %v4679_v39  ;;  %v4598_v61 = vmax.f32 %v4418_v20, %v4502_v12  ;;  %v4682_v40 = vsel %vm1805_vm7, %v4680_v36, %v4681_v10  ;;  %v4862_v54 = vsel %vm395_vm0, %v4860_v46, %v4861_v53 }
 0x378   : > { %v4323_v44 = vrot.slane %v4174_v3, 1  ;;  %v4503_v2 = vrot.slane %v4174_v3, 2  ;;  %v4683_v14 = vrot.slane %v4174_v3, 3  ;;  %v4863_v7 = vrot.slane %v4174_v3, 4 }
 0x379   : > { %v11102_v9 = vmax.f32 %v4777_v4, %v4859_v21  ;;  %v4778_v57 = vmax.f32 %v4598_v61, %v4682_v40  ;;  %v4057_v27 = vmax.f32 %v3997_v19, %v12226_v11  ;;  %v4326_v1 = vrot.slane %v10958_v15, 1  ;;  %v12234_v4 = vld [vmem:[#allocation11_spill] sm:$0xff] }
 0x37a   : > { %v4324_v8 = vsel %vm1075_vm4, %v4321_v25, %v4323_v44  ;;  %v4504_v39 = vsel %vm1440_vm5, %v4501_v59, %v4503_v2  ;;  %v4684_v20 = vsel %vm1805_vm7, %v4681_v10, %v4683_v14  ;;  %v4864_v36 = vsel %vm395_vm0, %v4861_v53, %v4863_v7 }
 0x37b   : > { %v4419_v55 = vmax.f32 %v12228_v38, %v4324_v8  ;;  %v11111_v46 = vmax.f32 %v4778_v57, %v4862_v54  ;;  %v5126_v3 = vpack.c.bf16 %v4504_v39, %v4502_v12  ;;  %v4117_v21 = vmax.f32 %v4057_v27, %v12198_v17  ;;  %6762 = vmatmul.mubr.msk.bf16.gmra.mrb[44].mxu0 %vm672_vm2, %v12234_v4 }
 0x37c   : > { %v4327_v19 = vsel %vm1075_vm4, %v4325_v42, %v4326_v1  ;;  %v4505_v25 = vrot.slane %v10952_v23, 2  ;;  %v4506_v59 = vrot.slane %v10958_v15, 2  ;;  %v4685_v10 = vrot.slane %v10952_v23, 3 }
 0x37d   : > { %v4599_v61 = vmax.f32 %v4419_v55, %v4504_v39  ;;  %6807 = vmatprep.mubr.msk.bf16.mxu1 %vm672_vm2, %v5126_v3  ;;  %v4177_v38 = vmax.f32 %v4117_v21, %v10894_v37  ;;  %v4420_v53 = vmax.f32 %v10952_v23, %v4327_v19  ;;  %v4686_v12 = vrot.slane %v10958_v15, 3 }
 0x37e   : > { %v4507_v40 = vsel %vm1440_vm5, %v4505_v25, %v4506_v59  ;;  %v4865_v54 = vrot.slane %v10952_v23, 4  ;;  %v4866_v42 = vrot.slane %v10958_v15, 4  ;;  %v4000_v44 = vmax.f32 %v12220_v13, %v12226_v11 }
 0x37f   : > { %v4779_v2 = vmax.f32 %v4599_v61, %v4684_v20  ;;  %v4328_v14 = vrot.slane %v4177_v38, 1  ;;  %v4508_v7 = vrot.slane %v4177_v38, 2  ;;  %v4600_v57 = vmax.f32 %v4420_v53, %v4507_v40 }
 0x380   : > { %v4687_v27 = vsel %vm1805_vm7, %v4685_v10, %v4686_v12  ;;  %v4688_v8 = vrot.slane %v4177_v38, 3  ;;  %v4867_v39 = vsel %vm395_vm0, %v4865_v54, %v4866_v42  ;;  %v4868_v55 = vrot.slane %v4177_v38, 4 }
 0x381   : > { %v11131_v3 = vmax.f32 %v4779_v2, %v4864_v36  ;;  %v4329_v21 = vsel %vm1075_vm4, %v4326_v1, %v4328_v14  ;;  %v4509_v23 = vsel %vm1440_vm5, %v4506_v59, %v4508_v7  ;;  %v4780_v4 = vmax.f32 %v4600_v57, %v4687_v27 }
 0x382   : > { %v4421_v19 = vmax.f32 %v10958_v15, %v4329_v21  ;;  %v4689_v13 = vsel %vm1805_vm7, %v4686_v12, %v4688_v8  ;;  %v4869_v20 = vsel %vm395_vm0, %v4866_v42, %v4868_v55  ;;  %v5127_v25 = vpack.c.bf16 %v4509_v23, %v4507_v40 }
 0x383   : > { %v11138_v61 = vmax.f32 %v4780_v4, %v4867_v39  ;;  %v4060_v10 = vmax.f32 %v4000_v44, %v12198_v17  ;;  %v12235_v36 = vmax.f32 %v12203_v49, %v10886_v32  ;;  %v12236_v1 = vmax.f32 %v12204_v22, %v10892_v48 }
 0x384   : > { %v4601_v15 = vmax.f32 %v4421_v19, %v4509_v23  ;;  %6808 = vmatmul.mubr.msk.bf16.gmra.mrb[8].mxu1 %vm672_vm2, %v5127_v25  ;;  %v12237_v53 = vrot.slane %v10714_v56, 1  ;;  %v4003_v40 = vmax.f32 %v12226_v11, %v12198_v17  ;;  %v12238_v32 = vmax.f32 %v10926_v47, %v10900_v43 }
 0x385   : > { %v4178_v38 = vmax.f32 %v12235_v36, %v10900_v43  ;;  %v4179_v59 = vmax.f32 %v12236_v1, %v10902_v29  ;;  %v4120_v54 = vmax.f32 %v4060_v10, %v10894_v37  ;;  %v12239_v25 = vrot.slane %v10714_v56, 2 }
 0x386   : > { %v3151_v12 = vmax.f32 %v10714_v56, %v12237_v53  ;;  %v11159_v49 = vmax.f32 %v12238_v32, %v10906_v41  ;;  %v4781_v44 = vmax.f32 %v4601_v15, %v4689_v13  ;;  %v4063_v36 = vmax.f32 %v4003_v40, %v10894_v37 }
 0x387   : > { %v4330_v48 = vrot.slane %v4178_v38, 1  ;;  %v4331_v22 = vrot.slane %v4179_v59, 1  ;;  %v4510_v42 = vrot.slane %v4178_v38, 2  ;;  %v4511_v2 = vrot.slane %v4179_v59, 2 }
 0x388   : > { %v4690_v14 = vrot.slane %v4178_v38, 3  ;;  %v4691_v7 = vrot.slane %v4179_v59, 3  ;;  %v4180_v57 = vmax.f32 %v4120_v54, %v10904_v30  ;;  %v4870_v11 = vrot.slane %v4178_v38, 4 }
 0x389   : > { %v4332_v27 = vsel %vm1075_vm4, %v4330_v48, %v4331_v22  ;;  %v4871_v8 = vrot.slane %v4179_v59, 4  ;;  %v11164_v39 = vmax.f32 %v4781_v44, %v4869_v20  ;;  %v4512_v41 = vsel %vm1440_vm5, %v4510_v42, %v4511_v2 }
 0x38a   : > { %v4422_v43 = vmax.f32 %v4178_v38, %v4332_v27  ;;  %v4692_v47 = vsel %vm1805_vm7, %v4690_v14, %v4691_v7  ;;  %v4333_v55 = vrot.slane %v4180_v57, 1  ;;  %v4513_v21 = vrot.slane %v4180_v57, 2 }
 0x38b   : > { %v4693_v23 = vrot.slane %v4180_v57, 3  ;;  %v4872_v4 = vsel %vm395_vm0, %v4870_v11, %v4871_v8  ;;  %v4873_v13 = vrot.slane %v4180_v57, 4  ;;  %v3415_v10 = vmax.f32 %v3151_v12, %v12239_v25 }
 0x38c   : > { %v4602_v19 = vmax.f32 %v4422_v43, %v4512_v41  ;;  %v4334_v20 = vsel %vm1075_vm4, %v4331_v22, %v4333_v55  ;;  %v4514_v38 = vsel %vm1440_vm5, %v4511_v2, %v4513_v21  ;;  %v12240_v15 = vmax.f32 %v10932_v62, %v10902_v29 }
 0x38d   : > { %v4694_v1 = vsel %vm1805_vm7, %v4691_v7, %v4693_v23  ;;  %v4423_v32 = vmax.f32 %v4179_v59, %v4334_v20  ;;  %v4874_v48 = vsel %vm395_vm0, %v4871_v8, %v4873_v13  ;;  %v5128_v42 = vpack.c.bf16 %v4514_v38, %v4512_v41  ;;  %v12247_v20 = vld [vmem:[#allocation25_spill] sm:$0xff] }
 0x38e   : > { %v4182_v53 = vmax.f32 %v12240_v15, %v10908_v58  ;;  %v4782_v54 = vmax.f32 %v4602_v19, %v4692_v47  ;;  %v12241_v12 = vrot.slane %v10714_v56, 3  ;;  %v4123_v40 = vmax.f32 %v4063_v36, %v10904_v30  ;;  %v12245_v19 = vld [vmem:[#allocation23_spill] sm:$0xff] }
 0x38f   : > { %v4335_v22 = vrot.slane %v11159_v49, 1  ;;  %v4603_v14 = vmax.f32 %v4423_v32, %v4514_v38  ;;  %6811 = vmatprep.mubr.msk.bf16.mxu1 %vm672_vm2, %v5128_v42  ;;  %v4515_v29 = vrot.slane %v11159_v49, 2  ;;  %v12242_v62 = vrot.slane %v10714_v56, 4  ;;  %v12243_v56 = vld [vmem:[#allocation8_spill] sm:$0xff] }
 0x390   : > { %v3679_v44 = vmax.f32 %v3415_v10, %v12241_v12  ;;  %v4336_v2 = vrot.slane %v4182_v53, 1  ;;  %v11184_v7 = vmax.f32 %v4782_v54, %v4872_v4  ;;  %v4516_v58 = vrot.slane %v4182_v53, 2  ;;  %v12244_v4 = vld [vmem:[#allocation24_spill] sm:$0xff] }
 0x391   : > { %v4695_v27 = vrot.slane %v11159_v49, 3  ;;  %v4696_v11 = vrot.slane %v4182_v53, 3  ;;  %v4783_v8 = vmax.f32 %v4603_v14, %v4694_v1  ;;  %v4875_v47 = vrot.slane %v11159_v49, 4  ;;  %v12248_v1 = vld [vmem:[#allocation26_spill] sm:$0xff] }
 0x392   : > { %v11190_v59 = vmax.f32 %v3679_v44, %v12242_v62  ;;  %v4337_v57 = vsel %vm1075_vm4, %v4335_v22, %v4336_v2  ;;  %v4517_v41 = vsel %vm1440_vm5, %v4515_v29, %v4516_v58  ;;  %v4876_v23 = vrot.slane %v4182_v53, 4  ;;  %v12249_v22 = vld [vmem:[#allocation27_spill] sm:$0xff] }
 0x393   : > { %v4424_v43 = vmax.f32 %v11159_v49, %v4337_v57  ;;  %v4697_v21 = vsel %vm1805_vm7, %v4695_v27, %v4696_v11  ;;  %v12246_v13 = vmax.f32 %v12244_v4, %v12245_v19  ;;  %v11205_v10 = vmax.f32 %v4783_v8, %v4874_v48  ;;  %v12250_v57 = vld [vmem:[#allocation7_spill] sm:$0xff] }
 0x394   : > { %v4183_v55 = vmax.f32 %v4123_v40, %v11190_v59  ;;  %v4250_v38 = vrot.slane %v12247_v20, 1  ;;  %v4251_v15 = vrot.slane %v12248_v1, 1  ;;  %v4877_v42 = vsel %vm395_vm0, %v4875_v47, %v4876_v23 }
 0x395   : > { %v11203_v25 = vmax.f32 %v12246_v13, %v12243_v56  ;;  %v4604_v36 = vmax.f32 %v4424_v43, %v4517_v41  ;;  %v4253_v14 = vrot.slane %v12249_v22, 1  ;;  %v4255_v27 = vrot.slane %v12250_v57, 1 }
 0x396   : > { %v4338_v32 = vrot.slane %v4183_v55, 1  ;;  %v4518_v49 = vrot.slane %v4183_v55, 2  ;;  %v4698_v54 = vrot.slane %v4183_v55, 3  ;;  %v4878_v44 = vrot.slane %v4183_v55, 4 }
 0x397   : > { %v4784_v12 = vmax.f32 %v4604_v36, %v4697_v21  ;;  %v4252_v40 = vsel %vm1075_vm4, %v4250_v38, %v4251_v15  ;;  %v4254_v55 = vsel %vm1075_vm4, %v4251_v15, %v4253_v14  ;;  %v12251_v21 = vld [vmem:[#allocation9_spill] sm:$0xff]  ;;  %v4258_v19 = vrot.slane %v11203_v25, 1 }
 0x398   : > { %v4339_v29 = vsel %vm1075_vm4, %v4336_v2, %v4338_v32  ;;  %v4519_v48 = vsel %vm1440_vm5, %v4516_v58, %v4518_v49  ;;  %v4699_v62 = vsel %vm1805_vm7, %v4696_v11, %v4698_v54  ;;  %v4879_v43 = vsel %vm395_vm0, %v4876_v23, %v4878_v44 }
 0x399   : > { %v4425_v8 = vmax.f32 %v4182_v53, %v4339_v29  ;;  %v11217_v56 = vmax.f32 %v4784_v12, %v4877_v42  ;;  %v5129_v47 = vpack.c.bf16 %v4519_v48, %v4517_v41  ;;  %v4256_v4 = vrot.slane %v12251_v21, 1 }
 0x39a   : > { %v4390_v2 = vmax.f32 %v12247_v20, %v4252_v40  ;;  %v4391_v58 = vmax.f32 %v12248_v1, %v4254_v55  ;;  %v4430_v53 = vrot.slane %v12247_v20, 2  ;;  %v4431_v11 = vrot.slane %v12248_v1, 2 }
 0x39b   : > { %v4605_v13 = vmax.f32 %v4425_v8, %v4519_v48  ;;  %6812 = vmatmul.mubr.msk.bf16.gmra.mrb[12].mxu1 %vm672_vm2, %v5129_v47  ;;  %v4257_v23 = vsel %vm1075_vm4, %v4255_v27, %v4256_v4  ;;  %v4259_v41 = vsel %vm1075_vm4, %v4256_v4, %v4258_v19  ;;  %v4433_v36 = vrot.slane %v12249_v22, 2  ;;  %v11241_v27 = vpop.f32.mrb[56].mxu0 }
 0x39c   : > { %v4435_v38 = vrot.slane %v12250_v57, 2  ;;  %v4392_v32 = vmax.f32 %v12250_v57, %v4257_v23  ;;  %v4393_v49 = vmax.f32 %v12251_v21, %v4259_v41  ;;  %v4432_v54 = vsel %vm1440_vm5, %v4430_v53, %v4431_v11  ;;  %12252 = vst [vmem:[#allocation41_spill] sm:$0xff] %v11241_v27  ;;  %v11247_v19 = vpop.f32.mrb[57].mxu0  ;;  %v12255_v41 = vld [vmem:[#allocation19_spill] sm:$0xff] }
 0x39d   : > { %v4785_v15 = vmax.f32 %v4605_v13, %v4699_v62  ;;  %v4434_v42 = vsel %vm1440_vm5, %v4431_v11, %v4433_v36  ;;  %v4436_v12 = vrot.slane %v12251_v21, 2  ;;  %v4438_v44 = vrot.slane %v11203_v25, 2  ;;  %12253 = vst [vmem:[#allocation62_spill] sm:$0xff] %v11247_v19  ;;  %v11251_v53 = vpop.f32.mrb[58].mxu0  ;;  %v12259_v19 = vld [vmem:[#allocation3_spill] sm:$0xff] }
 0x39e   : > { %v4570_v40 = vmax.f32 %v4390_v2, %v4432_v54  ;;  %v4571_v29 = vmax.f32 %v4391_v58, %v4434_v42  ;;  %v4610_v48 = vrot.slane %v12247_v20, 3  ;;  %v4611_v62 = vrot.slane %v12248_v1, 3  ;;  %12254 = vst [vmem:[#allocation63_spill] sm:$0xff] %v11251_v53  ;;  %v11257_v54 = vpop.f32.mrb[59].mxu0 }
 0x39f   : > { %v11237_v14 = vmax.f32 %v4785_v15, %v4879_v43  ;;  %v4437_v8 = vsel %vm1440_vm5, %v4435_v38, %v4436_v12  ;;  %v4439_v47 = vsel %vm1440_vm5, %v4436_v12, %v4438_v44  ;;  %v4613_v55 = vrot.slane %v12249_v22, 3  ;;  %v12256_v38 = vld [vmem:[#allocation16_spill] sm:$0xff]  ;;  %12257 = vst [vmem:[#allocation64_spill] sm:$0xff] %v11257_v54 }
 0x3a0   : > { %v4615_v4 = vrot.slane %v12250_v57, 3  ;;  %v4572_v2 = vmax.f32 %v4392_v32, %v4437_v8  ;;  %v4573_v43 = vmax.f32 %v4393_v49, %v4439_v47  ;;  %v4612_v13 = vsel %vm1805_vm7, %v4610_v48, %v4611_v62  ;;  %v12258_v32 = vld [vmem:[#allocation20_spill] sm:$0xff] }
 0x3a1   : > { %v4616_v58 = vrot.slane %v12251_v21, 3  ;;  %v4614_v11 = vsel %vm1805_vm7, %v4611_v62, %v4613_v55  ;;  %v4618_v23 = vrot.slane %v11203_v25, 3  ;;  %v4625_v36 = vrot.slane %v12255_v41, 3 }
 0x3a2   : > { %v4626_v15 = vrot.slane %v12256_v38, 3  ;;  %v4628_v49 = vrot.slane %v12258_v32, 3  ;;  %v4750_v12 = vmax.f32 %v4570_v40, %v4612_v13  ;;  %v4751_v44 = vmax.f32 %v4571_v29, %v4614_v11 }
 0x3a3   : > { %v4617_v42 = vsel %vm1805_vm7, %v4615_v4, %v4616_v58  ;;  %v4619_v48 = vsel %vm1805_vm7, %v4616_v58, %v4618_v23  ;;  %v4790_v62 = vrot.slane %v12247_v20, 4  ;;  %v4791_v54 = vrot.slane %v12248_v1, 4 }
 0x3a4   : > { %v4627_v8 = vsel %vm1805_vm7, %v4625_v36, %v4626_v15  ;;  %v4752_v47 = vmax.f32 %v4572_v2, %v4617_v42  ;;  %v4629_v55 = vsel %vm1805_vm7, %v4626_v15, %v4628_v49  ;;  %v4753_v53 = vmax.f32 %v4573_v43, %v4619_v48  ;;  %v12262_v15 = vld [vmem:[#allocation4_spill] sm:$0xff]  ;;  %v12264_v48 = vld [vmem:[#allocation37_spill] sm:$0xff] }
 0x3a5   : > { %v4756_v27 = vmax.f32 %v12259_v19, %v4627_v8  ;;  %v4757_v4 = vmax.f32 %v12260_v31, %v4629_v55  ;;  %v4793_v26 = vrot.slane %v12249_v22, 4  ;;  %v4795_v40 = vrot.slane %v12250_v57, 4 }
 0x3a6   : > { %v4796_v29 = vrot.slane %v12251_v21, 4  ;;  %v4792_v13 = vsel %vm395_vm0, %v4790_v62, %v4791_v54  ;;  %v4798_v2 = vrot.slane %v11203_v25, 4  ;;  %v4805_v20 = vrot.slane %v12255_v41, 4  ;;  %v12261_v41 = vld [vmem:[#allocation36_spill] sm:$0xff]  ;;  %v12266_v62 = vld [vmem:[#allocation31_spill] sm:$0xff] }
 0x3a7   : > { %v4806_v43 = vrot.slane %v12256_v38, 4  ;;  %v4794_v19 = vsel %vm395_vm0, %v4791_v54, %v4793_v26  ;;  %v4808_v31 = vrot.slane %v12258_v32, 4  ;;  %v4930_v58 = vmax.f32 %v4750_v12, %v4792_v13  ;;  %v12263_v54 = vld [vmem:[#allocation30_spill] sm:$0xff]  ;;  %v12265_v32 = vld [vmem:[#allocation21_spill] sm:$0xff] }
 0x3a8   : > { %v4797_v1 = vsel %vm395_vm0, %v4795_v40, %v4796_v29  ;;  %v4799_v22 = vsel %vm395_vm0, %v4796_v29, %v4798_v2  ;;  %v4931_v21 = vmax.f32 %v4751_v44, %v4794_v19  ;;  %v4978_v38 = vmax.f32 %v12262_v15, %v12261_v41 }
 0x3a9   : > { %v4807_v57 = vsel %vm395_vm0, %v4805_v20, %v4806_v43  ;;  %v4932_v11 = vmax.f32 %v4752_v47, %v4797_v1  ;;  %v4809_v23 = vsel %vm395_vm0, %v4806_v43, %v4808_v31  ;;  %v4933_v25 = vmax.f32 %v4753_v53, %v4799_v22 }
 0x3aa   : > { %v4936_v36 = vmax.f32 %v4756_v27, %v4807_v57  ;;  %v4937_v42 = vmax.f32 %v4757_v4, %v4809_v23  ;;  %v4979_v12 = vmax.f32 %v12265_v32, %v12264_v48 }
 0x3ab   : > { %v4970_v26 = vmax.f32 %v4930_v58, %v4932_v11  ;;  %v4972_v49 = vmax.f32 %v4932_v11, %v12263_v54  ;;  %v4971_v8 = vmax.f32 %v4931_v21, %v4933_v25  ;;  %v4973_v55 = vmax.f32 %v4933_v25, %v12266_v62  ;;  %v12267_v21 = vld [vmem:[#allocation32_spill] sm:$0xff] }
 0x3ac   : > { %v4974_v44 = vmax.f32 %v12263_v54, %v4936_v36  ;;  %v4976_v47 = vmax.f32 %v4936_v36, %v12262_v15  ;;  %v4975_v40 = vmax.f32 %v12266_v62, %v4937_v42  ;;  %v4977_v4 = vmax.f32 %v4937_v42, %v12265_v32 }
 0x3ad   : > { %v5002_v53 = vmax.f32 %v4970_v26, %v12263_v54  ;;  %v5004_v27 = vmax.f32 %v4972_v49, %v4936_v36  ;;  %v5003_v29 = vmax.f32 %v4971_v8, %v12266_v62  ;;  %v5005_v13 = vmax.f32 %v4973_v55, %v4937_v42  ;;  %v12269_v62 = vld [vmem:[#allocation43_spill] sm:$0xff] }
 0x3ae   : > { %v5006_v2 = vmax.f32 %v4974_v44, %v12262_v15  ;;  %v5008_v20 = vmax.f32 %v4976_v47, %v12261_v41  ;;  %v5007_v1 = vmax.f32 %v4975_v40, %v12265_v32  ;;  %v5009_v31 = vmax.f32 %v4977_v4, %v12264_v48  ;;  %v12270_v47 = vld [vmem:[#allocation44_spill] sm:$0xff] }
 0x3af   : > { %v5034_v43 = vmax.f32 %v5002_v53, %v4936_v36  ;;  %v5036_v19 = vmax.f32 %v5004_v27, %v12262_v15  ;;  %v5035_v58 = vmax.f32 %v5003_v29, %v4937_v42  ;;  %v5037_v22 = vmax.f32 %v5005_v13, %v12265_v32  ;;  %v12268_v36 = vld [vmem:[#allocation38_spill] sm:$0xff] }
 0x3b0   : > { %v5038_v57 = vmax.f32 %v5006_v2, %v12261_v41  ;;  %v5040_v11 = vmax.f32 %v5008_v20, %v12267_v21  ;;  %v5039_v26 = vmax.f32 %v5007_v1, %v12264_v48  ;;  %v5041_v54 = vmax.f32 %v5009_v31, %v12268_v36  ;;  %v12272_v31 = vld [vmem:[#allocation46_spill] sm:$0xff] }
 0x3b1   : > { %v5066_v23 = vmax.f32 %v5034_v43, %v12262_v15  ;;  %v5068_v25 = vmax.f32 %v5036_v19, %v12261_v41  ;;  %v5067_v49 = vmax.f32 %v5035_v58, %v12265_v32  ;;  %v5069_v8 = vmax.f32 %v5037_v22, %v12264_v48 }
 0x3b2   : > { %v5070_v42 = vmax.f32 %v5038_v57, %v12267_v21  ;;  %v5072_v55 = vmax.f32 %v5040_v11, %v12269_v62  ;;  %v5071_v44 = vmax.f32 %v5039_v26, %v12268_v36  ;;  %v5073_v53 = vmax.f32 %v5041_v54, %v12270_v47 }
 0x3b3   : > { %v5010_v15 = vmax.f32 %v4978_v38, %v12267_v21  ;;  %v5011_v27 = vmax.f32 %v4979_v12, %v12268_v36  ;;  %v5130_v40 = vpack.c.bf16 %v5067_v49, %v5066_v23  ;;  %v5131_v4 = vpack.c.bf16 %v5069_v8, %v5068_v25  ;;  %v12274_v49 = vld [vmem:[#allocation74_spill] sm:$0xff] }
 0x3b4   : > { %v4980_v29 = vmax.f32 %v12261_v41, %v12267_v21  ;;  %v4981_v32 = vmax.f32 %v12264_v48, %v12268_v36  ;;  %v5132_v13 = vpack.c.bf16 %v5071_v44, %v5070_v42  ;;  %v5133_v2 = vpack.c.bf16 %v5073_v53, %v5072_v55  ;;  %v12271_v48 = vld [vmem:[#allocation45_spill] sm:$0xff]  ;;  %v12275_v53 = vld [vmem:[#allocation75_spill] sm:$0xff] }
 0x3b5   : > { %v5042_v20 = vmax.f32 %v5010_v15, %v12269_v62  ;;  %v5043_v43 = vmax.f32 %v5011_v27, %v12270_v47  ;;  %6817 = vmatprep.mubr.msk.bf16.mxu1 %vm672_vm2, %v5130_v40  ;;  %v4982_v19 = vmax.f32 %v12267_v21, %v12269_v62  ;;  %v4983_v41 = vmax.f32 %v12268_v36, %v12270_v47  ;;  %v12273_v36 = vld [vmem:[#allocation73_spill] sm:$0xff]  ;;  %v12276_v27 = vld [vmem:[#allocation76_spill] sm:$0xff] }
 0x3b6   : > { %v5012_v38 = vmax.f32 %v4980_v29, %v12269_v62  ;;  %v5013_v12 = vmax.f32 %v4981_v32, %v12270_v47  ;;  %6818 = vmatmul.mubr.msk.bf16.vlgmr.msra.gmra.mrb[16].mxu1 %vm672_vm2, %v5131_v4  ;;  %v4984_v22 = vmax.f32 %v12269_v62, %v12271_v48  ;;  %v4985_v57 = vmax.f32 %v12270_v47, %v12272_v31 }
 0x3b7   : > { %v5074_v1 = vmax.f32 %v5042_v20, %v12271_v48  ;;  %v5075_v58 = vmax.f32 %v5043_v43, %v12272_v31  ;;  %6821 = vmatprep.mubr.msk.bf16.mxu1 %vm672_vm2, %v5132_v13  ;;  %v5014_v23 = vmax.f32 %v4982_v19, %v12271_v48  ;;  %v5015_v25 = vmax.f32 %v4983_v41, %v12272_v31 }
 0x3b8   : > { %v5044_v11 = vmax.f32 %v5012_v38, %v12271_v48  ;;  %v5045_v21 = vmax.f32 %v5013_v12, %v12272_v31  ;;  %v5016_v54 = vmax.f32 %v4984_v22, %v12273_v36  ;;  %v5017_v8 = vmax.f32 %v4985_v57, %v12274_v49 }
 0x3b9   : > { %v5134_v26 = vpack.c.bf16 %v5075_v58, %v5074_v1  ;;  %v4986_v42 = vmax.f32 %v12271_v48, %v12273_v36  ;;  %v5046_v44 = vmax.f32 %v5014_v23, %v12273_v36  ;;  %v5047_v47 = vmax.f32 %v5015_v25, %v12274_v49 }
 0x3ba   : > { %v5076_v62 = vmax.f32 %v5044_v11, %v12273_v36  ;;  %v5077_v55 = vmax.f32 %v5045_v21, %v12274_v49  ;;  %v5048_v15 = vmax.f32 %v5016_v54, %v12275_v53  ;;  %v5049_v40 = vmax.f32 %v5017_v8, %v12276_v27 }
 0x3bb   : > { %v4987_v4 = vmax.f32 %v12272_v31, %v12274_v49  ;;  %v5018_v29 = vmax.f32 %v4986_v42, %v12275_v53  ;;  %v5078_v13 = vmax.f32 %v5046_v44, %v12275_v53  ;;  %v5079_v20 = vmax.f32 %v5047_v47, %v12276_v27 }
 0x3bc   : > { %v5135_v32 = vpack.c.bf16 %v5077_v55, %v5076_v62  ;;  %v4988_v43 = vmax.f32 %v12273_v36, %v12275_v53  ;;  %v11356_v38 = vmax.f32 %v5048_v15, %v11008_v60  ;;  %v11359_v12 = vmax.f32 %v5049_v40, %v11026_v6 }
 0x3bd   : > { %v5019_v19 = vmax.f32 %v4987_v4, %v12276_v27  ;;  %v5050_v41 = vmax.f32 %v5018_v29, %v11008_v60  ;;  %v5136_v48 = vpack.c.bf16 %v5079_v20, %v5078_v13  ;;  %v4989_v1 = vmax.f32 %v12274_v49, %v12276_v27 }
 0x3be   : > { %v5020_v31 = vmax.f32 %v4988_v43, %v11008_v60  ;;  %v4990_v58 = vmax.f32 %v12275_v53, %v11008_v60  ;;  %6822 = vmatmul.mubr.msk.bf16.gmra.mrb[20].mxu1 %vm672_vm2, %v5133_v2  ;;  %v5137_v22 = vpack.c.bf16 %v11359_v12, %v11356_v38  ;;  %v4991_v21 = vmax.f32 %v12276_v27, %v11026_v6 }
 0x3bf   : > { %v5051_v57 = vmax.f32 %v5019_v19, %v11026_v6  ;;  %v11373_v11 = vmax.f32 %v5050_v41, %v11031_v50  ;;  %6825 = vmatprep.mubr.msk.bf16.mxu1 %vm672_vm2, %v5134_v26  ;;  %v5021_v23 = vmax.f32 %v4989_v1, %v11026_v6  ;;  %v4992_v2 = vmax.f32 %v11008_v60, %v11031_v50 }
 0x3c0   : > { %v5052_v25 = vmax.f32 %v5020_v31, %v11031_v50  ;;  %v5022_v36 = vmax.f32 %v4990_v58, %v11031_v50  ;;  %v5023_v49 = vmax.f32 %v4991_v21, %v11058_v33  ;;  %v4993_v8 = vmax.f32 %v11026_v6, %v11058_v33 }
 0x3c1   : > { %v11384_v54 = vmax.f32 %v5051_v57, %v11058_v33  ;;  %v4994_v26 = vmax.f32 %v11031_v50, %v11079_v0  ;;  %v5053_v42 = vmax.f32 %v5021_v23, %v11058_v33  ;;  %v5024_v60 = vmax.f32 %v4992_v2, %v11079_v0 }
 0x3c2   : > { %v11393_v62 = vmax.f32 %v5052_v25, %v11079_v0  ;;  %v5054_v55 = vmax.f32 %v5022_v36, %v11079_v0  ;;  %v5055_v47 = vmax.f32 %v5023_v49, %v11102_v9  ;;  %v5025_v53 = vmax.f32 %v4993_v8, %v11102_v9 }
 0x3c3   : > { %v5138_v44 = vpack.c.bf16 %v11384_v54, %v11373_v11  ;;  %v4995_v6 = vmax.f32 %v11058_v33, %v11102_v9  ;;  %v11404_v50 = vmax.f32 %v5053_v42, %v11102_v9  ;;  %v5056_v27 = vmax.f32 %v5024_v60, %v11111_v46 }
 0x3c4   : > { %v11407_v15 = vmax.f32 %v5054_v55, %v11111_v46  ;;  %v5026_v40 = vmax.f32 %v4994_v26, %v11111_v46  ;;  %v11412_v4 = vmax.f32 %v5055_v47, %v11131_v3  ;;  %v5057_v29 = vmax.f32 %v5025_v53, %v11131_v3 }
 0x3c5   : > { %v5027_v13 = vmax.f32 %v4995_v6, %v11131_v3  ;;  %v4996_v33 = vmax.f32 %v11079_v0, %v11111_v46  ;;  %v5139_v20 = vpack.c.bf16 %v11404_v50, %v11393_v62  ;;  %v11421_v43 = vmax.f32 %v5056_v27, %v11138_v61 }
 0x3c6   : > { %v5058_v19 = vmax.f32 %v5026_v40, %v11138_v61  ;;  %v4997_v41 = vmax.f32 %v11102_v9, %v11131_v3  ;;  %6826 = vmatmul.mubr.msk.bf16.gmra.mrb[24].mxu1 %vm672_vm2, %v5135_v32  ;;  %v5140_v1 = vpack.c.bf16 %v11412_v4, %v11407_v15  ;;  %v11430_v31 = vmax.f32 %v5057_v29, %v11164_v39 }
 0x3c7   : > { %v5059_v0 = vmax.f32 %v5027_v13, %v11164_v39  ;;  %v5028_v58 = vmax.f32 %v4996_v33, %v11138_v61  ;;  %6829 = vmatprep.mubr.msk.bf16.mxu1 %vm672_vm2, %v5136_v48  ;;  %v12277_v9 = vrot.slane %v10720_v28, 1  ;;  %v12278_v21 = vmax.f32 %v12198_v17, %v10894_v37 }
 0x3c8   : > { %v11436_v57 = vmax.f32 %v5058_v19, %v11184_v7  ;;  %v5029_v11 = vmax.f32 %v4997_v41, %v11164_v39  ;;  %v5141_v25 = vpack.c.bf16 %v11430_v31, %v11421_v43  ;;  %v4340_v2 = vrot.slane %v10960_v63, 1 }
 0x3c9   : > { %v3154_v32 = vmax.f32 %v10720_v28, %v12277_v9  ;;  %v4066_v23 = vmax.f32 %v12278_v21, %v10904_v30  ;;  %v11449_v36 = vmax.f32 %v5059_v0, %v11205_v10  ;;  %v5060_v48 = vmax.f32 %v5028_v58, %v11184_v7 }
 0x3ca   : > { %v5061_v54 = vmax.f32 %v5029_v11, %v11205_v10  ;;  %v12279_v49 = vrot.slane %v10720_v28, 2  ;;  %v4341_v17 = vrot.slane %v10964_v16, 1  ;;  %v4520_v60 = vrot.slane %v10960_v63, 2 }
 0x3cb   : > { %v4126_v26 = vmax.f32 %v4066_v23, %v11190_v59  ;;  %v5142_v42 = vpack.c.bf16 %v11449_v36, %v11436_v57  ;;  %v11461_v55 = vmax.f32 %v5060_v48, %v11217_v56  ;;  %v4521_v47 = vrot.slane %v10964_v16, 2 }
 0x3cc   : > { %v3418_v8 = vmax.f32 %v3154_v32, %v12279_v49  ;;  %v11466_v53 = vmax.f32 %v5061_v54, %v11237_v14  ;;  %v12280_v6 = vrot.slane %v10720_v28, 3  ;;  %v4342_v40 = vsel %vm1075_vm4, %v4340_v2, %v4341_v17 }
 0x3cd   : > { %v4700_v29 = vrot.slane %v10960_v63, 3  ;;  %v4426_v13 = vmax.f32 %v10960_v63, %v4342_v40  ;;  %v4522_v33 = vsel %vm1440_vm5, %v4520_v60, %v4521_v47  ;;  %v4701_v19 = vrot.slane %v10964_v16, 3 }
 0x3ce   : > { %v3682_v27 = vmax.f32 %v3418_v8, %v12280_v6  ;;  %v4880_v41 = vrot.slane %v10960_v63, 4  ;;  %v5143_v0 = vpack.c.bf16 %v11466_v53, %v11461_v55  ;;  %v12281_v58 = vrot.slane %v10720_v28, 4  ;;  %6830 = vmatmul.mubr.msk.bf16.gmra.mrb[28].mxu1 %vm672_vm2, %v5137_v22 }
 0x3cf   : > { %v4881_v9 = vrot.slane %v10964_v16, 4  ;;  %v4998_v32 = vmax.f32 %v11111_v46, %v11138_v61  ;;  %v4606_v21 = vmax.f32 %v4426_v13, %v4522_v33  ;;  %v4702_v23 = vsel %vm1805_vm7, %v4700_v29, %v4701_v19  ;;  %6833 = vmatprep.mubr.msk.bf16.mxu1 %vm672_vm2, %v5138_v44 }
 0x3d0   : > { %v3946_v11 = vmax.f32 %v3682_v27, %v12281_v58  ;;  %v4999_v63 = vmax.f32 %v11131_v3, %v11164_v39  ;;  %v12282_v48 = vrot.slane %v10726_v35, 1  ;;  %v12283_v38 = vmax.f32 %v10894_v37, %v10904_v30 }
 0x3d1   : > { %v4882_v46 = vsel %vm395_vm0, %v4880_v41, %v4881_v9  ;;  %v5030_v54 = vmax.f32 %v4998_v32, %v11184_v7  ;;  %v4786_v22 = vmax.f32 %v4606_v21, %v4702_v23  ;;  %v12284_v3 = vrot.slane %v10726_v35, 2 }
 0x3d2   : > { %v3157_v28 = vmax.f32 %v10726_v35, %v12282_v48  ;;  %v4186_v2 = vmax.f32 %v4126_v26, %v3946_v11  ;;  %v4069_v12 = vmax.f32 %v12283_v38, %v11190_v59  ;;  %v5031_v49 = vmax.f32 %v4999_v63, %v11205_v10 }
 0x3d3   : > { %v4345_v60 = vrot.slane %v10966_v5, 1  ;;  %v4966_v40 = vmax.f32 %v4786_v22, %v4882_v46  ;;  %v5062_v29 = vmax.f32 %v5030_v54, %v11217_v56  ;;  %v12285_v37 = vrot.slane %v10726_v35, 3 }
 0x3d4   : > { %v3421_v8 = vmax.f32 %v3157_v28, %v12284_v3  ;;  %v4343_v6 = vrot.slane %v4186_v2, 1  ;;  %v4523_v44 = vrot.slane %v4186_v2, 2  ;;  %v4703_v26 = vrot.slane %v4186_v2, 3 }
 0x3d5   : > { %v4883_v27 = vrot.slane %v4186_v2, 4  ;;  %v5063_v13 = vmax.f32 %v5031_v49, %v11237_v14  ;;  %v5094_v21 = vmax.f32 %v5062_v29, %v4966_v40  ;;  %v12286_v23 = vrot.slane %v10726_v35, 4 }
 0x3d6   : > { %v3685_v30 = vmax.f32 %v3421_v8, %v12285_v37  ;;  %v4344_v59 = vsel %vm1075_vm4, %v4341_v17, %v4343_v6  ;;  %v4524_v33 = vsel %vm1440_vm5, %v4521_v47, %v4523_v44  ;;  %v4704_v41 = vsel %vm1805_vm7, %v4701_v19, %v4703_v26  ;;  %6834 = vmatmul.mubr.msk.bf16.gmra.mrb[0].mxu1 %vm672_vm2, %v5139_v20 }
 0x3d7   : > { %v4884_v58 = vsel %vm395_vm0, %v4881_v9, %v4883_v27  ;;  %v4427_v32 = vmax.f32 %v10964_v16, %v4344_v59  ;;  %v4129_v48 = vmax.f32 %v4069_v12, %v3946_v11  ;;  %v4346_v28 = vrot.slane %v10968_v18, 1  ;;  %6837 = vmatprep.mubr.msk.bf16.mxu1 %vm672_vm2, %v5140_v1 }
 0x3d8   : > { %v3949_v63 = vmax.f32 %v3685_v30, %v12286_v23  ;;  %v4525_v2 = vrot.slane %v10966_v5, 2  ;;  %v4526_v46 = vrot.slane %v10968_v18, 2  ;;  %v4705_v17 = vrot.slane %v10966_v5, 3 }
 0x3d9   : > { %v4607_v47 = vmax.f32 %v4427_v32, %v4524_v33  ;;  %v4706_v19 = vrot.slane %v10968_v18, 3  ;;  %v4885_v35 = vrot.slane %v10966_v5, 4  ;;  %v4347_v11 = vsel %vm1075_vm4, %v4345_v60, %v4346_v28 }
 0x3da   : > { %v4189_v16 = vmax.f32 %v4129_v48, %v3949_v63  ;;  %v4527_v9 = vsel %vm1440_vm5, %v4525_v2, %v4526_v46  ;;  %v4886_v54 = vrot.slane %v10968_v18, 4  ;;  %v5000_v62 = vmax.f32 %v11138_v61, %v11184_v7 }
 0x3db   : > { %v4787_v50 = vmax.f32 %v4607_v47, %v4704_v41  ;;  %v4428_v38 = vmax.f32 %v10966_v5, %v4347_v11  ;;  %v4707_v22 = vsel %vm1805_vm7, %v4705_v17, %v4706_v19  ;;  %v5001_v5 = vmax.f32 %v11164_v39, %v11205_v10  ;;  %v11587_v47 = vld [vmem:[%s11723_s4] ss:$0 sm:$0xff] }
 0x3dc   : > { %v4348_v20 = vrot.slane %v4189_v16, 1  ;;  %v4528_v12 = vrot.slane %v4189_v16, 2  ;;  %v4708_v49 = vrot.slane %v4189_v16, 3  ;;  %v4887_v15 = vsel %vm395_vm0, %v4885_v35, %v4886_v54 }
 0x3dd   : > { %v4888_v4 = vrot.slane %v4189_v16, 4  ;;  %v4967_v1 = vmax.f32 %v4787_v50, %v4884_v58  ;;  %v4608_v60 = vmax.f32 %v4428_v38, %v4527_v9  ;;  %v5032_v27 = vmax.f32 %v5000_v62, %v11217_v56 }
 0x3de   : > { %v4349_v3 = vsel %vm1075_vm4, %v4346_v28, %v4348_v20  ;;  %v4529_v8 = vsel %vm1440_vm5, %v4526_v46, %v4528_v12  ;;  %v4709_v61 = vsel %vm1805_vm7, %v4706_v19, %v4708_v49  ;;  %v5033_v37 = vmax.f32 %v5001_v5, %v11237_v14  ;;  %6838 = vmatmul.mubr.msk.bf16.gmra.mrb[4].mxu1 %vm672_vm2, %v5141_v25 }
 0x3df   : > { %v4429_v6 = vmax.f32 %v10968_v18, %v4349_v3  ;;  %v4889_v7 = vsel %vm395_vm0, %v4886_v54, %v4888_v4  ;;  %v5095_v44 = vmax.f32 %v5063_v13, %v4967_v1  ;;  %v4788_v26 = vmax.f32 %v4608_v60, %v4707_v22  ;;  %6841 = vmatprep.mubr.msk.bf16.mxu1 %vm672_vm2, %v5142_v42 }
 0x3e0   : > { %v5064_v59 = vmax.f32 %v5032_v27, %v4966_v40  ;;  %v5065_v10 = vmax.f32 %v5033_v37, %v4967_v1 }
 0x3e1   : > { %v4609_v29 = vmax.f32 %v4429_v6, %v4529_v8  ;;  %v5144_v18 = vpack.c.bf16 %v5095_v44, %v5094_v21  ;;  %v4968_v30 = vmax.f32 %v4788_v26, %v4887_v15 }
 0x3e3   : > { %v4789_v39 = vmax.f32 %v4609_v29, %v4709_v61  ;;  %v5096_v13 = vmax.f32 %v5064_v59, %v4968_v30 }
 0x3e5   : > { %v4969_v56 = vmax.f32 %v4789_v39, %v4889_v7 }
 0x3e6   : > { %6842 = vmatmul.mubr.msk.bf16.gmra.mrb[8].mxu1 %vm672_vm2, %v5143_v0 }
 0x3e7   : > { %v5097_v33 = vmax.f32 %v5065_v10, %v4969_v56  ;;  %6845 = vmatprep.mubr.msk.bf16.mxu1 %vm672_vm2, %v5144_v18 }
 0x3e9   : > { %v5145_v41 = vpack.c.bf16 %v5097_v33, %v5096_v13 }
 0x3ee   : > { %6846 = vmatmul.mubr.msk.bf16.gmra.mrb[12].mxu1 %vm672_vm2, %v5145_v41 }
 0x42e   : > { %v11560_v14 = vpop.f32.mrb[60].mxu0 }
 0x42f   : > { %v11562_v43 = vpop.f32.mrb[61].mxu0 }
 0x430   : > { %v11564_v31 = vpop.f32.mrb[62].mxu0 }
 0x431   : > { %v11566_v57 = vpop.f32.mrb[63].mxu0 }
 0x436   : > { %v6751_v25 = vpop.f32.mrb[32].mxu0 }
 0x437   : > { %v5447_v36 = vpop.f32.mrb[33].mxu0 }
 0x438   : > { %v6752_v42 = vpop.f32.mrb[34].mxu0 }
 0x439   : > { %v5450_v40 = vpop.f32.mrb[35].mxu0 }
 0x43e   : > { %v6755_v58 = vpop.f32.mrb[36].mxu0 }
 0x43f   : > { %v5463_v55 = vpop.f32.mrb[37].mxu0 }
 0x440   : > { %v6756_v53 = vpop.f32.mrb[38].mxu0 }
 0x441   : > { %v5466_v0 = vpop.f32.mrb[39].mxu0 }
 0x446   : > { %v11568_v32 = vpop.f32.mrb[40].mxu0 }
 0x447   : > { %v11570_v21 = vpop.f32.mrb[41].mxu0 }
 0x448   : > { %v11572_v23 = vpop.f32.mrb[42].mxu0 }
 0x449   : > { %v11574_v63 = vpop.f32.mrb[43].mxu0 }
 0x44e   : > { %v11576_v48 = vpop.f32.mrb[44].mxu0 }
 0x44f   : > { %v11578_v28 = vpop.f32.mrb[45].mxu0 }
 0x450   : > { %v11580_v2 = vpop.f32.mrb[46].mxu0 }
 0x451   : > { %v11582_v46 = vpop.f32.mrb[47].mxu0 }
 0x489   : > { %v6819_v17 = vpop.f32.mrb[16].mxu1 }
 0x48a   : > { %v6851_v16 = vadd.f32 %v6819_v17, %v6751_v25  ;;  %v5907_v19 = vpop.f32.mrb[17].mxu1 }
 0x48b   : > { %v6852_v35 = vadd.f32 %v5907_v19, %v5447_v36  ;;  %v6820_v11 = vpop.f32.mrb[18].mxu1 }
 0x48c   : > { %v6075_v9 = vadd.f32 %v6851_v16, %v11587_v47  ;;  %v6853_v54 = vadd.f32 %v6820_v11, %v6752_v42  ;;  %v5910_v62 = vpop.f32.mrb[19].mxu1 }
 0x48d   : > { %v6073_v50 = vadd.f32 %v6852_v35, %v11587_v47  ;;  %v6854_v20 = vadd.f32 %v5910_v62, %v5450_v40 }
 0x48e   : > { %vm6107_vm0 = vcmp.ge.f32.partialorder %v6075_v9, 0.0  ;;  %v6139_v38 = vmul.f32 0.1, %v6075_v9  ;;  %v6076_v12 = vadd.f32 %v6853_v54, %v11587_v47 }
 0x48f   : > { %vm6105_vm2 = vcmp.ge.f32.partialorder %v6073_v50, 0.0  ;;  %v6137_v22 = vmul.f32 0.1, %v6073_v50  ;;  %v6074_v49 = vadd.f32 %v6854_v20, %v11587_v47 }
 0x490   : > { %v6171_v15 = vsel %vm6107_vm0, %v6075_v9, %v6139_v38  ;;  %vm6108_vm4 = vcmp.ge.f32.partialorder %v6076_v12, 0.0  ;;  %v6140_v4 = vmul.f32 0.1, %v6076_v12 }
 0x491   : > { %v6564_v1 = vpack.c.bf16 %v6171_v15, %v6171_v15  ;;  %v6169_v3 = vsel %vm6105_vm2, %v6073_v50, %v6137_v22  ;;  %vm6106_vm5 = vcmp.ge.f32.partialorder %v6074_v49, 0.0  ;;  %v6138_v8 = vmul.f32 0.1, %v6074_v49  ;;  %v6823_v60 = vpop.f32.mrb[20].mxu1 }
 0x492   : > { %v6562_v6 = vpack.c.bf16 %v6169_v3, %v6169_v3  ;;  %v6172_v61 = vsel %vm6108_vm4, %v6076_v12, %v6140_v4  ;;  %v6855_v7 = vadd.f32 %v6823_v60, %v6755_v58  ;;  %v5923_v5 = vpop.f32.mrb[21].mxu1 }
 0x493   : > { %6331 = vst.msk [vmem:[%s11598_s17 + $0x8] sm:$0xf] %vm676_vm3, %v6564_v1  ;;  %v6565_v44 = vpack.c.bf16 %v6172_v61, %v6172_v61  ;;  %v6170_v26 = vsel %vm6106_vm5, %v6074_v49, %v6138_v8  ;;  %v6856_v27 = vadd.f32 %v5923_v5, %v5463_v55  ;;  %v6824_v29 = vpop.f32.mrb[22].mxu1 }
 0x494   : > { %6329 = vst.msk [vmem:[%s11598_s17] sm:$0xf] %vm676_vm3, %v6562_v6  ;;  %v6563_v37 = vpack.c.bf16 %v6170_v26, %v6170_v26  ;;  %v6079_v18 = vadd.f32 %v6855_v7, %v11587_v47  ;;  %v6857_v30 = vadd.f32 %v6824_v29, %v6756_v53  ;;  %v5926_v59 = vpop.f32.mrb[23].mxu1 }
 0x495   : > { %6332 = vst.msk [vmem:[%s11598_s17 + $0xc] sm:$0xf] %vm676_vm3, %v6565_v44  ;;  %v6077_v39 = vadd.f32 %v6856_v27, %v11587_v47  ;;  %v6858_v10 = vadd.f32 %v5926_v59, %v5466_v0 }
 0x496   : > { %6330 = vst.msk [vmem:[%s11598_s17 + $0x4] sm:$0xf] %vm676_vm3, %v6563_v37  ;;  %vm6111_vm6 = vcmp.ge.f32.partialorder %v6079_v18, 0.0  ;;  %v6143_v13 = vmul.f32 0.1, %v6079_v18  ;;  %v6080_v56 = vadd.f32 %v6857_v30, %v11587_v47 }
 0x497   : > { %vm6109_vm7 = vcmp.ge.f32.partialorder %v6077_v39, 0.0  ;;  %v6141_v33 = vmul.f32 0.1, %v6077_v39  ;;  %v6078_v41 = vadd.f32 %v6858_v10, %v11587_v47 }
 0x498   : > { %v6175_v25 = vsel %vm6111_vm6, %v6079_v18, %v6143_v13  ;;  %vm6112_vm13 = vcmp.ge.f32.partialorder %v6080_v56, 0.0  ;;  %v6144_v36 = vmul.f32 0.1, %v6080_v56 }
 0x499   : > { %v6568_v42 = vpack.c.bf16 %v6175_v25, %v6175_v25  ;;  %v6173_v40 = vsel %vm6109_vm7, %v6077_v39, %v6141_v33  ;;  %vm6110_vm14 = vcmp.ge.f32.partialorder %v6078_v41, 0.0  ;;  %v6142_v58 = vmul.f32 0.1, %v6078_v41  ;;  %v6827_v55 = vpop.f32.mrb[24].mxu1 }
 0x49a   : > { %v6566_v53 = vpack.c.bf16 %v6173_v40, %v6173_v40  ;;  %v6176_v0 = vsel %vm6112_vm13, %v6080_v56, %v6144_v36  ;;  %v6859_v17 = vadd.f32 %v6827_v55, %v11568_v32  ;;  %v5939_v16 = vpop.f32.mrb[25].mxu1 }
 0x49b   : > { %6335 = vst.msk [vmem:[%s11598_s17 + $0x18] sm:$0xf] %vm676_vm3, %v6568_v42  ;;  %v6569_v19 = vpack.c.bf16 %v6176_v0, %v6176_v0  ;;  %v6174_v35 = vsel %vm6110_vm14, %v6078_v41, %v6142_v58  ;;  %v6860_v11 = vadd.f32 %v5939_v16, %v11570_v21  ;;  %v6828_v9 = vpop.f32.mrb[26].mxu1 }
 0x49c   : > { %6333 = vst.msk [vmem:[%s11598_s17 + $0x10] sm:$0xf] %vm676_vm3, %v6566_v53  ;;  %v6567_v54 = vpack.c.bf16 %v6174_v35, %v6174_v35  ;;  %v6083_v62 = vadd.f32 %v6859_v17, %v11587_v47  ;;  %v6861_v50 = vadd.f32 %v6828_v9, %v11572_v23  ;;  %v5942_v20 = vpop.f32.mrb[27].mxu1 }
 0x49d   : > { %6336 = vst.msk [vmem:[%s11598_s17 + $0x1c] sm:$0xf] %vm676_vm3, %v6569_v19  ;;  %v6081_v32 = vadd.f32 %v6860_v11, %v11587_v47  ;;  %v6862_v38 = vadd.f32 %v5942_v20, %v11574_v63 }
 0x49e   : > { %6334 = vst.msk [vmem:[%s11598_s17 + $0x14] sm:$0xf] %vm676_vm3, %v6567_v54  ;;  %vm6115_vm15 = vcmp.ge.f32.partialorder %v6083_v62, 0.0  ;;  %v6147_v12 = vmul.f32 0.1, %v6083_v62  ;;  %v6084_v21 = vadd.f32 %v6861_v50, %v11587_v47 }
 0x49f   : > { %vm6113_vm1 = vcmp.ge.f32.partialorder %v6081_v32, 0.0  ;;  %v6145_v22 = vmul.f32 0.1, %v6081_v32  ;;  %v6082_v49 = vadd.f32 %v6862_v38, %v11587_v47 }
 0x4a0   : > { %v6179_v15 = vsel %vm6115_vm15, %v6083_v62, %v6147_v12  ;;  %vm6116_vm8 = vcmp.ge.f32.partialorder %v6084_v21, 0.0  ;;  %v6148_v23 = vmul.f32 0.1, %v6084_v21 }
 0x4a1   : > { %v6572_v4 = vpack.c.bf16 %v6179_v15, %v6179_v15  ;;  %v6177_v1 = vsel %vm6113_vm1, %v6081_v32, %v6145_v22  ;;  %vm6114_vm9 = vcmp.ge.f32.partialorder %v6082_v49, 0.0  ;;  %v6146_v3 = vmul.f32 0.1, %v6082_v49  ;;  %v6831_v63 = vpop.f32.mrb[28].mxu1 }
 0x4a2   : > { %v6570_v8 = vpack.c.bf16 %v6177_v1, %v6177_v1  ;;  %v6180_v60 = vsel %vm6116_vm8, %v6084_v21, %v6148_v23  ;;  %v6863_v6 = vadd.f32 %v6831_v63, %v11576_v48  ;;  %v5955_v61 = vpop.f32.mrb[29].mxu1 }
 0x4a3   : > { %6339 = vst.msk [vmem:[%s11598_s17 + $0x28] sm:$0xf] %vm676_vm3, %v6572_v4  ;;  %v6573_v7 = vpack.c.bf16 %v6180_v60, %v6180_v60  ;;  %v6178_v5 = vsel %vm6114_vm9, %v6082_v49, %v6146_v3  ;;  %v6864_v44 = vadd.f32 %v5955_v61, %v11578_v28  ;;  %v6832_v26 = vpop.f32.mrb[30].mxu1  ;;  %v12287_v4 = vld [vmem:[#allocation47_spill] sm:$0xff]  ;;  %v12288_v60 = vld [vmem:[#allocation40_spill] sm:$0xff] }
 0x4a4   : > { %6337 = vst.msk [vmem:[%s11598_s17 + $0x20] sm:$0xf] %vm676_vm3, %v6570_v8  ;;  %v6571_v27 = vpack.c.bf16 %v6178_v5, %v6178_v5  ;;  %v6087_v29 = vadd.f32 %v6863_v6, %v11587_v47  ;;  %v6865_v37 = vadd.f32 %v6832_v26, %v11580_v2  ;;  %v5958_v18 = vpop.f32.mrb[31].mxu1 }
 0x4a5   : > { %6340 = vst.msk [vmem:[%s11598_s17 + $0x2c] sm:$0xf] %vm676_vm3, %v6573_v7  ;;  %v6085_v48 = vadd.f32 %v6864_v44, %v11587_v47  ;;  %v6866_v30 = vadd.f32 %v5958_v18, %v11582_v46  ;;  %v12289_v7 = vld [vmem:[#allocation48_spill] sm:$0xff] }
 0x4a6   : > { %6338 = vst.msk [vmem:[%s11598_s17 + $0x24] sm:$0xf] %vm676_vm3, %v6571_v27  ;;  %vm6119_vm10 = vcmp.ge.f32.partialorder %v6087_v29, 0.0  ;;  %v6151_v59 = vmul.f32 0.1, %v6087_v29  ;;  %v6088_v28 = vadd.f32 %v6865_v37, %v11587_v47 }
 0x4a7   : > { %vm6117_vm11 = vcmp.ge.f32.partialorder %v6085_v48, 0.0  ;;  %v6149_v39 = vmul.f32 0.1, %v6085_v48  ;;  %v6086_v10 = vadd.f32 %v6866_v30, %v11587_v47 }
 0x4a8   : > { %v6183_v13 = vsel %vm6119_vm10, %v6087_v29, %v6151_v59  ;;  %vm6120_vm12 = vcmp.ge.f32.partialorder %v6088_v28, 0.0  ;;  %v6152_v2 = vmul.f32 0.1, %v6088_v28 }
 0x4a9   : > { %v6576_v56 = vpack.c.bf16 %v6183_v13, %v6183_v13  ;;  %v6181_v33 = vsel %vm6117_vm11, %v6085_v48, %v6149_v39  ;;  %vm6118_vm0 = vcmp.ge.f32.partialorder %v6086_v10, 0.0  ;;  %v6150_v41 = vmul.f32 0.1, %v6086_v10  ;;  %v6835_v46 = vpop.f32.mrb[0].mxu1  ;;  %v12290_v13 = vld [vmem:[#allocation41_spill] sm:$0xff] }
 0x4aa   : > { %v6574_v25 = vpack.c.bf16 %v6181_v33, %v6181_v33  ;;  %v6184_v36 = vsel %vm6120_vm12, %v6088_v28, %v6152_v2  ;;  %v6867_v42 = vadd.f32 %v6835_v46, %v11044_v24  ;;  %v5971_v40 = vpop.f32.mrb[1].mxu1  ;;  %v12291_v46 = vld [vmem:[#allocation62_spill] sm:$0xff] }
 0x4ab   : > { %6343 = vst.msk [vmem:[%s11598_s17 + $0x38] sm:$0xf] %vm676_vm3, %v6576_v56  ;;  %v6577_v58 = vpack.c.bf16 %v6184_v36, %v6184_v36  ;;  %v6182_v55 = vsel %vm6118_vm0, %v6086_v10, %v6150_v41  ;;  %v6868_v53 = vadd.f32 %v5971_v40, %v11049_v34  ;;  %v6836_v0 = vpop.f32.mrb[2].mxu1 }
 0x4ac   : > { %6341 = vst.msk [vmem:[%s11598_s17 + $0x30] sm:$0xf] %vm676_vm3, %v6574_v25  ;;  %v6575_v17 = vpack.c.bf16 %v6182_v55, %v6182_v55  ;;  %v6091_v16 = vadd.f32 %v6867_v42, %v11587_v47  ;;  %v6869_v19 = vadd.f32 %v6836_v0, %v11056_v51  ;;  %v5974_v35 = vpop.f32.mrb[3].mxu1 }
 0x4ad   : > { %6344 = vst.msk [vmem:[%s11598_s17 + $0x3c] sm:$0xf] %vm676_vm3, %v6577_v58  ;;  %v6089_v24 = vadd.f32 %v6868_v53, %v11587_v47  ;;  %v6870_v11 = vadd.f32 %v5974_v35, %v11062_v45  ;;  %v12292_v58 = vld [vmem:[#allocation63_spill] sm:$0xff] }
 0x4ae   : > { %6342 = vst.msk [vmem:[%s11598_s17 + $0x34] sm:$0xf] %vm676_vm3, %v6575_v17  ;;  %vm6123_vm2 = vcmp.ge.f32.partialorder %v6091_v16, 0.0  ;;  %v6155_v9 = vmul.f32 0.1, %v6091_v16  ;;  %v6092_v34 = vadd.f32 %v6869_v19, %v11587_v47  ;;  %v12293_v17 = vld [vmem:[#allocation64_spill] sm:$0xff] }
 0x4af   : > { %vm6121_vm4 = vcmp.ge.f32.partialorder %v6089_v24, 0.0  ;;  %v6153_v54 = vmul.f32 0.1, %v6089_v24  ;;  %v6090_v62 = vadd.f32 %v6870_v11, %v11587_v47 }
 0x4b0   : > { %v6187_v50 = vsel %vm6123_vm2, %v6091_v16, %v6155_v9  ;;  %vm6124_vm5 = vcmp.ge.f32.partialorder %v6092_v34, 0.0  ;;  %v6156_v51 = vmul.f32 0.1, %v6092_v34 }
 0x4b1   : > { %v6580_v20 = vpack.c.bf16 %v6187_v50, %v6187_v50  ;;  %v6185_v32 = vsel %vm6121_vm4, %v6089_v24, %v6153_v54  ;;  %vm6122_vm6 = vcmp.ge.f32.partialorder %v6090_v62, 0.0  ;;  %v6154_v38 = vmul.f32 0.1, %v6090_v62  ;;  %v6839_v45 = vpop.f32.mrb[4].mxu1 }
 0x4b2   : > { %v6578_v12 = vpack.c.bf16 %v6185_v32, %v6185_v32  ;;  %v6188_v21 = vsel %vm6124_vm5, %v6092_v34, %v6156_v51  ;;  %v6871_v22 = vadd.f32 %v6839_v45, %v11065_v52  ;;  %v5987_v49 = vpop.f32.mrb[5].mxu1 }
 0x4b3   : > { %6347 = vst.msk [vmem:[%s11598_s17 + $0x48] sm:$0xf] %vm676_vm3, %v6580_v20  ;;  %v6581_v15 = vpack.c.bf16 %v6188_v21, %v6188_v21  ;;  %v6186_v23 = vsel %vm6122_vm6, %v6090_v62, %v6154_v38  ;;  %v6872_v1 = vadd.f32 %v5987_v49, %v12287_v4  ;;  %v6840_v3 = vpop.f32.mrb[6].mxu1 }
 0x4b4   : > { %6345 = vst.msk [vmem:[%s11598_s17 + $0x40] sm:$0xf] %vm676_vm3, %v6578_v12  ;;  %v6579_v63 = vpack.c.bf16 %v6186_v23, %v6186_v23  ;;  %v6095_v8 = vadd.f32 %v6871_v22, %v11587_v47  ;;  %v6873_v6 = vadd.f32 %v6840_v3, %v12288_v60  ;;  %v5990_v61 = vpop.f32.mrb[7].mxu1 }
 0x4b5   : > { %6348 = vst.msk [vmem:[%s11598_s17 + $0x4c] sm:$0xf] %vm676_vm3, %v6581_v15  ;;  %v6093_v52 = vadd.f32 %v6872_v1, %v11587_v47  ;;  %v6874_v5 = vadd.f32 %v5990_v61, %v12289_v7 }
 0x4b6   : > { %6346 = vst.msk [vmem:[%s11598_s17 + $0x44] sm:$0xf] %vm676_vm3, %v6579_v63  ;;  %vm6127_vm7 = vcmp.ge.f32.partialorder %v6095_v8, 0.0  ;;  %v6159_v44 = vmul.f32 0.1, %v6095_v8  ;;  %v6096_v26 = vadd.f32 %v6873_v6, %v11587_v47 }
 0x4b7   : > { %vm6125_vm13 = vcmp.ge.f32.partialorder %v6093_v52, 0.0  ;;  %v6157_v27 = vmul.f32 0.1, %v6093_v52  ;;  %v6094_v29 = vadd.f32 %v6874_v5, %v11587_v47 }
 0x4b8   : > { %v6191_v37 = vsel %vm6127_vm7, %v6095_v8, %v6159_v44  ;;  %vm6128_vm14 = vcmp.ge.f32.partialorder %v6096_v26, 0.0  ;;  %v6160_v18 = vmul.f32 0.1, %v6096_v26 }
 0x4b9   : > { %v6584_v48 = vpack.c.bf16 %v6191_v37, %v6191_v37  ;;  %v6189_v30 = vsel %vm6125_vm13, %v6093_v52, %v6157_v27  ;;  %vm6126_vm15 = vcmp.ge.f32.partialorder %v6094_v29, 0.0  ;;  %v6158_v59 = vmul.f32 0.1, %v6094_v29  ;;  %v6843_v28 = vpop.f32.mrb[8].mxu1 }
 0x4ba   : > { %v6582_v39 = vpack.c.bf16 %v6189_v30, %v6189_v30  ;;  %v6192_v10 = vsel %vm6128_vm14, %v6096_v26, %v6160_v18  ;;  %v6875_v2 = vadd.f32 %v6843_v28, %v12290_v13  ;;  %v6003_v56 = vpop.f32.mrb[9].mxu1 }
 0x4bb   : > { %6351 = vst.msk [vmem:[%s11598_s17 + $0x58] sm:$0xf] %vm676_vm3, %v6584_v48  ;;  %v6585_v33 = vpack.c.bf16 %v6192_v10, %v6192_v10  ;;  %v6190_v41 = vsel %vm6126_vm15, %v6094_v29, %v6158_v59  ;;  %v6876_v25 = vadd.f32 %v6003_v56, %v12291_v46  ;;  %v6844_v36 = vpop.f32.mrb[10].mxu1 }
 0x4bc   : > { %6349 = vst.msk [vmem:[%s11598_s17 + $0x50] sm:$0xf] %vm676_vm3, %v6582_v39  ;;  %v6583_v42 = vpack.c.bf16 %v6190_v41, %v6190_v41  ;;  %v6099_v40 = vadd.f32 %v6875_v2, %v11587_v47  ;;  %v6877_v55 = vadd.f32 %v6844_v36, %v12292_v58  ;;  %v6006_v53 = vpop.f32.mrb[11].mxu1 }
 0x4bd   : > { %6352 = vst.msk [vmem:[%s11598_s17 + $0x5c] sm:$0xf] %vm676_vm3, %v6585_v33  ;;  %v6097_v0 = vadd.f32 %v6876_v25, %v11587_v47  ;;  %v6878_v16 = vadd.f32 %v6006_v53, %v12293_v17 }
 0x4be   : > { %6350 = vst.msk [vmem:[%s11598_s17 + $0x54] sm:$0xf] %vm676_vm3, %v6583_v42  ;;  %vm6131_vm1 = vcmp.ge.f32.partialorder %v6099_v40, 0.0  ;;  %v6163_v19 = vmul.f32 0.1, %v6099_v40  ;;  %v6100_v35 = vadd.f32 %v6877_v55, %v11587_v47 }
 0x4bf   : > { %vm6129_vm8 = vcmp.ge.f32.partialorder %v6097_v0, 0.0  ;;  %v6161_v24 = vmul.f32 0.1, %v6097_v0  ;;  %v6098_v11 = vadd.f32 %v6878_v16, %v11587_v47 }
 0x4c0   : > { %v6195_v9 = vsel %vm6131_vm1, %v6099_v40, %v6163_v19  ;;  %vm6132_vm9 = vcmp.ge.f32.partialorder %v6100_v35, 0.0  ;;  %v6164_v34 = vmul.f32 0.1, %v6100_v35 }
 0x4c1   : > { %v6588_v54 = vpack.c.bf16 %v6195_v9, %v6195_v9  ;;  %v6193_v62 = vsel %vm6129_vm8, %v6097_v0, %v6161_v24  ;;  %vm6130_vm10 = vcmp.ge.f32.partialorder %v6098_v11, 0.0  ;;  %v6162_v50 = vmul.f32 0.1, %v6098_v11  ;;  %v6847_v51 = vpop.f32.mrb[12].mxu1 }
 0x4c2   : > { %v6586_v20 = vpack.c.bf16 %v6193_v62, %v6193_v62  ;;  %v6196_v32 = vsel %vm6132_vm9, %v6100_v35, %v6164_v34  ;;  %v6879_v38 = vadd.f32 %v6847_v51, %v11560_v14  ;;  %v6019_v45 = vpop.f32.mrb[13].mxu1 }
 0x4c3   : > { %6355 = vst.msk [vmem:[%s11598_s17 + $0x68] sm:$0xf] %vm676_vm3, %v6588_v54  ;;  %v6589_v12 = vpack.c.bf16 %v6196_v32, %v6196_v32  ;;  %v6194_v21 = vsel %vm6130_vm10, %v6098_v11, %v6162_v50  ;;  %v6880_v22 = vadd.f32 %v6019_v45, %v11562_v43  ;;  %v6848_v49 = vpop.f32.mrb[14].mxu1 }
 0x4c4   : > { %6353 = vst.msk [vmem:[%s11598_s17 + $0x60] sm:$0xf] %vm676_vm3, %v6586_v20  ;;  %v6587_v15 = vpack.c.bf16 %v6194_v21, %v6194_v21  ;;  %v6103_v23 = vadd.f32 %v6879_v38, %v11587_v47  ;;  %v6881_v4 = vadd.f32 %v6848_v49, %v11564_v31  ;;  %v6022_v1 = vpop.f32.mrb[15].mxu1 }
 0x4c5   : > { %6356 = vst.msk [vmem:[%s11598_s17 + $0x6c] sm:$0xf] %vm676_vm3, %v6589_v12  ;;  %v6101_v14 = vadd.f32 %v6880_v22, %v11587_v47  ;;  %v6882_v3 = vadd.f32 %v6022_v1, %v11566_v57 }
 0x4c6   : > { %6354 = vst.msk [vmem:[%s11598_s17 + $0x64] sm:$0xf] %vm676_vm3, %v6587_v15  ;;  %vm6135_vm11 = vcmp.ge.f32.partialorder %v6103_v23, 0.0  ;;  %v6167_v43 = vmul.f32 0.1, %v6103_v23  ;;  %v6104_v63 = vadd.f32 %v6881_v4, %v11587_v47 }
 0x4c7   : > { %vm6133_vm12 = vcmp.ge.f32.partialorder %v6101_v14, 0.0  ;;  %v6165_v8 = vmul.f32 0.1, %v6101_v14  ;;  %v6102_v31 = vadd.f32 %v6882_v3, %v11587_v47 }
 0x4c8   : > { %v6199_v60 = vsel %vm6135_vm11, %v6103_v23, %v6167_v43  ;;  %vm6136_vm0 = vcmp.ge.f32.partialorder %v6104_v63, 0.0  ;;  %v6168_v6 = vmul.f32 0.1, %v6104_v63 }
 0x4c9   : > { %v6592_v61 = vpack.c.bf16 %v6199_v60, %v6199_v60  ;;  %v6197_v52 = vsel %vm6133_vm12, %v6101_v14, %v6165_v8  ;;  %vm6134_vm2 = vcmp.ge.f32.partialorder %v6102_v31, 0.0  ;;  %v6166_v57 = vmul.f32 0.1, %v6102_v31 }
 0x4ca   : > { %v6590_v7 = vpack.c.bf16 %v6197_v52, %v6197_v52  ;;  %v6200_v5 = vsel %vm6136_vm0, %v6104_v63, %v6168_v6 }
 0x4cb   : > { %6359 = vst.msk [vmem:[%s11598_s17 + $0x78] sm:$0xf] %vm676_vm3, %v6592_v61  ;;  %v6593_v44 = vpack.c.bf16 %v6200_v5, %v6200_v5  ;;  %v6198_v26 = vsel %vm6134_vm2, %v6102_v31, %v6166_v57 }
 0x4cc   : > { %6357 = vst.msk [vmem:[%s11598_s17 + $0x70] sm:$0xf] %vm676_vm3, %v6590_v7  ;;  %v6591_v27 = vpack.c.bf16 %v6198_v26, %v6198_v26 }
 0x4cd   : > { %6360 = vst.msk [vmem:[%s11598_s17 + $0x7c] sm:$0xf] %vm676_vm3, %v6593_v44 }
 0x4ce   : > { %6358 = vst.msk [vmem:[%s11598_s17 + $0x74] sm:$0xf] %vm676_vm3, %v6591_v27 }
 0x4cf PF: > { %s15_s18 = sadd.s32 1, %s6985_s18  }
 0x4d0   : > { %p12_p4 = scmp.ge.s32.totalorder %s15_s18, 4  }
 0x4d2   :  { %14 = sbr.rel (!%p12_p4) target bundleno = 1 (0x1), region = 74 }

</bundles_post_ra>
